<compile_context>
chip_gen: v5e
topology: v5e:2x2
jax: 0.10.0
libtpu: 0.0.40
codegen_flags: <defaults>
</compile_context>

<pallas_src>
import functools
import math

import jax
import jax.numpy as jnp
from jax import lax
from jax.experimental import pallas as pl
from jax.experimental.pallas import tpu as pltpu

F32 = jnp.float32
BF16 = jnp.bfloat16
BN_EPS = 1e-5
N_BOTTLENECK = 3


# ----------------------------------------------------------------------------
# Fused C3 kernel: one batch image per grid step, whole chain in VMEM
# ----------------------------------------------------------------------------
def _c3_fused_kernel(x_ref, w_in_ref, s_in_ref, w1_ref, s1_ref, w2_ref, s2_ref,
                     w_out_ref, s_out_ref, o_ref, pad_ref, *, H, W, C, CH):
    HW = H * W

    def silu(v):  # v is f32; exp + approx reciprocal both go to the EUP slot
        return v * pl.reciprocal(1.0 + jnp.exp(-v), approx=True)

    def mm(a, w_bf16):  # bf16 MXU matmul with f32 accumulation
        return jnp.dot(a.astype(BF16), w_bf16, preferred_element_type=jnp.float32)

    # --- merged 1x1 stem: branch1-CBS and branch2-CBS share the input x -----
    x = x_ref[0]                                               # (HW, 2C) bf16
    t = silu(jnp.dot(x, w_in_ref[...], preferred_element_type=jnp.float32)
             + s_in_ref[...])                                  # (HW, 2C) f32
    b1 = t[:, :C]                                              # branch1 stem
    b2 = t[:, C:]                                              # branch2 (for concat)

    # Zero the spatially padded scratch once; its border stays zero for every
    # bottleneck (only the interior window is overwritten below).
    pad_ref[...] = jnp.zeros(pad_ref.shape, pad_ref.dtype)

    # --- 3x Bottleneck (shortcut=False per the PyTorch module defaults) -----
    for i in range(N_BOTTLENECK):
        # cv1: 1x1, C -> CH
        h = silu(mm(b1, w1_ref[i]) + s1_ref[i])                # (HW, CH) f32
        # cv2: 3x3 'same', CH -> C, as a 9-tap shifted-window accumulation.
        # Interior is stored at sublane offset 8 (aligned); taps read at
        # offsets 7/8/9 (cheap shifted loads); border columns/rows stay zero.
        pad_ref[1:H + 1, 8:8 + W, :] = h.reshape(H, W, CH)
        acc = jnp.zeros((HW, C), jnp.float32)
        for ky in range(3):
            for kx in range(3):
                tap = pad_ref[ky:ky + H, 7 + kx:7 + kx + W, :].reshape(HW, CH)
                acc = acc + mm(tap, w2_ref[i, ky * 3 + kx])
        b1 = silu(acc + s2_ref[i])                             # (HW, C) f32

    # --- output CBS on concat([b1, b2], channel): split-K matmul ------------
    w_out = w_out_ref[...]
    y = mm(b1, w_out[:C]) + mm(b2, w_out[C:]) + s_out_ref[...]
    o_ref[0] = silu(y).astype(o_ref.dtype)


def c3_forward(params, x_nchw, *, channel, keep_added_channel):
    """C3 forward. x_nchw: (B, 2*channel, H, W) f32 -> (B, cout, H, W) f32."""
    B, C2, H, W = x_nchw.shape
    assert C2 == 2 * channel and channel % 2 == 0
    assert W % 8 == 0, "W must be a multiple of 8 (sublane alignment)"
    CH = channel // 2
    cout = 2 * channel if keep_added_channel else channel
    HW = H * W

    x = jnp.transpose(x_nchw, (0, 2, 3, 1)).reshape(B, HW, C2).astype(BF16)

    def resident(arr):  # whole array, constant index map -> stays in VMEM
        nd = arr.ndim
        return pl.BlockSpec(arr.shape, lambda b: (0,) * nd)

    kernel = functools.partial(_c3_fused_kernel, H=H, W=W, C=channel, CH=CH)

    y = pl.pallas_call(
        kernel,
        out_shape=jax.ShapeDtypeStruct((B, HW, cout), F32),
        grid=(B,),
        in_specs=[
            pl.BlockSpec((1, HW, C2), lambda b: (b, 0, 0)),    # activation image
            resident(params["w_in"]), resident(params["s_in"]),
            resident(params["w1"]), resident(params["s1"]),
            resident(params["w2"]), resident(params["s2"]),
            resident(params["w_out"]), resident(params["s_out"]),
        ],
        out_specs=pl.BlockSpec((1, HW, cout), lambda b: (b, 0, 0)),
        scratch_shapes=[pltpu.VMEM((H + 2, W + 16, CH), F32)],  # padded 3x3 window
        compiler_params=pltpu.CompilerParams(
            dimension_semantics=("parallel",)),  # batch axis -> both TCs on v7x
    )(x, params["w_in"], params["s_in"], params["w1"], params["s1"],
      params["w2"], params["s2"], params["w_out"], params["s_out"])

    return jnp.transpose(y.reshape(B, H, W, cout), (0, 3, 1, 2))


# ----------------------------------------------------------------------------
# Parameter init (PyTorch layout) and one-time folding / relayout
# ----------------------------------------------------------------------------
def init_cbs_raw(key, cin, cout, k):
    kw, kb, k1, k2, k3, k4 = jax.random.split(key, 6)
    return {
        "w": jax.random.normal(kw, (cout, cin, k, k), F32) / math.sqrt(cin * k * k),
        "b": 0.05 * jax.random.normal(kb, (cout,), F32),
        "bn": {
            "gamma": 1.0 + 0.1 * jax.random.normal(k1, (cout,), F32),
            "beta": 0.1 * jax.random.normal(k2, (cout,), F32),
            "mean": 0.1 * jax.random.normal(k3, (cout,), F32),
            "var": 1.0 + 0.1 * jnp.abs(jax.random.normal(k4, (cout,), F32)),
        },
    }


def init_c3_raw(key, channel, keep_added_channel):
    ks = jax.random.split(key, 6)
    hidden = channel // 2
    cout = channel * 2 if keep_added_channel else channel
    bnecks = []
    for i in range(N_BOTTLENECK):
        k1, k2 = jax.random.split(ks[1 + i])
        bnecks.append({"cv1": init_cbs_raw(k1, channel, hidden, 1),
                       "cv2": init_cbs_raw(k2, hidden, channel, 3)})
    return {
        "branch1_cbs": init_cbs_raw(ks[0], channel * 2, channel, 1),
        "bnecks": bnecks,
        "branch2": init_cbs_raw(ks[4], channel * 2, channel, 1),
        "out": init_cbs_raw(ks[5], channel * 2, cout, 1),
    }


def _fold(p, k):
    """Fold BN(eval)+bias into the conv: per-tap (cin, cout) weight + shift."""
    scale = p["bn"]["gamma"] / jnp.sqrt(p["bn"]["var"] + BN_EPS)
    shift = p["bn"]["beta"] + (p["b"] - p["bn"]["mean"]) * scale
    cout, cin = p["w"].shape[0], p["w"].shape[1]
    w = jnp.transpose(p["w"], (2, 3, 1, 0)) * scale          # (k,k,cin,cout)
    return w.reshape(k * k, cin, cout), shift


def prep_c3_params(raw):
    w_b1, s_b1 = _fold(raw["branch1_cbs"], 1)
    w_b2, s_b2 = _fold(raw["branch2"], 1)
    w1s, s1s, w2s, s2s = [], [], [], []
    for bp in raw["bnecks"]:
        w1, s1 = _fold(bp["cv1"], 1)
        w2, s2 = _fold(bp["cv2"], 3)
        w1s.append(w1[0]); s1s.append(s1[None, :])
        w2s.append(w2);    s2s.append(s2[None, :])
    w_out, s_out = _fold(raw["out"], 1)
    return {
        # merged stem: columns [0:C] = branch1 CBS, [C:2C] = branch2 CBS
        "w_in": jnp.concatenate([w_b1[0], w_b2[0]], axis=1).astype(BF16),
        "s_in": jnp.concatenate([s_b1, s_b2])[None, :].astype(F32),
        "w1": jnp.stack(w1s).astype(BF16), "s1": jnp.stack(s1s).astype(F32),
        "w2": jnp.stack(w2s).astype(BF16), "s2": jnp.stack(s2s).astype(F32),
        "w_out": w_out[0].astype(BF16), "s_out": s_out[None, :].astype(F32),
    }


# ----------------------------------------------------------------------------
# Independent full-precision reference (NCHW, lax.conv + BN(eval) + SiLU)
# ----------------------------------------------------------------------------
def _cbs_reference(p, x, k):
    pad = k // 2
    y = lax.conv_general_dilated(x, p["w"], window_strides=(1, 1),
                                 padding=[(pad, pad), (pad, pad)],
                                 dimension_numbers=("NCHW", "OIHW", "NCHW"))
    y = y + p["b"][None, :, None, None]
    bn = p["bn"]
    y = ((y - bn["mean"][None, :, None, None])
         / jnp.sqrt(bn["var"][None, :, None, None] + BN_EPS)
         * bn["gamma"][None, :, None, None] + bn["beta"][None, :, None, None])
    return y * jax.nn.sigmoid(y)


def c3_reference(raw, x):
    b1 = _cbs_reference(raw["branch1_cbs"], x, 1)
    for bp in raw["bnecks"]:
        h = _cbs_reference(bp["cv1"], b1, 1)
        b1 = _cbs_reference(bp["cv2"], h, 3)       # shortcut=False
    b2 = _cbs_reference(raw["branch2"], x, 1)
    return _cbs_reference(raw["out"], jnp.concatenate([b1, b2], axis=1), 1)


if __name__ == "__main__":
    batch, channel, H, W = 2, 32, 16, 16
    keep_added_channel = False

    key = jax.random.PRNGKey(0)
    kp, kx = jax.random.split(key)
    raw = init_c3_raw(kp, channel, keep_added_channel)
    params = prep_c3_params(raw)
    x = jax.random.normal(kx, (batch, 2 * channel, H, W), F32)

    fwd = jax.jit(functools.partial(c3_forward, channel=channel,
                                    keep_added_channel=keep_added_channel))
    y = jax.block_until_ready(fwd(params, x))

    out_ch = 2 * channel if keep_added_channel else channel
    assert y.shape == (batch, out_ch, H, W)
    assert bool(jnp.all(jnp.isfinite(y)))

    # Validate against the independent f32 NCHW conv+BN+SiLU reference
    # (catches folding / relayout / in-kernel 9-tap conv bugs; remaining
    # difference is bf16 rounding + the approx-reciprocal sigmoid).
    ref = jax.block_until_ready(jax.jit(c3_reference)(raw, x))
    err = float(jnp.max(jnp.abs(y - ref)) / (jnp.max(jnp.abs(ref)) + 1e-6))
    assert err < 0.1, f"kernel/ref mismatch: normalized max err {err}"

    print("KERNEL_OK")
</pallas_src>

<mosaic_0001>
module attributes {stable_mosaic.version = 11 : i64} {
  func.func @_c3_fused_kernel(%arg0: i32, %arg1: memref<1x256x64xbf16, #tpu.memory_space<vmem>>, %arg2: memref<64x64xbf16, #tpu.memory_space<vmem>>, %arg3: memref<1x64xf32, #tpu.memory_space<vmem>>, %arg4: memref<3x32x16xbf16, #tpu.memory_space<vmem>>, %arg5: memref<3x1x16xf32, #tpu.memory_space<vmem>>, %arg6: memref<3x9x16x32xbf16, #tpu.memory_space<vmem>>, %arg7: memref<3x1x32xf32, #tpu.memory_space<vmem>>, %arg8: memref<64x32xbf16, #tpu.memory_space<vmem>>, %arg9: memref<1x32xf32, #tpu.memory_space<vmem>>, %arg10: memref<1x256x32xf32, #tpu.memory_space<vmem>>, %arg11: memref<18x32x16xf32, #tpu.memory_space<vmem>>) attributes {dimension_semantics = [#tpu.dimension_semantics<parallel>], iteration_bounds = array<i64: 2>, scalar_prefetch = 0 : i64, scratch_operands = 1 : i64, tpu.core_type = #tpu.core_type<tc>, window_params = [{transform_indices = @transform_0, window_bounds = array<i64: 1, 256, 64>}, {pipeline_mode = #tpu.pipeline_mode<synchronous>, transform_indices = @transform_1, window_bounds = array<i64: 64, 64>}, {pipeline_mode = #tpu.pipeline_mode<synchronous>, transform_indices = @transform_2, window_bounds = array<i64: 1, 64>}, {pipeline_mode = #tpu.pipeline_mode<synchronous>, transform_indices = @transform_3, window_bounds = array<i64: 3, 32, 16>}, {pipeline_mode = #tpu.pipeline_mode<synchronous>, transform_indices = @transform_4, window_bounds = array<i64: 3, 1, 16>}, {pipeline_mode = #tpu.pipeline_mode<synchronous>, transform_indices = @transform_5, window_bounds = array<i64: 3, 9, 16, 32>}, {pipeline_mode = #tpu.pipeline_mode<synchronous>, transform_indices = @transform_6, window_bounds = array<i64: 3, 1, 32>}, {pipeline_mode = #tpu.pipeline_mode<synchronous>, transform_indices = @transform_7, window_bounds = array<i64: 64, 32>}, {pipeline_mode = #tpu.pipeline_mode<synchronous>, transform_indices = @transform_8, window_bounds = array<i64: 1, 32>}, {transform_indices = @transform_9, window_bounds = array<i64: 1, 256, 32>}]} {
    %c0 = arith.constant 0 : index
    %c0_0 = arith.constant 0 : index
    %c0_1 = arith.constant 0 : index
    %0 = vector.load %arg1[%c0, %c0_0, %c0_1] : memref<1x256x64xbf16, #tpu.memory_space<vmem>>, vector<1x256x64xbf16>
    %1 = vector.shape_cast %0 : vector<1x256x64xbf16> to vector<256x64xbf16>
    %c0_2 = arith.constant 0 : index
    %c0_3 = arith.constant 0 : index
    %2 = vector.load %arg2[%c0_2, %c0_3] : memref<64x64xbf16, #tpu.memory_space<vmem>>, vector<64x64xbf16>
    %cst = arith.constant dense<0.000000e+00> : vector<256x64xf32>
    %3 = tpu.matmul %1, %2, %cst {dimension_numbers = #tpu.dot_dimension_numbers<[1], [0], [0], [1], [0, 0, 1, 1], [], []>} : vector<256x64xbf16>, vector<64x64xbf16>, vector<256x64xf32> -> vector<256x64xf32>
    %c0_4 = arith.constant 0 : index
    %c0_5 = arith.constant 0 : index
    %4 = vector.load %arg3[%c0_4, %c0_5] : memref<1x64xf32, #tpu.memory_space<vmem>>, vector<1x64xf32>
    %5 = vector.broadcast %4 : vector<1x64xf32> to vector<256x64xf32>
    %6 = arith.addf %3, %5 : vector<256x64xf32>
    %cst_6 = arith.constant 0.000000e+00 : f32
    %7 = vector.broadcast %cst_6 : f32 to vector<256x64xf32>
    %8 = arith.subf %7, %6 : vector<256x64xf32>
    %9 = math.exp %8 : vector<256x64xf32>
    %cst_7 = arith.constant 1.000000e+00 : f32
    %10 = vector.broadcast %cst_7 : f32 to vector<256x64xf32>
    %11 = arith.addf %10, %9 : vector<256x64xf32>
    %12 = tpu.reciprocal %11 {approx = true} : vector<256x64xf32> -> vector<256x64xf32>
    %13 = arith.mulf %6, %12 : vector<256x64xf32>
    %14 = vector.extract_strided_slice %13 {offsets = [0, 0], sizes = [256, 32], strides = [1, 1]} : vector<256x64xf32> to vector<256x32xf32>
    %15 = vector.extract_strided_slice %13 {offsets = [0, 32], sizes = [256, 32], strides = [1, 1]} : vector<256x64xf32> to vector<256x32xf32>
    %cst_8 = arith.constant 0.000000e+00 : f32
    %16 = vector.broadcast %cst_8 : f32 to vector<18x32x16xf32>
    %c0_9 = arith.constant 0 : index
    %c0_10 = arith.constant 0 : index
    %c0_11 = arith.constant 0 : index
    %17 = vector.load %arg11[%c0_9, %c0_10, %c0_11] : memref<18x32x16xf32, #tpu.memory_space<vmem>>, vector<18x32x16xf32>
    tpu.vector_store %arg11[%c0_9, %c0_10, %c0_11], %16 {strides = array<i32>} : memref<18x32x16xf32, #tpu.memory_space<vmem>>, vector<18x32x16xf32>,
    %c0_12 = arith.constant 0 : index
    %c0_13 = arith.constant 0 : index
    %c0_14 = arith.constant 0 : index
    %18 = vector.load %arg4[%c0_12, %c0_13, %c0_14] : memref<3x32x16xbf16, #tpu.memory_space<vmem>>, vector<1x32x16xbf16>
    %19 = vector.shape_cast %18 : vector<1x32x16xbf16> to vector<32x16xbf16>
    %20 = arith.truncf %14 : vector<256x32xf32> to vector<256x32xbf16>
    %cst_15 = arith.constant dense<0.000000e+00> : vector<256x16xf32>
    %21 = tpu.matmul %20, %19, %cst_15 {dimension_numbers = #tpu.dot_dimension_numbers<[1], [0], [0], [1], [0, 0, 1, 1], [], []>} : vector<256x32xbf16>, vector<32x16xbf16>, vector<256x16xf32> -> vector<256x16xf32>
    %c0_16 = arith.constant 0 : index
    %c0_17 = arith.constant 0 : index
    %c0_18 = arith.constant 0 : index
    %22 = vector.load %arg5[%c0_16, %c0_17, %c0_18] : memref<3x1x16xf32, #tpu.memory_space<vmem>>, vector<1x1x16xf32>
    %23 = vector.shape_cast %22 : vector<1x1x16xf32> to vector<1x16xf32>
    %24 = vector.broadcast %23 : vector<1x16xf32> to vector<256x16xf32>
    %25 = arith.addf %21, %24 : vector<256x16xf32>
    %cst_19 = arith.constant 0.000000e+00 : f32
    %26 = vector.broadcast %cst_19 : f32 to vector<256x16xf32>
    %27 = arith.subf %26, %25 : vector<256x16xf32>
    %28 = math.exp %27 : vector<256x16xf32>
    %cst_20 = arith.constant 1.000000e+00 : f32
    %29 = vector.broadcast %cst_20 : f32 to vector<256x16xf32>
    %30 = arith.addf %29, %28 : vector<256x16xf32>
    %31 = tpu.reciprocal %30 {approx = true} : vector<256x16xf32> -> vector<256x16xf32>
    %32 = arith.mulf %25, %31 : vector<256x16xf32>
    %33 = vector.shape_cast %32 : vector<256x16xf32> to vector<16x16x16xf32>
    %c1 = arith.constant 1 : index
    %c8 = arith.constant 8 : index
    %c0_21 = arith.constant 0 : index
    %34 = vector.load %arg11[%c1, %c8, %c0_21] : memref<18x32x16xf32, #tpu.memory_space<vmem>>, vector<16x16x16xf32>
    tpu.vector_store %arg11[%c1, %c8, %c0_21], %33 {strides = array<i32>} : memref<18x32x16xf32, #tpu.memory_space<vmem>>, vector<16x16x16xf32>,
    %cst_22 = arith.constant 0.000000e+00 : f32
    %35 = vector.broadcast %cst_22 : f32 to vector<256x32xf32>
    %c0_23 = arith.constant 0 : index
    %c7 = arith.constant 7 : index
    %c0_24 = arith.constant 0 : index
    %36 = vector.load %arg11[%c0_23, %c7, %c0_24] : memref<18x32x16xf32, #tpu.memory_space<vmem>>, vector<16x16x16xf32>
    %37 = vector.shape_cast %36 : vector<16x16x16xf32> to vector<256x16xf32>
    %c0_25 = arith.constant 0 : index
    %c0_26 = arith.constant 0 : index
    %c0_27 = arith.constant 0 : index
    %c0_28 = arith.constant 0 : index
    %38 = vector.load %arg6[%c0_25, %c0_26, %c0_27, %c0_28] : memref<3x9x16x32xbf16, #tpu.memory_space<vmem>>, vector<1x1x16x32xbf16>
    %39 = vector.shape_cast %38 : vector<1x1x16x32xbf16> to vector<16x32xbf16>
    %40 = arith.truncf %37 : vector<256x16xf32> to vector<256x16xbf16>
    %cst_29 = arith.constant dense<0.000000e+00> : vector<256x32xf32>
    %41 = tpu.matmul %40, %39, %cst_29 {dimension_numbers = #tpu.dot_dimension_numbers<[1], [0], [0], [1], [0, 0, 1, 1], [], []>} : vector<256x16xbf16>, vector<16x32xbf16>, vector<256x32xf32> -> vector<256x32xf32>
    %42 = arith.addf %35, %41 : vector<256x32xf32>
    %c0_30 = arith.constant 0 : index
    %c8_31 = arith.constant 8 : index
    %c0_32 = arith.constant 0 : index
    %43 = vector.load %arg11[%c0_30, %c8_31, %c0_32] : memref<18x32x16xf32, #tpu.memory_space<vmem>>, vector<16x16x16xf32>
    %44 = vector.shape_cast %43 : vector<16x16x16xf32> to vector<256x16xf32>
    %c0_33 = arith.constant 0 : index
    %c1_34 = arith.constant 1 : index
    %c0_35 = arith.constant 0 : index
    %c0_36 = arith.constant 0 : index
    %45 = vector.load %arg6[%c0_33, %c1_34, %c0_35, %c0_36] : memref<3x9x16x32xbf16, #tpu.memory_space<vmem>>, vector<1x1x16x32xbf16>
    %46 = vector.shape_cast %45 : vector<1x1x16x32xbf16> to vector<16x32xbf16>
    %47 = arith.truncf %44 : vector<256x16xf32> to vector<256x16xbf16>
    %cst_37 = arith.constant dense<0.000000e+00> : vector<256x32xf32>
    %48 = tpu.matmul %47, %46, %cst_37 {dimension_numbers = #tpu.dot_dimension_numbers<[1], [0], [0], [1], [0, 0, 1, 1], [], []>} : vector<256x16xbf16>, vector<16x32xbf16>, vector<256x32xf32> -> vector<256x32xf32>
    %49 = arith.addf %42, %48 : vector<256x32xf32>
    %c0_38 = arith.constant 0 : index
    %c9 = arith.constant 9 : index
    %c0_39 = arith.constant 0 : index
    %50 = vector.load %arg11[%c0_38, %c9, %c0_39] : memref<18x32x16xf32, #tpu.memory_space<vmem>>, vector<16x16x16xf32>
    %51 = vector.shape_cast %50 : vector<16x16x16xf32> to vector<256x16xf32>
    %c0_40 = arith.constant 0 : index
    %c2 = arith.constant 2 : index
    %c0_41 = arith.constant 0 : index
    %c0_42 = arith.constant 0 : index
    %52 = vector.load %arg6[%c0_40, %c2, %c0_41, %c0_42] : memref<3x9x16x32xbf16, #tpu.memory_space<vmem>>, vector<1x1x16x32xbf16>
    %53 = vector.shape_cast %52 : vector<1x1x16x32xbf16> to vector<16x32xbf16>
    %54 = arith.truncf %51 : vector<256x16xf32> to vector<256x16xbf16>
    %cst_43 = arith.constant dense<0.000000e+00> : vector<256x32xf32>
    %55 = tpu.matmul %54, %53, %cst_43 {dimension_numbers = #tpu.dot_dimension_numbers<[1], [0], [0], [1], [0, 0, 1, 1], [], []>} : vector<256x16xbf16>, vector<16x32xbf16>, vector<256x32xf32> -> vector<256x32xf32>
    %56 = arith.addf %49, %55 : vector<256x32xf32>
    %c1_44 = arith.constant 1 : index
    %c7_45 = arith.constant 7 : index
    %c0_46 = arith.constant 0 : index
    %57 = vector.load %arg11[%c1_44, %c7_45, %c0_46] : memref<18x32x16xf32, #tpu.memory_space<vmem>>, vector<16x16x16xf32>
    %58 = vector.shape_cast %57 : vector<16x16x16xf32> to vector<256x16xf32>
    %c0_47 = arith.constant 0 : index
    %c3 = arith.constant 3 : index
    %c0_48 = arith.constant 0 : index
    %c0_49 = arith.constant 0 : index
    %59 = vector.load %arg6[%c0_47, %c3, %c0_48, %c0_49] : memref<3x9x16x32xbf16, #tpu.memory_space<vmem>>, vector<1x1x16x32xbf16>
    %60 = vector.shape_cast %59 : vector<1x1x16x32xbf16> to vector<16x32xbf16>
    %61 = arith.truncf %58 : vector<256x16xf32> to vector<256x16xbf16>
    %cst_50 = arith.constant dense<0.000000e+00> : vector<256x32xf32>
    %62 = tpu.matmul %61, %60, %cst_50 {dimension_numbers = #tpu.dot_dimension_numbers<[1], [0], [0], [1], [0, 0, 1, 1], [], []>} : vector<256x16xbf16>, vector<16x32xbf16>, vector<256x32xf32> -> vector<256x32xf32>
    %63 = arith.addf %56, %62 : vector<256x32xf32>
    %c1_51 = arith.constant 1 : index
    %c8_52 = arith.constant 8 : index
    %c0_53 = arith.constant 0 : index
    %64 = vector.load %arg11[%c1_51, %c8_52, %c0_53] : memref<18x32x16xf32, #tpu.memory_space<vmem>>, vector<16x16x16xf32>
    %65 = vector.shape_cast %64 : vector<16x16x16xf32> to vector<256x16xf32>
    %c0_54 = arith.constant 0 : index
    %c4 = arith.constant 4 : index
    %c0_55 = arith.constant 0 : index
    %c0_56 = arith.constant 0 : index
    %66 = vector.load %arg6[%c0_54, %c4, %c0_55, %c0_56] : memref<3x9x16x32xbf16, #tpu.memory_space<vmem>>, vector<1x1x16x32xbf16>
    %67 = vector.shape_cast %66 : vector<1x1x16x32xbf16> to vector<16x32xbf16>
    %68 = arith.truncf %65 : vector<256x16xf32> to vector<256x16xbf16>
    %cst_57 = arith.constant dense<0.000000e+00> : vector<256x32xf32>
    %69 = tpu.matmul %68, %67, %cst_57 {dimension_numbers = #tpu.dot_dimension_numbers<[1], [0], [0], [1], [0, 0, 1, 1], [], []>} : vector<256x16xbf16>, vector<16x32xbf16>, vector<256x32xf32> -> vector<256x32xf32>
    %70 = arith.addf %63, %69 : vector<256x32xf32>
    %c1_58 = arith.constant 1 : index
    %c9_59 = arith.constant 9 : index
    %c0_60 = arith.constant 0 : index
    %71 = vector.load %arg11[%c1_58, %c9_59, %c0_60] : memref<18x32x16xf32, #tpu.memory_space<vmem>>, vector<16x16x16xf32>
    %72 = vector.shape_cast %71 : vector<16x16x16xf32> to vector<256x16xf32>
    %c0_61 = arith.constant 0 : index
    %c5 = arith.constant 5 : index
    %c0_62 = arith.constant 0 : index
    %c0_63 = arith.constant 0 : index
    %73 = vector.load %arg6[%c0_61, %c5, %c0_62, %c0_63] : memref<3x9x16x32xbf16, #tpu.memory_space<vmem>>, vector<1x1x16x32xbf16>
    %74 = vector.shape_cast %73 : vector<1x1x16x32xbf16> to vector<16x32xbf16>
    %75 = arith.truncf %72 : vector<256x16xf32> to vector<256x16xbf16>
    %cst_64 = arith.constant dense<0.000000e+00> : vector<256x32xf32>
    %76 = tpu.matmul %75, %74, %cst_64 {dimension_numbers = #tpu.dot_dimension_numbers<[1], [0], [0], [1], [0, 0, 1, 1], [], []>} : vector<256x16xbf16>, vector<16x32xbf16>, vector<256x32xf32> -> vector<256x32xf32>
    %77 = arith.addf %70, %76 : vector<256x32xf32>
    %c2_65 = arith.constant 2 : index
    %c7_66 = arith.constant 7 : index
    %c0_67 = arith.constant 0 : index
    %78 = vector.load %arg11[%c2_65, %c7_66, %c0_67] : memref<18x32x16xf32, #tpu.memory_space<vmem>>, vector<16x16x16xf32>
    %79 = vector.shape_cast %78 : vector<16x16x16xf32> to vector<256x16xf32>
    %c0_68 = arith.constant 0 : index
    %c6 = arith.constant 6 : index
    %c0_69 = arith.constant 0 : index
    %c0_70 = arith.constant 0 : index
    %80 = vector.load %arg6[%c0_68, %c6, %c0_69, %c0_70] : memref<3x9x16x32xbf16, #tpu.memory_space<vmem>>, vector<1x1x16x32xbf16>
    %81 = vector.shape_cast %80 : vector<1x1x16x32xbf16> to vector<16x32xbf16>
    %82 = arith.truncf %79 : vector<256x16xf32> to vector<256x16xbf16>
    %cst_71 = arith.constant dense<0.000000e+00> : vector<256x32xf32>
    %83 = tpu.matmul %82, %81, %cst_71 {dimension_numbers = #tpu.dot_dimension_numbers<[1], [0], [0], [1], [0, 0, 1, 1], [], []>} : vector<256x16xbf16>, vector<16x32xbf16>, vector<256x32xf32> -> vector<256x32xf32>
    %84 = arith.addf %77, %83 : vector<256x32xf32>
    %c2_72 = arith.constant 2 : index
    %c8_73 = arith.constant 8 : index
    %c0_74 = arith.constant 0 : index
    %85 = vector.load %arg11[%c2_72, %c8_73, %c0_74] : memref<18x32x16xf32, #tpu.memory_space<vmem>>, vector<16x16x16xf32>
    %86 = vector.shape_cast %85 : vector<16x16x16xf32> to vector<256x16xf32>
    %c0_75 = arith.constant 0 : index
    %c7_76 = arith.constant 7 : index
    %c0_77 = arith.constant 0 : index
    %c0_78 = arith.constant 0 : index
    %87 = vector.load %arg6[%c0_75, %c7_76, %c0_77, %c0_78] : memref<3x9x16x32xbf16, #tpu.memory_space<vmem>>, vector<1x1x16x32xbf16>
    %88 = vector.shape_cast %87 : vector<1x1x16x32xbf16> to vector<16x32xbf16>
    %89 = arith.truncf %86 : vector<256x16xf32> to vector<256x16xbf16>
    %cst_79 = arith.constant dense<0.000000e+00> : vector<256x32xf32>
    %90 = tpu.matmul %89, %88, %cst_79 {dimension_numbers = #tpu.dot_dimension_numbers<[1], [0], [0], [1], [0, 0, 1, 1], [], []>} : vector<256x16xbf16>, vector<16x32xbf16>, vector<256x32xf32> -> vector<256x32xf32>
    %91 = arith.addf %84, %90 : vector<256x32xf32>
    %c2_80 = arith.constant 2 : index
    %c9_81 = arith.constant 9 : index
    %c0_82 = arith.constant 0 : index
    %92 = vector.load %arg11[%c2_80, %c9_81, %c0_82] : memref<18x32x16xf32, #tpu.memory_space<vmem>>, vector<16x16x16xf32>
    %93 = vector.shape_cast %92 : vector<16x16x16xf32> to vector<256x16xf32>
    %c0_83 = arith.constant 0 : index
    %c8_84 = arith.constant 8 : index
    %c0_85 = arith.constant 0 : index
    %c0_86 = arith.constant 0 : index
    %94 = vector.load %arg6[%c0_83, %c8_84, %c0_85, %c0_86] : memref<3x9x16x32xbf16, #tpu.memory_space<vmem>>, vector<1x1x16x32xbf16>
    %95 = vector.shape_cast %94 : vector<1x1x16x32xbf16> to vector<16x32xbf16>
    %96 = arith.truncf %93 : vector<256x16xf32> to vector<256x16xbf16>
    %cst_87 = arith.constant dense<0.000000e+00> : vector<256x32xf32>
    %97 = tpu.matmul %96, %95, %cst_87 {dimension_numbers = #tpu.dot_dimension_numbers<[1], [0], [0], [1], [0, 0, 1, 1], [], []>} : vector<256x16xbf16>, vector<16x32xbf16>, vector<256x32xf32> -> vector<256x32xf32>
    %98 = arith.addf %91, %97 : vector<256x32xf32>
    %c0_88 = arith.constant 0 : index
    %c0_89 = arith.constant 0 : index
    %c0_90 = arith.constant 0 : index
    %99 = vector.load %arg7[%c0_88, %c0_89, %c0_90] : memref<3x1x32xf32, #tpu.memory_space<vmem>>, vector<1x1x32xf32>
    %100 = vector.shape_cast %99 : vector<1x1x32xf32> to vector<1x32xf32>
    %101 = vector.broadcast %100 : vector<1x32xf32> to vector<256x32xf32>
    %102 = arith.addf %98, %101 : vector<256x32xf32>
    %cst_91 = arith.constant 0.000000e+00 : f32
    %103 = vector.broadcast %cst_91 : f32 to vector<256x32xf32>
    %104 = arith.subf %103, %102 : vector<256x32xf32>
    %105 = math.exp %104 : vector<256x32xf32>
    %cst_92 = arith.constant 1.000000e+00 : f32
    %106 = vector.broadcast %cst_92 : f32 to vector<256x32xf32>
    %107 = arith.addf %106, %105 : vector<256x32xf32>
    %108 = tpu.reciprocal %107 {approx = true} : vector<256x32xf32> -> vector<256x32xf32>
    %109 = arith.mulf %102, %108 : vector<256x32xf32>
    %c1_93 = arith.constant 1 : index
    %c0_94 = arith.constant 0 : index
    %c0_95 = arith.constant 0 : index
    %110 = vector.load %arg4[%c1_93, %c0_94, %c0_95] : memref<3x32x16xbf16, #tpu.memory_space<vmem>>, vector<1x32x16xbf16>
    %111 = vector.shape_cast %110 : vector<1x32x16xbf16> to vector<32x16xbf16>
    %112 = arith.truncf %109 : vector<256x32xf32> to vector<256x32xbf16>
    %cst_96 = arith.constant dense<0.000000e+00> : vector<256x16xf32>
    %113 = tpu.matmul %112, %111, %cst_96 {dimension_numbers = #tpu.dot_dimension_numbers<[1], [0], [0], [1], [0, 0, 1, 1], [], []>} : vector<256x32xbf16>, vector<32x16xbf16>, vector<256x16xf32> -> vector<256x16xf32>
    %c1_97 = arith.constant 1 : index
    %c0_98 = arith.constant 0 : index
    %c0_99 = arith.constant 0 : index
    %114 = vector.load %arg5[%c1_97, %c0_98, %c0_99] : memref<3x1x16xf32, #tpu.memory_space<vmem>>, vector<1x1x16xf32>
    %115 = vector.shape_cast %114 : vector<1x1x16xf32> to vector<1x16xf32>
    %116 = vector.broadcast %115 : vector<1x16xf32> to vector<256x16xf32>
    %117 = arith.addf %113, %116 : vector<256x16xf32>
    %cst_100 = arith.constant 0.000000e+00 : f32
    %118 = vector.broadcast %cst_100 : f32 to vector<256x16xf32>
    %119 = arith.subf %118, %117 : vector<256x16xf32>
    %120 = math.exp %119 : vector<256x16xf32>
    %cst_101 = arith.constant 1.000000e+00 : f32
    %121 = vector.broadcast %cst_101 : f32 to vector<256x16xf32>
    %122 = arith.addf %121, %120 : vector<256x16xf32>
    %123 = tpu.reciprocal %122 {approx = true} : vector<256x16xf32> -> vector<256x16xf32>
    %124 = arith.mulf %117, %123 : vector<256x16xf32>
    %125 = vector.shape_cast %124 : vector<256x16xf32> to vector<16x16x16xf32>
    %c1_102 = arith.constant 1 : index
    %c8_103 = arith.constant 8 : index
    %c0_104 = arith.constant 0 : index
    %126 = vector.load %arg11[%c1_102, %c8_103, %c0_104] : memref<18x32x16xf32, #tpu.memory_space<vmem>>, vector<16x16x16xf32>
    tpu.vector_store %arg11[%c1_102, %c8_103, %c0_104], %125 {strides = array<i32>} : memref<18x32x16xf32, #tpu.memory_space<vmem>>, vector<16x16x16xf32>,
    %cst_105 = arith.constant 0.000000e+00 : f32
    %127 = vector.broadcast %cst_105 : f32 to vector<256x32xf32>
    %c0_106 = arith.constant 0 : index
    %c7_107 = arith.constant 7 : index
    %c0_108 = arith.constant 0 : index
    %128 = vector.load %arg11[%c0_106, %c7_107, %c0_108] : memref<18x32x16xf32, #tpu.memory_space<vmem>>, vector<16x16x16xf32>
    %129 = vector.shape_cast %128 : vector<16x16x16xf32> to vector<256x16xf32>
    %c1_109 = arith.constant 1 : index
    %c0_110 = arith.constant 0 : index
    %c0_111 = arith.constant 0 : index
    %c0_112 = arith.constant 0 : index
    %130 = vector.load %arg6[%c1_109, %c0_110, %c0_111, %c0_112] : memref<3x9x16x32xbf16, #tpu.memory_space<vmem>>, vector<1x1x16x32xbf16>
    %131 = vector.shape_cast %130 : vector<1x1x16x32xbf16> to vector<16x32xbf16>
    %132 = arith.truncf %129 : vector<256x16xf32> to vector<256x16xbf16>
    %cst_113 = arith.constant dense<0.000000e+00> : vector<256x32xf32>
    %133 = tpu.matmul %132, %131, %cst_113 {dimension_numbers = #tpu.dot_dimension_numbers<[1], [0], [0], [1], [0, 0, 1, 1], [], []>} : vector<256x16xbf16>, vector<16x32xbf16>, vector<256x32xf32> -> vector<256x32xf32>
    %134 = arith.addf %127, %133 : vector<256x32xf32>
    %c0_114 = arith.constant 0 : index
    %c8_115 = arith.constant 8 : index
    %c0_116 = arith.constant 0 : index
    %135 = vector.load %arg11[%c0_114, %c8_115, %c0_116] : memref<18x32x16xf32, #tpu.memory_space<vmem>>, vector<16x16x16xf32>
    %136 = vector.shape_cast %135 : vector<16x16x16xf32> to vector<256x16xf32>
    %c1_117 = arith.constant 1 : index
    %c1_118 = arith.constant 1 : index
    %c0_119 = arith.constant 0 : index
    %c0_120 = arith.constant 0 : index
    %137 = vector.load %arg6[%c1_117, %c1_118, %c0_119, %c0_120] : memref<3x9x16x32xbf16, #tpu.memory_space<vmem>>, vector<1x1x16x32xbf16>
    %138 = vector.shape_cast %137 : vector<1x1x16x32xbf16> to vector<16x32xbf16>
    %139 = arith.truncf %136 : vector<256x16xf32> to vector<256x16xbf16>
    %cst_121 = arith.constant dense<0.000000e+00> : vector<256x32xf32>
    %140 = tpu.matmul %139, %138, %cst_121 {dimension_numbers = #tpu.dot_dimension_numbers<[1], [0], [0], [1], [0, 0, 1, 1], [], []>} : vector<256x16xbf16>, vector<16x32xbf16>, vector<256x32xf32> -> vector<256x32xf32>
    %141 = arith.addf %134, %140 : vector<256x32xf32>
    %c0_122 = arith.constant 0 : index
    %c9_123 = arith.constant 9 : index
    %c0_124 = arith.constant 0 : index
    %142 = vector.load %arg11[%c0_122, %c9_123, %c0_124] : memref<18x32x16xf32, #tpu.memory_space<vmem>>, vector<16x16x16xf32>
    %143 = vector.shape_cast %142 : vector<16x16x16xf32> to vector<256x16xf32>
    %c1_125 = arith.constant 1 : index
    %c2_126 = arith.constant 2 : index
    %c0_127 = arith.constant 0 : index
    %c0_128 = arith.constant 0 : index
    %144 = vector.load %arg6[%c1_125, %c2_126, %c0_127, %c0_128] : memref<3x9x16x32xbf16, #tpu.memory_space<vmem>>, vector<1x1x16x32xbf16>
    %145 = vector.shape_cast %144 : vector<1x1x16x32xbf16> to vector<16x32xbf16>
    %146 = arith.truncf %143 : vector<256x16xf32> to vector<256x16xbf16>
    %cst_129 = arith.constant dense<0.000000e+00> : vector<256x32xf32>
    %147 = tpu.matmul %146, %145, %cst_129 {dimension_numbers = #tpu.dot_dimension_numbers<[1], [0], [0], [1], [0, 0, 1, 1], [], []>} : vector<256x16xbf16>, vector<16x32xbf16>, vector<256x32xf32> -> vector<256x32xf32>
    %148 = arith.addf %141, %147 : vector<256x32xf32>
    %c1_130 = arith.constant 1 : index
    %c7_131 = arith.constant 7 : index
    %c0_132 = arith.constant 0 : index
    %149 = vector.load %arg11[%c1_130, %c7_131, %c0_132] : memref<18x32x16xf32, #tpu.memory_space<vmem>>, vector<16x16x16xf32>
    %150 = vector.shape_cast %149 : vector<16x16x16xf32> to vector<256x16xf32>
    %c1_133 = arith.constant 1 : index
    %c3_134 = arith.constant 3 : index
    %c0_135 = arith.constant 0 : index
    %c0_136 = arith.constant 0 : index
    %151 = vector.load %arg6[%c1_133, %c3_134, %c0_135, %c0_136] : memref<3x9x16x32xbf16, #tpu.memory_space<vmem>>, vector<1x1x16x32xbf16>
    %152 = vector.shape_cast %151 : vector<1x1x16x32xbf16> to vector<16x32xbf16>
    %153 = arith.truncf %150 : vector<256x16xf32> to vector<256x16xbf16>
    %cst_137 = arith.constant dense<0.000000e+00> : vector<256x32xf32>
    %154 = tpu.matmul %153, %152, %cst_137 {dimension_numbers = #tpu.dot_dimension_numbers<[1], [0], [0], [1], [0, 0, 1, 1], [], []>} : vector<256x16xbf16>, vector<16x32xbf16>, vector<256x32xf32> -> vector<256x32xf32>
    %155 = arith.addf %148, %154 : vector<256x32xf32>
    %c1_138 = arith.constant 1 : index
    %c8_139 = arith.constant 8 : index
    %c0_140 = arith.constant 0 : index
    %156 = vector.load %arg11[%c1_138, %c8_139, %c0_140] : memref<18x32x16xf32, #tpu.memory_space<vmem>>, vector<16x16x16xf32>
    %157 = vector.shape_cast %156 : vector<16x16x16xf32> to vector<256x16xf32>
    %c1_141 = arith.constant 1 : index
    %c4_142 = arith.constant 4 : index
    %c0_143 = arith.constant 0 : index
    %c0_144 = arith.constant 0 : index
    %158 = vector.load %arg6[%c1_141, %c4_142, %c0_143, %c0_144] : memref<3x9x16x32xbf16, #tpu.memory_space<vmem>>, vector<1x1x16x32xbf16>
    %159 = vector.shape_cast %158 : vector<1x1x16x32xbf16> to vector<16x32xbf16>
    %160 = arith.truncf %157 : vector<256x16xf32> to vector<256x16xbf16>
    %cst_145 = arith.constant dense<0.000000e+00> : vector<256x32xf32>
    %161 = tpu.matmul %160, %159, %cst_145 {dimension_numbers = #tpu.dot_dimension_numbers<[1], [0], [0], [1], [0, 0, 1, 1], [], []>} : vector<256x16xbf16>, vector<16x32xbf16>, vector<256x32xf32> -> vector<256x32xf32>
    %162 = arith.addf %155, %161 : vector<256x32xf32>
    %c1_146 = arith.constant 1 : index
    %c9_147 = arith.constant 9 : index
    %c0_148 = arith.constant 0 : index
    %163 = vector.load %arg11[%c1_146, %c9_147, %c0_148] : memref<18x32x16xf32, #tpu.memory_space<vmem>>, vector<16x16x16xf32>
    %164 = vector.shape_cast %163 : vector<16x16x16xf32> to vector<256x16xf32>
    %c1_149 = arith.constant 1 : index
    %c5_150 = arith.constant 5 : index
    %c0_151 = arith.constant 0 : index
    %c0_152 = arith.constant 0 : index
    %165 = vector.load %arg6[%c1_149, %c5_150, %c0_151, %c0_152] : memref<3x9x16x32xbf16, #tpu.memory_space<vmem>>, vector<1x1x16x32xbf16>
    %166 = vector.shape_cast %165 : vector<1x1x16x32xbf16> to vector<16x32xbf16>
    %167 = arith.truncf %164 : vector<256x16xf32> to vector<256x16xbf16>
    %cst_153 = arith.constant dense<0.000000e+00> : vector<256x32xf32>
    %168 = tpu.matmul %167, %166, %cst_153 {dimension_numbers = #tpu.dot_dimension_numbers<[1], [0], [0], [1], [0, 0, 1, 1], [], []>} : vector<256x16xbf16>, vector<16x32xbf16>, vector<256x32xf32> -> vector<256x32xf32>
    %169 = arith.addf %162, %168 : vector<256x32xf32>
    %c2_154 = arith.constant 2 : index
    %c7_155 = arith.constant 7 : index
    %c0_156 = arith.constant 0 : index
    %170 = vector.load %arg11[%c2_154, %c7_155, %c0_156] : memref<18x32x16xf32, #tpu.memory_space<vmem>>, vector<16x16x16xf32>
    %171 = vector.shape_cast %170 : vector<16x16x16xf32> to vector<256x16xf32>
    %c1_157 = arith.constant 1 : index
    %c6_158 = arith.constant 6 : index
    %c0_159 = arith.constant 0 : index
    %c0_160 = arith.constant 0 : index
    %172 = vector.load %arg6[%c1_157, %c6_158, %c0_159, %c0_160] : memref<3x9x16x32xbf16, #tpu.memory_space<vmem>>, vector<1x1x16x32xbf16>
    %173 = vector.shape_cast %172 : vector<1x1x16x32xbf16> to vector<16x32xbf16>
    %174 = arith.truncf %171 : vector<256x16xf32> to vector<256x16xbf16>
    %cst_161 = arith.constant dense<0.000000e+00> : vector<256x32xf32>
    %175 = tpu.matmul %174, %173, %cst_161 {dimension_numbers = #tpu.dot_dimension_numbers<[1], [0], [0], [1], [0, 0, 1, 1], [], []>} : vector<256x16xbf16>, vector<16x32xbf16>, vector<256x32xf32> -> vector<256x32xf32>
    %176 = arith.addf %169, %175 : vector<256x32xf32>
    %c2_162 = arith.constant 2 : index
    %c8_163 = arith.constant 8 : index
    %c0_164 = arith.constant 0 : index
    %177 = vector.load %arg11[%c2_162, %c8_163, %c0_164] : memref<18x32x16xf32, #tpu.memory_space<vmem>>, vector<16x16x16xf32>
    %178 = vector.shape_cast %177 : vector<16x16x16xf32> to vector<256x16xf32>
    %c1_165 = arith.constant 1 : index
    %c7_166 = arith.constant 7 : index
    %c0_167 = arith.constant 0 : index
    %c0_168 = arith.constant 0 : index
    %179 = vector.load %arg6[%c1_165, %c7_166, %c0_167, %c0_168] : memref<3x9x16x32xbf16, #tpu.memory_space<vmem>>, vector<1x1x16x32xbf16>
    %180 = vector.shape_cast %179 : vector<1x1x16x32xbf16> to vector<16x32xbf16>
    %181 = arith.truncf %178 : vector<256x16xf32> to vector<256x16xbf16>
    %cst_169 = arith.constant dense<0.000000e+00> : vector<256x32xf32>
    %182 = tpu.matmul %181, %180, %cst_169 {dimension_numbers = #tpu.dot_dimension_numbers<[1], [0], [0], [1], [0, 0, 1, 1], [], []>} : vector<256x16xbf16>, vector<16x32xbf16>, vector<256x32xf32> -> vector<256x32xf32>
    %183 = arith.addf %176, %182 : vector<256x32xf32>
    %c2_170 = arith.constant 2 : index
    %c9_171 = arith.constant 9 : index
    %c0_172 = arith.constant 0 : index
    %184 = vector.load %arg11[%c2_170, %c9_171, %c0_172] : memref<18x32x16xf32, #tpu.memory_space<vmem>>, vector<16x16x16xf32>
    %185 = vector.shape_cast %184 : vector<16x16x16xf32> to vector<256x16xf32>
    %c1_173 = arith.constant 1 : index
    %c8_174 = arith.constant 8 : index
    %c0_175 = arith.constant 0 : index
    %c0_176 = arith.constant 0 : index
    %186 = vector.load %arg6[%c1_173, %c8_174, %c0_175, %c0_176] : memref<3x9x16x32xbf16, #tpu.memory_space<vmem>>, vector<1x1x16x32xbf16>
    %187 = vector.shape_cast %186 : vector<1x1x16x32xbf16> to vector<16x32xbf16>
    %188 = arith.truncf %185 : vector<256x16xf32> to vector<256x16xbf16>
    %cst_177 = arith.constant dense<0.000000e+00> : vector<256x32xf32>
    %189 = tpu.matmul %188, %187, %cst_177 {dimension_numbers = #tpu.dot_dimension_numbers<[1], [0], [0], [1], [0, 0, 1, 1], [], []>} : vector<256x16xbf16>, vector<16x32xbf16>, vector<256x32xf32> -> vector<256x32xf32>
    %190 = arith.addf %183, %189 : vector<256x32xf32>
    %c1_178 = arith.constant 1 : index
    %c0_179 = arith.constant 0 : index
    %c0_180 = arith.constant 0 : index
    %191 = vector.load %arg7[%c1_178, %c0_179, %c0_180] : memref<3x1x32xf32, #tpu.memory_space<vmem>>, vector<1x1x32xf32>
    %192 = vector.shape_cast %191 : vector<1x1x32xf32> to vector<1x32xf32>
    %193 = vector.broadcast %192 : vector<1x32xf32> to vector<256x32xf32>
    %194 = arith.addf %190, %193 : vector<256x32xf32>
    %cst_181 = arith.constant 0.000000e+00 : f32
    %195 = vector.broadcast %cst_181 : f32 to vector<256x32xf32>
    %196 = arith.subf %195, %194 : vector<256x32xf32>
    %197 = math.exp %196 : vector<256x32xf32>
    %cst_182 = arith.constant 1.000000e+00 : f32
    %198 = vector.broadcast %cst_182 : f32 to vector<256x32xf32>
    %199 = arith.addf %198, %197 : vector<256x32xf32>
    %200 = tpu.reciprocal %199 {approx = true} : vector<256x32xf32> -> vector<256x32xf32>
    %201 = arith.mulf %194, %200 : vector<256x32xf32>
    %c2_183 = arith.constant 2 : index
    %c0_184 = arith.constant 0 : index
    %c0_185 = arith.constant 0 : index
    %202 = vector.load %arg4[%c2_183, %c0_184, %c0_185] : memref<3x32x16xbf16, #tpu.memory_space<vmem>>, vector<1x32x16xbf16>
    %203 = vector.shape_cast %202 : vector<1x32x16xbf16> to vector<32x16xbf16>
    %204 = arith.truncf %201 : vector<256x32xf32> to vector<256x32xbf16>
    %cst_186 = arith.constant dense<0.000000e+00> : vector<256x16xf32>
    %205 = tpu.matmul %204, %203, %cst_186 {dimension_numbers = #tpu.dot_dimension_numbers<[1], [0], [0], [1], [0, 0, 1, 1], [], []>} : vector<256x32xbf16>, vector<32x16xbf16>, vector<256x16xf32> -> vector<256x16xf32>
    %c2_187 = arith.constant 2 : index
    %c0_188 = arith.constant 0 : index
    %c0_189 = arith.constant 0 : index
    %206 = vector.load %arg5[%c2_187, %c0_188, %c0_189] : memref<3x1x16xf32, #tpu.memory_space<vmem>>, vector<1x1x16xf32>
    %207 = vector.shape_cast %206 : vector<1x1x16xf32> to vector<1x16xf32>
    %208 = vector.broadcast %207 : vector<1x16xf32> to vector<256x16xf32>
    %209 = arith.addf %205, %208 : vector<256x16xf32>
    %cst_190 = arith.constant 0.000000e+00 : f32
    %210 = vector.broadcast %cst_190 : f32 to vector<256x16xf32>
    %211 = arith.subf %210, %209 : vector<256x16xf32>
    %212 = math.exp %211 : vector<256x16xf32>
    %cst_191 = arith.constant 1.000000e+00 : f32
    %213 = vector.broadcast %cst_191 : f32 to vector<256x16xf32>
    %214 = arith.addf %213, %212 : vector<256x16xf32>
    %215 = tpu.reciprocal %214 {approx = true} : vector<256x16xf32> -> vector<256x16xf32>
    %216 = arith.mulf %209, %215 : vector<256x16xf32>
    %217 = vector.shape_cast %216 : vector<256x16xf32> to vector<16x16x16xf32>
    %c1_192 = arith.constant 1 : index
    %c8_193 = arith.constant 8 : index
    %c0_194 = arith.constant 0 : index
    %218 = vector.load %arg11[%c1_192, %c8_193, %c0_194] : memref<18x32x16xf32, #tpu.memory_space<vmem>>, vector<16x16x16xf32>
    tpu.vector_store %arg11[%c1_192, %c8_193, %c0_194], %217 {strides = array<i32>} : memref<18x32x16xf32, #tpu.memory_space<vmem>>, vector<16x16x16xf32>,
    %cst_195 = arith.constant 0.000000e+00 : f32
    %219 = vector.broadcast %cst_195 : f32 to vector<256x32xf32>
    %c0_196 = arith.constant 0 : index
    %c7_197 = arith.constant 7 : index
    %c0_198 = arith.constant 0 : index
    %220 = vector.load %arg11[%c0_196, %c7_197, %c0_198] : memref<18x32x16xf32, #tpu.memory_space<vmem>>, vector<16x16x16xf32>
    %221 = vector.shape_cast %220 : vector<16x16x16xf32> to vector<256x16xf32>
    %c2_199 = arith.constant 2 : index
    %c0_200 = arith.constant 0 : index
    %c0_201 = arith.constant 0 : index
    %c0_202 = arith.constant 0 : index
    %222 = vector.load %arg6[%c2_199, %c0_200, %c0_201, %c0_202] : memref<3x9x16x32xbf16, #tpu.memory_space<vmem>>, vector<1x1x16x32xbf16>
    %223 = vector.shape_cast %222 : vector<1x1x16x32xbf16> to vector<16x32xbf16>
    %224 = arith.truncf %221 : vector<256x16xf32> to vector<256x16xbf16>
    %cst_203 = arith.constant dense<0.000000e+00> : vector<256x32xf32>
    %225 = tpu.matmul %224, %223, %cst_203 {dimension_numbers = #tpu.dot_dimension_numbers<[1], [0], [0], [1], [0, 0, 1, 1], [], []>} : vector<256x16xbf16>, vector<16x32xbf16>, vector<256x32xf32> -> vector<256x32xf32>
    %226 = arith.addf %219, %225 : vector<256x32xf32>
    %c0_204 = arith.constant 0 : index
    %c8_205 = arith.constant 8 : index
    %c0_206 = arith.constant 0 : index
    %227 = vector.load %arg11[%c0_204, %c8_205, %c0_206] : memref<18x32x16xf32, #tpu.memory_space<vmem>>, vector<16x16x16xf32>
    %228 = vector.shape_cast %227 : vector<16x16x16xf32> to vector<256x16xf32>
    %c2_207 = arith.constant 2 : index
    %c1_208 = arith.constant 1 : index
    %c0_209 = arith.constant 0 : index
    %c0_210 = arith.constant 0 : index
    %229 = vector.load %arg6[%c2_207, %c1_208, %c0_209, %c0_210] : memref<3x9x16x32xbf16, #tpu.memory_space<vmem>>, vector<1x1x16x32xbf16>
    %230 = vector.shape_cast %229 : vector<1x1x16x32xbf16> to vector<16x32xbf16>
    %231 = arith.truncf %228 : vector<256x16xf32> to vector<256x16xbf16>
    %cst_211 = arith.constant dense<0.000000e+00> : vector<256x32xf32>
    %232 = tpu.matmul %231, %230, %cst_211 {dimension_numbers = #tpu.dot_dimension_numbers<[1], [0], [0], [1], [0, 0, 1, 1], [], []>} : vector<256x16xbf16>, vector<16x32xbf16>, vector<256x32xf32> -> vector<256x32xf32>
    %233 = arith.addf %226, %232 : vector<256x32xf32>
    %c0_212 = arith.constant 0 : index
    %c9_213 = arith.constant 9 : index
    %c0_214 = arith.constant 0 : index
    %234 = vector.load %arg11[%c0_212, %c9_213, %c0_214] : memref<18x32x16xf32, #tpu.memory_space<vmem>>, vector<16x16x16xf32>
    %235 = vector.shape_cast %234 : vector<16x16x16xf32> to vector<256x16xf32>
    %c2_215 = arith.constant 2 : index
    %c2_216 = arith.constant 2 : index
    %c0_217 = arith.constant 0 : index
    %c0_218 = arith.constant 0 : index
    %236 = vector.load %arg6[%c2_215, %c2_216, %c0_217, %c0_218] : memref<3x9x16x32xbf16, #tpu.memory_space<vmem>>, vector<1x1x16x32xbf16>
    %237 = vector.shape_cast %236 : vector<1x1x16x32xbf16> to vector<16x32xbf16>
    %238 = arith.truncf %235 : vector<256x16xf32> to vector<256x16xbf16>
    %cst_219 = arith.constant dense<0.000000e+00> : vector<256x32xf32>
    %239 = tpu.matmul %238, %237, %cst_219 {dimension_numbers = #tpu.dot_dimension_numbers<[1], [0], [0], [1], [0, 0, 1, 1], [], []>} : vector<256x16xbf16>, vector<16x32xbf16>, vector<256x32xf32> -> vector<256x32xf32>
    %240 = arith.addf %233, %239 : vector<256x32xf32>
    %c1_220 = arith.constant 1 : index
    %c7_221 = arith.constant 7 : index
    %c0_222 = arith.constant 0 : index
    %241 = vector.load %arg11[%c1_220, %c7_221, %c0_222] : memref<18x32x16xf32, #tpu.memory_space<vmem>>, vector<16x16x16xf32>
    %242 = vector.shape_cast %241 : vector<16x16x16xf32> to vector<256x16xf32>
    %c2_223 = arith.constant 2 : index
    %c3_224 = arith.constant 3 : index
    %c0_225 = arith.constant 0 : index
    %c0_226 = arith.constant 0 : index
    %243 = vector.load %arg6[%c2_223, %c3_224, %c0_225, %c0_226] : memref<3x9x16x32xbf16, #tpu.memory_space<vmem>>, vector<1x1x16x32xbf16>
    %244 = vector.shape_cast %243 : vector<1x1x16x32xbf16> to vector<16x32xbf16>
    %245 = arith.truncf %242 : vector<256x16xf32> to vector<256x16xbf16>
    %cst_227 = arith.constant dense<0.000000e+00> : vector<256x32xf32>
    %246 = tpu.matmul %245, %244, %cst_227 {dimension_numbers = #tpu.dot_dimension_numbers<[1], [0], [0], [1], [0, 0, 1, 1], [], []>} : vector<256x16xbf16>, vector<16x32xbf16>, vector<256x32xf32> -> vector<256x32xf32>
    %247 = arith.addf %240, %246 : vector<256x32xf32>
    %c1_228 = arith.constant 1 : index
    %c8_229 = arith.constant 8 : index
    %c0_230 = arith.constant 0 : index
    %248 = vector.load %arg11[%c1_228, %c8_229, %c0_230] : memref<18x32x16xf32, #tpu.memory_space<vmem>>, vector<16x16x16xf32>
    %249 = vector.shape_cast %248 : vector<16x16x16xf32> to vector<256x16xf32>
    %c2_231 = arith.constant 2 : index
    %c4_232 = arith.constant 4 : index
    %c0_233 = arith.constant 0 : index
    %c0_234 = arith.constant 0 : index
    %250 = vector.load %arg6[%c2_231, %c4_232, %c0_233, %c0_234] : memref<3x9x16x32xbf16, #tpu.memory_space<vmem>>, vector<1x1x16x32xbf16>
    %251 = vector.shape_cast %250 : vector<1x1x16x32xbf16> to vector<16x32xbf16>
    %252 = arith.truncf %249 : vector<256x16xf32> to vector<256x16xbf16>
    %cst_235 = arith.constant dense<0.000000e+00> : vector<256x32xf32>
    %253 = tpu.matmul %252, %251, %cst_235 {dimension_numbers = #tpu.dot_dimension_numbers<[1], [0], [0], [1], [0, 0, 1, 1], [], []>} : vector<256x16xbf16>, vector<16x32xbf16>, vector<256x32xf32> -> vector<256x32xf32>
    %254 = arith.addf %247, %253 : vector<256x32xf32>
    %c1_236 = arith.constant 1 : index
    %c9_237 = arith.constant 9 : index
    %c0_238 = arith.constant 0 : index
    %255 = vector.load %arg11[%c1_236, %c9_237, %c0_238] : memref<18x32x16xf32, #tpu.memory_space<vmem>>, vector<16x16x16xf32>
    %256 = vector.shape_cast %255 : vector<16x16x16xf32> to vector<256x16xf32>
    %c2_239 = arith.constant 2 : index
    %c5_240 = arith.constant 5 : index
    %c0_241 = arith.constant 0 : index
    %c0_242 = arith.constant 0 : index
    %257 = vector.load %arg6[%c2_239, %c5_240, %c0_241, %c0_242] : memref<3x9x16x32xbf16, #tpu.memory_space<vmem>>, vector<1x1x16x32xbf16>
    %258 = vector.shape_cast %257 : vector<1x1x16x32xbf16> to vector<16x32xbf16>
    %259 = arith.truncf %256 : vector<256x16xf32> to vector<256x16xbf16>
    %cst_243 = arith.constant dense<0.000000e+00> : vector<256x32xf32>
    %260 = tpu.matmul %259, %258, %cst_243 {dimension_numbers = #tpu.dot_dimension_numbers<[1], [0], [0], [1], [0, 0, 1, 1], [], []>} : vector<256x16xbf16>, vector<16x32xbf16>, vector<256x32xf32> -> vector<256x32xf32>
    %261 = arith.addf %254, %260 : vector<256x32xf32>
    %c2_244 = arith.constant 2 : index
    %c7_245 = arith.constant 7 : index
    %c0_246 = arith.constant 0 : index
    %262 = vector.load %arg11[%c2_244, %c7_245, %c0_246] : memref<18x32x16xf32, #tpu.memory_space<vmem>>, vector<16x16x16xf32>
    %263 = vector.shape_cast %262 : vector<16x16x16xf32> to vector<256x16xf32>
    %c2_247 = arith.constant 2 : index
    %c6_248 = arith.constant 6 : index
    %c0_249 = arith.constant 0 : index
    %c0_250 = arith.constant 0 : index
    %264 = vector.load %arg6[%c2_247, %c6_248, %c0_249, %c0_250] : memref<3x9x16x32xbf16, #tpu.memory_space<vmem>>, vector<1x1x16x32xbf16>
    %265 = vector.shape_cast %264 : vector<1x1x16x32xbf16> to vector<16x32xbf16>
    %266 = arith.truncf %263 : vector<256x16xf32> to vector<256x16xbf16>
    %cst_251 = arith.constant dense<0.000000e+00> : vector<256x32xf32>
    %267 = tpu.matmul %266, %265, %cst_251 {dimension_numbers = #tpu.dot_dimension_numbers<[1], [0], [0], [1], [0, 0, 1, 1], [], []>} : vector<256x16xbf16>, vector<16x32xbf16>, vector<256x32xf32> -> vector<256x32xf32>
    %268 = arith.addf %261, %267 : vector<256x32xf32>
    %c2_252 = arith.constant 2 : index
    %c8_253 = arith.constant 8 : index
    %c0_254 = arith.constant 0 : index
    %269 = vector.load %arg11[%c2_252, %c8_253, %c0_254] : memref<18x32x16xf32, #tpu.memory_space<vmem>>, vector<16x16x16xf32>
    %270 = vector.shape_cast %269 : vector<16x16x16xf32> to vector<256x16xf32>
    %c2_255 = arith.constant 2 : index
    %c7_256 = arith.constant 7 : index
    %c0_257 = arith.constant 0 : index
    %c0_258 = arith.constant 0 : index
    %271 = vector.load %arg6[%c2_255, %c7_256, %c0_257, %c0_258] : memref<3x9x16x32xbf16, #tpu.memory_space<vmem>>, vector<1x1x16x32xbf16>
    %272 = vector.shape_cast %271 : vector<1x1x16x32xbf16> to vector<16x32xbf16>
    %273 = arith.truncf %270 : vector<256x16xf32> to vector<256x16xbf16>
    %cst_259 = arith.constant dense<0.000000e+00> : vector<256x32xf32>
    %274 = tpu.matmul %273, %272, %cst_259 {dimension_numbers = #tpu.dot_dimension_numbers<[1], [0], [0], [1], [0, 0, 1, 1], [], []>} : vector<256x16xbf16>, vector<16x32xbf16>, vector<256x32xf32> -> vector<256x32xf32>
    %275 = arith.addf %268, %274 : vector<256x32xf32>
    %c2_260 = arith.constant 2 : index
    %c9_261 = arith.constant 9 : index
    %c0_262 = arith.constant 0 : index
    %276 = vector.load %arg11[%c2_260, %c9_261, %c0_262] : memref<18x32x16xf32, #tpu.memory_space<vmem>>, vector<16x16x16xf32>
    %277 = vector.shape_cast %276 : vector<16x16x16xf32> to vector<256x16xf32>
    %c2_263 = arith.constant 2 : index
    %c8_264 = arith.constant 8 : index
    %c0_265 = arith.constant 0 : index
    %c0_266 = arith.constant 0 : index
    %278 = vector.load %arg6[%c2_263, %c8_264, %c0_265, %c0_266] : memref<3x9x16x32xbf16, #tpu.memory_space<vmem>>, vector<1x1x16x32xbf16>
    %279 = vector.shape_cast %278 : vector<1x1x16x32xbf16> to vector<16x32xbf16>
    %280 = arith.truncf %277 : vector<256x16xf32> to vector<256x16xbf16>
    %cst_267 = arith.constant dense<0.000000e+00> : vector<256x32xf32>
    %281 = tpu.matmul %280, %279, %cst_267 {dimension_numbers = #tpu.dot_dimension_numbers<[1], [0], [0], [1], [0, 0, 1, 1], [], []>} : vector<256x16xbf16>, vector<16x32xbf16>, vector<256x32xf32> -> vector<256x32xf32>
    %282 = arith.addf %275, %281 : vector<256x32xf32>
    %c2_268 = arith.constant 2 : index
    %c0_269 = arith.constant 0 : index
    %c0_270 = arith.constant 0 : index
    %283 = vector.load %arg7[%c2_268, %c0_269, %c0_270] : memref<3x1x32xf32, #tpu.memory_space<vmem>>, vector<1x1x32xf32>
    %284 = vector.shape_cast %283 : vector<1x1x32xf32> to vector<1x32xf32>
    %285 = vector.broadcast %284 : vector<1x32xf32> to vector<256x32xf32>
    %286 = arith.addf %282, %285 : vector<256x32xf32>
    %cst_271 = arith.constant 0.000000e+00 : f32
    %287 = vector.broadcast %cst_271 : f32 to vector<256x32xf32>
    %288 = arith.subf %287, %286 : vector<256x32xf32>
    %289 = math.exp %288 : vector<256x32xf32>
    %cst_272 = arith.constant 1.000000e+00 : f32
    %290 = vector.broadcast %cst_272 : f32 to vector<256x32xf32>
    %291 = arith.addf %290, %289 : vector<256x32xf32>
    %292 = tpu.reciprocal %291 {approx = true} : vector<256x32xf32> -> vector<256x32xf32>
    %293 = arith.mulf %286, %292 : vector<256x32xf32>
    %c0_273 = arith.constant 0 : index
    %c0_274 = arith.constant 0 : index
    %294 = vector.load %arg8[%c0_273, %c0_274] : memref<64x32xbf16, #tpu.memory_space<vmem>>, vector<64x32xbf16>
    %295 = vector.extract_strided_slice %294 {offsets = [0, 0], sizes = [32, 32], strides = [1, 1]} : vector<64x32xbf16> to vector<32x32xbf16>
    %296 = arith.truncf %293 : vector<256x32xf32> to vector<256x32xbf16>
    %cst_275 = arith.constant dense<0.000000e+00> : vector<256x32xf32>
    %297 = tpu.matmul %296, %295, %cst_275 {dimension_numbers = #tpu.dot_dimension_numbers<[1], [0], [0], [1], [0, 0, 1, 1], [], []>} : vector<256x32xbf16>, vector<32x32xbf16>, vector<256x32xf32> -> vector<256x32xf32>
    %298 = vector.extract_strided_slice %294 {offsets = [32, 0], sizes = [32, 32], strides = [1, 1]} : vector<64x32xbf16> to vector<32x32xbf16>
    %299 = arith.truncf %15 : vector<256x32xf32> to vector<256x32xbf16>
    %cst_276 = arith.constant dense<0.000000e+00> : vector<256x32xf32>
    %300 = tpu.matmul %299, %298, %cst_276 {dimension_numbers = #tpu.dot_dimension_numbers<[1], [0], [0], [1], [0, 0, 1, 1], [], []>} : vector<256x32xbf16>, vector<32x32xbf16>, vector<256x32xf32> -> vector<256x32xf32>
    %301 = arith.addf %297, %300 : vector<256x32xf32>
    %c0_277 = arith.constant 0 : index
    %c0_278 = arith.constant 0 : index
    %302 = vector.load %arg9[%c0_277, %c0_278] : memref<1x32xf32, #tpu.memory_space<vmem>>, vector<1x32xf32>
    %303 = vector.broadcast %302 : vector<1x32xf32> to vector<256x32xf32>
    %304 = arith.addf %301, %303 : vector<256x32xf32>
    %cst_279 = arith.constant 0.000000e+00 : f32
    %305 = vector.broadcast %cst_279 : f32 to vector<256x32xf32>
    %306 = arith.subf %305, %304 : vector<256x32xf32>
    %307 = math.exp %306 : vector<256x32xf32>
    %cst_280 = arith.constant 1.000000e+00 : f32
    %308 = vector.broadcast %cst_280 : f32 to vector<256x32xf32>
    %309 = arith.addf %308, %307 : vector<256x32xf32>
    %310 = tpu.reciprocal %309 {approx = true} : vector<256x32xf32> -> vector<256x32xf32>
    %311 = arith.mulf %304, %310 : vector<256x32xf32>
    %c0_281 = arith.constant 0 : index
    %c0_282 = arith.constant 0 : index
    %c0_283 = arith.constant 0 : index
    %312 = vector.load %arg10[%c0_281, %c0_282, %c0_283] : memref<1x256x32xf32, #tpu.memory_space<vmem>>, vector<1x256x32xf32>
    %313 = vector.shape_cast %312 : vector<1x256x32xf32> to vector<256x32xf32>
    %314 = vector.shape_cast %311 : vector<256x32xf32> to vector<1x256x32xf32>
    tpu.vector_store %arg10[%c0_281, %c0_282, %c0_283], %314 {strides = array<i32>} : memref<1x256x32xf32, #tpu.memory_space<vmem>>, vector<1x256x32xf32>,
    return
  }
  func.func @transform_0(%arg0: i32) -> (i32, i32, i32) {
    %c0_i32 = arith.constant 0 : i32
    %c0_i32_0 = arith.constant 0 : i32
    %c0_i32_1 = arith.constant 0 : i32
    return %arg0, %c0_i32, %c0_i32_0 : i32, i32, i32
  }
  func.func @transform_1(%arg0: i32) -> (i32, i32) {
    %c0_i32 = arith.constant 0 : i32
    %c0_i32_0 = arith.constant 0 : i32
    %c0_i32_1 = arith.constant 0 : i32
    return %c0_i32, %c0_i32_0 : i32, i32
  }
  func.func @transform_2(%arg0: i32) -> (i32, i32) {
    %c0_i32 = arith.constant 0 : i32
    %c0_i32_0 = arith.constant 0 : i32
    %c0_i32_1 = arith.constant 0 : i32
    return %c0_i32, %c0_i32_0 : i32, i32
  }
  func.func @transform_3(%arg0: i32) -> (i32, i32, i32) {
    %c0_i32 = arith.constant 0 : i32
    %c0_i32_0 = arith.constant 0 : i32
    %c0_i32_1 = arith.constant 0 : i32
    %c0_i32_2 = arith.constant 0 : i32
    return %c0_i32, %c0_i32_0, %c0_i32_1 : i32, i32, i32
  }
  func.func @transform_4(%arg0: i32) -> (i32, i32, i32) {
    %c0_i32 = arith.constant 0 : i32
    %c0_i32_0 = arith.constant 0 : i32
    %c0_i32_1 = arith.constant 0 : i32
    %c0_i32_2 = arith.constant 0 : i32
    return %c0_i32, %c0_i32_0, %c0_i32_1 : i32, i32, i32
  }
  func.func @transform_5(%arg0: i32) -> (i32, i32, i32, i32) {
    %c0_i32 = arith.constant 0 : i32
    %c0_i32_0 = arith.constant 0 : i32
    %c0_i32_1 = arith.constant 0 : i32
    %c0_i32_2 = arith.constant 0 : i32
    %c0_i32_3 = arith.constant 0 : i32
    return %c0_i32, %c0_i32_0, %c0_i32_1, %c0_i32_2 : i32, i32, i32, i32
  }
  func.func @transform_6(%arg0: i32) -> (i32, i32, i32) {
    %c0_i32 = arith.constant 0 : i32
    %c0_i32_0 = arith.constant 0 : i32
    %c0_i32_1 = arith.constant 0 : i32
    %c0_i32_2 = arith.constant 0 : i32
    return %c0_i32, %c0_i32_0, %c0_i32_1 : i32, i32, i32
  }
  func.func @transform_7(%arg0: i32) -> (i32, i32) {
    %c0_i32 = arith.constant 0 : i32
    %c0_i32_0 = arith.constant 0 : i32
    %c0_i32_1 = arith.constant 0 : i32
    return %c0_i32, %c0_i32_0 : i32, i32
  }
  func.func @transform_8(%arg0: i32) -> (i32, i32) {
    %c0_i32 = arith.constant 0 : i32
    %c0_i32_0 = arith.constant 0 : i32
    %c0_i32_1 = arith.constant 0 : i32
    return %c0_i32, %c0_i32_0 : i32, i32
  }
  func.func @transform_9(%arg0: i32) -> (i32, i32, i32) {
    %c0_i32 = arith.constant 0 : i32
    %c0_i32_0 = arith.constant 0 : i32
    %c0_i32_1 = arith.constant 0 : i32
    return %arg0, %c0_i32, %c0_i32_0 : i32, i32, i32
  }
}

</mosaic_0001>

<bundles_post_ra>
// kernel: c3_forward.1
= control target key start
LH: loop header
LB: loop body
LE: loop exit
PB: predicated region body
PF: predicated region fallthrough
CT: control target
= control target key end

     0   :  { %14 = vsyncpa [#allocation4], 0  ;;  %s15493_s0 = inlined_call_operand.vmem [shape: bf16[2,256,64], index: 0, kind: input, shape index: {}]   ;;  %s15494_s1 = inlined_call_operand.vmem [shape: bf16[64,64], index: 1, kind: input, shape index: {}]   ;;  %s15495_s2 = inlined_call_operand.vmem [shape: f32[1,64], index: 2, kind: input, shape index: {}]   ;;  %s15496_s3 = inlined_call_operand.vmem [shape: bf16[3,32,16], index: 3, kind: input, shape index: {}]   ;;  %s15497_s4 = inlined_call_operand.vmem [shape: f32[3,1,16], index: 4, kind: input, shape index: {}]   ;;  %s15498_s5 = inlined_call_operand.vmem [shape: bf16[3,9,16,32], index: 5, kind: input, shape index: {}]   ;;  %s15499_s6 = inlined_call_operand.vmem [shape: f32[3,1,32], index: 6, kind: input, shape index: {}]   ;;  %s15500_s7 = inlined_call_operand.vmem [shape: bf16[64,32], index: 7, kind: input, shape index: {}]   ;;  %s15501_s8 = inlined_call_operand.vmem [shape: f32[1,32], index: 8, kind: input, shape index: {}]   ;;  %s15502_s9 = inlined_call_operand.hbm [shape: f32[2,256,32], index: 9, kind: output, shape index: {}]  }
   0x1   :  { %16 = vsyncpa [#allocation4 + $0x1], 0  ;;  %s11479_s30 = smov 0   ;;  %s11481_s10 = smov 0  }
   0x2   :  { %s11483_s11 = smov 0   ;;  %s11485_s12 = smov 0  }
   0x3 LB: > { %s11500_s13 = sadd.s32 4294967295, %s11423_s12   ;;  %s9384_s14 = sadd.s32 4294967294, %s11423_s12   ;;  %s11423_s12 = sphi %s11485_s12, %s15798_s12   ;;  %s11419_s11 = sphi %s11483_s11, %s15797_s11   ;;  %s11415_s10 = sphi %s11481_s10, %s15796_s10   ;;  %s11411_s30 = sphi %s11479_s30, %s15795_s30  }
   0x4   : > { %s11504_s15 = sadd.s32 1, %s11423_s12   ;;  %s223_s16 = sadd.s32 1, %s11419_s11 }
   0x5   : > { %s220_s17 = ssub.s32 %s11423_s12, %s11504_s15  ;;  %p233_p0 = scmp.ne.s32.totalorder %s11419_s11, %s11415_s10 }
   0x6   : > { %p221_p1 = scmp.eq.s32.totalorder %s220_s17, 0  ;;  %p234_p2 = scmp.eq.s32.totalorder %s11500_s13, 1 }
   0x7   : > { %p239_p3 = scmp.ne.s32.totalorder %s11415_s10, %s11411_s30  ;;  %p240_p4 = scmp.eq.s32.totalorder %s9384_s14, 1 }
   0x8   : > { %s11515_s18 = scalar_select %p221_p1, %s11419_s11, %s223_s16  }
   0x9   : > { %p11517_p5 = por %p234_p2, %p233_p0  ;;  %p11521_p6 = por %p240_p4, %p239_p3 }
   0xa   : > { %p9387_p7 = scmp.ge.s32.totalorder %s11423_s12, 1  ;;  %p290_p8 = scmp.lt.s32.totalorder %s11423_s12, 3 }
   0xc   : > { %p291_p9 = pnand %p9387_p7, %p290_p8 }
   0xe   : > { %294 = sbr.rel (%p291_p9) target bundleno = 3365 (0xd25), region = 56 }
  0x13   : > { %v10236_v0 = vld [vmem:[%s15494_s1 + $0x18] sm:$0xff]  ;;  %p326_p10 = scmp.lt.s32.totalorder %s11500_s13, 1  ;;  %v10235_v1 = vld [vmem:[%s15494_s1 + $0x10] sm:$0xff]  ;;  %v10234_v2 = vld [vmem:[%s15494_s1 + $0x8] sm:$0xff]  ;;  %vm480_vm0 = vcmask 523264   ;;  %vm919_vm1 = vcmask 261120  }
  0x14   : > { %533 = vmatpush.bf16.msra.mxu0 %v10236_v0  ;;  %v10233_v3 = vld [vmem:[%s15494_s1] sm:$0xff]  ;;  %v10238_v31 = vld [vmem:[%s15496_s3 + $0x8] sm:$0xff]  ;;  %vm810_vm2 = vcmask 130048   ;;  %s323_s27 = sand.u32 1, %s11415_s10   ;;  %s10274_s22 = sshll.u32 %s11500_s13, 8 }
  0x15   : > { %s327_s25 = scalar_select %p326_p10, %s11500_s13, 1  ;;  %v11565_v12 = vld [vmem:[%s15495_s2] ss:$0 sm:$0xff]  ;;  %10275 = vmatpush.bf16.msra.mxu1 %v10238_v31 }
  0x16   : > { %v10237_v38 = vld [vmem:[%s15496_s3] sm:$0xff]  ;;  %s9307_s13 = scalar_lea.sflag [#allocation4], %s323_s27 }
  0x17   : > { %s10216_s28 = sshll.u32 %s327_s25, 7  ;;  %s9318_s25 = scalar_lea.hbm %s15502_s9, %s10274_s22 }
  0x18   : > { %534 = vmatpush.bf16.msra.mxu0 %v10235_v1  ;;  %s11544_s21 = scalar_lea.vmem %s15493_s0, %s10216_s28  ;;  %s11425_s28 = smov 96  }
  0x19   : > { %v10217_v4 = vld [vmem:[%s11544_s21] sm:$0xff]  ;;  %v10218_v5 = vld [vmem:[%s11544_s21 + $0x8] sm:$0xff]  ;;  %v10219_v6 = vld [vmem:[%s11544_s21 + $0x10] sm:$0xff]  ;;  %10276 = vmatpush.bf16.msra.mxu1 %v10237_v38  ;;  %s11381_s22 = scalar_lea.hbm %s15502_s9, 512 }
  0x1a   : > { %v10220_v7 = vld [vmem:[%s11544_s21 + $0x18] sm:$0xff]  ;;  %v10221_v8 = vld [vmem:[%s11544_s21 + $0x20] sm:$0xff]  ;;  %v10222_v9 = vld [vmem:[%s11544_s21 + $0x28] sm:$0xff] }
  0x1b   : > { %v10223_v10 = vld [vmem:[%s11544_s21 + $0x30] sm:$0xff]  ;;  %v10224_v11 = vld [vmem:[%s11544_s21 + $0x38] sm:$0xff]  ;;  %v10225_v13 = vld [vmem:[%s11544_s21 + $0x40] sm:$0xff] }
  0x1c   : > { %535 = vmatpush.bf16.msra.mxu0 %v10234_v2  ;;  %v10226_v23 = vld [vmem:[%s11544_s21 + $0x48] sm:$0xff]  ;;  %v10227_v41 = vld [vmem:[%s11544_s21 + $0x50] sm:$0xff]  ;;  %v10228_v60 = vld [vmem:[%s11544_s21 + $0x58] sm:$0xff] }
  0x20   : > { %536 = vmatpush.bf16.msra.mxu0 %v10233_v3 }
  0x23   : > { %9471 = vmatmul.msk.bf16.vlgmr.msra.gmra.mxu0 %vm480_vm0, %v10217_v4 }
  0x24   : > { %974 = vmatpush.bf16.msrb.mxu0 %v10238_v31 }
  0x28   : > { %975 = vmatpush.bf16.msrb.mxu0 %v10237_v38 }
  0x33   : > { %9472 = vmatmul.msk.bf16.gmra.mxu0 %vm480_vm0, %v10218_v5 }
  0x43   : > { %9473 = vmatmul.msk.bf16.gmra.mxu0 %vm480_vm0, %v10219_v6 }
  0x53   : > { %9474 = vmatmul.msk.bf16.gmra.mxu0 %vm480_vm0, %v10220_v7 }
  0x63   : > { %9475 = vmatmul.msk.bf16.gmra.mxu0 %vm480_vm0, %v10221_v8 }
  0x73   : > { %9476 = vmatmul.msk.bf16.gmra.mxu0 %vm480_vm0, %v10222_v9 }
  0x83   : > { %9477 = vmatmul.msk.bf16.gmra.mxu0 %vm480_vm0, %v10223_v10 }
  0x93   : > { %9478 = vmatmul.msk.bf16.gmra.mxu0 %vm480_vm0, %v10224_v11 }
  0xa0   : > { %v538_v14 = vpop.f32.mrf.mxu0 }
  0xa1   : > { %v539_v15 = vadd.f32 %v11565_v12, %v538_v14  ;;  %v10229_v14 = vld [vmem:[%s11544_s21 + $0x60] sm:$0xff] }
  0xa3   : > { %v618_v16 = vsub.f32 0.0, %v539_v15  ;;  %9479 = vmatmul.msk.bf16.gmra.mxu0 %vm480_vm0, %v10225_v13 }
  0xa5   : > { %v650_v17 = vmul.f32 1.442695, %v618_v16 }
  0xa7   : > { %10330 = vpow2.f32 %v650_v17 }
  0xa8   : > { %v540_v18 = vpop.f32.mrf.mxu0 }
  0xa9   : > { %v541_v19 = vadd.f32 %v11565_v12, %v540_v18 }
  0xab   : > { %v619_v20 = vsub.f32 0.0, %v541_v19 }
  0xad   : > { %v652_v21 = vmul.f32 1.442695, %v619_v20  ;;  %v10331_v22 = vpop.eup %10330 }
  0xae   : > { %v714_v26 = vadd.f32 1.0, %v10331_v22 }
  0xaf   : > { %10332 = vpow2.f32 %v652_v21 }
  0xb0   : > { %v543_v24 = vpop.f32.mrf.mxu0  ;;  %10334 = vrcp.f32 %v714_v26 }
  0xb1   : > { %v544_v25 = vadd.f32 %v11565_v12, %v543_v24 }
  0xb3   : > { %v620_v27 = vsub.f32 0.0, %v544_v25  ;;  %9480 = vmatmul.msk.bf16.gmra.mxu0 %vm480_vm0, %v10226_v23 }
  0xb5   : > { %v10333_v28 = vpop.eup %10332  ;;  %v654_v29 = vmul.f32 1.442695, %v620_v27 }
  0xb6   : > { %v715_v30 = vadd.f32 1.0, %v10333_v28  ;;  %v10335_v35 = vpop.eup %10334 }
  0xb7   : > { %v778_v40 = vmul.f32 %v10335_v35, %v539_v15 }
  0xb8   : > { %10336 = vrcp.f32 %v715_v30  ;;  %v545_v32 = vpop.f32.mrf.mxu0 }
  0xb9   : > { %10338 = vpow2.f32 %v654_v29  ;;  %v546_v33 = vadd.f32 %v11565_v12, %v545_v32 }
  0xbb   : > { %v621_v34 = vsub.f32 0.0, %v546_v33 }
  0xbd   : > { %v656_v36 = vmul.f32 1.442695, %v621_v34 }
  0xbe   : > { %v10337_v37 = vpop.eup %10336 }
  0xbf   : > { %v10339_v39 = vpop.eup %10338  ;;  %10340 = vpow2.f32 %v656_v36  ;;  %v779_v42 = vmul.f32 %v10337_v37, %v541_v19 }
  0xc0   : > { %v548_v43 = vpop.f32.mrf.mxu0  ;;  %v716_v46 = vadd.f32 1.0, %v10339_v39 }
  0xc1   : > { %v549_v44 = vadd.f32 %v11565_v12, %v548_v43  ;;  %v11583_v45 = vpack.c.bf16 %v779_v42, %v778_v40 }
  0xc2   : > { %10342 = vrcp.f32 %v716_v46 }
  0xc3   : > { %v622_v47 = vsub.f32 0.0, %v549_v44  ;;  %9481 = vmatmul.msk.bf16.gmra.mxu0 %vm480_vm0, %v10227_v41  ;;  %8716 = vrot.lane.b32.xlu0 %v11583_v45, %s11425_s28 }
  0xc5   : > { %v10341_v48 = vpop.eup %10340  ;;  %v658_v49 = vmul.f32 1.442695, %v622_v47 }
  0xc6   : > { %v717_v50 = vadd.f32 1.0, %v10341_v48 }
  0xc8   : > { %10344 = vrcp.f32 %v717_v50  ;;  %v550_v51 = vpop.f32.mrf.mxu0  ;;  %v10343_v54 = vpop.eup %10342 }
  0xc9   : > { %10346 = vpow2.f32 %v658_v49  ;;  %v551_v52 = vadd.f32 %v11565_v12, %v550_v51  ;;  %v780_v58 = vmul.f32 %v10343_v54, %v544_v25  ;;  %v10231_v51 = vld [vmem:[%s11544_s21 + $0x70] sm:$0xff] }
  0xcb   : > { %v623_v53 = vsub.f32 0.0, %v551_v52 }
  0xcd   : > { %v660_v55 = vmul.f32 1.442695, %v623_v53 }
  0xce   : > { %v10345_v56 = vpop.eup %10344 }
  0xcf   : > { %v10347_v57 = vpop.eup %10346  ;;  %v781_v59 = vmul.f32 %v10345_v56, %v546_v33  ;;  %10348 = vpow2.f32 %v660_v55  ;;  %v10230_v33 = vld [vmem:[%s11544_s21 + $0x68] sm:$0xff] }
  0xd0   : > { %v553_v61 = vpop.f32.mrf.mxu0  ;;  %v718_v0 = vadd.f32 1.0, %v10347_v57 }
  0xd1   : > { %v554_v62 = vadd.f32 %v11565_v12, %v553_v61  ;;  %v11591_v63 = vpack.c.bf16 %v781_v59, %v780_v58 }
  0xd2   : > { %10350 = vrcp.f32 %v718_v0 }
  0xd3   : > { %v624_v1 = vsub.f32 0.0, %v554_v62  ;;  %9482 = vmatmul.msk.bf16.gmra.mxu0 %vm480_vm0, %v10228_v60  ;;  %8718 = vrot.lane.b32.xlu0 %v11591_v63, %s11425_s28 }
  0xd5   : > { %v10349_v2 = vpop.eup %10348  ;;  %v662_v3 = vmul.f32 1.442695, %v624_v1 }
  0xd6   : > { %v719_v4 = vadd.f32 1.0, %v10349_v2 }
  0xd8   : > { %10352 = vrcp.f32 %v719_v4  ;;  %v555_v5 = vpop.f32.mrf.mxu0  ;;  %v10351_v8 = vpop.eup %10350 }
  0xd9   : > { %10354 = vpow2.f32 %v662_v3  ;;  %v556_v6 = vadd.f32 %v11565_v12, %v555_v5  ;;  %v782_v13 = vmul.f32 %v10351_v8, %v549_v44 }
  0xdb   : > { %v625_v7 = vsub.f32 0.0, %v556_v6 }
  0xdd   : > { %v664_v9 = vmul.f32 1.442695, %v625_v7  ;;  %v10232_v7 = vld [vmem:[%s11544_s21 + $0x78] sm:$0xff] }
  0xde   : > { %v10353_v10 = vpop.eup %10352 }
  0xdf   : > { %v10355_v11 = vpop.eup %10354  ;;  %10356 = vpow2.f32 %v664_v9  ;;  %v783_v15 = vmul.f32 %v10353_v10, %v551_v52 }
  0xe0   : > { %v558_v16 = vpop.f32.mrf.mxu0  ;;  %v720_v19 = vadd.f32 1.0, %v10355_v11 }
  0xe1   : > { %v559_v17 = vadd.f32 %v11565_v12, %v558_v16  ;;  %v889_v18 = vpack.c.bf16 %v783_v15, %v782_v13 }
  0xe2   : > { %10358 = vrcp.f32 %v720_v19 }
  0xe3   : > { %v626_v20 = vsub.f32 0.0, %v559_v17  ;;  %9483 = vmatmul.msk.bf16.gmra.mxu0 %vm480_vm0, %v10229_v14  ;;  %8720 = vrot.lane.b32.xlu1 %v889_v18, %s11425_s28 }
  0xe4   : > { %9497 = vmatmul.msk.bf16.vlgmr.msra.gmra.mxu1 %vm919_vm1, %v889_v18 }
  0xe5   : > { %v10357_v21 = vpop.eup %10356  ;;  %v666_v22 = vmul.f32 1.442695, %v626_v20 }
  0xe6   : > { %v721_v23 = vadd.f32 1.0, %v10357_v21 }
  0xe8   : > { %10360 = vrcp.f32 %v721_v23  ;;  %v560_v24 = vpop.f32.mrf.mxu0  ;;  %v10359_v27 = vpop.eup %10358 }
  0xe9   : > { %10362 = vpow2.f32 %v666_v22  ;;  %v561_v25 = vadd.f32 %v11565_v12, %v560_v24  ;;  %v784_v31 = vmul.f32 %v10359_v27, %v554_v62 }
  0xeb   : > { %v627_v26 = vsub.f32 0.0, %v561_v25 }
  0xed   : > { %v668_v28 = vmul.f32 1.442695, %v627_v26 }
  0xee   : > { %v10361_v29 = vpop.eup %10360 }
  0xef   : > { %v10363_v30 = vpop.eup %10362  ;;  %v785_v32 = vmul.f32 %v10361_v29, %v556_v6  ;;  %10364 = vpow2.f32 %v668_v28 }
  0xf0   : > { %v563_v34 = vpop.f32.mrf.mxu0  ;;  %v722_v37 = vadd.f32 1.0, %v10363_v30 }
  0xf1   : > { %v564_v35 = vadd.f32 %v11565_v12, %v563_v34  ;;  %v890_v36 = vpack.c.bf16 %v785_v32, %v784_v31 }
  0xf2   : > { %10366 = vrcp.f32 %v722_v37 }
  0xf3   : > { %v628_v38 = vsub.f32 0.0, %v564_v35  ;;  %9484 = vmatmul.msk.bf16.gmra.mxu0 %vm480_vm0, %v10230_v33  ;;  %8722 = vrot.lane.b32.xlu1 %v890_v36, %s11425_s28 }
  0xf4   : > { %9498 = vmatmul.msk.bf16.gmra.mxu1 %vm919_vm1, %v890_v36 }
  0xf5   : > { %v10365_v39 = vpop.eup %10364  ;;  %v670_v40 = vmul.f32 1.442695, %v628_v38 }
  0xf6   : > { %v723_v41 = vadd.f32 1.0, %v10365_v39 }
  0xf8   : > { %10368 = vrcp.f32 %v723_v41  ;;  %v565_v42 = vpop.f32.mrf.mxu0  ;;  %v10367_v46 = vpop.eup %10366 }
  0xf9   : > { %10370 = vpow2.f32 %v670_v40  ;;  %v566_v43 = vadd.f32 %v11565_v12, %v565_v42  ;;  %v786_v50 = vmul.f32 %v10367_v46, %v559_v17 }
  0xfb   : > { %v629_v44 = vsub.f32 0.0, %v566_v43 }
  0xfd   : > { %v672_v47 = vmul.f32 1.442695, %v629_v44 }
  0xfe   : > { %v10369_v48 = vpop.eup %10368 }
  0xff   : > { %v10371_v49 = vpop.eup %10370  ;;  %10372 = vpow2.f32 %v672_v47  ;;  %v787_v52 = vmul.f32 %v10369_v48, %v561_v25 }
 0x100   : > { %v568_v53 = vpop.f32.mrf.mxu0  ;;  %v724_v56 = vadd.f32 1.0, %v10371_v49 }
 0x101   : > { %v569_v54 = vadd.f32 %v11565_v12, %v568_v53  ;;  %v891_v55 = vpack.c.bf16 %v787_v52, %v786_v50 }
 0x102   : > { %10374 = vrcp.f32 %v724_v56 }
 0x103   : > { %v630_v57 = vsub.f32 0.0, %v569_v54  ;;  %9485 = vmatmul.msk.bf16.gmra.mxu0 %vm480_vm0, %v10231_v51  ;;  %8724 = vrot.lane.b32.xlu2 %v891_v55, %s11425_s28 }
 0x104   : > { %9499 = vmatmul.msk.bf16.gmra.mxu1 %vm919_vm1, %v891_v55 }
 0x105   : > { %v10373_v58 = vpop.eup %10372  ;;  %v674_v59 = vmul.f32 1.442695, %v630_v57 }
 0x106   : > { %v725_v60 = vadd.f32 1.0, %v10373_v58 }
 0x108   : > { %10376 = vrcp.f32 %v725_v60  ;;  %v570_v61 = vpop.f32.mrf.mxu0  ;;  %v10375_v1 = vpop.eup %10374 }
 0x109   : > { %10378 = vpow2.f32 %v674_v59  ;;  %v571_v62 = vadd.f32 %v11565_v12, %v570_v61  ;;  %v788_v5 = vmul.f32 %v10375_v1, %v564_v35 }
 0x10b   : > { %v631_v0 = vsub.f32 0.0, %v571_v62 }
 0x10d   : > { %v676_v2 = vmul.f32 1.442695, %v631_v0 }
 0x10e   : > { %v10377_v3 = vpop.eup %10376 }
 0x10f   : > { %v10379_v4 = vpop.eup %10378  ;;  %v789_v6 = vmul.f32 %v10377_v3, %v566_v43  ;;  %10380 = vpow2.f32 %v676_v2 }
 0x110   : > { %v573_v8 = vpop.f32.mrf.mxu0  ;;  %v726_v11 = vadd.f32 1.0, %v10379_v4 }
 0x111   : > { %v574_v9 = vadd.f32 %v11565_v12, %v573_v8  ;;  %v892_v10 = vpack.c.bf16 %v789_v6, %v788_v5 }
 0x112   : > { %10382 = vrcp.f32 %v726_v11 }
 0x113   : > { %v632_v13 = vsub.f32 0.0, %v574_v9  ;;  %9486 = vmatmul.msk.bf16.gmra.mxu0 %vm480_vm0, %v10232_v7  ;;  %8726 = vrot.lane.b32.xlu2 %v892_v10, %s11425_s28 }
 0x114   : > { %9500 = vmatmul.msk.bf16.gmra.mxu1 %vm919_vm1, %v892_v10 }
 0x115   : > { %v10381_v14 = vpop.eup %10380  ;;  %v678_v15 = vmul.f32 1.442695, %v632_v13 }
 0x116   : > { %v727_v16 = vadd.f32 1.0, %v10381_v14 }
 0x118   : > { %10384 = vrcp.f32 %v727_v16  ;;  %v575_v17 = vpop.f32.mrf.mxu0  ;;  %v10383_v20 = vpop.eup %10382 }
 0x119   : > { %10386 = vpow2.f32 %v678_v15  ;;  %v576_v18 = vadd.f32 %v11565_v12, %v575_v17  ;;  %v790_v24 = vmul.f32 %v10383_v20, %v569_v54 }
 0x11b   : > { %v633_v19 = vsub.f32 0.0, %v576_v18 }
 0x11d   : > { %v680_v21 = vmul.f32 1.442695, %v633_v19 }
 0x11e   : > { %v10385_v22 = vpop.eup %10384 }
 0x11f   : > { %v10387_v23 = vpop.eup %10386  ;;  %v791_v25 = vmul.f32 %v10385_v22, %v571_v62  ;;  %10388 = vpow2.f32 %v680_v21 }
 0x120   : > { %v578_v26 = vpop.f32.mrf.mxu0  ;;  %v728_v29 = vadd.f32 1.0, %v10387_v23  ;;  %v11426_v23 = vmov 0.0  }
 0x121   : > { %v579_v27 = vadd.f32 %v11565_v12, %v578_v26  ;;  %v893_v28 = vpack.c.bf16 %v791_v25, %v790_v24  ;;  %824 = vst.msk [vmem:[#allocation2 + $0x68] sm:$0xff] %vm810_vm2, %v11426_v23 }
 0x122   : > { %10390 = vrcp.f32 %v728_v29  ;;  %811 = vst.msk [vmem:[#allocation2] sm:$0xff] %vm810_vm2, %v11426_v23  ;;  %v11659_v29 = vld [vmem:[%s15497_s4] ss:$0 sm:$0xff] }
 0x123   : > { %v634_v30 = vsub.f32 0.0, %v579_v27  ;;  %8728 = vrot.lane.b32.xlu0 %v893_v28, %s11425_s28  ;;  %9495 = vmatmul.msk.bf16.vlgmr.msrb.gmra.mxu0 %vm919_vm1, %v11583_v45  ;;  %812 = vst.msk [vmem:[#allocation2 + $0x8] sm:$0xff] %vm810_vm2, %v11426_v23 }
 0x124   : > { %9501 = vmatmul.msk.bf16.gmra.mxu1 %vm919_vm1, %v893_v28  ;;  %813 = vst.msk [vmem:[#allocation2 + $0x10] sm:$0xff] %vm810_vm2, %v11426_v23 }
 0x125   : > { %v10389_v31 = vpop.eup %10388  ;;  %v682_v32 = vmul.f32 1.442695, %v634_v30  ;;  %814 = vst.msk [vmem:[#allocation2 + $0x18] sm:$0xff] %vm810_vm2, %v11426_v23 }
 0x126   : > { %v729_v33 = vadd.f32 1.0, %v10389_v31  ;;  %815 = vst.msk [vmem:[#allocation2 + $0x20] sm:$0xff] %vm810_vm2, %v11426_v23 }
 0x127   : > { %816 = vst.msk [vmem:[#allocation2 + $0x28] sm:$0xff] %vm810_vm2, %v11426_v23 }
 0x128   : > { %10392 = vrcp.f32 %v729_v33  ;;  %v580_v34 = vpop.f32.mrf.mxu0  ;;  %v10391_v37 = vpop.eup %10390  ;;  %817 = vst.msk [vmem:[#allocation2 + $0x30] sm:$0xff] %vm810_vm2, %v11426_v23 }
 0x129   : > { %10394 = vpow2.f32 %v682_v32  ;;  %v581_v35 = vadd.f32 %v11565_v12, %v580_v34  ;;  %v792_v41 = vmul.f32 %v10391_v37, %v574_v9  ;;  %818 = vst.msk [vmem:[#allocation2 + $0x38] sm:$0xff] %vm810_vm2, %v11426_v23 }
 0x12a   : > { %819 = vst.msk [vmem:[#allocation2 + $0x40] sm:$0xff] %vm810_vm2, %v11426_v23 }
 0x12b   : > { %v635_v36 = vsub.f32 0.0, %v581_v35  ;;  %820 = vst.msk [vmem:[#allocation2 + $0x48] sm:$0xff] %vm810_vm2, %v11426_v23 }
 0x12c   : > { %821 = vst.msk [vmem:[#allocation2 + $0x50] sm:$0xff] %vm810_vm2, %v11426_v23 }
 0x12d   : > { %v684_v38 = vmul.f32 1.442695, %v635_v36  ;;  %822 = vst.msk [vmem:[#allocation2 + $0x58] sm:$0xff] %vm810_vm2, %v11426_v23 }
 0x12e   : > { %v10393_v39 = vpop.eup %10392  ;;  %823 = vst.msk [vmem:[#allocation2 + $0x60] sm:$0xff] %vm810_vm2, %v11426_v23 }
 0x12f   : > { %v10395_v40 = vpop.eup %10394  ;;  %v793_v42 = vmul.f32 %v10393_v39, %v576_v18  ;;  %10396 = vpow2.f32 %v684_v38  ;;  %825 = vst.msk [vmem:[#allocation2 + $0x70] sm:$0xff] %vm810_vm2, %v11426_v23 }
 0x130   : > { %v583_v45 = vpop.f32.mrf.mxu0  ;;  %v730_v46 = vadd.f32 1.0, %v10395_v40  ;;  %826 = vst.msk [vmem:[#allocation2 + $0x78] sm:$0xff] %vm810_vm2, %v11426_v23 }
 0x131   : > { %v584_v43 = vadd.f32 %v11565_v12, %v583_v45  ;;  %v894_v44 = vpack.c.bf16 %v793_v42, %v792_v41  ;;  %827 = vst.msk [vmem:[#allocation2 + $0x80] sm:$0xff] %vm810_vm2, %v11426_v23 }
 0x132   : > { %10398 = vrcp.f32 %v730_v46  ;;  %828 = vst.msk [vmem:[#allocation2 + $0x88] sm:$0xff] %vm810_vm2, %v11426_v23 }
 0x133   : > { %v636_v47 = vsub.f32 0.0, %v584_v43  ;;  %8730 = vrot.lane.b32.xlu1 %v894_v44, %s11425_s28  ;;  %9496 = vmatmul.msk.bf16.gmra.mxu0 %vm919_vm1, %v11591_v63  ;;  %829 = vst.msk [vmem:[#allocation2 + $0x90] sm:$0xff] %vm810_vm2, %v11426_v23 }
 0x134   : > { %9502 = vmatmul.msk.bf16.gmra.mxu1 %vm919_vm1, %v894_v44  ;;  %830 = vst.msk [vmem:[#allocation2 + $0x98] sm:$0xff] %vm810_vm2, %v11426_v23 }
 0x135   : > { %v10397_v48 = vpop.eup %10396  ;;  %v686_v49 = vmul.f32 1.442695, %v636_v47  ;;  %831 = vst.msk [vmem:[#allocation2 + $0xa0] sm:$0xff] %vm810_vm2, %v11426_v23 }
 0x136   : > { %v731_v50 = vadd.f32 1.0, %v10397_v48  ;;  %832 = vst.msk [vmem:[#allocation2 + $0xa8] sm:$0xff] %vm810_vm2, %v11426_v23 }
 0x137   : > { %833 = vst.msk [vmem:[#allocation2 + $0xb0] sm:$0xff] %vm810_vm2, %v11426_v23 }
 0x138   : > { %10400 = vrcp.f32 %v731_v50  ;;  %v585_v51 = vpop.f32.mrf.mxu0  ;;  %v10399_v54 = vpop.eup %10398  ;;  %834 = vst.msk [vmem:[#allocation2 + $0xb8] sm:$0xff] %vm810_vm2, %v11426_v23 }
 0x139   : > { %10402 = vpow2.f32 %v686_v49  ;;  %v586_v52 = vadd.f32 %v11565_v12, %v585_v51  ;;  %v794_v58 = vmul.f32 %v10399_v54, %v579_v27  ;;  %835 = vst.msk [vmem:[#allocation2 + $0xc0] sm:$0xff] %vm810_vm2, %v11426_v23 }
 0x13a   : > { %836 = vst.msk [vmem:[#allocation2 + $0xc8] sm:$0xff] %vm810_vm2, %v11426_v23 }
 0x13b   : > { %v637_v53 = vsub.f32 0.0, %v586_v52  ;;  %837 = vst.msk [vmem:[#allocation2 + $0xd0] sm:$0xff] %vm810_vm2, %v11426_v23 }
 0x13c   : > { %838 = vst.msk [vmem:[#allocation2 + $0xd8] sm:$0xff] %vm810_vm2, %v11426_v23 }
 0x13d   : > { %v688_v55 = vmul.f32 1.442695, %v637_v53  ;;  %839 = vst.msk [vmem:[#allocation2 + $0xe0] sm:$0xff] %vm810_vm2, %v11426_v23 }
 0x13e   : > { %v10401_v56 = vpop.eup %10400  ;;  %840 = vst.msk [vmem:[#allocation2 + $0xe8] sm:$0xff] %vm810_vm2, %v11426_v23 }
 0x13f   : > { %v10403_v57 = vpop.eup %10402  ;;  %v795_v59 = vmul.f32 %v10401_v56, %v581_v35  ;;  %10404 = vpow2.f32 %v688_v55  ;;  %841 = vst.msk [vmem:[#allocation2 + $0xf0] sm:$0xff] %vm810_vm2, %v11426_v23 }
 0x140   : > { %v588_v63 = vpop.f32.mrf.mxu0  ;;  %v732_v62 = vadd.f32 1.0, %v10403_v57  ;;  %842 = vst.msk [vmem:[#allocation2 + $0xf8] sm:$0xff] %vm810_vm2, %v11426_v23 }
 0x141   : > { %v589_v60 = vadd.f32 %v11565_v12, %v588_v63  ;;  %v895_v61 = vpack.c.bf16 %v795_v59, %v794_v58  ;;  %843 = vst.msk [vmem:[#allocation2 + $0x100] sm:$0xff] %vm810_vm2, %v11426_v23 }
 0x142   : > { %10406 = vrcp.f32 %v732_v62  ;;  %844 = vst.msk [vmem:[#allocation2 + $0x108] sm:$0xff] %vm810_vm2, %v11426_v23 }
 0x143   : > { %v638_v0 = vsub.f32 0.0, %v589_v60  ;;  %8732 = vrot.lane.b32.xlu2 %v895_v61, %s11425_s28  ;;  %845 = vst.msk [vmem:[#allocation2 + $0x110] sm:$0xff] %vm810_vm2, %v11426_v23 }
 0x144   : > { %9503 = vmatmul.msk.bf16.gmra.mxu1 %vm919_vm1, %v895_v61  ;;  %846 = vst.msk [vmem:[#allocation2 + $0x118] sm:$0xff] %vm810_vm2, %v11426_v23 }
 0x145   : > { %v10405_v1 = vpop.eup %10404  ;;  %v690_v2 = vmul.f32 1.442695, %v638_v0  ;;  %847 = vst.msk [vmem:[#allocation2 + $0x120] sm:$0xff] %vm810_vm2, %v11426_v23 }
 0x146   : > { %v733_v3 = vadd.f32 1.0, %v10405_v1  ;;  %848 = vst.msk [vmem:[#allocation2 + $0x128] sm:$0xff] %vm810_vm2, %v11426_v23 }
 0x147   : > { %849 = vst.msk [vmem:[#allocation2 + $0x130] sm:$0xff] %vm810_vm2, %v11426_v23 }
 0x148   : > { %10408 = vrcp.f32 %v733_v3  ;;  %v590_v4 = vpop.f32.mrf.mxu0  ;;  %v10407_v7 = vpop.eup %10406  ;;  %850 = vst.msk [vmem:[#allocation2 + $0x138] sm:$0xff] %vm810_vm2, %v11426_v23 }
 0x149   : > { %10410 = vpow2.f32 %v690_v2  ;;  %v591_v5 = vadd.f32 %v11565_v12, %v590_v4  ;;  %v796_v11 = vmul.f32 %v10407_v7, %v584_v43  ;;  %851 = vst.msk [vmem:[#allocation2 + $0x140] sm:$0xff] %vm810_vm2, %v11426_v23 }
 0x14a   : > { %852 = vst.msk [vmem:[#allocation2 + $0x148] sm:$0xff] %vm810_vm2, %v11426_v23 }
 0x14b   : > { %v639_v6 = vsub.f32 0.0, %v591_v5  ;;  %853 = vst.msk [vmem:[#allocation2 + $0x150] sm:$0xff] %vm810_vm2, %v11426_v23 }
 0x14c   : > { %854 = vst.msk [vmem:[#allocation2 + $0x158] sm:$0xff] %vm810_vm2, %v11426_v23 }
 0x14d   : > { %v692_v8 = vmul.f32 1.442695, %v639_v6  ;;  %855 = vst.msk [vmem:[#allocation2 + $0x160] sm:$0xff] %vm810_vm2, %v11426_v23 }
 0x14e   : > { %v10409_v9 = vpop.eup %10408  ;;  %856 = vst.msk [vmem:[#allocation2 + $0x168] sm:$0xff] %vm810_vm2, %v11426_v23 }
 0x14f   : > { %v10411_v10 = vpop.eup %10410  ;;  %v797_v13 = vmul.f32 %v10409_v9, %v586_v52  ;;  %10412 = vpow2.f32 %v692_v8  ;;  %857 = vst.msk [vmem:[#allocation2 + $0x170] sm:$0xff] %vm810_vm2, %v11426_v23 }
 0x150   : > { %v593_v14 = vpop.f32.mrf.mxu0  ;;  %v734_v17 = vadd.f32 1.0, %v10411_v10  ;;  %858 = vst.msk [vmem:[#allocation2 + $0x178] sm:$0xff] %vm810_vm2, %v11426_v23 }
 0x151   : > { %v11638_v15 = vadd.f32 %v11565_v12, %v593_v14  ;;  %v896_v16 = vpack.c.bf16 %v797_v13, %v796_v11  ;;  %859 = vst.msk [vmem:[#allocation2 + $0x180] sm:$0xff] %vm810_vm2, %v11426_v23 }
 0x152   : > { %10414 = vrcp.f32 %v734_v17  ;;  %860 = vst.msk [vmem:[#allocation2 + $0x188] sm:$0xff] %vm810_vm2, %v11426_v23 }
 0x153   : > { %v640_v18 = vsub.f32 0.0, %v11638_v15  ;;  %8734 = vrot.lane.b32.xlu0 %v896_v16, %s11425_s28  ;;  %861 = vst.msk [vmem:[#allocation2 + $0x190] sm:$0xff] %vm810_vm2, %v11426_v23 }
 0x154   : > { %9504 = vmatmul.msk.bf16.gmra.mxu1 %vm919_vm1, %v896_v16  ;;  %862 = vst.msk [vmem:[#allocation2 + $0x198] sm:$0xff] %vm810_vm2, %v11426_v23 }
 0x155   : > { %v10413_v19 = vpop.eup %10412  ;;  %v694_v20 = vmul.f32 1.442695, %v640_v18  ;;  %863 = vst.msk [vmem:[#allocation2 + $0x1a0] sm:$0xff] %vm810_vm2, %v11426_v23 }
 0x156   : > { %v735_v21 = vadd.f32 1.0, %v10413_v19  ;;  %864 = vst.msk [vmem:[#allocation2 + $0x1a8] sm:$0xff] %vm810_vm2, %v11426_v23 }
 0x157   : > { %865 = vst.msk [vmem:[#allocation2 + $0x1b0] sm:$0xff] %vm810_vm2, %v11426_v23 }
 0x158   : > { %10416 = vrcp.f32 %v735_v21  ;;  %v595_v22 = vpop.f32.mrf.mxu0  ;;  %v10415_v26 = vpop.eup %10414  ;;  %866 = vst.msk [vmem:[#allocation2 + $0x1b8] sm:$0xff] %vm810_vm2, %v11426_v23 }
 0x159   : > { %10418 = vpow2.f32 %v694_v20  ;;  %v596_v24 = vadd.f32 %v11565_v12, %v595_v22  ;;  %v798_v31 = vmul.f32 %v10415_v26, %v589_v60  ;;  %867 = vst.msk [vmem:[#allocation2 + $0x1c0] sm:$0xff] %vm810_vm2, %v11426_v23 }
 0x15a   : > { %868 = vst.msk [vmem:[#allocation2 + $0x1c8] sm:$0xff] %vm810_vm2, %v11426_v23 }
 0x15b   : > { %v641_v25 = vsub.f32 0.0, %v596_v24  ;;  %869 = vst.msk [vmem:[#allocation2 + $0x1d0] sm:$0xff] %vm810_vm2, %v11426_v23 }
 0x15c   : > { %870 = vst.msk [vmem:[#allocation2 + $0x1d8] sm:$0xff] %vm810_vm2, %v11426_v23 }
 0x15d   : > { %v696_v27 = vmul.f32 1.442695, %v641_v25  ;;  %871 = vst.msk [vmem:[#allocation2 + $0x1e0] sm:$0xff] %vm810_vm2, %v11426_v23 }
 0x15e   : > { %v10417_v28 = vpop.eup %10416  ;;  %872 = vst.msk [vmem:[#allocation2 + $0x1e8] sm:$0xff] %vm810_vm2, %v11426_v23 }
 0x15f   : > { %v10419_v30 = vpop.eup %10418  ;;  %v799_v32 = vmul.f32 %v10417_v28, %v591_v5  ;;  %10420 = vpow2.f32 %v696_v27  ;;  %873 = vst.msk [vmem:[#allocation2 + $0x1f0] sm:$0xff] %vm810_vm2, %v11426_v23 }
 0x160   : > { %v598_v33 = vpop.f32.mrf.mxu0  ;;  %v736_v37 = vadd.f32 1.0, %v10419_v30  ;;  %874 = vst.msk [vmem:[#allocation2 + $0x1f8] sm:$0xff] %vm810_vm2, %v11426_v23 }
 0x161   : > { %v11668_v34 = vadd.f32 %v11565_v12, %v598_v33  ;;  %v987_v35 = vpop.f32.mrf.mxu1  ;;  %v897_v36 = vpack.c.bf16 %v799_v32, %v798_v31  ;;  %875 = vst.msk [vmem:[#allocation2 + $0x200] sm:$0xff] %vm810_vm2, %v11426_v23 }
 0x162   : > { %v11673_v38 = vadd.f32 %v11659_v29, %v987_v35  ;;  %10422 = vrcp.f32 %v736_v37  ;;  %876 = vst.msk [vmem:[#allocation2 + $0x208] sm:$0xff] %vm810_vm2, %v11426_v23 }
 0x163   : > { %v642_v39 = vsub.f32 0.0, %v11668_v34  ;;  %8736 = vrot.lane.b32.xlu1 %v897_v36, %s11425_s28  ;;  %877 = vst.msk [vmem:[#allocation2 + $0x210] sm:$0xff] %vm810_vm2, %v11426_v23 }
 0x164   : > { %v1061_v40 = vsub.f32 0.0, %v11673_v38  ;;  %9505 = vmatmul.msk.bf16.gmra.mxu1 %vm919_vm1, %v897_v36  ;;  %878 = vst.msk [vmem:[#allocation2 + $0x218] sm:$0xff] %vm810_vm2, %v11426_v23 }
 0x165   : > { %v10421_v41 = vpop.eup %10420  ;;  %v698_v42 = vmul.f32 1.442695, %v642_v39  ;;  %879 = vst.msk [vmem:[#allocation2 + $0x220] sm:$0xff] %vm810_vm2, %v11426_v23 }
 0x166   : > { %v737_v45 = vadd.f32 1.0, %v10421_v41  ;;  %v1097_v43 = vmul.f32 1.442695, %v1061_v40  ;;  %880 = vst.msk [vmem:[#allocation2 + $0x228] sm:$0xff] %vm810_vm2, %v11426_v23 }
 0x167   : > { %10424 = vpow2.f32 %v698_v42  ;;  %881 = vst.msk [vmem:[#allocation2 + $0x230] sm:$0xff] %vm810_vm2, %v11426_v23 }
 0x168   : > { %10426 = vrcp.f32 %v737_v45  ;;  %v600_v44 = vpop.f32.mrf.mxu0  ;;  %v10423_v49 = vpop.eup %10422  ;;  %882 = vst.msk [vmem:[#allocation2 + $0x238] sm:$0xff] %vm810_vm2, %v11426_v23 }
 0x169   : > { %10428 = vpow2.f32 %v1097_v43  ;;  %v11696_v46 = vadd.f32 %v11565_v12, %v600_v44  ;;  %v989_v47 = vpop.f32.mrf.mxu1  ;;  %v800_v54 = vmul.f32 %v10423_v49, %v11638_v15 }
 0x16a   : > { %v11735_v2 = vadd.f32 %v11659_v29, %v989_v47 }
 0x16b   : > { %v643_v48 = vsub.f32 0.0, %v11696_v46 }
 0x16c   : > { %v1062_v10 = vsub.f32 0.0, %v11735_v2 }
 0x16d   : > { %v10425_v50 = vpop.eup %10424  ;;  %v700_v51 = vmul.f32 1.442695, %v643_v48 }
 0x16e   : > { %v10427_v52 = vpop.eup %10426  ;;  %v738_v60 = vadd.f32 1.0, %v10425_v50  ;;  %v1099_v21 = vmul.f32 1.442695, %v1062_v10 }
 0x16f   : > { %v10429_v53 = vpop.eup %10428  ;;  %v801_v55 = vmul.f32 %v10427_v52, %v596_v24  ;;  %10430 = vpow2.f32 %v700_v51 }
 0x170   : > { %v1157_v56 = vadd.f32 1.0, %v10429_v53  ;;  %v603_v57 = vpop.f32.mrf.mxu0 }
 0x171   : > { %v11717_v58 = vadd.f32 %v11565_v12, %v603_v57  ;;  %v992_v59 = vpop.f32.mrf.mxu1  ;;  %v898_v63 = vpack.c.bf16 %v801_v55, %v800_v54 }
 0x172   : > { %10432 = vrcp.f32 %v1157_v56  ;;  %v11740_v4 = vadd.f32 %v11659_v29, %v992_v59 }
 0x173   : > { %v644_v61 = vsub.f32 0.0, %v11717_v58  ;;  %8738 = vrot.lane.b32.xlu2 %v898_v63, %s11425_s28  ;;  %10434 = vrcp.f32 %v738_v60 }
 0x174   : > { %9506 = vmatmul.msk.bf16.gmra.mxu1 %vm919_vm1, %v898_v63  ;;  %v1063_v14 = vsub.f32 0.0, %v11740_v4 }
 0x175   : > { %v10431_v62 = vpop.eup %10430  ;;  %v702_v0 = vmul.f32 1.442695, %v644_v61 }
 0x176   : > { %v739_v1 = vadd.f32 1.0, %v10431_v62  ;;  %v1101_v22 = vmul.f32 1.442695, %v1063_v14 }
 0x177   : > { %10436 = vpow2.f32 %v702_v0 }
 0x178   : > { %v10433_v3 = vpop.eup %10432  ;;  %10438 = vrcp.f32 %v739_v1  ;;  %v605_v5 = vpop.f32.mrf.mxu0 }
 0x179   : > { %v1221_v6 = vmul.f32 %v10433_v3, %v11673_v38  ;;  %v11746_v7 = vadd.f32 %v11565_v12, %v605_v5  ;;  %v994_v8 = vpop.f32.mrf.mxu1  ;;  %v10435_v13 = vpop.eup %10434 }
 0x17a   : > { %v11751_v9 = vadd.f32 %v11659_v29, %v994_v8  ;;  %v802_v19 = vmul.f32 %v10435_v13, %v11668_v34 }
 0x17b   : > { %1254 = vst.msk [vmem:[#allocation2 + $0x68] sm:$0xff] %vm810_vm2, %v1221_v6  ;;  %v645_v11 = vsub.f32 0.0, %v11746_v7 }
 0x17c   : > { %v1064_v18 = vsub.f32 0.0, %v11751_v9 }
 0x17d   : > { %v10437_v15 = vpop.eup %10436  ;;  %v704_v16 = vmul.f32 1.442695, %v645_v11 }
 0x17e   : > { %v10439_v17 = vpop.eup %10438  ;;  %v740_v25 = vadd.f32 1.0, %v10437_v15  ;;  %v1103_v30 = vmul.f32 1.442695, %v1064_v18 }
 0x17f   : > { %v803_v20 = vmul.f32 %v10439_v17, %v11696_v46  ;;  %10440 = vpow2.f32 %v704_v16 }
 0x180   : > { %v608_v24 = vpop.f32.mrf.mxu0  ;;  %10442 = vpow2.f32 %v1099_v21 }
 0x181   : > { %v11773_v26 = vadd.f32 %v11565_v12, %v608_v24  ;;  %v997_v27 = vpop.f32.mrf.mxu1  ;;  %v899_v28 = vpack.c.bf16 %v803_v20, %v802_v19  ;;  %10444 = vpow2.f32 %v1101_v22 }
 0x182   : > { %v11778_v31 = vadd.f32 %v11659_v29, %v997_v27  ;;  %10446 = vrcp.f32 %v740_v25 }
 0x183   : > { %v646_v32 = vsub.f32 0.0, %v11773_v26  ;;  %8740 = vrot.lane.b32.xlu0 %v899_v28, %s11425_s28  ;;  %10448 = vpow2.f32 %v1103_v30 }
 0x184   : > { %v1065_v33 = vsub.f32 0.0, %v11778_v31  ;;  %9507 = vmatmul.msk.bf16.gmra.mxu1 %vm919_vm1, %v899_v28 }
 0x185   : > { %v10441_v34 = vpop.eup %10440  ;;  %v706_v35 = vmul.f32 1.442695, %v646_v32 }
 0x186   : > { %v741_v36 = vadd.f32 1.0, %v10441_v34  ;;  %v1105_v37 = vmul.f32 1.442695, %v1065_v33  ;;  %v10443_v39 = vpop.eup %10442 }
 0x187   : > { %10450 = vpow2.f32 %v706_v35  ;;  %v10445_v42 = vpop.eup %10444  ;;  %v1158_v51 = vadd.f32 1.0, %v10443_v39 }
 0x188   : > { %10452 = vrcp.f32 %v741_v36  ;;  %v610_v38 = vpop.f32.mrf.mxu0  ;;  %v10447_v43 = vpop.eup %10446  ;;  %v1159_v55 = vadd.f32 1.0, %v10445_v42 }
 0x189   : > { %10454 = vpow2.f32 %v1105_v37  ;;  %v11799_v40 = vadd.f32 %v11565_v12, %v610_v38  ;;  %v999_v41 = vpop.f32.mrf.mxu1  ;;  %v10449_v46 = vpop.eup %10448  ;;  %v804_v54 = vmul.f32 %v10447_v43, %v11717_v58 }
 0x18a   : > { %v11804_v45 = vadd.f32 %v11659_v29, %v999_v41  ;;  %v1160_v57 = vadd.f32 1.0, %v10449_v46 }
 0x18b   : > { %v647_v44 = vsub.f32 0.0, %v11799_v40 }
 0x18c   : > { %v1066_v47 = vsub.f32 0.0, %v11804_v45 }
 0x18d   : > { %v10451_v48 = vpop.eup %10450  ;;  %v708_v49 = vmul.f32 1.442695, %v647_v44 }
 0x18e   : > { %v10453_v50 = vpop.eup %10452  ;;  %v1107_v52 = vmul.f32 1.442695, %v1066_v47  ;;  %v742_v63 = vadd.f32 1.0, %v10451_v48 }
 0x18f   : > { %v10455_v53 = vpop.eup %10454  ;;  %v805_v56 = vmul.f32 %v10453_v50, %v11746_v7  ;;  %10456 = vpow2.f32 %v708_v49 }
 0x190   : > { %v613_v59 = vpop.f32.mrf.mxu0  ;;  %10458 = vpow2.f32 %v1107_v52  ;;  %v1161_v58 = vadd.f32 1.0, %v10455_v53 }
 0x191   : > { %v11825_v60 = vadd.f32 %v11565_v12, %v613_v59  ;;  %v1002_v61 = vpop.f32.mrf.mxu1  ;;  %v900_v62 = vpack.c.bf16 %v805_v56, %v804_v54  ;;  %10460 = vrcp.f32 %v1158_v51 }
 0x192   : > { %v11830_v0 = vadd.f32 %v11659_v29, %v1002_v61  ;;  %10462 = vrcp.f32 %v1159_v55 }
 0x193   : > { %v648_v1 = vsub.f32 0.0, %v11825_v60  ;;  %8742 = vrot.lane.b32.xlu1 %v900_v62, %s11425_s28  ;;  %10464 = vrcp.f32 %v1160_v57 }
 0x194   : > { %v1067_v3 = vsub.f32 0.0, %v11830_v0  ;;  %9508 = vmatmul.msk.bf16.gmra.mxu1 %vm919_vm1, %v900_v62  ;;  %10466 = vrcp.f32 %v742_v63 }
 0x195   : > { %v10457_v5 = vpop.eup %10456  ;;  %v710_v6 = vmul.f32 1.442695, %v648_v1  ;;  %10468 = vrcp.f32 %v1161_v58 }
 0x196   : > { %v743_v7 = vadd.f32 1.0, %v10457_v5  ;;  %v1109_v8 = vmul.f32 1.442695, %v1067_v3  ;;  %v10459_v10 = vpop.eup %10458 }
 0x197   : > { %10470 = vpow2.f32 %v710_v6  ;;  %v10461_v11 = vpop.eup %10460  ;;  %v1162_v13 = vadd.f32 1.0, %v10459_v10 }
 0x198   : > { %10472 = vrcp.f32 %v743_v7  ;;  %v615_v14 = vpop.f32.mrf.mxu0  ;;  %v10463_v15 = vpop.eup %10462  ;;  %v1222_v25 = vmul.f32 %v10461_v11, %v11735_v2 }
 0x199   : > { %10474 = vpow2.f32 %v1109_v8  ;;  %v11851_v16 = vadd.f32 %v11565_v12, %v615_v14  ;;  %v1004_v17 = vpop.f32.mrf.mxu1  ;;  %v10465_v18 = vpop.eup %10464  ;;  %v1223_v30 = vmul.f32 %v10463_v15, %v11740_v4  ;;  %v10240_v15 = vld [vmem:[%s15498_s5 + $0x8] sm:$0xff] }
 0x19a   : > { %10476 = vrcp.f32 %v1162_v13  ;;  %v11856_v19 = vadd.f32 %v11659_v29, %v1004_v17  ;;  %v10467_v20 = vpop.eup %10466  ;;  %v1224_v34 = vmul.f32 %v10465_v18, %v11751_v9  ;;  %1255 = vst.msk [vmem:[#allocation2 + $0x70] sm:$0xff] %vm810_vm2, %v1222_v25  ;;  %10277 = vmatpush.bf16.msra.mxu2 %v10240_v15  ;;  %1444 = vmatpush.bf16.msrb.mxu1 %v10240_v15 }
 0x19b   : > { %v649_v21 = vsub.f32 0.0, %v11851_v16  ;;  %v10469_v22 = vpop.eup %10468  ;;  %v806_v35 = vmul.f32 %v10467_v20, %v11773_v26  ;;  %1256 = vst.msk [vmem:[#allocation2 + $0x88] sm:$0xff] %vm810_vm2, %v1223_v30  ;;  %10278 = vmatpush.bf16.msra.mxu3 %v10240_v15 }
 0x19c   : > { %v1068_v12 = vsub.f32 0.0, %v11856_v19  ;;  %v1225_v37 = vmul.f32 %v10469_v22, %v11778_v31  ;;  %1257 = vst.msk [vmem:[#allocation2 + $0x90] sm:$0xff] %vm810_vm2, %v1224_v34 }
 0x19d   : > { %v10471_v24 = vpop.eup %10470  ;;  %v712_v27 = vmul.f32 1.442695, %v649_v21 }
 0x19e   : > { %v10473_v28 = vpop.eup %10472  ;;  %v1111_v32 = vmul.f32 1.442695, %v1068_v12  ;;  %v744_v38 = vadd.f32 1.0, %v10471_v24  ;;  %1258 = vst.msk [vmem:[#allocation2 + $0xa8] sm:$0xff] %vm810_vm2, %v1225_v37 }
 0x19f   : > { %v10475_v33 = vpop.eup %10474  ;;  %v807_v36 = vmul.f32 %v10473_v28, %v11799_v40  ;;  %10478 = vpow2.f32 %v712_v27 }
 0x1a0   : > { %v10477_v2 = vpop.eup %10476  ;;  %v1163_v4 = vadd.f32 1.0, %v10475_v33  ;;  %v977_v39 = vpop.f32.mrf.mxu0  ;;  %10480 = vpow2.f32 %v1111_v32 }
 0x1a1   : > { %v1226_v41 = vmul.f32 %v10477_v2, %v11804_v45  ;;  %v11881_v9 = vadd.f32 %v11659_v29, %v977_v39  ;;  %v1007_v26 = vpop.f32.mrf.mxu1  ;;  %v901_v40 = vpack.c.bf16 %v807_v36, %v806_v35  ;;  %v1332_v39 = vld [vmem:[#allocation2 + $0x8] sm:$0xff] }
 0x1a2   : > { %10482 = vrcp.f32 %v1163_v4  ;;  %v11885_v23 = vadd.f32 %v11659_v29, %v1007_v26 }
 0x1a3   : > { %v1057_v31 = vsub.f32 0.0, %v11881_v9  ;;  %8744 = vrot.lane.b32.xlu2 %v901_v40, %s11425_s28  ;;  %10484 = vrcp.f32 %v744_v38  ;;  %1259 = vst.msk [vmem:[#allocation2 + $0xb0] sm:$0xff] %vm810_vm2, %v1226_v41  ;;  %v1333_v41 = vld [vmem:[#allocation2 + $0x10] sm:$0xff] }
 0x1a4   : > { %v1069_v42 = vsub.f32 0.0, %v11885_v23  ;;  %9509 = vmatmul.msk.bf16.gmra.mxu1 %vm919_vm1, %v901_v40 }
 0x1a5   : > { %v10479_v45 = vpop.eup %10478  ;;  %v1089_v43 = vmul.f32 1.442695, %v1057_v31 }
 0x1a6   : > { %v745_v44 = vadd.f32 1.0, %v10479_v45  ;;  %v1113_v46 = vmul.f32 1.442695, %v1069_v42  ;;  %v10481_v47 = vpop.eup %10480 }
 0x1a7   : > { %10486 = vpow2.f32 %v1089_v43  ;;  %v1164_v49 = vadd.f32 1.0, %v10481_v47  ;;  %v1367_v43 = vpack.c.bf16 %v1333_v41, %v1332_v39 }
 0x1a8   : > { %v10483_v48 = vpop.eup %10482  ;;  %10488 = vrcp.f32 %v745_v44  ;;  %v979_v50 = vpop.f32.mrf.mxu0 }
 0x1a9   : > { %v1227_v51 = vmul.f32 %v10483_v48, %v11830_v0  ;;  %10490 = vpow2.f32 %v1113_v46  ;;  %v11896_v52 = vadd.f32 %v11659_v29, %v979_v50  ;;  %v1009_v53 = vpop.f32.mrf.mxu1  ;;  %v10485_v54 = vpop.eup %10484  ;;  %v10244_v48 = vld [vmem:[%s15498_s5 + $0x28] sm:$0xff] }
 0x1aa   : > { %10492 = vrcp.f32 %v1164_v49  ;;  %v11899_v55 = vadd.f32 %v11659_v29, %v1009_v53  ;;  %v808_v63 = vmul.f32 %v10485_v54, %v11825_v60  ;;  %2459 = vmatpush.bf16.msra.mxu0 %v10244_v48 }
 0x1ab   : > { %1260 = vst.msk [vmem:[#allocation2 + $0xc8] sm:$0xff] %vm810_vm2, %v1227_v51  ;;  %v1058_v56 = vsub.f32 0.0, %v11896_v52 }
 0x1ac   : > { %v1070_v57 = vsub.f32 0.0, %v11899_v55 }
 0x1ad   : > { %v10487_v59 = vpop.eup %10486  ;;  %v1091_v61 = vmul.f32 1.442695, %v1058_v56 }
 0x1ae   : > { %v10489_v62 = vpop.eup %10488  ;;  %v1153_v58 = vadd.f32 1.0, %v10487_v59  ;;  %v1115_v0 = vmul.f32 1.442695, %v1070_v57 }
 0x1af   : > { %v10491_v1 = vpop.eup %10490  ;;  %v809_v3 = vmul.f32 %v10489_v62, %v11851_v16  ;;  %10494 = vpow2.f32 %v1091_v61 }
 0x1b0   : > { %v10493_v5 = vpop.eup %10492  ;;  %10496 = vrcp.f32 %v1153_v58  ;;  %v1165_v6 = vadd.f32 1.0, %v10491_v1  ;;  %v982_v7 = vpop.f32.mrf.mxu0 }
 0x1b1   : > { %v902_v8 = vpack.c.bf16 %v809_v3, %v808_v63  ;;  %v1228_v10 = vmul.f32 %v10493_v5, %v11856_v19  ;;  %10498 = vpow2.f32 %v1115_v0  ;;  %v11908_v11 = vadd.f32 %v11659_v29, %v982_v7  ;;  %v1012_v60 = vpop.f32.mrf.mxu1 }
 0x1b2   : > { %10500 = vrcp.f32 %v1165_v6  ;;  %v11911_v13 = vadd.f32 %v11659_v29, %v1012_v60  ;;  %v1344_v34 = vld [vmem:[#allocation2 + $0xc8] sm:$0xff] }
 0x1b3   : > { %1261 = vst.msk [vmem:[#allocation2 + $0xd0] sm:$0xff] %vm810_vm2, %v1228_v10  ;;  %v1059_v14 = vsub.f32 0.0, %v11908_v11  ;;  %8746 = vrot.lane.b32.xlu0 %v902_v8, %s11425_s28  ;;  %s9388_s28 = sshll.u32 %s323_s27, 8 }
 0x1b4   : > { %v1071_v16 = vsub.f32 0.0, %v11911_v13  ;;  %9510 = vmatmul.msk.bf16.gmra.mxu1 %vm919_vm1, %v902_v8  ;;  %s15259_s29 = scalar_lea.vmem [#allocation3], %s9388_s28  ;;  %s9321_s28 = sshll.u32 %s9318_s25, 4  ;;  %s9322_s28 = int_to_ptr.hbm [resolvable:$true] %s9321_s28 }
 0x1b5   : > { %v10495_v17 = vpop.eup %10494  ;;  %v1093_v18 = vmul.f32 1.442695, %v1059_v14  ;;  %s9319_s26 = sshll.u32 %s15259_s29, 4  ;;  %s11375_s14 = sshra.s32 %s9322_s28, 4  ;;  %s9320_s26 = int_to_ptr.vmem [resolvable:$true] %s9319_s26  ;;  %s11376_s14 = int_to_ptr.hbm [resolvable:$true] %s11375_s14 }
 0x1b6   : > { %v10497_v19 = vpop.eup %10496  ;;  %v1154_v20 = vadd.f32 1.0, %v10495_v17  ;;  %v1117_v21 = vmul.f32 1.442695, %v1071_v16  ;;  %s11377_s16 = scalar_lea.hbm %s11376_s14, 256  ;;  %p11382_p0 = scmp.lt.s32.totalorder %s11376_s14, %s15502_s9 }
 0x1b7   : > { %v10499_v22 = vpop.eup %10498  ;;  %v1217_v12 = vmul.f32 %v10497_v19, %v11881_v9  ;;  %10502 = vpow2.f32 %v1093_v18  ;;  %p11378_p11 = scmp.ne.s32.totalorder %s11376_s14, %s11377_s16  ;;  %p11383_p1 = scmp.lt.s32.totalorder %s11381_s22, %s11377_s16 }
 0x1b8   : > { %v10501_v24 = vpop.eup %10500  ;;  %10504 = vrcp.f32 %v1154_v20  ;;  %v1166_v25 = vadd.f32 1.0, %v10499_v22  ;;  %v984_v27 = vpop.f32.mrf.mxu0 }
 0x1b9   : > { %1250 = vst.msk [vmem:[#allocation2 + $0x28] sm:$0xff] %vm810_vm2, %v1217_v12  ;;  %v1229_v28 = vmul.f32 %v10501_v24, %v11885_v23  ;;  %10506 = vpow2.f32 %v1117_v21  ;;  %v11925_v30 = vadd.f32 %v11659_v29, %v984_v27  ;;  %v1014_v32 = vpop.f32.mrf.mxu1  ;;  %p11379_p12 = pnand %p11378_p11, %p11517_p5  ;;  %p11384_p2 = por %p11383_p1, %p11382_p0 }
 0x1ba   : > { %10508 = vrcp.f32 %v1166_v25  ;;  %v11928_v33 = vadd.f32 %v11659_v29, %v1014_v32  ;;  %v1345_v35 = vld [vmem:[#allocation2 + $0xd0] sm:$0xff] }
 0x1bb   : > { %1262 = vst.msk [vmem:[#allocation2 + $0xe8] sm:$0xff] %vm810_vm2, %v1229_v28  ;;  %v1060_v36 = vsub.f32 0.0, %v11925_v30  ;;  %v11932_v2 = vpack.c.bf16 %v1345_v35, %v1344_v34  ;;  %p11380_p13 = pneg %p11379_p12 }
 0x1bc   : > { %v1072_v37 = vsub.f32 0.0, %v11928_v33 }
 0x1bd   : > { %v10503_v38 = vpop.eup %10502  ;;  %v1095_v4 = vmul.f32 1.442695, %v1060_v36  ;;  %9523 = vmatmul.msk.bf16.vlgmr.msra.gmra.mxu2 %vm810_vm2, %v11932_v2  ;;  %p11385_p3 = pnand %p11384_p2, %p11380_p13 }
 0x1be   : > { %v10505_v9 = vpop.eup %10504  ;;  %v1155_v26 = vadd.f32 1.0, %v10503_v38  ;;  %v1119_v40 = vmul.f32 1.442695, %v1072_v37 }
 0x1bf   : > { %v10507_v23 = vpop.eup %10506  ;;  %v1218_v31 = vmul.f32 %v10505_v9, %v11896_v52  ;;  %10510 = vpow2.f32 %v1095_v4 }
 0x1c0   : > { %v10509_v42 = vpop.eup %10508  ;;  %10512 = vrcp.f32 %v1155_v26  ;;  %v1167_v45 = vadd.f32 1.0, %v10507_v23  ;;  %v1334_v17 = vld [vmem:[#allocation2 + $0x28] sm:$0xff] }
 0x1c1   : > { %1251 = vst.msk [vmem:[#allocation2 + $0x30] sm:$0xff] %vm810_vm2, %v1218_v31  ;;  %v1230_v44 = vmul.f32 %v10509_v42, %v11899_v55  ;;  %10514 = vpow2.f32 %v1119_v40  ;;  %v1017_v46 = vpop.f32.mrf.mxu1 }
 0x1c2   : > { %10516 = vrcp.f32 %v1167_v45  ;;  %v1018_v47 = vadd.f32 %v11659_v29, %v1017_v46  ;;  %v1346_v1 = vld [vmem:[#allocation2 + $0xe8] sm:$0xff] }
 0x1c3   : > { %1263 = vst.msk [vmem:[#allocation2 + $0xf0] sm:$0xff] %vm810_vm2, %v1230_v44  ;;  %v2351_v46 = vld [vmem:[#allocation2 + $0x69] sm:$0xff] }
 0x1c4   : > { %v1073_v49 = vsub.f32 0.0, %v1018_v47  ;;  %9517 = vmatmul.msk.bf16.vlgmr.msrb.gmra.mxu1 %vm810_vm2, %v1367_v43 }
 0x1c5   : > { %v10511_v50 = vpop.eup %10510 }
 0x1c6   : > { %v10513_v51 = vpop.eup %10512  ;;  %v1156_v52 = vadd.f32 1.0, %v10511_v50  ;;  %v1121_v53 = vmul.f32 1.442695, %v1073_v49 }
 0x1c7   : > { %v10515_v54 = vpop.eup %10514  ;;  %v1219_v55 = vmul.f32 %v10513_v51, %v11908_v11 }
 0x1c8   : > { %v10517_v56 = vpop.eup %10516  ;;  %10518 = vrcp.f32 %v1156_v52  ;;  %v1168_v57 = vadd.f32 1.0, %v10515_v54  ;;  %v2347_v59 = vld [vmem:[#allocation2 + $0x29] sm:$0xff]  ;;  %v2348_v63 = vld [vmem:[#allocation2 + $0x31] sm:$0xff] }
 0x1c9   : > { %1252 = vst.msk [vmem:[#allocation2 + $0x48] sm:$0xff] %vm810_vm2, %v1219_v55  ;;  %v1231_v61 = vmul.f32 %v10517_v56, %v11911_v13  ;;  %10520 = vpow2.f32 %v1121_v53  ;;  %v1019_v62 = vpop.f32.mrf.mxu1  ;;  %v11949_v58 = vpack.c.bf16 %v2348_v63, %v2347_v59  ;;  %v1335_v60 = vld [vmem:[#allocation2 + $0x30] sm:$0xff] }
 0x1ca   : > { %10522 = vrcp.f32 %v1168_v57  ;;  %v1020_v0 = vadd.f32 %v11659_v29, %v1019_v62  ;;  %v1347_v3 = vld [vmem:[#allocation2 + $0xf0] sm:$0xff]  ;;  %v11963_v19 = vpack.c.bf16 %v1335_v60, %v1334_v17 }
 0x1cb   : > { %1264 = vst.msk [vmem:[#allocation2 + $0x108] sm:$0xff] %vm810_vm2, %v1231_v61  ;;  %v11953_v5 = vpack.c.bf16 %v1347_v3, %v1346_v1  ;;  %9625 = vmatmul.msk.bf16.vlgmr.msra.gmra.mxu0 %vm810_vm2, %v11949_v58 }
 0x1cc   : > { %v1074_v6 = vsub.f32 0.0, %v1020_v0 }
 0x1cd   : > { %9524 = vmatmul.msk.bf16.gmra.mxu2 %vm810_vm2, %v11953_v5 }
 0x1ce   : > { %v10519_v7 = vpop.eup %10518  ;;  %v1123_v8 = vmul.f32 1.442695, %v1074_v6  ;;  %v1338_v6 = vld [vmem:[#allocation2 + $0x68] sm:$0xff] }
 0x1cf   : > { %v10521_v10 = vpop.eup %10520  ;;  %v1220_v11 = vmul.f32 %v10519_v7, %v11925_v30 }
 0x1d0   : > { %v10523_v13 = vpop.eup %10522  ;;  %v1169_v14 = vadd.f32 1.0, %v10521_v10  ;;  %10524 = vpow2.f32 %v1123_v8  ;;  %v1336_v23 = vld [vmem:[#allocation2 + $0x48] sm:$0xff] }
 0x1d1   : > { %1253 = vst.msk [vmem:[#allocation2 + $0x50] sm:$0xff] %vm810_vm2, %v1220_v11  ;;  %v1232_v15 = vmul.f32 %v10523_v13, %v11928_v33  ;;  %v1022_v16 = vpop.f32.mrf.mxu1  ;;  %v2353_v13 = vld [vmem:[#allocation2 + $0x89] sm:$0xff] }
 0x1d2   : > { %10526 = vrcp.f32 %v1169_v14  ;;  %v1023_v18 = vadd.f32 %v11659_v29, %v1022_v16  ;;  %v1348_v34 = vld [vmem:[#allocation2 + $0x108] sm:$0xff]  ;;  %v2354_v14 = vld [vmem:[#allocation2 + $0x91] sm:$0xff] }
 0x1d3   : > { %1265 = vst.msk [vmem:[#allocation2 + $0x110] sm:$0xff] %vm810_vm2, %v1232_v15 }
 0x1d4   : > { %v1075_v20 = vsub.f32 0.0, %v1023_v18  ;;  %9518 = vmatmul.msk.bf16.gmra.mxu1 %vm810_vm2, %v11963_v19 }
 0x1d6   : > { %v10525_v21 = vpop.eup %10524  ;;  %v1125_v22 = vmul.f32 1.442695, %v1075_v20 }
 0x1d7   : > { %v1170_v12 = vadd.f32 1.0, %v10525_v21 }
 0x1d8   : > { %v10527_v24 = vpop.eup %10526  ;;  %10528 = vpow2.f32 %v1125_v22  ;;  %v2349_v25 = vld [vmem:[#allocation2 + $0x49] sm:$0xff]  ;;  %v2350_v27 = vld [vmem:[#allocation2 + $0x51] sm:$0xff]  ;;  %v12000_v22 = vpack.c.bf16 %v2354_v14, %v2353_v13 }
 0x1d9   : > { %v1233_v28 = vmul.f32 %v10527_v24, %v1018_v47  ;;  %10530 = vrcp.f32 %v1170_v12  ;;  %v1024_v30 = vpop.f32.mrf.mxu1  ;;  %v11968_v32 = vpack.c.bf16 %v2350_v27, %v2349_v25  ;;  %v1337_v9 = vld [vmem:[#allocation2 + $0x50] sm:$0xff] }
 0x1da   : > { %v1025_v33 = vadd.f32 %v11659_v29, %v1024_v30  ;;  %v1349_v35 = vld [vmem:[#allocation2 + $0x110] sm:$0xff]  ;;  %v11980_v42 = vpack.c.bf16 %v1337_v9, %v1336_v23  ;;  %v10239_v9 = vld [vmem:[%s15498_s5] sm:$0xff] }
 0x1db   : > { %1266 = vst.msk [vmem:[#allocation2 + $0x128] sm:$0xff] %vm810_vm2, %v1233_v28  ;;  %v11972_v36 = vpack.c.bf16 %v1349_v35, %v1348_v34  ;;  %9626 = vmatmul.msk.bf16.gmra.mxu0 %vm810_vm2, %v11968_v32  ;;  %v2352_v47 = vld [vmem:[#allocation2 + $0x71] sm:$0xff]  ;;  %1587 = vmatpush.bf16.msrb.mxu3 %v10239_v9 }
 0x1dc   : > { %v1076_v37 = vsub.f32 0.0, %v1025_v33  ;;  %v11984_v54 = vpack.c.bf16 %v2352_v47, %v2351_v46  ;;  %v1341_v34 = vld [vmem:[#allocation2 + $0x90] sm:$0xff] }
 0x1dd   : > { %9525 = vmatmul.msk.bf16.gmra.mxu2 %vm810_vm2, %v11972_v36 }
 0x1de   : > { %v10529_v38 = vpop.eup %10528  ;;  %v1127_v4 = vmul.f32 1.442695, %v1076_v37 }
 0x1df   : > { %v10531_v39 = vpop.eup %10530  ;;  %v1171_v41 = vadd.f32 1.0, %v10529_v38  ;;  %v1340_v38 = vld [vmem:[#allocation2 + $0x88] sm:$0xff] }
 0x1e0   : > { %v1234_v26 = vmul.f32 %v10531_v39, %v1020_v0  ;;  %10532 = vpow2.f32 %v1127_v4  ;;  %v1339_v0 = vld [vmem:[#allocation2 + $0x70] sm:$0xff]  ;;  %v12012_v39 = vpack.c.bf16 %v1341_v34, %v1340_v38 }
 0x1e1   : > { %10534 = vrcp.f32 %v1171_v41  ;;  %v1027_v40 = vpop.f32.mrf.mxu1  ;;  %v11996_v8 = vpack.c.bf16 %v1339_v0, %v1338_v6  ;;  %v10241_v41 = vld [vmem:[%s15498_s5 + $0x10] sm:$0xff] }
 0x1e2   : > { %1267 = vst.msk [vmem:[#allocation2 + $0x130] sm:$0xff] %vm810_vm2, %v1234_v26  ;;  %v1028_v31 = vadd.f32 %v11659_v29, %v1027_v40  ;;  %v1350_v52 = vld [vmem:[#allocation2 + $0x128] sm:$0xff]  ;;  %1781 = vmatpush.bf16.msrb.mxu2 %v10241_v41 }
 0x1e3   : > { %v2355_v40 = vld [vmem:[#allocation2 + $0xa9] sm:$0xff] }
 0x1e4   : > { %v1077_v45 = vsub.f32 0.0, %v1028_v31  ;;  %9519 = vmatmul.msk.bf16.gmra.mxu1 %vm810_vm2, %v11980_v42 }
 0x1e6   : > { %v10533_v43 = vpop.eup %10532  ;;  %v1129_v44 = vmul.f32 1.442695, %v1077_v45  ;;  %v1670_v45 = vld [vmem:[#allocation2 + $0x11] sm:$0xff] }
 0x1e7   : > { %v10535_v48 = vpop.eup %10534  ;;  %v1172_v49 = vadd.f32 1.0, %v10533_v43  ;;  %v2356_v43 = vld [vmem:[#allocation2 + $0xb1] sm:$0xff] }
 0x1e8   : > { %v1235_v50 = vmul.f32 %v10535_v48, %v1023_v18  ;;  %10536 = vpow2.f32 %v1129_v44 }
 0x1e9   : > { %10538 = vrcp.f32 %v1172_v49  ;;  %v1029_v51 = vpop.f32.mrf.mxu1  ;;  %v1351_v53 = vld [vmem:[#allocation2 + $0x130] sm:$0xff] }
 0x1ea   : > { %1268 = vst.msk [vmem:[#allocation2 + $0x148] sm:$0xff] %vm810_vm2, %v1235_v50  ;;  %v1030_v55 = vadd.f32 %v11659_v29, %v1029_v51  ;;  %v11988_v56 = vpack.c.bf16 %v1351_v53, %v1350_v52  ;;  %v12022_v52 = vpack.c.bf16 %v2356_v43, %v2355_v40  ;;  %v12028_v53 = vld [vmem:[%s15497_s4] ss:$0 sm:$0xff] }
 0x1eb   : > { %9627 = vmatmul.msk.bf16.gmra.mxu0 %vm810_vm2, %v11984_v54 }
 0x1ec   : > { %v1078_v57 = vsub.f32 0.0, %v1030_v55 }
 0x1ed   : > { %9526 = vmatmul.msk.bf16.gmra.mxu2 %vm810_vm2, %v11988_v56 }
 0x1ee   : > { %v10537_v59 = vpop.eup %10536  ;;  %v1131_v63 = vmul.f32 1.442695, %v1078_v57 }
 0x1ef   : > { %v10539_v61 = vpop.eup %10538  ;;  %v1173_v62 = vadd.f32 1.0, %v10537_v59 }
 0x1f0   : > { %v1236_v1 = vmul.f32 %v10539_v61, %v1025_v33  ;;  %10540 = vpow2.f32 %v1131_v63 }
 0x1f1   : > { %10542 = vrcp.f32 %v1173_v62  ;;  %v1032_v3 = vpop.f32.mrf.mxu1  ;;  %v1352_v20 = vld [vmem:[#allocation2 + $0x148] sm:$0xff] }
 0x1f2   : > { %1269 = vst.msk [vmem:[#allocation2 + $0x150] sm:$0xff] %vm810_vm2, %v1236_v1  ;;  %v1033_v7 = vadd.f32 %v11659_v29, %v1032_v3  ;;  %v1343_v1 = vld [vmem:[#allocation2 + $0xb0] sm:$0xff] }
 0x1f4   : > { %v1079_v10 = vsub.f32 0.0, %v1033_v7  ;;  %9520 = vmatmul.msk.bf16.gmra.mxu1 %vm810_vm2, %v11996_v8 }
 0x1f6   : > { %v10541_v11 = vpop.eup %10540  ;;  %v1133_v60 = vmul.f32 1.442695, %v1079_v10 }
 0x1f7   : > { %v10543_v15 = vpop.eup %10542  ;;  %v1174_v16 = vadd.f32 1.0, %v10541_v11 }
 0x1f8   : > { %v1237_v17 = vmul.f32 %v10543_v15, %v1028_v31  ;;  %10544 = vpow2.f32 %v1133_v60  ;;  %v2357_v15 = vld [vmem:[#allocation2 + $0xc9] sm:$0xff] }
 0x1f9   : > { %10546 = vrcp.f32 %v1174_v16  ;;  %v1034_v18 = vpop.f32.mrf.mxu1  ;;  %v1353_v21 = vld [vmem:[#allocation2 + $0x150] sm:$0xff] }
 0x1fa   : > { %1270 = vst.msk [vmem:[#allocation2 + $0x168] sm:$0xff] %vm810_vm2, %v1237_v17  ;;  %v1035_v12 = vadd.f32 %v11659_v29, %v1034_v18  ;;  %v12004_v24 = vpack.c.bf16 %v1353_v21, %v1352_v20  ;;  %v2358_v16 = vld [vmem:[#allocation2 + $0xd1] sm:$0xff] }
 0x1fb   : > { %9628 = vmatmul.msk.bf16.gmra.mxu0 %vm810_vm2, %v12000_v22 }
 0x1fc   : > { %v1080_v25 = vsub.f32 0.0, %v1035_v12 }
 0x1fd   : > { %9527 = vmatmul.msk.bf16.gmra.mxu2 %vm810_vm2, %v12004_v24 }
 0x1fe   : > { %v10545_v27 = vpop.eup %10544  ;;  %v1135_v28 = vmul.f32 1.442695, %v1080_v25 }
 0x1ff   : > { %v10547_v30 = vpop.eup %10546  ;;  %v1175_v33 = vadd.f32 1.0, %v10545_v27  ;;  %v12044_v27 = vpack.c.bf16 %v2358_v16, %v2357_v15 }
 0x200   : > { %v1238_v35 = vmul.f32 %v10547_v30, %v1030_v55  ;;  %10548 = vpow2.f32 %v1135_v28 }
 0x201   : > { %10550 = vrcp.f32 %v1175_v33  ;;  %v1037_v37 = vpop.f32.mrf.mxu1  ;;  %v1354_v49 = vld [vmem:[#allocation2 + $0x168] sm:$0xff]  ;;  %v10243_v33 = vld [vmem:[%s15498_s5 + $0x20] sm:$0xff] }
 0x202   : > { %1271 = vst.msk [vmem:[#allocation2 + $0x170] sm:$0xff] %vm810_vm2, %v1238_v35  ;;  %v1038_v4 = vadd.f32 %v11659_v29, %v1037_v37  ;;  %v1669_v29 = vld [vmem:[#allocation2 + $0x9] sm:$0xff]  ;;  %2233 = vmatpush.bf16.msra.mxu1 %v10243_v33 }
 0x203   : > { %v1704_v51 = vpack.c.bf16 %v1670_v45, %v1669_v29  ;;  %v2359_v29 = vld [vmem:[#allocation2 + $0xe9] sm:$0xff] }
 0x204   : > { %v1081_v26 = vsub.f32 0.0, %v1038_v4  ;;  %9521 = vmatmul.msk.bf16.gmra.mxu1 %vm810_vm2, %v12012_v39 }
 0x206   : > { %v10549_v23 = vpop.eup %10548  ;;  %v1137_v31 = vmul.f32 1.442695, %v1081_v26 }
 0x207   : > { %v10551_v44 = vpop.eup %10550  ;;  %v1176_v46 = vadd.f32 1.0, %v10549_v23 }
 0x208   : > { %v1239_v47 = vmul.f32 %v10551_v44, %v1033_v7  ;;  %10552 = vpow2.f32 %v1137_v31  ;;  %v1342_v7 = vld [vmem:[#allocation2 + $0xa8] sm:$0xff] }
 0x209   : > { %10554 = vrcp.f32 %v1176_v46  ;;  %v1039_v48 = vpop.f32.mrf.mxu1  ;;  %v1355_v50 = vld [vmem:[#allocation2 + $0x170] sm:$0xff]  ;;  %v12040_v11 = vpack.c.bf16 %v1343_v1, %v1342_v7 }
 0x20a   : > { %1272 = vst.msk [vmem:[#allocation2 + $0x188] sm:$0xff] %vm810_vm2, %v1239_v47  ;;  %v1040_v55 = vadd.f32 %v12028_v53, %v1039_v48  ;;  %v12031_v57 = vpack.c.bf16 %v1355_v50, %v1354_v49 }
 0x20b   : > { %9629 = vmatmul.msk.bf16.gmra.mxu0 %vm810_vm2, %v12022_v52 }
 0x20c   : > { %v1082_v59 = vsub.f32 0.0, %v1040_v55  ;;  %9528 = vmatmul.msk.bf16.vlgmr.msra.gmra.mxu3 %vm810_vm2, %v12031_v57 }
 0x20d   : > { %9559 = vmatmul.msk.bf16.vlgmr.msrb.gmra.mxu2 %vm810_vm2, %v1704_v51 }
 0x20e   : > { %v10553_v63 = vpop.eup %10552  ;;  %v1139_v61 = vmul.f32 1.442695, %v1082_v59 }
 0x20f   : > { %v10555_v62 = vpop.eup %10554  ;;  %v1177_v0 = vadd.f32 1.0, %v10553_v63 }
 0x210   : > { %v1240_v3 = vmul.f32 %v10555_v62, %v1035_v12  ;;  %10556 = vpow2.f32 %v1139_v61 }
 0x211   : > { %10558 = vrcp.f32 %v1177_v0  ;;  %v1042_v6 = vpop.f32.mrf.mxu1  ;;  %v1356_v12 = vld [vmem:[#allocation2 + $0x188] sm:$0xff] }
 0x212   : > { %1273 = vst.msk [vmem:[#allocation2 + $0x190] sm:$0xff] %vm810_vm2, %v1240_v3  ;;  %v1043_v10 = vadd.f32 %v12028_v53, %v1042_v6 }
 0x214   : > { %v1083_v60 = vsub.f32 0.0, %v1043_v10  ;;  %9522 = vmatmul.msk.bf16.gmra.mxu1 %vm810_vm2, %v12040_v11 }
 0x216   : > { %v10557_v13 = vpop.eup %10556  ;;  %v1141_v14 = vmul.f32 1.442695, %v1083_v60 }
 0x217   : > { %v10559_v17 = vpop.eup %10558  ;;  %v1178_v18 = vadd.f32 1.0, %v10557_v13 }
 0x218   : > { %v1241_v20 = vmul.f32 %v10559_v17, %v1038_v4  ;;  %10560 = vpow2.f32 %v1141_v14 }
 0x219   : > { %10562 = vrcp.f32 %v1178_v18  ;;  %v1044_v21 = vpop.f32.mrf.mxu1  ;;  %v1357_v25 = vld [vmem:[#allocation2 + $0x190] sm:$0xff] }
 0x21a   : > { %1274 = vst.msk [vmem:[#allocation2 + $0x1a8] sm:$0xff] %vm810_vm2, %v1241_v20  ;;  %v1045_v28 = vadd.f32 %v12028_v53, %v1044_v21  ;;  %v12048_v30 = vpack.c.bf16 %v1357_v25, %v1356_v12  ;;  %v10242_v12 = vld [vmem:[%s15498_s5 + $0x18] sm:$0xff] }
 0x21b   : > { %9630 = vmatmul.msk.bf16.gmra.mxu0 %vm810_vm2, %v12044_v27  ;;  %2007 = vmatpush.bf16.msra.mxu3 %v10242_v12 }
 0x21c   : > { %v1084_v34 = vsub.f32 0.0, %v1045_v28  ;;  %9529 = vmatmul.msk.bf16.gmra.mxu3 %vm810_vm2, %v12048_v30 }
 0x21d   : > { %9560 = vmatmul.msk.bf16.gmra.mxu2 %vm810_vm2, %v11949_v58  ;;  %v2360_v58 = vld [vmem:[#allocation2 + $0xf1] sm:$0xff] }
 0x21e   : > { %v10561_v35 = vpop.eup %10560  ;;  %v1143_v37 = vmul.f32 1.442695, %v1084_v34  ;;  %v12063_v49 = vpack.c.bf16 %v2360_v58, %v2359_v29 }
 0x21f   : > { %v10563_v38 = vpop.eup %10562  ;;  %v1179_v4 = vadd.f32 1.0, %v10561_v35 }
 0x220   : > { %v1242_v41 = vmul.f32 %v10563_v38, %v1040_v55  ;;  %10564 = vpow2.f32 %v1143_v37  ;;  %v2363_v38 = vld [vmem:[#allocation2 + $0x129] sm:$0xff] }
 0x221   : > { %10566 = vrcp.f32 %v1179_v4  ;;  %v1047_v9 = vpop.f32.mrf.mxu1  ;;  %v1358_v47 = vld [vmem:[#allocation2 + $0x1a8] sm:$0xff]  ;;  %v2364_v4 = vld [vmem:[#allocation2 + $0x131] sm:$0xff] }
 0x222   : > { %1275 = vst.msk [vmem:[#allocation2 + $0x1b0] sm:$0xff] %vm810_vm2, %v1242_v41  ;;  %v1048_v26 = vadd.f32 %v12028_v53, %v1047_v9  ;;  %v12105_v58 = vpack.c.bf16 %v2364_v4, %v2363_v38 }
 0x224   : > { %v1085_v40 = vsub.f32 0.0, %v1048_v26  ;;  %9603 = vmatmul.msk.bf16.vlgmr.msra.gmra.mxu1 %vm810_vm2, %v11963_v19 }
 0x226   : > { %v10565_v23 = vpop.eup %10564  ;;  %v1145_v31 = vmul.f32 1.442695, %v1085_v40 }
 0x227   : > { %v10567_v45 = vpop.eup %10566  ;;  %v1180_v43 = vadd.f32 1.0, %v10565_v23 }
 0x228   : > { %v1243_v44 = vmul.f32 %v10567_v45, %v1043_v10  ;;  %10568 = vpow2.f32 %v1145_v31  ;;  %v2361_v10 = vld [vmem:[#allocation2 + $0x109] sm:$0xff] }
 0x229   : > { %10570 = vrcp.f32 %v1180_v43  ;;  %v1049_v46 = vpop.f32.mrf.mxu1  ;;  %v1359_v48 = vld [vmem:[#allocation2 + $0x1b0] sm:$0xff] }
 0x22a   : > { %1276 = vst.msk [vmem:[#allocation2 + $0x1c8] sm:$0xff] %vm810_vm2, %v1243_v44  ;;  %v1050_v50 = vadd.f32 %v12028_v53, %v1049_v46  ;;  %v12067_v51 = vpack.c.bf16 %v1359_v48, %v1358_v47  ;;  %v1282_v47 = vld [vmem:[#allocation2 + $0x7] sm:$0xff]  ;;  %v1283_v48 = vld [vmem:[#allocation2 + $0xf] sm:$0xff] }
 0x22b   : > { %9631 = vmatmul.msk.bf16.gmra.mxu0 %vm810_vm2, %v12063_v49 }
 0x22c   : > { %v1086_v19 = vsub.f32 0.0, %v1050_v50  ;;  %9530 = vmatmul.msk.bf16.gmra.mxu3 %vm810_vm2, %v12067_v51 }
 0x22d   : > { %9561 = vmatmul.msk.bf16.gmra.mxu2 %vm810_vm2, %v11968_v32  ;;  %v2362_v32 = vld [vmem:[#allocation2 + $0x111] sm:$0xff] }
 0x22e   : > { %v10569_v55 = vpop.eup %10568  ;;  %v1147_v59 = vmul.f32 1.442695, %v1086_v19  ;;  %v12079_v18 = vpack.c.bf16 %v2362_v32, %v2361_v10  ;;  %v2366_v19 = vld [vmem:[#allocation2 + $0x151] sm:$0xff] }
 0x22f   : > { %v10571_v63 = vpop.eup %10570  ;;  %v1181_v61 = vadd.f32 1.0, %v10569_v55 }
 0x230   : > { %v1244_v62 = vmul.f32 %v10571_v63, %v1045_v28  ;;  %10572 = vpow2.f32 %v1147_v59  ;;  %v1316_v59 = vpack.c.bf16 %v1283_v48, %v1282_v47 }
 0x231   : > { %10574 = vrcp.f32 %v1181_v61  ;;  %v1052_v0 = vpop.f32.mrf.mxu1  ;;  %v1360_v16 = vld [vmem:[#allocation2 + $0x1c8] sm:$0xff] }
 0x232   : > { %1277 = vst.msk [vmem:[#allocation2 + $0x1d0] sm:$0xff] %vm810_vm2, %v1244_v62  ;;  %v1053_v1 = vadd.f32 %v12028_v53, %v1052_v0  ;;  %v2367_v62 = vld [vmem:[#allocation2 + $0x169] sm:$0xff]  ;;  %v2368_v0 = vld [vmem:[#allocation2 + $0x171] sm:$0xff] }
 0x233   : > { %v12144_v10 = vpack.c.bf16 %v2368_v0, %v2367_v62  ;;  %v1290_v0 = vld [vmem:[#allocation2 + $0x87] sm:$0xff] }
 0x234   : > { %v1087_v3 = vsub.f32 0.0, %v1053_v1  ;;  %9604 = vmatmul.msk.bf16.gmra.mxu1 %vm810_vm2, %v11980_v42 }
 0x236   : > { %v10573_v6 = vpop.eup %10572  ;;  %v1149_v7 = vmul.f32 1.442695, %v1087_v3 }
 0x237   : > { %v10575_v60 = vpop.eup %10574  ;;  %v1182_v13 = vadd.f32 1.0, %v10573_v6 }
 0x238   : > { %v1245_v14 = vmul.f32 %v10575_v60, %v1048_v26  ;;  %10576 = vpow2.f32 %v1149_v7  ;;  %v1284_v7 = vld [vmem:[#allocation2 + $0x27] sm:$0xff] }
 0x239   : > { %10578 = vrcp.f32 %v1182_v13  ;;  %v1054_v15 = vpop.f32.mrf.mxu1  ;;  %v1361_v17 = vld [vmem:[#allocation2 + $0x1d0] sm:$0xff] }
 0x23a   : > { %1278 = vst.msk [vmem:[#allocation2 + $0x1e8] sm:$0xff] %vm810_vm2, %v1245_v14  ;;  %v1055_v20 = vadd.f32 %v12028_v53, %v1054_v15  ;;  %v12083_v21 = vpack.c.bf16 %v1361_v17, %v1360_v16  ;;  %v2369_v14 = vld [vmem:[#allocation2 + $0x189] sm:$0xff]  ;;  %v2370_v15 = vld [vmem:[#allocation2 + $0x191] sm:$0xff] }
 0x23b   : > { %9632 = vmatmul.msk.bf16.gmra.mxu0 %vm810_vm2, %v12079_v18  ;;  %v1287_v16 = vld [vmem:[#allocation2 + $0x4f] sm:$0xff]  ;;  %v12166_v12 = vpack.c.bf16 %v2370_v15, %v2369_v14 }
 0x23c   : > { %v1088_v42 = vsub.f32 0.0, %v1055_v20  ;;  %9531 = vmatmul.msk.bf16.gmra.mxu3 %vm810_vm2, %v12083_v21  ;;  %v2373_v47 = vld [vmem:[#allocation2 + $0x1c9] sm:$0xff]  ;;  %v2374_v48 = vld [vmem:[#allocation2 + $0x1d1] sm:$0xff] }
 0x23d   : > { %9562 = vmatmul.msk.bf16.gmra.mxu2 %vm810_vm2, %v11984_v54 }
 0x23e   : > { %v10577_v25 = vpop.eup %10576  ;;  %v1151_v28 = vmul.f32 1.442695, %v1088_v42  ;;  %v1286_v42 = vld [vmem:[#allocation2 + $0x47] sm:$0xff] }
 0x23f   : > { %v10579_v33 = vpop.eup %10578  ;;  %v1183_v53 = vadd.f32 1.0, %v10577_v25  ;;  %v12168_v25 = vpack.c.bf16 %v1287_v16, %v1286_v42 }
 0x240   : > { %v1246_v34 = vmul.f32 %v10579_v33, %v1050_v50  ;;  %10580 = vpow2.f32 %v1151_v28  ;;  %v12094_v35 = vpop.f32.mrf.mxu2  ;;  %v2365_v50 = vld [vmem:[#allocation2 + $0x149] sm:$0xff] }
 0x241   : > { %15523 = vst [vmem:[#allocation6_spill] sm:$0xff] %v12094_v35  ;;  %10582 = vrcp.f32 %v1183_v53  ;;  %v12096_v37 = vpop.f32.mrf.mxu1  ;;  %v1362_v31 = vld [vmem:[#allocation2 + $0x1e8] sm:$0xff] }
 0x242   : > { %1279 = vst.msk [vmem:[#allocation2 + $0x1f0] sm:$0xff] %vm810_vm2, %v1246_v34  ;;  %v2371_v53 = vld [vmem:[#allocation2 + $0x1a9] sm:$0xff]  ;;  %v2372_v34 = vld [vmem:[#allocation2 + $0x1b1] sm:$0xff] }
 0x244   : > { %9605 = vmatmul.msk.bf16.gmra.mxu1 %vm810_vm2, %v11996_v8 }
 0x246   : > { %v10581_v54 = vpop.eup %10580 }
 0x247   : > { %v10583_v41 = vpop.eup %10582  ;;  %v1184_v9 = vadd.f32 1.0, %v10581_v54  ;;  %v1289_v54 = vld [vmem:[#allocation2 + $0x6f] sm:$0xff] }
 0x248   : > { %v1247_v26 = vmul.f32 %v10583_v41, %v1053_v1  ;;  %v12101_v40 = vpop.f32.mrf.mxu2  ;;  %v1285_v1 = vld [vmem:[#allocation2 + $0x2f] sm:$0xff]  ;;  %v12160_v13 = vpop.f32.mrf.mxu0 }
 0x249   : > { %15524 = vst [vmem:[#allocation7_spill] sm:$0xff] %v12101_v40  ;;  %10584 = vrcp.f32 %v1184_v9  ;;  %v12103_v23 = vpop.f32.mrf.mxu1  ;;  %v1363_v29 = vld [vmem:[#allocation2 + $0x1f0] sm:$0xff]  ;;  %v12146_v32 = vpack.c.bf16 %v1285_v1, %v1284_v7  ;;  %v1288_v9 = vld [vmem:[#allocation2 + $0x67] sm:$0xff]  ;;  %v12216_v1 = vpack.c.bf16 %v2374_v48, %v2373_v47 }
 0x24a   : > { %1280 = vst.msk [vmem:[#allocation2 + $0x208] sm:$0xff] %vm810_vm2, %v1247_v26  ;;  %v12108_v45 = vpack.c.bf16 %v1363_v29, %v1362_v31  ;;  %v12190_v26 = vpack.c.bf16 %v2372_v34, %v2371_v53  ;;  %v12192_v31 = vpack.c.bf16 %v1289_v54, %v1288_v9  ;;  %v2375_v42 = vld [vmem:[#allocation2 + $0x1e9] sm:$0xff]  ;;  %v2376_v53 = vld [vmem:[#allocation2 + $0x1f1] sm:$0xff] }
 0x24b   : > { %9633 = vmatmul.msk.bf16.gmra.mxu0 %vm810_vm2, %v12105_v58  ;;  %15530 = vst [vmem:[#allocation13_spill] sm:$0xff] %v12160_v13  ;;  %v1293_v9 = vld [vmem:[#allocation2 + $0xaf] sm:$0xff] }
 0x24c   : > { %9532 = vmatmul.msk.bf16.gmra.mxu3 %vm810_vm2, %v12108_v45 }
 0x24d   : > { %9563 = vmatmul.msk.bf16.gmra.mxu2 %vm810_vm2, %v12000_v22  ;;  %v12127_v22 = vpack.c.bf16 %v2366_v19, %v2365_v50  ;;  %v1291_v19 = vld [vmem:[#allocation2 + $0x8f] sm:$0xff] }
 0x24e   : > { %v12218_v7 = vpack.c.bf16 %v1291_v19, %v1290_v0  ;;  %v1292_v19 = vld [vmem:[#allocation2 + $0xa7] sm:$0xff]  ;;  %v12244_v0 = vpack.c.bf16 %v2376_v53, %v2375_v42 }
 0x24f   : > { %v10585_v8 = vpop.eup %10584 }
 0x250   : > { %v1248_v43 = vmul.f32 %v10585_v8, %v1055_v20  ;;  %v12116_v44 = vpop.f32.mrf.mxu2 }
 0x251   : > { %15525 = vst [vmem:[#allocation8_spill] sm:$0xff] %v12116_v44  ;;  %v12118_v46 = vpop.f32.mrf.mxu1 }
 0x252   : > { %1281 = vst.msk [vmem:[#allocation2 + $0x210] sm:$0xff] %vm810_vm2, %v1248_v43 }
 0x254   : > { %9606 = vmatmul.msk.bf16.gmra.mxu1 %vm810_vm2, %v12012_v39 }
 0x258   : > { %v12123_v55 = vpop.f32.mrf.mxu2 }
 0x259   : > { %15526 = vst [vmem:[#allocation9_spill] sm:$0xff] %v12123_v55  ;;  %v12125_v63 = vpop.f32.mrf.mxu1  ;;  %v2377_v42 = vld [vmem:[#allocation2 + $0x209] sm:$0xff]  ;;  %v2378_v53 = vld [vmem:[#allocation2 + $0x211] sm:$0xff] }
 0x25b   : > { %9634 = vmatmul.msk.bf16.gmra.mxu0 %vm810_vm2, %v12127_v22 }
 0x25c   : > { %9537 = vmatmul.msk.bf16.vlgmr.msrb.gmra.mxu3 %vm810_vm2, %v1316_v59 }
 0x25d   : > { %9564 = vmatmul.msk.bf16.gmra.mxu2 %vm810_vm2, %v12022_v52 }
 0x260   : > { %v12134_v39 = vpop.f32.mrf.mxu2 }
 0x261   : > { %15527 = vst [vmem:[#allocation10_spill] sm:$0xff] %v12134_v39  ;;  %v12136_v61 = vpop.f32.mrf.mxu1  ;;  %v1304_v39 = vld [vmem:[#allocation2 + $0x167] sm:$0xff] }
 0x264   : > { %9607 = vmatmul.msk.bf16.gmra.mxu1 %vm810_vm2, %v12040_v11 }
 0x268   : > { %v12140_v3 = vpop.f32.mrf.mxu2 }
 0x269   : > { %15528 = vst [vmem:[#allocation11_spill] sm:$0xff] %v12140_v3  ;;  %v12142_v6 = vpop.f32.mrf.mxu1 }
 0x26b   : > { %9635 = vmatmul.msk.bf16.gmra.mxu0 %vm810_vm2, %v12144_v10 }
 0x26c   : > { %9538 = vmatmul.msk.bf16.gmra.mxu3 %vm810_vm2, %v12146_v32 }
 0x26d   : > { %9565 = vmatmul.msk.bf16.gmra.mxu2 %vm810_vm2, %v12044_v27 }
 0x270   : > { %v12154_v11 = vpop.f32.mrf.mxu2 }
 0x271   : > { %15529 = vst [vmem:[#allocation12_spill] sm:$0xff] %v12154_v11  ;;  %v12156_v60 = vpop.f32.mrf.mxu1 }
 0x274   : > { %9608 = vmatmul.msk.bf16.gmra.mxu1 %vm810_vm2, %v11932_v2  ;;  %v12176_v2 = vpop.f32.mrf.mxu0 }
 0x275   : > { %15532 = vst [vmem:[#allocation15_spill] sm:$0xff] %v12176_v2  ;;  %v12266_v2 = vpack.c.bf16 %v2378_v53, %v2377_v42 }
 0x278   : > { %v12162_v17 = vpop.f32.mrf.mxu2 }
 0x279   : > { %15531 = vst [vmem:[#allocation14_spill] sm:$0xff] %v12162_v17  ;;  %v12164_v20 = vpop.f32.mrf.mxu1 }
 0x27b   : > { %9636 = vmatmul.msk.bf16.gmra.mxu0 %vm810_vm2, %v12166_v12 }
 0x27c   : > { %9539 = vmatmul.msk.bf16.gmra.mxu3 %vm810_vm2, %v12168_v25  ;;  %v12186_v4 = vpop.f32.mrf.mxu0 }
 0x27d   : > { %9566 = vmatmul.msk.bf16.gmra.mxu2 %vm810_vm2, %v12063_v49  ;;  %15535 = vst [vmem:[#allocation18_spill] sm:$0xff] %v12186_v4 }
 0x280   : > { %v12178_v28 = vpop.f32.mrf.mxu2 }
 0x281   : > { %15533 = vst [vmem:[#allocation16_spill] sm:$0xff] %v12178_v28  ;;  %v12180_v33 = vpop.f32.mrf.mxu1 }
 0x284   : > { %9609 = vmatmul.msk.bf16.gmra.mxu1 %vm810_vm2, %v11953_v5  ;;  %v12206_v43 = vpop.f32.mrf.mxu0 }
 0x285   : > { %15539 = vst [vmem:[#allocation22_spill] sm:$0xff] %v12206_v43 }
 0x288   : > { %v12184_v38 = vpop.f32.mrf.mxu2 }
 0x289   : > { %15534 = vst [vmem:[#allocation17_spill] sm:$0xff] %v12184_v38  ;;  %v12188_v41 = vpop.f32.mrf.mxu1 }
 0x28a   : > { %15536 = vst [vmem:[#allocation19_spill] sm:$0xff] %v12188_v41 }
 0x28b   : > { %9637 = vmatmul.msk.bf16.gmra.mxu0 %vm810_vm2, %v12190_v26 }
 0x28c   : > { %9540 = vmatmul.msk.bf16.gmra.mxu3 %vm810_vm2, %v12192_v31 }
 0x28d   : > { %9567 = vmatmul.msk.bf16.gmra.mxu2 %vm810_vm2, %v12079_v18 }
 0x28f   : > { %v12200_v5 = vpop.f32.mrf.mxu3 }
 0x290   : > { %15537 = vst [vmem:[#allocation20_spill] sm:$0xff] %v12200_v5  ;;  %v12202_v29 = vpop.f32.mrf.mxu2 }
 0x291   : > { %v12204_v8 = vpop.f32.mrf.mxu1 }
 0x292   : > { %15538 = vst [vmem:[#allocation21_spill] sm:$0xff] %v12204_v8 }
 0x294   : > { %9610 = vmatmul.msk.bf16.gmra.mxu1 %vm810_vm2, %v11972_v36  ;;  %v12224_v36 = vpop.f32.mrf.mxu0 }
 0x295   : > { %15542 = vst [vmem:[#allocation25_spill] sm:$0xff] %v12224_v36  ;;  %v12246_v36 = vpack.c.bf16 %v1293_v9, %v1292_v19  ;;  %v1295_v19 = vld [vmem:[#allocation2 + $0xcf] sm:$0xff] }
 0x297   : > { %v12210_v50 = vpop.f32.mrf.mxu3 }
 0x298   : > { %15540 = vst [vmem:[#allocation23_spill] sm:$0xff] %v12210_v50  ;;  %v12212_v59 = vpop.f32.mrf.mxu2  ;;  %v10245_v50 = vld [vmem:[%s15498_s5 + $0x30] sm:$0xff] }
 0x299   : > { %v12214_v62 = vpop.f32.mrf.mxu1  ;;  %2686 = vmatpush.bf16.msra.mxu2 %v10245_v50  ;;  %v1303_v50 = vld [vmem:[#allocation2 + $0x14f] sm:$0xff] }
 0x29a   : > { %15541 = vst [vmem:[#allocation24_spill] sm:$0xff] %v12214_v62  ;;  %v1308_v62 = vld [vmem:[#allocation2 + $0x1a7] sm:$0xff] }
 0x29b   : > { %9638 = vmatmul.msk.bf16.gmra.mxu0 %vm810_vm2, %v12216_v1 }
 0x29c   : > { %9541 = vmatmul.msk.bf16.gmra.mxu3 %vm810_vm2, %v12218_v7  ;;  %v12236_v34 = vpop.f32.mrf.mxu0 }
 0x29d   : > { %9568 = vmatmul.msk.bf16.gmra.mxu2 %vm810_vm2, %v12105_v58  ;;  %15545 = vst [vmem:[#allocation28_spill] sm:$0xff] %v12236_v34 }
 0x29f   : > { %v12228_v14 = vpop.f32.mrf.mxu3 }
 0x2a0   : > { %15543 = vst [vmem:[#allocation26_spill] sm:$0xff] %v12228_v14  ;;  %v12230_v15 = vpop.f32.mrf.mxu2 }
 0x2a1   : > { %v12232_v16 = vpop.f32.mrf.mxu1 }
 0x2a2   : > { %15544 = vst [vmem:[#allocation27_spill] sm:$0xff] %v12232_v16  ;;  %v1294_v16 = vld [vmem:[#allocation2 + $0xc7] sm:$0xff] }
 0x2a4   : > { %9611 = vmatmul.msk.bf16.gmra.mxu1 %vm810_vm2, %v11988_v56  ;;  %v12258_v43 = vpop.f32.mrf.mxu0 }
 0x2a5   : > { %15549 = vst [vmem:[#allocation32_spill] sm:$0xff] %v12258_v43 }
 0x2a7   : > { %v12238_v54 = vpop.f32.mrf.mxu3 }
 0x2a8   : > { %15546 = vst [vmem:[#allocation29_spill] sm:$0xff] %v12238_v54  ;;  %v12240_v47 = vpop.f32.mrf.mxu2  ;;  %v1298_v54 = vld [vmem:[#allocation2 + $0x107] sm:$0xff] }
 0x2a9   : > { %v12242_v48 = vpop.f32.mrf.mxu1 }
 0x2aa   : > { %15547 = vst [vmem:[#allocation30_spill] sm:$0xff] %v12242_v48 }
 0x2ab   : > { %9639 = vmatmul.msk.bf16.gmra.mxu0 %vm810_vm2, %v12244_v0 }
 0x2ac   : > { %9542 = vmatmul.msk.bf16.gmra.mxu3 %vm810_vm2, %v12246_v36  ;;  %v12274_v43 = vpop.f32.mrf.mxu0 }
 0x2ad   : > { %9569 = vmatmul.msk.bf16.gmra.mxu2 %vm810_vm2, %v12127_v22  ;;  %15553 = vst [vmem:[#allocation36_spill] sm:$0xff] %v12274_v43 }
 0x2af   : > { %v12254_v56 = vpop.f32.mrf.mxu3 }
 0x2b0   : > { %15548 = vst [vmem:[#allocation31_spill] sm:$0xff] %v12254_v56  ;;  %v12256_v34 = vpop.f32.mrf.mxu2  ;;  %v12272_v56 = vpack.c.bf16 %v1295_v19, %v1294_v16  ;;  %v1297_v19 = vld [vmem:[#allocation2 + $0xef] sm:$0xff] }
 0x2b1   : > { %v12260_v4 = vpop.f32.mrf.mxu1 }
 0x2b2   : > { %15550 = vst [vmem:[#allocation33_spill] sm:$0xff] %v12260_v4  ;;  %v1296_v4 = vld [vmem:[#allocation2 + $0xe7] sm:$0xff] }
 0x2b4   : > { %9612 = vmatmul.msk.bf16.gmra.mxu1 %vm810_vm2, %v12004_v24 }
 0x2b7   : > { %v12264_v9 = vpop.f32.mrf.mxu3 }
 0x2b8   : > { %15551 = vst [vmem:[#allocation34_spill] sm:$0xff] %v12264_v9  ;;  %v12268_v48 = vpop.f32.mrf.mxu2  ;;  %v12296_v9 = vpack.c.bf16 %v1297_v19, %v1296_v4 }
 0x2b9   : > { %v12270_v13 = vpop.f32.mrf.mxu1 }
 0x2ba   : > { %15552 = vst [vmem:[#allocation35_spill] sm:$0xff] %v12270_v13 }
 0x2bb   : > { %9640 = vmatmul.msk.bf16.gmra.mxu0 %vm810_vm2, %v12266_v2 }
 0x2bc   : > { %9543 = vmatmul.msk.bf16.gmra.mxu3 %vm810_vm2, %v12272_v56 }
 0x2bd   : > { %9570 = vmatmul.msk.bf16.gmra.mxu2 %vm810_vm2, %v12144_v10 }
 0x2bf   : > { %v12282_v24 = vpop.f32.mrf.mxu3 }
 0x2c0   : > { %15554 = vst [vmem:[#allocation37_spill] sm:$0xff] %v12282_v24  ;;  %v12284_v42 = vpop.f32.mrf.mxu2 }
 0x2c1   : > { %v12286_v53 = vpop.f32.mrf.mxu1 }
 0x2c2   : > { %15555 = vst [vmem:[#allocation38_spill] sm:$0xff] %v12286_v53 }
 0x2c4   : > { %9613 = vmatmul.msk.bf16.gmra.mxu1 %vm810_vm2, %v12031_v57 }
 0x2c7   : > { %v12290_v16 = vpop.f32.mrf.mxu3 }
 0x2c8   : > { %15556 = vst [vmem:[#allocation39_spill] sm:$0xff] %v12290_v16  ;;  %v12292_v43 = vpop.f32.mrf.mxu2 }
 0x2c9   : > { %v12294_v13 = vpop.f32.mrf.mxu1 }
 0x2ca   : > { %15557 = vst [vmem:[#allocation40_spill] sm:$0xff] %v12294_v13  ;;  %v1299_v13 = vld [vmem:[#allocation2 + $0x10f] sm:$0xff] }
 0x2cb   : > { %v12316_v14 = vpack.c.bf16 %v1299_v13, %v1298_v54  ;;  %v1300_v54 = vld [vmem:[#allocation2 + $0x127] sm:$0xff] }
 0x2cc   : > { %9544 = vmatmul.msk.bf16.gmra.mxu3 %vm810_vm2, %v12296_v9 }
 0x2cd   : > { %9571 = vmatmul.msk.bf16.gmra.mxu2 %vm810_vm2, %v12166_v12 }
 0x2cf   : > { %v12302_v53 = vpop.f32.mrf.mxu3 }
 0x2d0   : > { %15558 = vst [vmem:[#allocation41_spill] sm:$0xff] %v12302_v53  ;;  %v12304_v24 = vpop.f32.mrf.mxu2 }
 0x2d1   : > { %v12306_v57 = vpop.f32.mrf.mxu1 }
 0x2d2   : > { %15559 = vst [vmem:[#allocation42_spill] sm:$0xff] %v12306_v57 }
 0x2d4   : > { %9614 = vmatmul.msk.bf16.gmra.mxu1 %vm810_vm2, %v12048_v30 }
 0x2d7   : > { %v12310_v16 = vpop.f32.mrf.mxu3 }
 0x2d8   : > { %15560 = vst [vmem:[#allocation43_spill] sm:$0xff] %v12310_v16  ;;  %v12312_v4 = vpop.f32.mrf.mxu2 }
 0x2d9   : > { %15561 = vst [vmem:[#allocation44_spill] sm:$0xff] %v12312_v4  ;;  %v12314_v19 = vpop.f32.mrf.mxu1  ;;  %v1310_v4 = vld [vmem:[#allocation2 + $0x1c7] sm:$0xff] }
 0x2da   : > { %15562 = vst [vmem:[#allocation45_spill] sm:$0xff] %v12314_v19  ;;  %v1301_v19 = vld [vmem:[#allocation2 + $0x12f] sm:$0xff] }
 0x2db   : > { %v12337_v5 = vpack.c.bf16 %v1301_v19, %v1300_v54  ;;  %v1302_v54 = vld [vmem:[#allocation2 + $0x147] sm:$0xff] }
 0x2dc   : > { %9545 = vmatmul.msk.bf16.gmra.mxu3 %vm810_vm2, %v12316_v14 }
 0x2dd   : > { %9572 = vmatmul.msk.bf16.gmra.mxu2 %vm810_vm2, %v12190_v26 }
 0x2df   : > { %v12322_v57 = vpop.f32.mrf.mxu3 }
 0x2e0   : > { %v12324_v53 = vpop.f32.mrf.mxu2 }
 0x2e1   : > { %15563 = vst [vmem:[#allocation46_spill] sm:$0xff] %v12324_v53  ;;  %v12326_v30 = vpop.f32.mrf.mxu1 }
 0x2e2   : > { %15564 = vst [vmem:[#allocation47_spill] sm:$0xff] %v12326_v30 }
 0x2e4   : > { %9615 = vmatmul.msk.bf16.gmra.mxu1 %vm810_vm2, %v12067_v51 }
 0x2e7   : > { %v12330_v16 = vpop.f32.mrf.mxu3 }
 0x2e8   : > { %v12332_v13 = vpop.f32.mrf.mxu2 }
 0x2e9   : > { %15565 = vst [vmem:[#allocation48_spill] sm:$0xff] %v12332_v13  ;;  %v12339_v38 = vpop.f32.mrf.mxu1 }
 0x2ea   : > { %15566 = vst [vmem:[#allocation49_spill] sm:$0xff] %v12339_v38  ;;  %v12355_v38 = vpack.c.bf16 %v1303_v50, %v1302_v54 }
 0x2ec   : > { %9546 = vmatmul.msk.bf16.gmra.mxu3 %vm810_vm2, %v12337_v5 }
 0x2ed   : > { %9573 = vmatmul.msk.bf16.gmra.mxu2 %vm810_vm2, %v12216_v1 }
 0x2ef   : > { %v12345_v51 = vpop.f32.mrf.mxu3 }
 0x2f0   : > { %v12347_v30 = vpop.f32.mrf.mxu2 }
 0x2f1   : > { %15567 = vst [vmem:[#allocation50_spill] sm:$0xff] %v12347_v30  ;;  %v12351_v28 = vpop.f32.mrf.mxu1 }
 0x2f2   : > { %15568 = vst [vmem:[#allocation51_spill] sm:$0xff] %v12351_v28  ;;  %v1305_v28 = vld [vmem:[#allocation2 + $0x16f] sm:$0xff] }
 0x2f3   : > { %v12378_v44 = vpack.c.bf16 %v1305_v28, %v1304_v39  ;;  %v1307_v39 = vld [vmem:[#allocation2 + $0x18f] sm:$0xff]  ;;  %v1306_v28 = vld [vmem:[#allocation2 + $0x187] sm:$0xff] }
 0x2f4   : > { %9616 = vmatmul.msk.bf16.gmra.mxu1 %vm810_vm2, %v12083_v21  ;;  %v10247_v21 = vld [vmem:[%s15498_s5 + $0x40] sm:$0xff]  ;;  %v12393_v30 = vpack.c.bf16 %v1307_v39, %v1306_v28  ;;  %v1309_v28 = vld [vmem:[#allocation2 + $0x1af] sm:$0xff] }
 0x2f5   : > { %3138 = vmatpush.bf16.msrb.mxu1 %v10247_v21  ;;  %v12412_v53 = vpack.c.bf16 %v1309_v28, %v1308_v62  ;;  %v1311_v62 = vld [vmem:[#allocation2 + $0x1cf] sm:$0xff] }
 0x2f7   : > { %v12353_v19 = vpop.f32.mrf.mxu3 }
 0x2f8   : > { %v12359_v17 = vpop.f32.mrf.mxu2 }
 0x2f9   : > { %15569 = vst [vmem:[#allocation52_spill] sm:$0xff] %v12359_v17  ;;  %v12365_v3 = vpop.f32.mrf.mxu1 }
 0x2fa   : > { %15570 = vst [vmem:[#allocation53_spill] sm:$0xff] %v12365_v3  ;;  %v2151_v3 = vld [vmem:[#allocation2 + $0x208] sm:$0xff] }
 0x2fc   : > { %9547 = vmatmul.msk.bf16.gmra.mxu3 %vm810_vm2, %v12355_v38 }
 0x2fd   : > { %9574 = vmatmul.msk.bf16.gmra.mxu2 %vm810_vm2, %v12244_v0 }
 0x2ff   : > { %v12363_v11 = vpop.f32.mrf.mxu3 }
 0x300   : > { %v12372_v50 = vpop.f32.mrf.mxu2 }
 0x301   : > { %15571 = vst [vmem:[#allocation54_spill] sm:$0xff] %v12372_v50  ;;  %v12376_v55 = vpop.f32.mrf.mxu1 }
 0x302   : > { %15572 = vst [vmem:[#allocation55_spill] sm:$0xff] %v12376_v55 }
 0x304   : > { %9617 = vmatmul.msk.bf16.gmra.mxu1 %vm810_vm2, %v12108_v45  ;;  %v2152_v45 = vld [vmem:[#allocation2 + $0x210] sm:$0xff] }
 0x305   : > { %v2171_v50 = vpack.c.bf16 %v2152_v45, %v2151_v3  ;;  %v3026_v45 = vld [vmem:[#allocation2 + $0x49] sm:$0xff] }
 0x307   : > { %v12374_v54 = vpop.f32.mrf.mxu3 }
 0x308   : > { %v12386_v17 = vpop.f32.mrf.mxu2 }
 0x309   : > { %15573 = vst [vmem:[#allocation56_spill] sm:$0xff] %v12386_v17  ;;  %v12388_v40 = vpop.f32.mrf.mxu1 }
 0x30a   : > { %15574 = vst [vmem:[#allocation57_spill] sm:$0xff] %v12388_v40 }
 0x30c   : > { %9548 = vmatmul.msk.bf16.gmra.mxu3 %vm810_vm2, %v12378_v44 }
 0x30d   : > { %9647 = vmatmul.msk.bf16.vlgmr.msra.gmra.mxu2 %vm810_vm2, %v12168_v25 }
 0x30f   : > { %v12384_v21 = vpop.f32.mrf.mxu3 }
 0x310   : > { %v12395_v35 = vpop.f32.mrf.mxu2 }
 0x311   : > { %15575 = vst [vmem:[#allocation58_spill] sm:$0xff] %v12395_v35  ;;  %v12401_v17 = vpop.f32.mrf.mxu1 }
 0x312   : > { %15576 = vst [vmem:[#allocation59_spill] sm:$0xff] %v12401_v17 }
 0x314   : > { %9618 = vmatmul.msk.bf16.gmra.mxu1 %vm810_vm2, %v2171_v50  ;;  %v3027_v50 = vld [vmem:[#allocation2 + $0x51] sm:$0xff] }
 0x315   : > { %v3061_v40 = vpack.c.bf16 %v3027_v50, %v3026_v45  ;;  %v3029_v50 = vld [vmem:[#allocation2 + $0x71] sm:$0xff] }
 0x317   : > { %v12391_v55 = vpop.f32.mrf.mxu3 }
 0x318   : > { %v12406_v13 = vpop.f32.mrf.mxu2 }
 0x319   : > { %15577 = vst [vmem:[#allocation60_spill] sm:$0xff] %v12406_v13  ;;  %v12410_v35 = vpop.f32.mrf.mxu1 }
 0x31a   : > { %15579 = vst [vmem:[#allocation62_spill] sm:$0xff] %v12410_v35 }
 0x31c   : > { %9549 = vmatmul.msk.bf16.gmra.mxu3 %vm810_vm2, %v12393_v30 }
 0x31d   : > { %9648 = vmatmul.msk.bf16.gmra.mxu2 %vm810_vm2, %v12192_v31 }
 0x31f   : > { %v12403_v3 = vpop.f32.mrf.mxu3 }
 0x320   : > { %v12418_v17 = vpop.f32.mrf.mxu2 }
 0x321   : > { %15580 = vst [vmem:[#allocation63_spill] sm:$0xff] %v12418_v17  ;;  %v12422_v13 = vpop.f32.mrf.mxu1  ;;  %v1313_v17 = vld [vmem:[#allocation2 + $0x1ef] sm:$0xff] }
 0x322   : > { %15582 = vst [vmem:[#allocation65_spill] sm:$0xff] %v12422_v13  ;;  %v3031_v13 = vld [vmem:[#allocation2 + $0x91] sm:$0xff] }
 0x324   : > { %9691 = vmatmul.msk.bf16.vlgmr.msrb.gmra.mxu1 %vm810_vm2, %v3061_v40  ;;  %v3028_v40 = vld [vmem:[#allocation2 + $0x69] sm:$0xff] }
 0x325   : > { %v3062_v8 = vpack.c.bf16 %v3029_v50, %v3028_v40  ;;  %v3030_v50 = vld [vmem:[#allocation2 + $0x89] sm:$0xff] }
 0x327   : > { %v12408_v39 = vpop.f32.mrf.mxu3 }
 0x328   : > { %15578 = vst [vmem:[#allocation61_spill] sm:$0xff] %v12408_v39  ;;  %v12427_v28 = vpop.f32.mrf.mxu2  ;;  %v12429_v39 = vpack.c.bf16 %v1311_v62, %v1310_v4 }
 0x329   : > { %15584 = vst [vmem:[#allocation67_spill] sm:$0xff] %v12427_v28  ;;  %v12431_v41 = vpop.f32.mrf.mxu1  ;;  %v3063_v28 = vpack.c.bf16 %v3031_v13, %v3030_v50 }
 0x32a   : > { %15585 = vst [vmem:[#allocation68_spill] sm:$0xff] %v12431_v41 }
 0x32c   : > { %9550 = vmatmul.msk.bf16.gmra.mxu3 %vm810_vm2, %v12412_v53 }
 0x32d   : > { %9649 = vmatmul.msk.bf16.gmra.mxu2 %vm810_vm2, %v12218_v7 }
 0x32f   : > { %v12420_v45 = vpop.f32.mrf.mxu3 }
 0x330   : > { %15581 = vst [vmem:[#allocation64_spill] sm:$0xff] %v12420_v45  ;;  %v12442_v4 = vpop.f32.mrf.mxu2 }
 0x331   : > { %v12445_v62 = vpop.f32.mrf.mxu1 }
 0x332   : > { %15587 = vst [vmem:[#allocation70_spill] sm:$0xff] %v12445_v62 }
 0x334   : > { %9692 = vmatmul.msk.bf16.gmra.mxu1 %vm810_vm2, %v3062_v8  ;;  %v10246_v8 = vld [vmem:[%s15498_s5 + $0x38] sm:$0xff] }
 0x335   : > { %2912 = vmatpush.bf16.msrb.mxu3 %v10246_v8 }
 0x337   : > { %v12425_v35 = vpop.f32.mrf.mxu3 }
 0x338   : > { %15583 = vst [vmem:[#allocation66_spill] sm:$0xff] %v12425_v35  ;;  %v1312_v35 = vld [vmem:[#allocation2 + $0x1e7] sm:$0xff] }
 0x339   : > { %v12449_v45 = vpack.c.bf16 %v1313_v17, %v1312_v35  ;;  %v12459_v8 = vpop.f32.mrf.mxu1 }
 0x33a   : > { %15588 = vst [vmem:[#allocation71_spill] sm:$0xff] %v12459_v8 }
 0x33c   : > { %9551 = vmatmul.msk.bf16.gmra.mxu3 %vm810_vm2, %v12429_v39 }
 0x33d   : > { %9650 = vmatmul.msk.bf16.gmra.mxu2 %vm810_vm2, %v12246_v36 }
 0x33f   : > { %v12440_v40 = vpop.f32.mrf.mxu3 }
 0x340   : > { %15586 = vst [vmem:[#allocation69_spill] sm:$0xff] %v12440_v40  ;;  %v12453_v40 = vpop.f32.mrf.mxu2 }
 0x341   : > { %v12467_v35 = vpop.f32.mrf.mxu1 }
 0x342   : > { %15590 = vst [vmem:[#allocation73_spill] sm:$0xff] %v12467_v35 }
 0x344   : > { %9693 = vmatmul.msk.bf16.gmra.mxu1 %vm810_vm2, %v3063_v28 }
 0x347   : > { %v12447_v41 = vpop.f32.mrf.mxu3 }
 0x348   : > { %v12463_v28 = vpop.f32.mrf.mxu2 }
 0x349   : > { %15589 = vst [vmem:[#allocation72_spill] sm:$0xff] %v12463_v28  ;;  %v12477_v8 = vpop.f32.mrf.mxu1 }
 0x34a   : > { %15592 = vst [vmem:[#allocation75_spill] sm:$0xff] %v12477_v8 }
 0x34c   : > { %9552 = vmatmul.msk.bf16.gmra.mxu3 %vm810_vm2, %v12449_v45 }
 0x34d   : > { %9651 = vmatmul.msk.bf16.gmra.mxu2 %vm810_vm2, %v12272_v56 }
 0x34f   : > { %v12457_v13 = vpop.f32.mrf.mxu3 }
 0x350   : > { %v12475_v62 = vpop.f32.mrf.mxu2 }
 0x351   : > { %15591 = vst [vmem:[#allocation74_spill] sm:$0xff] %v12475_v62 }
 0x354   : > { %9694 = vmatmul.msk.bf16.gmra.mxu1 %vm810_vm2, %v12022_v52 }
 0x357   : > { %v12465_v50 = vpop.f32.mrf.mxu3 }
 0x358   : > { %v12483_v28 = vpop.f32.mrf.mxu2 }
 0x359   : > { %15593 = vst [vmem:[#allocation76_spill] sm:$0xff] %v12483_v28 }
 0x35c   : > { %9581 = vmatmul.msk.bf16.vlgmr.msra.gmra.mxu3 %vm810_vm2, %v12146_v32  ;;  %v12489_v32 = vpop.f32.mrf.mxu1 }
 0x35d   : > { %9652 = vmatmul.msk.bf16.gmra.mxu2 %vm810_vm2, %v12296_v9  ;;  %15594 = vst [vmem:[#allocation77_spill] sm:$0xff] %v12489_v32 }
 0x35f   : > { %v12473_v17 = vpop.f32.mrf.mxu3 }
 0x360   : > { %v12495_v8 = vpop.f32.mrf.mxu2 }
 0x361   : > { %15595 = vst [vmem:[#allocation78_spill] sm:$0xff] %v12495_v8 }
 0x364   : > { %9695 = vmatmul.msk.bf16.gmra.mxu1 %vm810_vm2, %v12044_v27  ;;  %v12499_v62 = vpop.f32.mrf.mxu1 }
 0x365   : > { %15596 = vst [vmem:[#allocation79_spill] sm:$0xff] %v12499_v62 }
 0x367   : > { %v12481_v52 = vpop.f32.mrf.mxu3 }
 0x36c   : > { %9582 = vmatmul.msk.bf16.gmra.mxu3 %vm810_vm2, %v12168_v25  ;;  %v12505_v25 = vpop.f32.mrf.mxu2  ;;  %v12509_v28 = vpop.f32.mrf.mxu1 }
 0x36d   : > { %9653 = vmatmul.msk.bf16.gmra.mxu2 %vm810_vm2, %v12316_v14  ;;  %15597 = vst [vmem:[#allocation80_spill] sm:$0xff] %v12505_v25 }
 0x36e   : > { %15598 = vst [vmem:[#allocation81_spill] sm:$0xff] %v12509_v28 }
 0x36f   : > { %v12491_v35 = vpop.f32.mrf.mxu3 }
 0x374   : > { %9696 = vmatmul.msk.bf16.gmra.mxu1 %vm810_vm2, %v12063_v49  ;;  %v12515_v8 = vpop.f32.mrf.mxu2  ;;  %v12517_v62 = vpop.f32.mrf.mxu1 }
 0x375   : > { %15599 = vst [vmem:[#allocation82_spill] sm:$0xff] %v12515_v8 }
 0x376   : > { %15600 = vst [vmem:[#allocation83_spill] sm:$0xff] %v12517_v62 }
 0x377   : > { %v12497_v27 = vpop.f32.mrf.mxu3 }
 0x37c   : > { %9583 = vmatmul.msk.bf16.gmra.mxu3 %vm810_vm2, %v12192_v31  ;;  %v12525_v25 = vpop.f32.mrf.mxu2 }
 0x37d   : > { %9654 = vmatmul.msk.bf16.gmra.mxu2 %vm810_vm2, %v12337_v5  ;;  %15601 = vst [vmem:[#allocation84_spill] sm:$0xff] %v12525_v25 }
 0x37f   : > { %v12507_v32 = vpop.f32.mrf.mxu3 }
 0x384   : > { %9697 = vmatmul.msk.bf16.gmra.mxu1 %vm810_vm2, %v12079_v18  ;;  %v12529_v18 = vpop.f32.mrf.mxu1  ;;  %v12535_v62 = vpop.f32.mrf.mxu2 }
 0x385   : > { %15602 = vst [vmem:[#allocation85_spill] sm:$0xff] %v12529_v18 }
 0x386   : > { %15603 = vst [vmem:[#allocation86_spill] sm:$0xff] %v12535_v62 }
 0x387   : > { %v12513_v49 = vpop.f32.mrf.mxu3 }
 0x38c   : > { %9584 = vmatmul.msk.bf16.gmra.mxu3 %vm810_vm2, %v12218_v7  ;;  %v12541_v8 = vpop.f32.mrf.mxu1 }
 0x38d   : > { %9655 = vmatmul.msk.bf16.gmra.mxu2 %vm810_vm2, %v12355_v38  ;;  %15604 = vst [vmem:[#allocation87_spill] sm:$0xff] %v12541_v8 }
 0x38f   : > { %v12523_v31 = vpop.f32.mrf.mxu3 }
 0x394   : > { %9698 = vmatmul.msk.bf16.gmra.mxu1 %vm810_vm2, %v12105_v58  ;;  %v12545_v58 = vpop.f32.mrf.mxu2  ;;  %v12549_v25 = vpop.f32.mrf.mxu1 }
 0x395   : > { %15605 = vst [vmem:[#allocation88_spill] sm:$0xff] %v12545_v58 }
 0x396   : > { %15606 = vst [vmem:[#allocation89_spill] sm:$0xff] %v12549_v25 }
 0x397   : > { %v12531_v28 = vpop.f32.mrf.mxu3 }
 0x39c   : > { %9585 = vmatmul.msk.bf16.gmra.mxu3 %vm810_vm2, %v12246_v36  ;;  %v12557_v62 = vpop.f32.mrf.mxu2  ;;  %v12559_v8 = vpop.f32.mrf.mxu1 }
 0x39d   : > { %9656 = vmatmul.msk.bf16.gmra.mxu2 %vm810_vm2, %v12378_v44  ;;  %15607 = vst [vmem:[#allocation90_spill] sm:$0xff] %v12557_v62 }
 0x39e   : > { %15608 = vst [vmem:[#allocation91_spill] sm:$0xff] %v12559_v8 }
 0x39f   : > { %v12539_v7 = vpop.f32.mrf.mxu3 }
 0x3a4   : > { %9699 = vmatmul.msk.bf16.gmra.mxu1 %vm810_vm2, %v12127_v22  ;;  %v12565_v58 = vpop.f32.mrf.mxu2 }
 0x3a5   : > { %15609 = vst [vmem:[#allocation92_spill] sm:$0xff] %v12565_v58 }
 0x3a7   : > { %v12547_v18 = vpop.f32.mrf.mxu3 }
 0x3ac   : > { %9586 = vmatmul.msk.bf16.gmra.mxu3 %vm810_vm2, %v12272_v56  ;;  %v12571_v56 = vpop.f32.mrf.mxu1  ;;  %v12577_v8 = vpop.f32.mrf.mxu2 }
 0x3ad   : > { %9657 = vmatmul.msk.bf16.gmra.mxu2 %vm810_vm2, %v12393_v30  ;;  %15610 = vst [vmem:[#allocation93_spill] sm:$0xff] %v12571_v56 }
 0x3ae   : > { %15611 = vst [vmem:[#allocation94_spill] sm:$0xff] %v12577_v8 }
 0x3af   : > { %v12555_v36 = vpop.f32.mrf.mxu3 }
 0x3b4   : > { %9700 = vmatmul.msk.bf16.gmra.mxu1 %vm810_vm2, %v12144_v10  ;;  %v12581_v62 = vpop.f32.mrf.mxu1 }
 0x3b5   : > { %15612 = vst [vmem:[#allocation95_spill] sm:$0xff] %v12581_v62  ;;  %v1590_v62 = vadd.f32 %v12322_v57, %v12096_v37  ;;  %v10249_v37 = vld [vmem:[%s15496_s3 + $0x18] sm:$0xff] }
 0x3b6   : > { %3572 = vmatpush.bf16.msrb.mxu0 %v10249_v37 }
 0x3b7   : > { %v12563_v22 = vpop.f32.mrf.mxu3 }
 0x3bc   : > { %9587 = vmatmul.msk.bf16.gmra.mxu3 %vm810_vm2, %v12296_v9  ;;  %v12587_v9 = vpop.f32.mrf.mxu2  ;;  %v12591_v58 = vpop.f32.mrf.mxu1 }
 0x3bd   : > { %9658 = vmatmul.msk.bf16.gmra.mxu2 %vm810_vm2, %v12412_v53  ;;  %15613 = vst [vmem:[#allocation96_spill] sm:$0xff] %v12587_v9  ;;  %v1863_v9 = vadd.f32 %v12202_v29, %v1590_v62 }
 0x3be   : > { %15615 = vst [vmem:[#allocation98_spill] sm:$0xff] %v12591_v58 }
 0x3bf   : > { %v12573_v25 = vpop.f32.mrf.mxu3 }
 0x3c4   : > { %9701 = vmatmul.msk.bf16.gmra.mxu1 %vm810_vm2, %v12166_v12  ;;  %v12597_v8 = vpop.f32.mrf.mxu2 }
 0x3c5   : > { %15616 = vst [vmem:[#allocation99_spill] sm:$0xff] %v12597_v8 }
 0x3c7   : > { %v12579_v10 = vpop.f32.mrf.mxu3 }
 0x3cc   : > { %9588 = vmatmul.msk.bf16.gmra.mxu3 %vm810_vm2, %v12316_v14  ;;  %v12601_v14 = vpop.f32.mrf.mxu1  ;;  %v12612_v8 = vpop.f32.mrf.mxu2 }
 0x3cd   : > { %9659 = vmatmul.msk.bf16.gmra.mxu2 %vm810_vm2, %v12429_v39 }
 0x3cf   : > { %v12589_v56 = vpop.f32.mrf.mxu3 }
 0x3d0   : > { %15614 = vst [vmem:[#allocation97_spill] sm:$0xff] %v12589_v56 }
 0x3d4   : > { %9702 = vmatmul.msk.bf16.gmra.mxu1 %vm810_vm2, %v12190_v26  ;;  %v1592_v26 = vadd.f32 %v12330_v16, %v12103_v23  ;;  %v1595_v23 = vadd.f32 %v12345_v51, %v12118_v46  ;;  %v1597_v46 = vadd.f32 %v12353_v19, %v12125_v63 }
 0x3d6   : > { %v1864_v57 = vadd.f32 %v12212_v59, %v1592_v26  ;;  %v1865_v59 = vadd.f32 %v12230_v15, %v1595_v23 }
 0x3d7   : > { %v12595_v12 = vpop.f32.mrf.mxu3 }
 0x3dc   : > { %9589 = vmatmul.msk.bf16.gmra.mxu3 %vm810_vm2, %v12337_v5  ;;  %v12619_v5 = vpop.f32.mrf.mxu1 }
 0x3dd   : > { %9660 = vmatmul.msk.bf16.gmra.mxu2 %vm810_vm2, %v12449_v45 }
 0x3df   : > { %v2009_v58 = vpop.f32.mrf.mxu3 }
 0x3e0   : > { %v12608_v56 = vadd.f32 %v2009_v58, %v1863_v9  ;;  %v2602_v58 = vld [vmem:[#allocation2 + $0x207] sm:$0xff]  ;;  %v2603_v9 = vld [vmem:[#allocation2 + $0x20f] sm:$0xff] }
 0x3e1   : > { %v12626_v16 = vpack.c.bf16 %v2603_v9, %v2602_v58  ;;  %v1600_v58 = vadd.f32 %v12363_v11, %v12136_v61 }
 0x3e3   : > { %v1867_v9 = vadd.f32 %v12256_v34, %v1600_v58 }
 0x3e4   : > { %9703 = vmatmul.msk.bf16.gmra.mxu1 %vm810_vm2, %v12216_v1  ;;  %v12630_v1 = vpop.f32.mrf.mxu2  ;;  %v12635_v37 = vpop.f32.mrf.mxu1 }
 0x3e7   : > { %v2011_v29 = vpop.f32.mrf.mxu3 }
 0x3e8   : > { %v12622_v62 = vadd.f32 %v2011_v29, %v1864_v57 }
 0x3ec   : > { %9590 = vmatmul.msk.bf16.gmra.mxu3 %vm810_vm2, %v12355_v38  ;;  %v1866_v38 = vadd.f32 %v12240_v47, %v1597_v46  ;;  %v12648_v15 = vpop.f32.mrf.mxu1  ;;  %v1610_v46 = vadd.f32 %v12403_v3, %v12180_v33  ;;  %v12690_v33 = vpop.f32.mrf.mxu2 }
 0x3ed   : > { %9661 = vmatmul.msk.bf16.gmra.mxu2 %vm810_vm2, %v12626_v16 }
 0x3ef   : > { %v2014_v26 = vpop.f32.mrf.mxu3 }
 0x3f0   : > { %v12637_v57 = vadd.f32 %v2014_v26, %v1865_v59 }
 0x3f4   : > { %9704 = vmatmul.msk.bf16.gmra.mxu1 %vm810_vm2, %v12244_v0  ;;  %v1602_v0 = vadd.f32 %v12374_v54, %v12142_v6  ;;  %v12657_v47 = vpop.f32.mrf.mxu1  ;;  %v1607_v54 = vadd.f32 %v12391_v55, %v12164_v20  ;;  %v15619_v55 = vld [vmem:[#allocation44_spill] sm:$0xff] }
 0x3f6   : > { %v1868_v61 = vadd.f32 %v12268_v48, %v1602_v0 }
 0x3f7   : > { %v2016_v51 = vpop.f32.mrf.mxu3 }
 0x3f8   : > { %v12644_v29 = vadd.f32 %v2016_v51, %v1866_v38  ;;  %v15618_v38 = vld [vmem:[#allocation61_spill] sm:$0xff] }
 0x3fc   : > { %9591 = vmatmul.msk.bf16.gmra.mxu3 %vm810_vm2, %v12378_v44  ;;  %v1605_v44 = vadd.f32 %v12384_v21, %v12156_v60  ;;  %v1871_v60 = vadd.f32 %v12304_v24, %v1610_v46  ;;  %v15617_v21 = vld [vmem:[#allocation19_spill] sm:$0xff]  ;;  %v15622_v24 = vld [vmem:[#allocation46_spill] sm:$0xff]  ;;  %v15625_v46 = vld [vmem:[#allocation48_spill] sm:$0xff] }
 0x3fd   : > { %v1612_v51 = vadd.f32 %v15618_v38, %v15617_v21  ;;  %v15627_v38 = vld [vmem:[#allocation69_spill] sm:$0xff] }
 0x3fe   : > { %v1869_v34 = vadd.f32 %v12284_v42, %v1605_v44  ;;  %v15624_v44 = vld [vmem:[#allocation66_spill] sm:$0xff] }
 0x3ff   : > { %v2019_v23 = vpop.f32.mrf.mxu3  ;;  %v1872_v20 = vadd.f32 %v15619_v55, %v1612_v51  ;;  %v15628_v55 = vld [vmem:[#allocation50_spill] sm:$0xff] }
 0x400   : > { %v12653_v63 = vadd.f32 %v2019_v23, %v1867_v9  ;;  %v15620_v9 = vld [vmem:[#allocation21_spill] sm:$0xff]  ;;  %v15621_v23 = vld [vmem:[#allocation64_spill] sm:$0xff] }
 0x401   : > { %v1615_v0 = vadd.f32 %v15621_v23, %v15620_v9  ;;  %v15629_v23 = vld [vmem:[#allocation7_spill] sm:$0xff] }
 0x404   : > { %9705 = vmatmul.msk.bf16.gmra.mxu1 %vm810_vm2, %v12266_v2  ;;  %v1870_v2 = vadd.f32 %v12292_v43, %v1607_v54  ;;  %v2605_v54 = vld [vmem:[#allocation2 + $0x22f] sm:$0xff] }
 0x407   : > { %v2021_v11 = vpop.f32.mrf.mxu3 }
 0x408   : > { %v12662_v19 = vadd.f32 %v2021_v11, %v1868_v61  ;;  %v15623_v11 = vld [vmem:[#allocation24_spill] sm:$0xff] }
 0x40c   : > { %9592 = vmatmul.msk.bf16.gmra.mxu3 %vm810_vm2, %v12393_v30 }
 0x40f   : > { %v2024_v59 = vpop.f32.mrf.mxu3 }
 0x410   : > { %v12669_v6 = vadd.f32 %v2024_v59, %v1869_v34  ;;  %v1617_v34 = vadd.f32 %v15624_v44, %v15623_v11  ;;  %v2604_v59 = vld [vmem:[#allocation2 + $0x227] sm:$0xff]  ;;  %v15631_v44 = vld [vmem:[#allocation8_spill] sm:$0xff] }
 0x417   : > { %v2026_v48 = vpop.f32.mrf.mxu3 }
 0x418   : > { %v12674_v26 = vadd.f32 %v2026_v48, %v1870_v2  ;;  %v2624_v2 = vpack.c.bf16 %v2605_v54, %v2604_v59  ;;  %v12699_v48 = vpop.f32.mrf.mxu2 }
 0x41a   : > { %9662 = vmatmul.msk.bf16.gmra.mxu2 %vm810_vm2, %v2624_v2 }
 0x41c   : > { %9593 = vmatmul.msk.bf16.gmra.mxu3 %vm810_vm2, %v12412_v53  ;;  %v1873_v53 = vadd.f32 %v15622_v24, %v1615_v0  ;;  %v1622_v0 = vadd.f32 %v12447_v41, %v15629_v23  ;;  %v15630_v24 = vld [vmem:[#allocation52_spill] sm:$0xff] }
 0x41d   : > { %v15634_v41 = vld [vmem:[#allocation56_spill] sm:$0xff] }
 0x41f   : > { %v2029_v42 = vpop.f32.mrf.mxu3 }
 0x420   : > { %v12681_v30 = vadd.f32 %v2029_v42, %v1871_v60  ;;  %v1874_v60 = vadd.f32 %v15625_v46, %v1617_v34  ;;  %v1625_v34 = vadd.f32 %v12457_v13, %v15631_v44  ;;  %v15633_v46 = vld [vmem:[#allocation9_spill] sm:$0xff]  ;;  %v15638_v44 = vld [vmem:[#allocation60_spill] sm:$0xff] }
 0x427   : > { %v2031_v43 = vpop.f32.mrf.mxu3 }
 0x428   : > { %v12686_v58 = vadd.f32 %v2031_v43, %v1872_v20 }
 0x42c   : > { %9594 = vmatmul.msk.bf16.gmra.mxu3 %vm810_vm2, %v12429_v39  ;;  %v15626_v39 = vld [vmem:[#allocation6_spill] sm:$0xff] }
 0x42d   : > { %v1620_v51 = vadd.f32 %v15627_v38, %v15626_v39  ;;  %v2801_v38 = vld [vmem:[#allocation2 + $0x50] sm:$0xff] }
 0x42f   : > { %v2034_v3 = vpop.f32.mrf.mxu3  ;;  %v1875_v20 = vadd.f32 %v15628_v55, %v1620_v51  ;;  %v2800_v55 = vld [vmem:[#allocation2 + $0x48] sm:$0xff] }
 0x430   : > { %v12695_v61 = vadd.f32 %v2034_v3, %v1873_v53  ;;  %v1876_v53 = vadd.f32 %v15630_v24, %v1622_v0 }
 0x437   : > { %v2036_v42 = vpop.f32.mrf.mxu3 }
 0x438   : > { %v12703_v21 = vadd.f32 %v2036_v42, %v1874_v60  ;;  %v1627_v60 = vadd.f32 %v12465_v50, %v15633_v46  ;;  %v15639_v46 = vld [vmem:[#allocation12_spill] sm:$0xff] }
 0x43a   : > { %v1878_v42 = vadd.f32 %v15634_v41, %v1627_v60  ;;  %v1635_v60 = vadd.f32 %v12491_v35, %v15639_v46 }
 0x43c   : > { %9595 = vmatmul.msk.bf16.gmra.mxu3 %vm810_vm2, %v12449_v45  ;;  %v15632_v45 = vld [vmem:[#allocation54_spill] sm:$0xff] }
 0x43d   : > { %v1877_v59 = vadd.f32 %v15632_v45, %v1625_v34 }
 0x43f   : > { %v2039_v43 = vpop.f32.mrf.mxu3 }
 0x440   : > { %v12710_v9 = vadd.f32 %v2039_v43, %v1875_v20  ;;  %v15635_v20 = vld [vmem:[#allocation10_spill] sm:$0xff]  ;;  %v2835_v43 = vpack.c.bf16 %v2801_v38, %v2800_v55 }
 0x441   : > { %v1630_v13 = vadd.f32 %v12473_v17, %v15635_v20  ;;  %v2803_v17 = vld [vmem:[#allocation2 + $0x70] sm:$0xff]  ;;  %v15641_v55 = vld [vmem:[#allocation14_spill] sm:$0xff] }
 0x442   : > { %v1637_v20 = vadd.f32 %v12497_v27, %v15641_v55 }
 0x447   : > { %v2041_v3 = vpop.f32.mrf.mxu3 }
 0x448   : > { %v12715_v11 = vadd.f32 %v2041_v3, %v1876_v53  ;;  %v15637_v53 = vld [vmem:[#allocation11_spill] sm:$0xff]  ;;  %v10248_v3 = vld [vmem:[%s15496_s3 + $0x10] sm:$0xff] }
 0x449   : > { %v1632_v50 = vadd.f32 %v12481_v52, %v15637_v53  ;;  %3573 = vmatpush.bf16.msrb.mxu0 %v10248_v3  ;;  %v2804_v53 = vld [vmem:[#allocation2 + $0x88] sm:$0xff] }
 0x44b   : > { %v1880_v34 = vadd.f32 %v15638_v44, %v1632_v50  ;;  %v15643_v50 = vld [vmem:[#allocation16_spill] sm:$0xff] }
 0x44c   : > { %9596 = vmatmul.msk.bf16.gmra.mxu3 %vm810_vm2, %v12626_v16  ;;  %v15636_v16 = vld [vmem:[#allocation58_spill] sm:$0xff]  ;;  %v1640_v35 = vadd.f32 %v12507_v32, %v15643_v50  ;;  %v10251_v44 = vld [vmem:[%s15498_s5 + $0x50] sm:$0xff] }
 0x44d   : > { %v1879_v23 = vadd.f32 %v15636_v16, %v1630_v13  ;;  %v15642_v13 = vld [vmem:[#allocation67_spill] sm:$0xff]  ;;  %4042 = vmatpush.bf16.msrb.mxu2 %v10251_v44  ;;  %v2807_v32 = vld [vmem:[#allocation2 + $0xb0] sm:$0xff]  ;;  %v15649_v44 = vld [vmem:[#allocation26_spill] sm:$0xff] }
 0x44f   : > { %v2044_v54 = vpop.f32.mrf.mxu3 }
 0x450   : > { %v12722_v2 = vadd.f32 %v2044_v54, %v1877_v59  ;;  %v2802_v54 = vld [vmem:[#allocation2 + $0x68] sm:$0xff] }
 0x451   : > { %v2836_v41 = vpack.c.bf16 %v2803_v17, %v2802_v54  ;;  %v15644_v17 = vld [vmem:[#allocation17_spill] sm:$0xff] }
 0x452   : > { %v1642_v54 = vadd.f32 %v12513_v49, %v15644_v17 }
 0x454   : > { %v1884_v46 = vadd.f32 %v12453_v40, %v1642_v54  ;;  %v12776_v40 = vpop.f32.mrf.mxu0  ;;  %v15650_v54 = vld [vmem:[#allocation76_spill] sm:$0xff] }
 0x457   : > { %v2046_v39 = vpop.f32.mrf.mxu3 }
 0x458   : > { %v12727_v51 = vadd.f32 %v2046_v39, %v1878_v42  ;;  %v15640_v42 = vld [vmem:[#allocation63_spill] sm:$0xff] }
 0x459   : > { %v1881_v52 = vadd.f32 %v15640_v42, %v1635_v60  ;;  %v2806_v42 = vld [vmem:[#allocation2 + $0xa8] sm:$0xff] }
 0x45a   : > { %v2838_v55 = vpack.c.bf16 %v2807_v32, %v2806_v42  ;;  %v15652_v32 = vld [vmem:[#allocation29_spill] sm:$0xff] }
 0x45b   : > { %v1652_v42 = vadd.f32 %v12547_v18, %v15652_v32 }
 0x45c   : > { %9669 = vmatmul.msk.bf16.vlgmr.msrb.gmra.mxu3 %vm810_vm2, %v2835_v43  ;;  %v1882_v43 = vadd.f32 %v15642_v13, %v1637_v20  ;;  %v12784_v17 = vpop.f32.mrf.mxu0 }
 0x45f   : > { %v2049_v0 = vpop.f32.mrf.mxu3 }
 0x460   : > { %v12733_v24 = vadd.f32 %v2049_v0, %v1879_v23  ;;  %v2805_v23 = vld [vmem:[#allocation2 + $0x90] sm:$0xff] }
 0x461   : > { %v2837_v3 = vpack.c.bf16 %v2805_v23, %v2804_v53  ;;  %v15648_v23 = vld [vmem:[#allocation74_spill] sm:$0xff] }
 0x467   : > { %v2051_v45 = vpop.f32.mrf.mxu3 }
 0x468   : > { %v12741_v59 = vadd.f32 %v2051_v45, %v1880_v34  ;;  %v1883_v34 = vadd.f32 %v12442_v4, %v1640_v35  ;;  %v15646_v4 = vld [vmem:[#allocation72_spill] sm:$0xff] }
 0x469   : > { %v2809_v35 = vld [vmem:[#allocation2 + $0xd0] sm:$0xff] }
 0x46c   : > { %9670 = vmatmul.msk.bf16.gmra.mxu3 %vm810_vm2, %v2836_v41 }
 0x46f   : > { %v2054_v39 = vpop.f32.mrf.mxu3 }
 0x470   : > { %v12747_v38 = vadd.f32 %v2054_v39, %v1881_v52  ;;  %v15645_v52 = vld [vmem:[#allocation20_spill] sm:$0xff] }
 0x471   : > { %v1645_v39 = vadd.f32 %v12523_v31, %v15645_v52  ;;  %v2808_v31 = vld [vmem:[#allocation2 + $0xc8] sm:$0xff]  ;;  %v15653_v52 = vld [vmem:[#allocation78_spill] sm:$0xff] }
 0x473   : > { %v1885_v20 = vadd.f32 %v15646_v4, %v1645_v39  ;;  %v1888_v39 = vadd.f32 %v15653_v52, %v1652_v42  ;;  %v2811_v4 = vld [vmem:[#allocation2 + $0xf0] sm:$0xff]  ;;  %v15661_v42 = vld [vmem:[#allocation37_spill] sm:$0xff] }
 0x474   : > { %v1660_v52 = vadd.f32 %v12573_v25, %v15661_v42  ;;  %v15669_v42 = vld [vmem:[#allocation88_spill] sm:$0xff] }
 0x477   : > { %v2056_v16 = vpop.f32.mrf.mxu3 }
 0x478   : > { %v12752_v0 = vadd.f32 %v2056_v16, %v1882_v43  ;;  %v15647_v16 = vld [vmem:[#allocation23_spill] sm:$0xff] }
 0x479   : > { %v1647_v49 = vadd.f32 %v12531_v28, %v15647_v16  ;;  %v15655_v16 = vld [vmem:[#allocation31_spill] sm:$0xff] }
 0x47b   : > { %v1886_v53 = vadd.f32 %v15648_v23, %v1647_v49  ;;  %v1655_v49 = vadd.f32 %v12555_v36, %v15655_v16  ;;  %v2812_v36 = vld [vmem:[#allocation2 + $0x108] sm:$0xff] }
 0x47c   : > { %9671 = vmatmul.msk.bf16.gmra.mxu3 %vm810_vm2, %v2837_v3 }
 0x47f   : > { %v2059_v27 = vpop.f32.mrf.mxu3 }
 0x480   : > { %v12761_v45 = vadd.f32 %v2059_v27, %v1883_v34  ;;  %v1650_v34 = vadd.f32 %v12539_v7, %v15649_v44  ;;  %v2839_v27 = vpack.c.bf16 %v2809_v35, %v2808_v31  ;;  %v15658_v44 = vld [vmem:[#allocation34_spill] sm:$0xff] }
 0x487   : > { %v2061_v60 = vpop.f32.mrf.mxu3 }
 0x488   : > { %v12766_v41 = vadd.f32 %v2061_v60, %v1884_v46  ;;  %v1887_v46 = vadd.f32 %v15650_v54, %v1650_v34  ;;  %v1657_v34 = vadd.f32 %v12563_v22, %v15658_v44  ;;  %v15664_v22 = vld [vmem:[#allocation39_spill] sm:$0xff] }
 0x48c   : > { %9672 = vmatmul.msk.bf16.gmra.mxu3 %vm810_vm2, %v2838_v55 }
 0x48f   : > { %v2064_v13 = vpop.f32.mrf.mxu3 }
 0x490   : > { %v12772_v43 = vadd.f32 %v2064_v13, %v1885_v20  ;;  %v12792_v20 = vpop.f32.mrf.mxu0  ;;  %v2810_v13 = vld [vmem:[#allocation2 + $0xe8] sm:$0xff] }
 0x491   : > { %v2840_v23 = vpack.c.bf16 %v2811_v4, %v2810_v13  ;;  %v15662_v4 = vld [vmem:[#allocation84_spill] sm:$0xff] }
 0x492   : > { %v1891_v13 = vadd.f32 %v15662_v4, %v1660_v52 }
 0x497   : > { %v2066_v50 = vpop.f32.mrf.mxu3 }
 0x498   : > { %v12779_v3 = vadd.f32 %v2066_v50, %v1886_v53  ;;  %v15656_v53 = vld [vmem:[#allocation80_spill] sm:$0xff]  ;;  %v12802_v18 = vpop.f32.mrf.mxu0 }
 0x499   : > { %v1889_v50 = vadd.f32 %v15656_v53, %v1655_v49 }
 0x49c   : > { %9673 = vmatmul.msk.bf16.gmra.mxu3 %vm810_vm2, %v2839_v27  ;;  %v15659_v27 = vld [vmem:[#allocation82_spill] sm:$0xff] }
 0x49d   : > { %v1890_v54 = vadd.f32 %v15659_v27, %v1657_v34  ;;  %v2815_v34 = vld [vmem:[#allocation2 + $0x130] sm:$0xff]  ;;  %v2814_v27 = vld [vmem:[#allocation2 + $0x128] sm:$0xff] }
 0x49f   : > { %v2069_v28 = vpop.f32.mrf.mxu3 }
 0x4a0   : > { %v12787_v60 = vadd.f32 %v2069_v28, %v1887_v46  ;;  %v2813_v28 = vld [vmem:[#allocation2 + $0x110] sm:$0xff] }
 0x4a2   : > { %15651 = vst [vmem:[#allocation19_spill] sm:$0xff] %v12787_v60 }
 0x4a7   : > { %v2071_v55 = vpop.f32.mrf.mxu3 }
 0x4a8   : > { %v12794_v7 = vadd.f32 %v2071_v55, %v1888_v39  ;;  %v2841_v39 = vpack.c.bf16 %v2813_v28, %v2812_v36  ;;  %v12811_v55 = vpop.f32.mrf.mxu0  ;;  %v2842_v36 = vpack.c.bf16 %v2815_v34, %v2814_v27  ;;  %v2816_v27 = vld [vmem:[#allocation2 + $0x148] sm:$0xff] }
 0x4aa   : > { %15654 = vst [vmem:[#allocation61_spill] sm:$0xff] %v12794_v7 }
 0x4ac   : > { %9674 = vmatmul.msk.bf16.gmra.mxu3 %vm810_vm2, %v2840_v23  ;;  %v1662_v23 = vadd.f32 %v12579_v10, %v15664_v22  ;;  %v15672_v22 = vld [vmem:[#allocation27_spill] sm:$0xff] }
 0x4af   : > { %v2074_v35 = vpop.f32.mrf.mxu3 }
 0x4b0   : > { %v12800_v31 = vadd.f32 %v2074_v35, %v1889_v50  ;;  %v12819_v53 = vpop.f32.mrf.mxu0  ;;  %v15665_v50 = vld [vmem:[#allocation86_spill] sm:$0xff] }
 0x4b1   : > { %v1892_v35 = vadd.f32 %v15665_v50, %v1662_v23  ;;  %v2315_v23 = vadd.f32 %v15672_v22, %v12608_v56  ;;  %v15673_v50 = vld [vmem:[#allocation90_spill] sm:$0xff]  ;;  %v12846_v56 = vpop.f32.mrf.mxu1 }
 0x4b2   : > { %15657 = vst [vmem:[#allocation44_spill] sm:$0xff] %v12800_v31 }
 0x4b7   : > { %v2076_v46 = vpop.f32.mrf.mxu3 }
 0x4b8   : > { %v12807_v32 = vadd.f32 %v2076_v46, %v1890_v54  ;;  %v15667_v54 = vld [vmem:[#allocation41_spill] sm:$0xff]  ;;  %v12828_v4 = vpop.f32.mrf.mxu0 }
 0x4b9   : > { %v15668_v46 = vld [vmem:[#allocation97_spill] sm:$0xff] }
 0x4ba   : > { %15660 = vst [vmem:[#allocation21_spill] sm:$0xff] %v12807_v32  ;;  %v1665_v28 = vadd.f32 %v15668_v46, %v15667_v54  ;;  %v2817_v54 = vld [vmem:[#allocation2 + $0x150] sm:$0xff] }
 0x4bc   : > { %9675 = vmatmul.msk.bf16.gmra.mxu3 %vm810_vm2, %v2841_v39  ;;  %v1893_v52 = vadd.f32 %v15669_v42, %v1665_v28  ;;  %v2843_v28 = vpack.c.bf16 %v2817_v54, %v2816_v27  ;;  %v15679_v54 = vld [vmem:[#allocation15_spill] sm:$0xff] }
 0x4bf   : > { %v2079_v16 = vpop.f32.mrf.mxu3 }
 0x4c0   : > { %v12815_v49 = vadd.f32 %v2079_v16, %v1891_v13  ;;  %v15671_v13 = vld [vmem:[#allocation43_spill] sm:$0xff]  ;;  %v12839_v46 = vpop.f32.mrf.mxu0 }
 0x4c1   : > { %v1667_v16 = vadd.f32 %v12595_v12, %v15671_v13 }
 0x4c2   : > { %15663 = vst [vmem:[#allocation64_spill] sm:$0xff] %v12815_v49 }
 0x4c7   : > { %v2081_v44 = vpop.f32.mrf.mxu3 }
 0x4c8   : > { %v12822_v25 = vadd.f32 %v2081_v44, %v1892_v35  ;;  %v1894_v35 = vadd.f32 %v15673_v50, %v1667_v16  ;;  %v12851_v50 = vld [vmem:[%s15499_s6] ss:$0 sm:$0xff]  ;;  %v12855_v27 = vpop.f32.mrf.mxu0 }
 0x4ca   : > { %15666 = vst [vmem:[#allocation46_spill] sm:$0xff] %v12822_v25  ;;  %v12864_v25 = vpop.f32.mrf.mxu1 }
 0x4cc   : > { %9676 = vmatmul.msk.bf16.gmra.mxu3 %vm810_vm2, %v2842_v36  ;;  %v15675_v36 = vld [vmem:[#allocation13_spill] sm:$0xff] }
 0x4cd   : > { %v2541_v42 = vadd.f32 %v15675_v36, %v2315_v23 }
 0x4cf   : > { %v2084_v39 = vpop.f32.mrf.mxu3 }
 0x4d0   : > { %v12830_v10 = vadd.f32 %v2084_v39, %v1893_v52  ;;  %v15676_v52 = vld [vmem:[#allocation30_spill] sm:$0xff]  ;;  %v15677_v39 = vld [vmem:[#allocation92_spill] sm:$0xff] }
 0x4d1   : > { %v2316_v12 = vadd.f32 %v15676_v52, %v12622_v62  ;;  %v2768_v13 = vadd.f32 %v15677_v39, %v2541_v42  ;;  %v15680_v62 = vld [vmem:[#allocation33_spill] sm:$0xff]  ;;  %v15681_v52 = vld [vmem:[#allocation94_spill] sm:$0xff] }
 0x4d2   : > { %15670 = vst [vmem:[#allocation24_spill] sm:$0xff] %v12830_v10  ;;  %v2317_v36 = vadd.f32 %v15680_v62, %v12637_v57  ;;  %v12870_v57 = vpop.f32.mrf.mxu0 }
 0x4d3   : > { %v2542_v23 = vadd.f32 %v15679_v54, %v2316_v12  ;;  %v15682_v54 = vld [vmem:[#allocation18_spill] sm:$0xff] }
 0x4d5   : > { %v2769_v39 = vadd.f32 %v15681_v52, %v2542_v23  ;;  %v15683_v23 = vld [vmem:[#allocation35_spill] sm:$0xff]  ;;  %v15684_v52 = vld [vmem:[#allocation96_spill] sm:$0xff] }
 0x4d6   : > { %v2318_v62 = vadd.f32 %v15683_v23, %v12644_v29 }
 0x4d7   : > { %v2086_v44 = vpop.f32.mrf.mxu3 }
 0x4d8   : > { %v12837_v34 = vadd.f32 %v2086_v44, %v1894_v35  ;;  %v15678_v35 = vld [vmem:[#allocation98_spill] sm:$0xff] }
 0x4da   : > { %15674 = vst [vmem:[#allocation66_spill] sm:$0xff] %v12837_v34  ;;  %v12888_v31 = vpop.f32.mrf.mxu0 }
 0x4dc   : > { %9677 = vmatmul.msk.bf16.gmra.mxu3 %vm810_vm2, %v2843_v28 }
 0x4df   : > { %v2914_v16 = vpop.f32.mrf.mxu3 }
 0x4e0   : > { %v2994_v22 = vadd.f32 %v2914_v16, %v2768_v13  ;;  %v2819_v16 = vld [vmem:[#allocation2 + $0x170] sm:$0xff] }
 0x4e2   : > { %v3220_v44 = vadd.f32 %v15678_v35, %v2994_v22  ;;  %v2818_v22 = vld [vmem:[#allocation2 + $0x168] sm:$0xff] }
 0x4e3   : > { %v2844_v35 = vpack.c.bf16 %v2819_v16, %v2818_v22 }
 0x4e4   : > { %v12858_v28 = vadd.f32 %v12851_v50, %v3220_v44  ;;  %v2543_v44 = vadd.f32 %v15682_v54, %v2317_v36  ;;  %v15685_v36 = vld [vmem:[#allocation22_spill] sm:$0xff] }
 0x4e5   : > { %v2544_v22 = vadd.f32 %v15685_v36, %v2318_v62  ;;  %v15686_v54 = vld [vmem:[#allocation38_spill] sm:$0xff]  ;;  %v2820_v36 = vld [vmem:[#allocation2 + $0x188] sm:$0xff] }
 0x4e6   : > { %v3288_v42 = vsub.f32 0.0, %v12858_v28 }
 0x4e7   : > { %v2916_v13 = vpop.f32.mrf.mxu3 }
 0x4e8   : > { %v3320_v34 = vmul.f32 1.442695, %v3288_v42  ;;  %v2995_v10 = vadd.f32 %v2916_v13, %v2769_v39  ;;  %v2770_v39 = vadd.f32 %v15684_v52, %v2543_v44  ;;  %v12875_v13 = vpop.f32.mrf.mxu2  ;;  %v2319_v44 = vadd.f32 %v15686_v54, %v12653_v63  ;;  %v15687_v52 = vld [vmem:[#allocation99_spill] sm:$0xff]  ;;  %v15688_v63 = vld [vmem:[#allocation25_spill] sm:$0xff] }
 0x4ea   : > { %v3221_v12 = vadd.f32 %v12601_v14, %v2995_v10  ;;  %10586 = vpow2.f32 %v3320_v34  ;;  %v2545_v54 = vadd.f32 %v15688_v63, %v2319_v44  ;;  %v15690_v44 = vld [vmem:[#allocation28_spill] sm:$0xff] }
 0x4ec   : > { %v3257_v49 = vadd.f32 %v12851_v50, %v3221_v12  ;;  %9678 = vmatmul.msk.bf16.gmra.mxu3 %vm810_vm2, %v2844_v35  ;;  %v12879_v12 = vpop.f32.mrf.mxu1 }
 0x4ee   : > { %v3289_v42 = vsub.f32 0.0, %v3257_v49 }
 0x4ef   : > { %v2919_v32 = vpop.f32.mrf.mxu3 }
 0x4f0   : > { %v3322_v14 = vmul.f32 1.442695, %v3289_v42  ;;  %v2996_v10 = vadd.f32 %v2919_v32, %v2770_v39  ;;  %v10587_v16 = vpop.eup %10586  ;;  %v2771_v42 = vadd.f32 %v15687_v52, %v2544_v22  ;;  %v2821_v39 = vld [vmem:[#allocation2 + $0x190] sm:$0xff] }
 0x4f1   : > { %v3384_v29 = vadd.f32 1.0, %v10587_v16  ;;  %v2845_v7 = vpack.c.bf16 %v2821_v39, %v2820_v36  ;;  %v12902_v36 = vpop.f32.mrf.mxu0 }
 0x4f2   : > { %10588 = vpow2.f32 %v3322_v14  ;;  %v3222_v34 = vadd.f32 %v12619_v5, %v2996_v10  ;;  %v12890_v10 = vpop.f32.mrf.mxu2 }
 0x4f3   : > { %10590 = vrcp.f32 %v3384_v29  ;;  %v2772_v29 = vadd.f32 %v12612_v8, %v2545_v54 }
 0x4f4   : > { %v12882_v35 = vadd.f32 %v12851_v50, %v3222_v34  ;;  %v12896_v52 = vpop.f32.mrf.mxu1 }
 0x4f6   : > { %v3290_v23 = vsub.f32 0.0, %v12882_v35 }
 0x4f7   : > { %v2921_v32 = vpop.f32.mrf.mxu3 }
 0x4f8   : > { %v10589_v14 = vpop.eup %10588  ;;  %v3324_v5 = vmul.f32 1.442695, %v3290_v23  ;;  %v2997_v62 = vadd.f32 %v2921_v32, %v2771_v42  ;;  %v15689_v23 = vld [vmem:[#allocation40_spill] sm:$0xff] }
 0x4f9   : > { %v3385_v34 = vadd.f32 1.0, %v10589_v14  ;;  %v2320_v42 = vadd.f32 %v15689_v23, %v12662_v19  ;;  %v10591_v14 = vpop.eup %10590 }
 0x4fa   : > { %v3223_v16 = vadd.f32 %v12635_v37, %v2997_v62  ;;  %v12906_v19 = vpop.f32.mrf.mxu2 }
 0x4fb   : > { %10592 = vrcp.f32 %v3385_v34  ;;  %v2546_v34 = vadd.f32 %v15690_v44, %v2320_v42  ;;  %v2822_v44 = vld [vmem:[#allocation2 + $0x1a8] sm:$0xff] }
 0x4fc   : > { %10594 = vpow2.f32 %v3324_v5  ;;  %v3259_v22 = vadd.f32 %v12851_v50, %v3223_v16  ;;  %9679 = vmatmul.msk.bf16.gmra.mxu3 %vm810_vm2, %v2845_v7  ;;  %v3448_v7 = vmul.f32 %v10591_v14, %v12858_v28 }
 0x4fd   : > { %v2773_v28 = vadd.f32 %v12630_v1, %v2546_v34 }
 0x4fe   : > { %v3291_v32 = vsub.f32 0.0, %v3259_v22 }
 0x4ff   : > { %v2924_v60 = vpop.f32.mrf.mxu3 }
 0x500   : > { %v3326_v37 = vmul.f32 1.442695, %v3291_v32  ;;  %v2998_v39 = vadd.f32 %v2924_v60, %v2772_v29  ;;  %v15691_v60 = vld [vmem:[#allocation42_spill] sm:$0xff] }
 0x501   : > { %v10593_v62 = vpop.eup %10592  ;;  %v2321_v32 = vadd.f32 %v15691_v60, %v12669_v6  ;;  %v15692_v6 = vld [vmem:[#allocation32_spill] sm:$0xff] }
 0x502   : > { %v10595_v5 = vpop.eup %10594  ;;  %v3449_v16 = vmul.f32 %v10593_v62, %v3257_v49  ;;  %10596 = vpow2.f32 %v3326_v37  ;;  %v3224_v63 = vadd.f32 %v12648_v15, %v2998_v39  ;;  %v12916_v49 = vpop.f32.mrf.mxu1  ;;  %v2823_v15 = vld [vmem:[#allocation2 + $0x1b0] sm:$0xff] }
 0x503   : > { %v3386_v54 = vadd.f32 1.0, %v10595_v5  ;;  %v12924_v34 = vpop.f32.mrf.mxu2 }
 0x504   : > { %v3485_v23 = vpack.c.bf16 %v3449_v16, %v3448_v7  ;;  %v12909_v8 = vadd.f32 %v12851_v50, %v3224_v63  ;;  %v2846_v7 = vpack.c.bf16 %v2823_v15, %v2822_v44  ;;  %v2547_v16 = vadd.f32 %v15692_v6, %v2321_v32  ;;  %v12920_v63 = vpop.f32.mrf.mxu0 }
 0x505   : > { %10598 = vrcp.f32 %v3386_v54 }
 0x506   : > { %v3292_v42 = vsub.f32 0.0, %v12909_v8  ;;  %9720 = vmatmul.msk.bf16.vlgmr.msrb.gmra.mxu0 %vm919_vm1, %v3485_v23  ;;  %v15693_v23 = vld [vmem:[#allocation45_spill] sm:$0xff] }
 0x507   : > { %v2926_v29 = vpop.f32.mrf.mxu3  ;;  %v2322_v54 = vadd.f32 %v15693_v23, %v12674_v26  ;;  %v15695_v23 = vld [vmem:[#allocation47_spill] sm:$0xff] }
 0x508   : > { %v10597_v14 = vpop.eup %10596  ;;  %v3328_v37 = vmul.f32 1.442695, %v3292_v42  ;;  %v2999_v39 = vadd.f32 %v2926_v29, %v2773_v28  ;;  %v2774_v42 = vadd.f32 %v12690_v33, %v2547_v16 }
 0x509   : > { %v3387_v62 = vadd.f32 1.0, %v10597_v14 }
 0x50a   : > { %v3225_v5 = vadd.f32 %v12657_v47, %v2999_v39  ;;  %v12929_v14 = vpop.f32.mrf.mxu1 }
 0x50b   : > { %10600 = vrcp.f32 %v3387_v62  ;;  %v10599_v47 = vpop.eup %10598 }
 0x50c   : > { %10602 = vpow2.f32 %v3328_v37  ;;  %v3261_v1 = vadd.f32 %v12851_v50, %v3225_v5  ;;  %9680 = vmatmul.msk.bf16.gmra.mxu3 %vm810_vm2, %v2846_v7  ;;  %v15694_v37 = vld [vmem:[#allocation36_spill] sm:$0xff]  ;;  %v3450_v44 = vmul.f32 %v10599_v47, %v12882_v35  ;;  %v12937_v16 = vpop.f32.mrf.mxu0 }
 0x50d   : > { %v2548_v39 = vadd.f32 %v15694_v37, %v2322_v54 }
 0x50e   : > { %v3293_v60 = vsub.f32 0.0, %v3261_v1 }
 0x50f   : > { %v2929_v28 = vpop.f32.mrf.mxu3  ;;  %v2775_v35 = vadd.f32 %v12699_v48, %v2548_v39  ;;  %v15696_v39 = vld [vmem:[#allocation49_spill] sm:$0xff] }
 0x510   : > { %v3330_v29 = vmul.f32 1.442695, %v3293_v60  ;;  %v3000_v32 = vadd.f32 %v2929_v28, %v2774_v42  ;;  %v2323_v60 = vadd.f32 %v15695_v23, %v12681_v30 }
 0x511   : > { %v10601_v15 = vpop.eup %10600 }
 0x512   : > { %v10603_v62 = vpop.eup %10602  ;;  %v3451_v5 = vmul.f32 %v10601_v15, %v3259_v22  ;;  %10604 = vpow2.f32 %v3330_v29  ;;  %v3226_v7 = vadd.f32 %v12846_v56, %v3000_v32  ;;  %v12944_v22 = vpop.f32.mrf.mxu2  ;;  %v2825_v56 = vld [vmem:[#allocation2 + $0x1d0] sm:$0xff]  ;;  %v2824_v15 = vld [vmem:[#allocation2 + $0x1c8] sm:$0xff]  ;;  %v2549_v30 = vadd.f32 %v12776_v40, %v2323_v60 }
 0x513   : > { %v3388_v6 = vadd.f32 1.0, %v10603_v62  ;;  %v2847_v62 = vpack.c.bf16 %v2825_v56, %v2824_v15 }
 0x514   : > { %v12935_v26 = vadd.f32 %v12851_v50, %v3226_v7  ;;  %v3486_v33 = vpack.c.bf16 %v3451_v5, %v3450_v44  ;;  %v12948_v44 = vpop.f32.mrf.mxu1  ;;  %v2324_v5 = vadd.f32 %v15696_v39, %v12686_v58 }
 0x515   : > { %10606 = vrcp.f32 %v3388_v6 }
 0x516   : > { %v3294_v42 = vsub.f32 0.0, %v12935_v26  ;;  %9721 = vmatmul.msk.bf16.gmra.mxu0 %vm919_vm1, %v3486_v33  ;;  %v2776_v33 = vadd.f32 %v12875_v13, %v2549_v30 }
 0x517   : > { %v2931_v54 = vpop.f32.mrf.mxu3 }
 0x518   : > { %v10605_v47 = vpop.eup %10604  ;;  %v3332_v28 = vmul.f32 1.442695, %v3294_v42  ;;  %v3001_v29 = vadd.f32 %v2931_v54, %v2775_v35  ;;  %v2550_v54 = vadd.f32 %v12784_v17, %v2324_v5 }
 0x519   : > { %v3389_v32 = vadd.f32 1.0, %v10605_v47 }
 0x51a   : > { %v3227_v37 = vadd.f32 %v12864_v25, %v3001_v29  ;;  %v12955_v25 = vpop.f32.mrf.mxu0  ;;  %v12957_v35 = vpop.f32.mrf.mxu2  ;;  %v2777_v17 = vadd.f32 %v12890_v10, %v2550_v54 }
 0x51b   : > { %10608 = vrcp.f32 %v3389_v32  ;;  %v10607_v6 = vpop.eup %10606 }
 0x51c   : > { %10610 = vpow2.f32 %v3332_v28  ;;  %v3263_v48 = vadd.f32 %v12851_v50, %v3227_v37  ;;  %9681 = vmatmul.msk.bf16.gmra.mxu3 %vm810_vm2, %v2847_v62  ;;  %v3452_v47 = vmul.f32 %v10607_v6, %v12909_v8  ;;  %v12965_v32 = vpop.f32.mrf.mxu1  ;;  %v15697_v37 = vld [vmem:[#allocation51_spill] sm:$0xff] }
 0x51d   : > { %v2325_v62 = vadd.f32 %v15697_v37, %v12695_v61 }
 0x51e   : > { %v3295_v7 = vsub.f32 0.0, %v3263_v48 }
 0x51f   : > { %v2934_v23 = vpop.f32.mrf.mxu3  ;;  %v2551_v61 = vadd.f32 %v12792_v20, %v2325_v62 }
 0x520   : > { %v3334_v42 = vmul.f32 1.442695, %v3295_v7  ;;  %v3002_v40 = vadd.f32 %v2934_v23, %v2776_v33  ;;  %v2826_v33 = vld [vmem:[#allocation2 + $0x1e8] sm:$0xff] }
 0x521   : > { %v10609_v60 = vpop.eup %10608 }
 0x522   : > { %v10611_v56 = vpop.eup %10610  ;;  %v3453_v28 = vmul.f32 %v10609_v60, %v3261_v1  ;;  %10612 = vpow2.f32 %v3334_v42  ;;  %v3228_v58 = vadd.f32 %v12879_v12, %v3002_v40  ;;  %v2827_v1 = vld [vmem:[#allocation2 + $0x1f0] sm:$0xff]  ;;  %v12972_v6 = vpop.f32.mrf.mxu0  ;;  %v15698_v60 = vld [vmem:[#allocation53_spill] sm:$0xff] }
 0x523   : > { %v3390_v15 = vadd.f32 1.0, %v10611_v56  ;;  %v2848_v42 = vpack.c.bf16 %v2827_v1, %v2826_v33  ;;  %v12976_v40 = vpop.f32.mrf.mxu2  ;;  %v2326_v54 = vadd.f32 %v15698_v60, %v12703_v21  ;;  %v2829_v33 = vld [vmem:[#allocation2 + $0x210] sm:$0xff] }
 0x524   : > { %v12963_v13 = vadd.f32 %v12851_v50, %v3228_v58  ;;  %v3487_v29 = vpack.c.bf16 %v3453_v28, %v3452_v47  ;;  %v2778_v47 = vadd.f32 %v12906_v19, %v2551_v61  ;;  %v12983_v58 = vpop.f32.mrf.mxu1 }
 0x525   : > { %10614 = vrcp.f32 %v3390_v15  ;;  %v2552_v37 = vadd.f32 %v12802_v18, %v2326_v54 }
 0x526   : > { %v3296_v30 = vsub.f32 0.0, %v12963_v13  ;;  %9722 = vmatmul.msk.bf16.gmra.mxu0 %vm919_vm1, %v3487_v29 }
 0x527   : > { %v2936_v8 = vpop.f32.mrf.mxu3 }
 0x528   : > { %v10613_v39 = vpop.eup %10612  ;;  %v3336_v12 = vmul.f32 1.442695, %v3296_v30  ;;  %v3003_v5 = vadd.f32 %v2936_v8, %v2777_v17 }
 0x529   : > { %v3391_v7 = vadd.f32 1.0, %v10613_v39 }
 0x52a   : > { %v3229_v23 = vadd.f32 %v12896_v52, %v3003_v5  ;;  %v12988_v21 = vpop.f32.mrf.mxu0  ;;  %v15699_v5 = vld [vmem:[#allocation55_spill] sm:$0xff] }
 0x52b   : > { %10616 = vrcp.f32 %v3391_v7  ;;  %v10615_v28 = vpop.eup %10614  ;;  %v12993_v39 = vpop.f32.mrf.mxu2  ;;  %v2327_v7 = vadd.f32 %v15699_v5, %v12710_v9 }
 0x52c   : > { %10618 = vpow2.f32 %v3336_v12  ;;  %v3265_v10 = vadd.f32 %v12851_v50, %v3229_v23  ;;  %9682 = vmatmul.msk.bf16.gmra.mxu3 %vm810_vm2, %v2848_v42  ;;  %v3454_v30 = vmul.f32 %v10615_v28, %v12935_v26  ;;  %v2779_v26 = vadd.f32 %v12924_v34, %v2552_v37  ;;  %v13000_v60 = vpop.f32.mrf.mxu1  ;;  %v10250_v28 = vld [vmem:[%s15498_s5 + $0x48] sm:$0xff] }
 0x52d   : > { %v2553_v9 = vadd.f32 %v12811_v55, %v2327_v7  ;;  %4185 = vmatpush.bf16.msra.mxu3 %v10250_v28 }
 0x52e   : > { %v3297_v56 = vsub.f32 0.0, %v3265_v10 }
 0x52f   : > { %v2939_v52 = vpop.f32.mrf.mxu3 }
 0x530   : > { %v3338_v29 = vmul.f32 1.442695, %v3297_v56  ;;  %v3004_v20 = vadd.f32 %v2939_v52, %v2778_v47  ;;  %v15700_v52 = vld [vmem:[#allocation57_spill] sm:$0xff] }
 0x531   : > { %v10617_v15 = vpop.eup %10616 }
 0x532   : > { %v10619_v62 = vpop.eup %10618  ;;  %v3455_v17 = vmul.f32 %v10617_v15, %v3263_v48  ;;  %10620 = vpow2.f32 %v3338_v29  ;;  %v3230_v8 = vadd.f32 %v12916_v49, %v3004_v20  ;;  %v2828_v49 = vld [vmem:[#allocation2 + $0x208] sm:$0xff]  ;;  %v2328_v29 = vadd.f32 %v15700_v52, %v12715_v11  ;;  %v13011_v20 = vpop.f32.mrf.mxu0 }
 0x533   : > { %v3392_v12 = vadd.f32 1.0, %v10619_v62  ;;  %v2849_v47 = vpack.c.bf16 %v2829_v33, %v2828_v49  ;;  %v2780_v15 = vadd.f32 %v12944_v22, %v2553_v9  ;;  %v13014_v37 = vpop.f32.mrf.mxu2  ;;  %v2830_v49 = vld [vmem:[#allocation2 + $0x228] sm:$0xff]  ;;  %v2831_v33 = vld [vmem:[#allocation2 + $0x230] sm:$0xff] }
 0x534   : > { %v12991_v19 = vadd.f32 %v12851_v50, %v3230_v8  ;;  %v3488_v1 = vpack.c.bf16 %v3455_v17, %v3454_v30 }
 0x535   : > { %10622 = vrcp.f32 %v3392_v12 }
 0x536   : > { %v3298_v18 = vsub.f32 0.0, %v12991_v19  ;;  %9723 = vmatmul.msk.bf16.gmra.mxu0 %vm919_vm1, %v3488_v1  ;;  %v2554_v1 = vadd.f32 %v12819_v53, %v2328_v29  ;;  %v3056_v29 = vld [vmem:[#allocation2 + $0x229] sm:$0xff] }
 0x537   : > { %v2941_v48 = vpop.f32.mrf.mxu3 }
 0x538   : > { %v10621_v23 = vpop.eup %10620  ;;  %v3340_v42 = vmul.f32 1.442695, %v3298_v18  ;;  %v3005_v61 = vadd.f32 %v2941_v48, %v2779_v26  ;;  %v13019_v18 = vpop.f32.mrf.mxu1 }
 0x539   : > { %v3393_v54 = vadd.f32 1.0, %v10621_v23  ;;  %v15701_v23 = vld [vmem:[#allocation59_spill] sm:$0xff] }
 0x53a   : > { %v3231_v56 = vadd.f32 %v12929_v14, %v3005_v61  ;;  %v13029_v61 = vpop.f32.mrf.mxu0 }
 0x53b   : > { %10624 = vrcp.f32 %v3393_v54  ;;  %v10623_v55 = vpop.eup %10622  ;;  %v13031_v9 = vpop.f32.mrf.mxu2 }
 0x53c   : > { %10626 = vpow2.f32 %v3340_v42  ;;  %v3267_v34 = vadd.f32 %v12851_v50, %v3231_v56  ;;  %9683 = vmatmul.msk.bf16.gmra.mxu3 %vm810_vm2, %v2849_v47  ;;  %v3456_v5 = vmul.f32 %v10623_v55, %v12963_v13  ;;  %v2329_v42 = vadd.f32 %v15701_v23, %v12722_v2 }
 0x53d   : > { %v2781_v13 = vadd.f32 %v12957_v35, %v2554_v1  ;;  %v2850_v47 = vpack.c.bf16 %v2831_v33, %v2830_v49 }
 0x53e   : > { %v3299_v14 = vsub.f32 0.0, %v3267_v34  ;;  %v2555_v2 = vadd.f32 %v12828_v4, %v2329_v42 }
 0x53f   : > { %v2944_v62 = vpop.f32.mrf.mxu3 }
 0x540   : > { %v3342_v30 = vmul.f32 1.442695, %v3299_v14  ;;  %v3006_v17 = vadd.f32 %v2944_v62, %v2780_v15  ;;  %v3057_v14 = vld [vmem:[#allocation2 + $0x231] sm:$0xff]  ;;  %v13037_v55 = vpop.f32.mrf.mxu1  ;;  %v15702_v62 = vld [vmem:[#allocation62_spill] sm:$0xff] }
 0x541   : > { %v10625_v8 = vpop.eup %10624  ;;  %v3076_v15 = vpack.c.bf16 %v3057_v14, %v3056_v29 }
 0x542   : > { %v10627_v12 = vpop.eup %10626  ;;  %v3457_v7 = vmul.f32 %v10625_v8, %v3265_v10  ;;  %10628 = vpow2.f32 %v3342_v30  ;;  %v3232_v11 = vadd.f32 %v12948_v44, %v3006_v17  ;;  %v2330_v30 = vadd.f32 %v15702_v62, %v12727_v51 }
 0x543   : > { %v3394_v48 = vadd.f32 1.0, %v10627_v12  ;;  %9706 = vmatmul.msk.bf16.gmra.mxu1 %vm810_vm2, %v3076_v15  ;;  %v2733_v33 = vpop.f32.mrf.mxu2 }
 0x544   : > { %v13022_v22 = vadd.f32 %v12851_v50, %v3232_v11  ;;  %v3489_v26 = vpack.c.bf16 %v3457_v7, %v3456_v5  ;;  %v2556_v7 = vadd.f32 %v12839_v46, %v2330_v30 }
 0x545   : > { %10630 = vrcp.f32 %v3394_v48 }
 0x546   : > { %v3300_v53 = vsub.f32 0.0, %v13022_v22  ;;  %9724 = vmatmul.msk.bf16.gmra.mxu0 %vm919_vm1, %v3489_v26  ;;  %v13044_v26 = vpop.f32.mrf.mxu0 }
 0x547   : > { %v2946_v10 = vpop.f32.mrf.mxu3 }
 0x548   : > { %v10629_v44 = vpop.eup %10628  ;;  %v3344_v54 = vmul.f32 1.442695, %v3300_v53  ;;  %v3007_v56 = vadd.f32 %v2946_v10, %v2781_v13  ;;  %v15703_v53 = vld [vmem:[#allocation65_spill] sm:$0xff]  ;;  %v2783_v10 = vadd.f32 %v12993_v39, %v2556_v7  ;;  %v15704_v39 = vld [vmem:[#allocation68_spill] sm:$0xff] }
 0x549   : > { %v3395_v28 = vadd.f32 1.0, %v10629_v44  ;;  %v2331_v13 = vadd.f32 %v15703_v53, %v12733_v24  ;;  %v2332_v29 = vadd.f32 %v15704_v39, %v12741_v59 }
 0x54a   : > { %v3233_v52 = vadd.f32 %v12965_v32, %v3007_v56  ;;  %v2782_v32 = vadd.f32 %v12976_v40, %v2555_v2 }
 0x54b   : > { %10632 = vrcp.f32 %v3395_v28  ;;  %v10631_v4 = vpop.eup %10630  ;;  %v2557_v28 = vadd.f32 %v12855_v27, %v2331_v13  ;;  %v2735_v2 = vpop.f32.mrf.mxu2  ;;  %v2558_v27 = vadd.f32 %v12870_v57, %v2332_v29 }
 0x54c   : > { %10634 = vpow2.f32 %v3344_v54  ;;  %v3269_v35 = vadd.f32 %v12851_v50, %v3233_v52  ;;  %9684 = vmatmul.msk.bf16.gmra.mxu3 %vm810_vm2, %v2850_v47  ;;  %v3458_v48 = vmul.f32 %v10631_v4, %v12991_v19  ;;  %v13056_v19 = vpop.f32.mrf.mxu1 }
 0x54d   : > { %v2784_v15 = vadd.f32 %v13014_v37, %v2557_v28  ;;  %v2785_v57 = vadd.f32 %v13031_v9, %v2558_v27 }
 0x54e   : > { %v3301_v17 = vsub.f32 0.0, %v3269_v35  ;;  %v13060_v24 = vpop.f32.mrf.mxu0 }
 0x54f   : > { %v2949_v8 = vpop.f32.mrf.mxu3 }
 0x550   : > { %v3346_v1 = vmul.f32 1.442695, %v3301_v17  ;;  %v3008_v12 = vadd.f32 %v2949_v8, %v2782_v32 }
 0x551   : > { %v10633_v5 = vpop.eup %10632 }
 0x552   : > { %v10635_v11 = vpop.eup %10634  ;;  %v3459_v49 = vmul.f32 %v10633_v5, %v3267_v34  ;;  %10636 = vpow2.f32 %v3346_v1  ;;  %v3234_v51 = vadd.f32 %v12983_v58, %v3008_v12 }
 0x553   : > { %v3396_v42 = vadd.f32 1.0, %v10635_v11 }
 0x554   : > { %v13049_v23 = vadd.f32 %v12851_v50, %v3234_v51  ;;  %v3490_v40 = vpack.c.bf16 %v3459_v49, %v3458_v48  ;;  %v3187_v4 = vpop.f32.mrf.mxu1  ;;  %v15705_v48 = vld [vmem:[#allocation70_spill] sm:$0xff] }
 0x555   : > { %10638 = vrcp.f32 %v3396_v42  ;;  %v2333_v49 = vadd.f32 %v15705_v48, %v12747_v38 }
 0x556   : > { %v3302_v46 = vsub.f32 0.0, %v13049_v23  ;;  %9725 = vmatmul.msk.bf16.gmra.mxu0 %vm919_vm1, %v3490_v40  ;;  %v13072_v11 = vpop.f32.mrf.mxu0 }
 0x557   : > { %v2951_v34 = vpop.f32.mrf.mxu3 }
 0x558   : > { %v10637_v44 = vpop.eup %10636  ;;  %v3348_v58 = vmul.f32 1.442695, %v3302_v46  ;;  %v3009_v54 = vadd.f32 %v2951_v34, %v2783_v10  ;;  %v2559_v46 = vadd.f32 %v12888_v31, %v2333_v49  ;;  %v15706_v34 = vld [vmem:[#allocation71_spill] sm:$0xff] }
 0x559   : > { %v3397_v56 = vadd.f32 1.0, %v10637_v44  ;;  %v2334_v44 = vadd.f32 %v15706_v34, %v12752_v0  ;;  %v15708_v49 = vld [vmem:[#allocation75_spill] sm:$0xff] }
 0x55a   : > { %v3235_v47 = vadd.f32 %v13000_v60, %v3009_v54 }
 0x55b   : > { %10640 = vrcp.f32 %v3397_v56  ;;  %v10639_v62 = vpop.eup %10638  ;;  %v2560_v31 = vadd.f32 %v12902_v36, %v2334_v44 }
 0x55c   : > { %10642 = vpow2.f32 %v3348_v58  ;;  %v3271_v52 = vadd.f32 %v12851_v50, %v3235_v47  ;;  %v3460_v1 = vmul.f32 %v10639_v62, %v13022_v22  ;;  %v2738_v22 = vpop.f32.mrf.mxu2  ;;  %v3190_v10 = vpop.f32.mrf.mxu1  ;;  %v2786_v58 = vadd.f32 %v2733_v33, %v2559_v46 }
 0x55d   : > { %v2787_v36 = vadd.f32 %v2735_v2, %v2560_v31  ;;  %v2336_v2 = vadd.f32 %v15708_v49, %v12766_v41 }
 0x55e   : > { %v3303_v14 = vsub.f32 0.0, %v3271_v52  ;;  %v13084_v29 = vpop.f32.mrf.mxu0 }
 0x55f   : > { %v2954_v30 = vpop.f32.mrf.mxu3 }
 0x560   : > { %v3350_v17 = vmul.f32 1.442695, %v3303_v14  ;;  %v3010_v32 = vadd.f32 %v2954_v30, %v2784_v15 }
 0x561   : > { %v10641_v60 = vpop.eup %10640 }
 0x562   : > { %v10643_v8 = vpop.eup %10642  ;;  %v3461_v12 = vmul.f32 %v10641_v60, %v3269_v35  ;;  %10644 = vpow2.f32 %v3350_v17  ;;  %v3236_v5 = vadd.f32 %v13019_v18, %v3010_v32  ;;  %v15707_v60 = vld [vmem:[#allocation73_spill] sm:$0xff] }
 0x563   : > { %v3398_v37 = vadd.f32 1.0, %v10643_v8  ;;  %v2335_v27 = vadd.f32 %v15707_v60, %v12761_v45 }
 0x564   : > { %v13070_v59 = vadd.f32 %v12851_v50, %v3236_v5  ;;  %v3491_v7 = vpack.c.bf16 %v3461_v12, %v3460_v1  ;;  %v3192_v17 = vpop.f32.mrf.mxu1 }
 0x565   : > { %10646 = vrcp.f32 %v3398_v37 }
 0x566   : > { %v3304_v51 = vsub.f32 0.0, %v13070_v59  ;;  %9726 = vmatmul.msk.bf16.gmra.mxu0 %vm919_vm1, %v3491_v7  ;;  %v2561_v7 = vadd.f32 %v12920_v63, %v2335_v27  ;;  %v13097_v37 = vpop.f32.mrf.mxu0 }
 0x567   : > { %v2956_v35 = vpop.f32.mrf.mxu3 }
 0x568   : > { %v10645_v40 = vpop.eup %10644  ;;  %v3352_v18 = vmul.f32 1.442695, %v3304_v51  ;;  %v3011_v42 = vadd.f32 %v2956_v35, %v2785_v57  ;;  %v2788_v57 = vadd.f32 %v2738_v22, %v2561_v7 }
 0x569   : > { %v3399_v53 = vadd.f32 1.0, %v10645_v40 }
 0x56a   : > { %v3237_v13 = vadd.f32 %v13037_v55, %v3011_v42  ;;  %v2740_v55 = vpop.f32.mrf.mxu2  ;;  %v13110_v42 = vld [vmem:[%s15497_s4 + $0x1] ss:$0 sm:$0xff] }
 0x56b   : > { %10648 = vrcp.f32 %v3399_v53  ;;  %v10647_v54 = vpop.eup %10646 }
 0x56c   : > { %10650 = vpow2.f32 %v3352_v18  ;;  %v3273_v38 = vadd.f32 %v12851_v50, %v3237_v13  ;;  %v3462_v15 = vmul.f32 %v10647_v54, %v13049_v23  ;;  %v13105_v40 = vpop.f32.mrf.mxu1  ;;  %v2562_v13 = vadd.f32 %v12937_v16, %v2336_v2  ;;  %v3880_v2 = vld [vmem:[#allocation2 + $0xf] sm:$0xff] }
 0x56e   : > { %v3305_v9 = vsub.f32 0.0, %v3273_v38 }
 0x56f   : > { %v2959_v56 = vpop.f32.mrf.mxu3 }
 0x570   : > { %v3354_v47 = vmul.f32 1.442695, %v3305_v9  ;;  %v3012_v28 = vadd.f32 %v2959_v56, %v2786_v58 }
 0x571   : > { %v10649_v39 = vpop.eup %10648 }
 0x572   : > { %v10651_v14 = vpop.eup %10650  ;;  %v3463_v62 = vmul.f32 %v10649_v39, %v3271_v52  ;;  %10652 = vpow2.f32 %v3354_v47  ;;  %v3238_v30 = vadd.f32 %v13056_v19, %v3012_v28  ;;  %v2743_v48 = vpop.f32.mrf.mxu2  ;;  %v15709_v28 = vld [vmem:[#allocation77_spill] sm:$0xff] }
 0x573   : > { %v3400_v32 = vadd.f32 1.0, %v10651_v14  ;;  %v2337_v39 = vadd.f32 %v15709_v28, %v12772_v43 }
 0x574   : > { %v13090_v0 = vadd.f32 %v12851_v50, %v3238_v30  ;;  %v3492_v33 = vpack.c.bf16 %v3463_v62, %v3462_v15  ;;  %v13125_v30 = vpop.f32.mrf.mxu1 }
 0x575   : > { %10654 = vrcp.f32 %v3400_v32  ;;  %v2563_v43 = vadd.f32 %v12955_v25, %v2337_v39  ;;  %v3879_v25 = vld [vmem:[#allocation2 + $0x7] sm:$0xff] }
 0x576   : > { %v3306_v8 = vsub.f32 0.0, %v13090_v0  ;;  %9727 = vmatmul.msk.bf16.gmra.mxu0 %vm919_vm1, %v3492_v33 }
 0x577   : > { %v2961_v1 = vpop.f32.mrf.mxu3 }
 0x578   : > { %v10653_v23 = vpop.eup %10652  ;;  %v3356_v52 = vmul.f32 1.442695, %v3306_v8  ;;  %v3013_v12 = vadd.f32 %v2961_v1, %v2787_v36  ;;  %v15710_v8 = vld [vmem:[#allocation79_spill] sm:$0xff] }
 0x579   : > { %v3401_v19 = vadd.f32 1.0, %v10653_v23  ;;  %v2338_v36 = vadd.f32 %v15710_v8, %v12779_v3 }
 0x57a   : > { %v3239_v5 = vadd.f32 %v3187_v4, %v3013_v12  ;;  %v2745_v56 = vpop.f32.mrf.mxu2  ;;  %v3931_v12 = vld [vmem:[#allocation2 + $0x10] sm:$0xff] }
 0x57b   : > { %10656 = vrcp.f32 %v3401_v19  ;;  %v10655_v35 = vpop.eup %10654 }
 0x57c   : > { %10658 = vpow2.f32 %v3356_v52  ;;  %v13100_v45 = vadd.f32 %v12851_v50, %v3239_v5  ;;  %v3464_v41 = vmul.f32 %v10655_v35, %v13070_v59  ;;  %v2790_v52 = vadd.f32 %v2743_v48, %v2563_v43 }
 0x57e   : > { %v3307_v51 = vsub.f32 0.0, %v13100_v45 }
 0x57f   : > { %v2964_v4 = vpop.f32.mrf.mxu3 }
 0x580   : > { %v3358_v18 = vmul.f32 1.442695, %v3307_v51  ;;  %v3014_v63 = vadd.f32 %v2964_v4, %v2788_v57 }
 0x581   : > { %v10657_v53 = vpop.eup %10656 }
 0x582   : > { %v10659_v46 = vpop.eup %10658  ;;  %v3465_v34 = vmul.f32 %v10657_v53, %v3273_v38  ;;  %10660 = vpow2.f32 %v3358_v18  ;;  %v3240_v22 = vadd.f32 %v3190_v10, %v3014_v63  ;;  %v2789_v10 = vadd.f32 %v2740_v55, %v2562_v13  ;;  %v13138_v5 = vpop.f32.mrf.mxu2 }
 0x583   : > { %v3575_v44 = vpop.f32.mrf.mxu0  ;;  %v3402_v47 = vadd.f32 1.0, %v10659_v46  ;;  %v3914_v18 = vpack.c.bf16 %v3880_v2, %v3879_v25  ;;  %v2564_v63 = vadd.f32 %v12972_v6, %v2338_v36 }
 0x584   : > { %v13115_v9 = vadd.f32 %v12851_v50, %v3240_v22  ;;  %v13118_v58 = vadd.f32 %v13110_v42, %v3575_v44  ;;  %v3493_v54 = vpack.c.bf16 %v3465_v34, %v3464_v41  ;;  %v3200_v41 = vpop.f32.mrf.mxu1 }
 0x585   : > { %10662 = vrcp.f32 %v3402_v47  ;;  %9764 = vmatmul.msk.bf16.vlgmr.msra.gmra.mxu3 %vm810_vm2, %v3914_v18 }
 0x586   : > { %v3308_v16 = vsub.f32 0.0, %v13115_v9  ;;  %v3655_v59 = vsub.f32 0.0, %v13118_v58  ;;  %9728 = vmatmul.msk.bf16.gmra.mxu0 %vm919_vm1, %v3493_v54 }
 0x587   : > { %v2966_v38 = vpop.f32.mrf.mxu3 }
 0x588   : > { %v10661_v31 = vpop.eup %10660  ;;  %v3360_v14 = vmul.f32 1.442695, %v3308_v16  ;;  %v3687_v15 = vmul.f32 1.442695, %v3655_v59  ;;  %v3015_v62 = vadd.f32 %v2966_v38, %v2789_v10  ;;  %v2791_v16 = vadd.f32 %v2745_v56, %v2564_v63  ;;  %v10252_v59 = vld [vmem:[%s15498_s5 + $0x58] sm:$0xff]  ;;  %v4267_v10 = vld [vmem:[#allocation2 + $0x9] sm:$0xff] }
 0x589   : > { %v3403_v33 = vadd.f32 1.0, %v10661_v31  ;;  %v4268_v38 = vld [vmem:[#allocation2 + $0x11] sm:$0xff]  ;;  %4379 = vmatpush.bf16.msra.mxu1 %v10252_v59 }
 0x58a   : > { %10664 = vpow2.f32 %v3360_v14  ;;  %v3241_v32 = vadd.f32 %v3192_v17, %v3015_v62  ;;  %v3930_v17 = vld [vmem:[#allocation2 + $0x8] sm:$0xff]  ;;  %v4302_v14 = vpack.c.bf16 %v4268_v38, %v4267_v10 }
 0x58b   : > { %10666 = vrcp.f32 %v3403_v33  ;;  %v3577_v60 = vpop.f32.mrf.mxu0  ;;  %v10663_v19 = vpop.eup %10662  ;;  %v3965_v49 = vpack.c.bf16 %v3931_v12, %v3930_v17 }
 0x58c   : > { %10668 = vpow2.f32 %v3687_v15  ;;  %v13129_v27 = vadd.f32 %v12851_v50, %v3241_v32  ;;  %v13132_v55 = vadd.f32 %v13110_v42, %v3577_v60  ;;  %v3466_v53 = vmul.f32 %v10663_v19, %v13090_v0  ;;  %v15711_v0 = vld [vmem:[#allocation19_spill] sm:$0xff]  ;;  %v2750_v60 = vpop.f32.mrf.mxu2  ;;  %9786 = vmatmul.msk.bf16.vlgmr.msra.gmra.mxu1 %vm810_vm2, %v4302_v14 }
 0x58d   : > { %9744 = vmatmul.msk.bf16.vlgmr.msrb.gmra.mxu2 %vm810_vm2, %v3965_v49  ;;  %v10254_v15 = vld [vmem:[%s15498_s5 + $0x68] sm:$0xff] }
 0x58e   : > { %v3309_v1 = vsub.f32 0.0, %v13129_v27  ;;  %v3656_v23 = vsub.f32 0.0, %v13132_v55  ;;  %4831 = vmatpush.bf16.msra.mxu2 %v10254_v15  ;;  %v15714_v49 = vld [vmem:[#allocation83_spill] sm:$0xff] }
 0x58f   : > { %v2969_v7 = vpop.f32.mrf.mxu3 }
 0x590   : > { %v10665_v51 = vpop.eup %10664  ;;  %v3362_v57 = vmul.f32 1.442695, %v3309_v1  ;;  %v3689_v35 = vmul.f32 1.442695, %v3656_v23  ;;  %v3016_v4 = vadd.f32 %v2969_v7, %v2790_v52  ;;  %v10253_v23 = vld [vmem:[%s15498_s5 + $0x60] sm:$0xff]  ;;  %v15713_v7 = vld [vmem:[#allocation61_spill] sm:$0xff] }
 0x591   : > { %v10667_v3 = vpop.eup %10666  ;;  %v3404_v47 = vadd.f32 1.0, %v10665_v51  ;;  %4605 = vmatpush.bf16.msra.mxu0 %v10253_v23  ;;  %v2340_v2 = vadd.f32 %v15714_v49, %v15713_v7  ;;  %v15718_v49 = vld [vmem:[#allocation87_spill] sm:$0xff] }
 0x592   : > { %v10669_v48 = vpop.eup %10668  ;;  %v3467_v13 = vmul.f32 %v10667_v3, %v13100_v45  ;;  %10670 = vpow2.f32 %v3362_v57  ;;  %v3242_v46 = vadd.f32 %v13105_v40, %v3016_v4  ;;  %v15712_v45 = vld [vmem:[#allocation81_spill] sm:$0xff] }
 0x593   : > { %v3751_v34 = vadd.f32 1.0, %v10669_v48  ;;  %v3580_v22 = vpop.f32.mrf.mxu0  ;;  %10672 = vpow2.f32 %v3689_v35  ;;  %v2339_v28 = vadd.f32 %v15712_v45, %v15711_v0 }
 0x594   : > { %v13147_v44 = vadd.f32 %v12851_v50, %v3242_v46  ;;  %v13150_v54 = vadd.f32 %v13110_v42, %v3580_v22  ;;  %v3494_v6 = vpack.c.bf16 %v3467_v13, %v3466_v53 }
 0x595   : > { %10674 = vrcp.f32 %v3751_v34  ;;  %v2565_v1 = vadd.f32 %v12988_v21, %v2339_v28  ;;  %v3202_v21 = vpop.f32.mrf.mxu1  ;;  %v2566_v34 = vadd.f32 %v13011_v20, %v2340_v2  ;;  %v13189_v28 = vld [vmem:[%s15499_s6] ss:$0 sm:$0xff]  ;;  %v15715_v20 = vld [vmem:[#allocation44_spill] sm:$0xff] }
 0x596   : > { %v3310_v40 = vsub.f32 0.0, %v13147_v44  ;;  %v3657_v39 = vsub.f32 0.0, %v13150_v54  ;;  %9729 = vmatmul.msk.bf16.gmra.mxu0 %vm919_vm1, %v3494_v6  ;;  %10676 = vrcp.f32 %v3404_v47  ;;  %v2753_v6 = vpop.f32.mrf.mxu2 }
 0x597   : > { %v2971_v31 = vpop.f32.mrf.mxu3  ;;  %v2793_v10 = vadd.f32 %v2750_v60, %v2566_v34 }
 0x598   : > { %v10671_v62 = vpop.eup %10670  ;;  %v3364_v33 = vmul.f32 1.442695, %v3310_v40  ;;  %v3691_v32 = vmul.f32 1.442695, %v3657_v39  ;;  %v3017_v43 = vadd.f32 %v2971_v31, %v2791_v16  ;;  %v15716_v40 = vld [vmem:[#allocation85_spill] sm:$0xff] }
 0x599   : > { %v3405_v56 = vadd.f32 1.0, %v10671_v62  ;;  %v10673_v8 = vpop.eup %10672  ;;  %v2341_v39 = vadd.f32 %v15716_v40, %v15715_v20 }
 0x59a   : > { %10678 = vpow2.f32 %v3364_v33  ;;  %v3243_v36 = vadd.f32 %v13125_v30, %v3017_v43  ;;  %v3752_v17 = vadd.f32 1.0, %v10673_v8 }
 0x59b   : > { %v10675_v52 = vpop.eup %10674  ;;  %10680 = vrcp.f32 %v3405_v56  ;;  %v3582_v12 = vpop.f32.mrf.mxu0  ;;  %v2567_v43 = vadd.f32 %v13029_v61, %v2341_v39  ;;  %v15717_v61 = vld [vmem:[#allocation21_spill] sm:$0xff] }
 0x59c   : > { %v3815_v25 = vmul.f32 %v10675_v52, %v13118_v58  ;;  %10682 = vpow2.f32 %v3691_v32  ;;  %v13171_v19 = vadd.f32 %v12851_v50, %v3243_v36  ;;  %v13174_v30 = vadd.f32 %v13110_v42, %v3582_v12  ;;  %v10677_v35 = vpop.eup %10676 }
 0x59d   : > { %10684 = vrcp.f32 %v3752_v17  ;;  %v2792_v58 = vadd.f32 %v13138_v5, %v2565_v1  ;;  %v3468_v47 = vmul.f32 %v10677_v35, %v13115_v9  ;;  %v3205_v38 = vpop.f32.mrf.mxu1  ;;  %v2342_v2 = vadd.f32 %v15718_v49, %v15717_v61 }
 0x59e   : > { %3847 = vst.msk [vmem:[#allocation2 + $0x28] sm:$0xff] %vm810_vm2, %v3815_v25  ;;  %v3311_v51 = vsub.f32 0.0, %v13171_v19  ;;  %v3658_v57 = vsub.f32 0.0, %v13174_v30  ;;  %v2755_v7 = vpop.f32.mrf.mxu2 }
 0x59f   : > { %v2974_v50 = vpop.f32.mrf.mxu3 }
 0x5a0   : > { %v10679_v4 = vpop.eup %10678  ;;  %v3366_v18 = vmul.f32 1.442695, %v3311_v51  ;;  %v3693_v3 = vmul.f32 1.442695, %v3658_v57  ;;  %v3018_v63 = vadd.f32 %v2974_v50, %v2792_v58  ;;  %v2794_v58 = vadd.f32 %v2753_v6, %v2567_v43 }
 0x5a1   : > { %v10681_v48 = vpop.eup %10680  ;;  %v3406_v9 = vadd.f32 1.0, %v10679_v4 }
 0x5a2   : > { %v10683_v53 = vpop.eup %10682  ;;  %v3469_v13 = vmul.f32 %v10681_v48, %v13129_v27  ;;  %10686 = vpow2.f32 %v3366_v18  ;;  %v3244_v46 = vadd.f32 %v3200_v41, %v3018_v63 }
 0x5a3   : > { %v10685_v22 = vpop.eup %10684  ;;  %v3753_v0 = vadd.f32 1.0, %v10683_v53  ;;  %v3585_v5 = vpop.f32.mrf.mxu0  ;;  %10688 = vpow2.f32 %v3693_v3 }
 0x5a4   : > { %v3816_v45 = vmul.f32 %v10685_v22, %v13132_v55  ;;  %v13192_v27 = vadd.f32 %v13189_v28, %v3244_v46  ;;  %v13195_v41 = vadd.f32 %v13110_v42, %v3585_v5  ;;  %v3495_v16 = vpack.c.bf16 %v3469_v13, %v3468_v47 }
 0x5a5   : > { %10690 = vrcp.f32 %v3753_v0  ;;  %v3932_v12 = vld [vmem:[#allocation2 + $0x28] sm:$0xff]  ;;  %v3207_v6 = vpop.f32.mrf.mxu1 }
 0x5a6   : > { %3848 = vst.msk [vmem:[#allocation2 + $0x30] sm:$0xff] %vm810_vm2, %v3816_v45  ;;  %v3312_v55 = vsub.f32 0.0, %v13192_v27  ;;  %v3659_v59 = vsub.f32 0.0, %v13195_v41  ;;  %9730 = vmatmul.msk.bf16.gmra.mxu0 %vm919_vm1, %v3495_v16  ;;  %10692 = vrcp.f32 %v3406_v9  ;;  %v3881_v25 = vld [vmem:[#allocation2 + $0x27] sm:$0xff]  ;;  %v2568_v45 = vadd.f32 %v13044_v26, %v2342_v2 }
 0x5a7   : > { %v2976_v31 = vpop.f32.mrf.mxu3 }
 0x5a8   : > { %v10687_v14 = vpop.eup %10686  ;;  %v3368_v15 = vmul.f32 1.442695, %v3312_v55  ;;  %v3695_v62 = vmul.f32 1.442695, %v3659_v59  ;;  %v3019_v33 = vadd.f32 %v2976_v31, %v2793_v10  ;;  %v15719_v10 = vld [vmem:[#allocation64_spill] sm:$0xff] }
 0x5a9   : > { %v3407_v32 = vadd.f32 1.0, %v10687_v14  ;;  %v10689_v56 = vpop.eup %10688 }
 0x5aa   : > { %10694 = vpow2.f32 %v3368_v15  ;;  %v3245_v8 = vadd.f32 %v3202_v21, %v3019_v33  ;;  %v3754_v1 = vadd.f32 1.0, %v10689_v56  ;;  %v2758_v15 = vpop.f32.mrf.mxu2 }
 0x5ab   : > { %v10691_v36 = vpop.eup %10690  ;;  %10696 = vrcp.f32 %v3407_v32  ;;  %v3587_v23 = vpop.f32.mrf.mxu0 }
 0x5ac   : > { %v3817_v60 = vmul.f32 %v10691_v36, %v13150_v54  ;;  %10698 = vpow2.f32 %v3695_v62  ;;  %v13206_v52 = vadd.f32 %v13189_v28, %v3245_v8  ;;  %v13209_v17 = vadd.f32 %v13110_v42, %v3587_v23  ;;  %v10693_v3 = vpop.eup %10692 }
 0x5ad   : > { %10700 = vrcp.f32 %v3754_v1  ;;  %v3933_v21 = vld [vmem:[#allocation2 + $0x30] sm:$0xff]  ;;  %v3470_v40 = vmul.f32 %v10693_v3, %v13147_v44 }
 0x5ae   : > { %v3882_v51 = vld [vmem:[#allocation2 + $0x2f] sm:$0xff]  ;;  %3849 = vst.msk [vmem:[#allocation2 + $0x48] sm:$0xff] %vm810_vm2, %v3817_v60  ;;  %v3313_v54 = vsub.f32 0.0, %v13206_v52  ;;  %v3660_v35 = vsub.f32 0.0, %v13209_v17  ;;  %v3966_v50 = vpack.c.bf16 %v3933_v21, %v3932_v12  ;;  %v3210_v12 = vpop.f32.mrf.mxu1 }
 0x5af   : > { %v4269_v57 = vld [vmem:[#allocation2 + $0x29] sm:$0xff]  ;;  %v13216_v4 = vpack.c.bf16 %v3882_v51, %v3881_v25  ;;  %v4270_v18 = vld [vmem:[#allocation2 + $0x31] sm:$0xff]  ;;  %v2979_v48 = vpop.f32.mrf.mxu3 }
 0x5b0   : > { %v4303_v63 = vpack.c.bf16 %v4270_v18, %v4269_v57  ;;  %v10695_v53 = vpop.eup %10694  ;;  %v3370_v13 = vmul.f32 1.442695, %v3313_v54  ;;  %v3697_v46 = vmul.f32 1.442695, %v3660_v35  ;;  %9745 = vmatmul.msk.bf16.gmra.mxu2 %vm810_vm2, %v3966_v50  ;;  %v3020_v34 = vadd.f32 %v2979_v48, %v2794_v58  ;;  %v15722_v57 = vld [vmem:[#allocation91_spill] sm:$0xff] }
 0x5b1   : > { %9765 = vmatmul.msk.bf16.gmra.mxu3 %vm810_vm2, %v13216_v4  ;;  %v10697_v22 = vpop.eup %10696 }
 0x5b2   : > { %9787 = vmatmul.msk.bf16.gmra.mxu1 %vm810_vm2, %v4303_v63  ;;  %v10699_v47 = vpop.eup %10698  ;;  %v3471_v0 = vmul.f32 %v10697_v22, %v13171_v19  ;;  %10702 = vpow2.f32 %v3370_v13  ;;  %v3246_v5 = vadd.f32 %v3205_v38, %v3020_v34  ;;  %v15720_v19 = vld [vmem:[#allocation89_spill] sm:$0xff]  ;;  %v3408_v38 = vadd.f32 1.0, %v10695_v53 }
 0x5b3   : > { %v10701_v20 = vpop.eup %10700  ;;  %v3755_v39 = vadd.f32 1.0, %v10699_v47  ;;  %v3590_v9 = vpop.f32.mrf.mxu0  ;;  %10704 = vpow2.f32 %v3697_v46  ;;  %v2343_v31 = vadd.f32 %v15720_v19, %v15719_v10 }
 0x5b4   : > { %v3818_v16 = vmul.f32 %v10701_v20, %v13174_v30  ;;  %v13227_v55 = vadd.f32 %v13189_v28, %v3246_v5  ;;  %v13230_v59 = vadd.f32 %v13110_v42, %v3590_v9  ;;  %v3496_v26 = vpack.c.bf16 %v3471_v0, %v3470_v40 }
 0x5b5   : > { %10706 = vrcp.f32 %v3755_v39  ;;  %v2795_v30 = vadd.f32 %v2755_v7, %v2568_v45  ;;  %v2569_v36 = vadd.f32 %v13060_v24, %v2343_v31  ;;  %v3934_v21 = vld [vmem:[#allocation2 + $0x48] sm:$0xff]  ;;  %v15721_v24 = vld [vmem:[#allocation46_spill] sm:$0xff]  ;;  %v2760_v45 = vpop.f32.mrf.mxu2 }
 0x5b6   : > { %3850 = vst.msk [vmem:[#allocation2 + $0x50] sm:$0xff] %vm810_vm2, %v3818_v16  ;;  %v3314_v44 = vsub.f32 0.0, %v13227_v55  ;;  %v3661_v14 = vsub.f32 0.0, %v13230_v59  ;;  %9731 = vmatmul.msk.bf16.gmra.mxu0 %vm919_vm1, %v3496_v26  ;;  %10708 = vrcp.f32 %v3408_v38  ;;  %v3883_v51 = vld [vmem:[#allocation2 + $0x47] sm:$0xff]  ;;  %v2344_v58 = vadd.f32 %v15722_v57, %v15721_v24 }
 0x5b7   : > { %v2981_v62 = vpop.f32.mrf.mxu3  ;;  %v2796_v18 = vadd.f32 %v2758_v15, %v2569_v36 }
 0x5b8   : > { %v10703_v33 = vpop.eup %10702  ;;  %v3372_v32 = vmul.f32 1.442695, %v3314_v44  ;;  %v3699_v43 = vmul.f32 1.442695, %v3661_v14  ;;  %v3021_v56 = vadd.f32 %v2981_v62, %v2795_v30  ;;  %v2570_v9 = vadd.f32 %v13072_v11, %v2344_v58  ;;  %v3212_v14 = vpop.f32.mrf.mxu1  ;;  %v15724_v30 = vld [vmem:[#allocation93_spill] sm:$0xff] }
 0x5b9   : > { %v3409_v8 = vadd.f32 1.0, %v10703_v33  ;;  %v10705_v1 = vpop.eup %10704 }
 0x5ba   : > { %10710 = vpow2.f32 %v3372_v32  ;;  %v3247_v23 = vadd.f32 %v3207_v6, %v3021_v56  ;;  %v3756_v25 = vadd.f32 1.0, %v10705_v1  ;;  %v2797_v33 = vadd.f32 %v2760_v45, %v2570_v9 }
 0x5bb   : > { %v10707_v60 = vpop.eup %10706  ;;  %10712 = vrcp.f32 %v3409_v8  ;;  %v3592_v7 = vpop.f32.mrf.mxu0 }
 0x5bc   : > { %v3819_v61 = vmul.f32 %v10707_v60, %v13195_v41  ;;  %10714 = vpow2.f32 %v3699_v43  ;;  %v13241_v49 = vadd.f32 %v13189_v28, %v3247_v23  ;;  %v13244_v2 = vadd.f32 %v13110_v42, %v3592_v7  ;;  %v10709_v13 = vpop.eup %10708 }
 0x5bd   : > { %10716 = vrcp.f32 %v3756_v25  ;;  %v3935_v54 = vld [vmem:[#allocation2 + $0x50] sm:$0xff]  ;;  %v3472_v10 = vmul.f32 %v10709_v13, %v13192_v27  ;;  %v2763_v23 = vpop.f32.mrf.mxu2 }
 0x5be   : > { %v3884_v35 = vld [vmem:[#allocation2 + $0x4f] sm:$0xff]  ;;  %3851 = vst.msk [vmem:[#allocation2 + $0x68] sm:$0xff] %vm810_vm2, %v3819_v61  ;;  %v3315_v41 = vsub.f32 0.0, %v13241_v49  ;;  %v3662_v3 = vsub.f32 0.0, %v13244_v2  ;;  %v3967_v63 = vpack.c.bf16 %v3935_v54, %v3934_v21 }
 0x5bf   : > { %v4271_v50 = vld [vmem:[#allocation2 + $0x49] sm:$0xff]  ;;  %v13251_v48 = vpack.c.bf16 %v3884_v35, %v3883_v51  ;;  %v4272_v53 = vld [vmem:[#allocation2 + $0x51] sm:$0xff]  ;;  %v2984_v34 = vpop.f32.mrf.mxu3  ;;  %v15725_v35 = vld [vmem:[#allocation66_spill] sm:$0xff] }
 0x5c0   : > { %v4304_v46 = vpack.c.bf16 %v4272_v53, %v4271_v50  ;;  %v10711_v22 = vpop.eup %10710  ;;  %v3374_v6 = vmul.f32 1.442695, %v3315_v41  ;;  %v3701_v47 = vmul.f32 1.442695, %v3662_v3  ;;  %9746 = vmatmul.msk.bf16.gmra.mxu2 %vm810_vm2, %v3967_v63  ;;  %v3022_v0 = vadd.f32 %v2984_v34, %v2796_v18  ;;  %v15726_v50 = vld [vmem:[#allocation95_spill] sm:$0xff]  ;;  %v3215_v53 = vpop.f32.mrf.mxu1 }
 0x5c1   : > { %9766 = vmatmul.msk.bf16.gmra.mxu3 %vm810_vm2, %v13251_v48  ;;  %v10713_v5 = vpop.eup %10712  ;;  %v3410_v62 = vadd.f32 1.0, %v10711_v22  ;;  %v2346_v18 = vadd.f32 %v15726_v50, %v15725_v35 }
 0x5c2   : > { %9788 = vmatmul.msk.bf16.gmra.mxu1 %vm810_vm2, %v4304_v46  ;;  %v10715_v20 = vpop.eup %10714  ;;  %v3473_v40 = vmul.f32 %v10713_v5, %v13206_v52  ;;  %10718 = vpow2.f32 %v3374_v6  ;;  %v3248_v39 = vadd.f32 %v3210_v12, %v3022_v0  ;;  %v15723_v52 = vld [vmem:[#allocation24_spill] sm:$0xff] }
 0x5c3   : > { %v10717_v16 = vpop.eup %10716  ;;  %v3757_v19 = vadd.f32 1.0, %v10715_v20  ;;  %v3595_v31 = vpop.f32.mrf.mxu0  ;;  %10720 = vpow2.f32 %v3701_v47  ;;  %v2345_v15 = vadd.f32 %v15724_v30, %v15723_v52 }
 0x5c4   : > { %v3820_v38 = vmul.f32 %v10717_v16, %v13209_v17  ;;  %v13262_v26 = vadd.f32 %v13189_v28, %v3248_v39  ;;  %v13265_v44 = vadd.f32 %v13110_v42, %v3595_v31  ;;  %v3497_v11 = vpack.c.bf16 %v3473_v40, %v3472_v10 }
 0x5c5   : > { %10722 = vrcp.f32 %v3757_v19  ;;  %v2571_v1 = vadd.f32 %v13084_v29, %v2345_v15  ;;  %v3936_v29 = vld [vmem:[#allocation2 + $0x68] sm:$0xff]  ;;  %v2572_v16 = vadd.f32 %v13097_v37, %v2346_v18 }
 0x5c6   : > { %3852 = vst.msk [vmem:[#allocation2 + $0x70] sm:$0xff] %vm810_vm2, %v3820_v38  ;;  %v3316_v27 = vsub.f32 0.0, %v13262_v26  ;;  %v3663_v17 = vsub.f32 0.0, %v13265_v44  ;;  %9732 = vmatmul.msk.bf16.gmra.mxu0 %vm919_vm1, %v3497_v11  ;;  %10724 = vrcp.f32 %v3410_v62  ;;  %v3885_v58 = vld [vmem:[#allocation2 + $0x67] sm:$0xff]  ;;  %v2765_v38 = vpop.f32.mrf.mxu2 }
 0x5c7   : > { %v2986_v32 = vpop.f32.mrf.mxu3  ;;  %v2798_v54 = vadd.f32 %v2763_v23, %v2571_v1 }
 0x5c8   : > { %v10719_v43 = vpop.eup %10718  ;;  %v3376_v56 = vmul.f32 1.442695, %v3316_v27  ;;  %v3703_v8 = vmul.f32 1.442695, %v3663_v17  ;;  %v3023_v36 = vadd.f32 %v2986_v32, %v2797_v33  ;;  %v2799_v27 = vadd.f32 %v2765_v38, %v2572_v16  ;;  %v3217_v33 = vpop.f32.mrf.mxu1 }
 0x5c9   : > { %v3411_v60 = vadd.f32 1.0, %v10719_v43  ;;  %v10721_v12 = vpop.eup %10720 }
 0x5ca   : > { %10726 = vpow2.f32 %v3376_v56  ;;  %v3249_v25 = vadd.f32 %v3212_v14, %v3023_v36  ;;  %v3758_v61 = vadd.f32 1.0, %v10721_v12 }
 0x5cb   : > { %v10723_v7 = vpop.eup %10722  ;;  %10728 = vrcp.f32 %v3411_v60  ;;  %v3597_v21 = vpop.f32.mrf.mxu0 }
 0x5cc   : > { %v3821_v51 = vmul.f32 %v10723_v7, %v13230_v59  ;;  %10730 = vpow2.f32 %v3703_v8  ;;  %v13276_v24 = vadd.f32 %v13189_v28, %v3249_v25  ;;  %v13279_v57 = vadd.f32 %v13110_v42, %v3597_v21  ;;  %v10725_v6 = vpop.eup %10724 }
 0x5cd   : > { %10732 = vrcp.f32 %v3758_v61  ;;  %v3937_v41 = vld [vmem:[#allocation2 + $0x70] sm:$0xff]  ;;  %v3474_v14 = vmul.f32 %v10725_v6, %v13227_v55 }
 0x5ce   : > { %v3886_v3 = vld [vmem:[#allocation2 + $0x6f] sm:$0xff]  ;;  %3853 = vst.msk [vmem:[#allocation2 + $0x88] sm:$0xff] %vm810_vm2, %v3821_v51  ;;  %v3317_v59 = vsub.f32 0.0, %v13276_v24  ;;  %v3664_v13 = vsub.f32 0.0, %v13279_v57  ;;  %v3968_v46 = vpack.c.bf16 %v3937_v41, %v3936_v29 }
 0x5cf   : > { %v4273_v63 = vld [vmem:[#allocation2 + $0x69] sm:$0xff]  ;;  %v13286_v34 = vpack.c.bf16 %v3886_v3, %v3885_v58  ;;  %v4274_v22 = vld [vmem:[#allocation2 + $0x71] sm:$0xff]  ;;  %v2989_v0 = vpop.f32.mrf.mxu3 }
 0x5d0   : > { %v4305_v47 = vpack.c.bf16 %v4274_v22, %v4273_v63  ;;  %v10727_v5 = vpop.eup %10726  ;;  %v3378_v45 = vmul.f32 1.442695, %v3317_v59  ;;  %v3705_v20 = vmul.f32 1.442695, %v3664_v13  ;;  %9747 = vmatmul.msk.bf16.gmra.mxu2 %vm810_vm2, %v3968_v46  ;;  %v3024_v40 = vadd.f32 %v2989_v0, %v2798_v54 }
 0x5d1   : > { %9767 = vmatmul.msk.bf16.gmra.mxu3 %vm810_vm2, %v13286_v34  ;;  %v10729_v39 = vpop.eup %10728  ;;  %v3412_v37 = vadd.f32 1.0, %v10727_v5 }
 0x5d2   : > { %9789 = vmatmul.msk.bf16.gmra.mxu1 %vm810_vm2, %v4305_v47  ;;  %v10731_v9 = vpop.eup %10730  ;;  %v3475_v10 = vmul.f32 %v10729_v39, %v13241_v49  ;;  %10734 = vpow2.f32 %v3378_v45  ;;  %v3250_v19 = vadd.f32 %v3215_v53, %v3024_v40 }
 0x5d3   : > { %v10733_v31 = vpop.eup %10732  ;;  %v3759_v52 = vadd.f32 1.0, %v10731_v9  ;;  %v3600_v30 = vpop.f32.mrf.mxu0  ;;  %10736 = vpow2.f32 %v3705_v20 }
 0x5d4   : > { %v3822_v15 = vmul.f32 %v10733_v31, %v13244_v2  ;;  %v13297_v62 = vadd.f32 %v13189_v28, %v3250_v19  ;;  %v13300_v11 = vadd.f32 %v13110_v42, %v3600_v30  ;;  %v3498_v49 = vpack.c.bf16 %v3475_v10, %v3474_v14 }
 0x5d5   : > { %10738 = vrcp.f32 %v3759_v52  ;;  %v3938_v51 = vld [vmem:[#allocation2 + $0x88] sm:$0xff] }
 0x5d6   : > { %3854 = vst.msk [vmem:[#allocation2 + $0x90] sm:$0xff] %vm810_vm2, %v3822_v15  ;;  %v3318_v17 = vsub.f32 0.0, %v13297_v62  ;;  %v3665_v55 = vsub.f32 0.0, %v13300_v11  ;;  %9733 = vmatmul.msk.bf16.gmra.mxu0 %vm919_vm1, %v3498_v49  ;;  %10740 = vrcp.f32 %v3412_v37  ;;  %v3887_v29 = vld [vmem:[#allocation2 + $0x87] sm:$0xff] }
 0x5d7   : > { %v2991_v2 = vpop.f32.mrf.mxu3 }
 0x5d8   : > { %v10735_v32 = vpop.eup %10734  ;;  %v3380_v43 = vmul.f32 1.442695, %v3318_v17  ;;  %v3707_v56 = vmul.f32 1.442695, %v3665_v55  ;;  %v3025_v8 = vadd.f32 %v2991_v2, %v2799_v27 }
 0x5d9   : > { %v3413_v36 = vadd.f32 1.0, %v10735_v32  ;;  %v10737_v1 = vpop.eup %10736 }
 0x5da   : > { %10742 = vpow2.f32 %v3380_v43  ;;  %v3251_v23 = vadd.f32 %v3217_v33, %v3025_v8  ;;  %v3760_v12 = vadd.f32 1.0, %v10737_v1 }
 0x5db   : > { %v10739_v60 = vpop.eup %10738  ;;  %10744 = vrcp.f32 %v3413_v36  ;;  %v3602_v25 = vpop.f32.mrf.mxu0 }
 0x5dc   : > { %v3823_v7 = vmul.f32 %v10739_v60, %v13265_v44  ;;  %10746 = vpow2.f32 %v3707_v56  ;;  %v13308_v61 = vadd.f32 %v13189_v28, %v3251_v23  ;;  %v13311_v21 = vadd.f32 %v13110_v42, %v3602_v25  ;;  %v10741_v3 = vpop.eup %10740 }
 0x5dd   : > { %10748 = vrcp.f32 %v3760_v12  ;;  %v3939_v58 = vld [vmem:[#allocation2 + $0x90] sm:$0xff]  ;;  %v3476_v6 = vmul.f32 %v10741_v3, %v13262_v26 }
 0x5de   : > { %v3888_v54 = vld [vmem:[#allocation2 + $0x8f] sm:$0xff]  ;;  %3855 = vst.msk [vmem:[#allocation2 + $0xa8] sm:$0xff] %vm810_vm2, %v3823_v7  ;;  %v3319_v50 = vsub.f32 0.0, %v13308_v61  ;;  %v3666_v18 = vsub.f32 0.0, %v13311_v21  ;;  %v3969_v44 = vpack.c.bf16 %v3939_v58, %v3938_v51 }
 0x5df   : > { %v4275_v35 = vld [vmem:[#allocation2 + $0x89] sm:$0xff]  ;;  %v13316_v41 = vpack.c.bf16 %v3888_v54, %v3887_v29  ;;  %v4276_v28 = vld [vmem:[#allocation2 + $0x91] sm:$0xff] }
 0x5e0   : > { %v4306_v63 = vpack.c.bf16 %v4276_v28, %v4275_v35  ;;  %v10743_v53 = vpop.eup %10742  ;;  %v3382_v59 = vmul.f32 1.442695, %v3319_v50  ;;  %v3709_v13 = vmul.f32 1.442695, %v3666_v18  ;;  %9748 = vmatmul.msk.bf16.gmra.mxu2 %vm810_vm2, %v3969_v44 }
 0x5e1   : > { %9768 = vmatmul.msk.bf16.gmra.mxu3 %vm810_vm2, %v13316_v41  ;;  %v10745_v46 = vpop.eup %10744  ;;  %v3414_v9 = vadd.f32 1.0, %v10743_v53 }
 0x5e2   : > { %9790 = vmatmul.msk.bf16.gmra.mxu1 %vm810_vm2, %v4306_v63  ;;  %v10747_v22 = vpop.eup %10746  ;;  %v3477_v47 = vmul.f32 %v10745_v46, %v13276_v24  ;;  %10750 = vpow2.f32 %v3382_v59 }
 0x5e3   : > { %v10749_v0 = vpop.eup %10748  ;;  %v3761_v5 = vadd.f32 1.0, %v10747_v22  ;;  %v3605_v45 = vpop.f32.mrf.mxu0  ;;  %10752 = vpow2.f32 %v3709_v13 }
 0x5e4   : > { %v3824_v20 = vmul.f32 %v10749_v0, %v13279_v57  ;;  %v3606_v40 = vadd.f32 %v13110_v42, %v3605_v45  ;;  %v3499_v39 = vpack.c.bf16 %v3477_v47, %v3476_v6 }
 0x5e5   : > { %10754 = vrcp.f32 %v3761_v5  ;;  %v3940_v30 = vld [vmem:[#allocation2 + $0xa8] sm:$0xff] }
 0x5e6   : > { %3856 = vst.msk [vmem:[#allocation2 + $0xb0] sm:$0xff] %vm810_vm2, %v3824_v20  ;;  %v3667_v16 = vsub.f32 0.0, %v3606_v40  ;;  %9734 = vmatmul.msk.bf16.gmra.mxu0 %vm919_vm1, %v3499_v39  ;;  %10756 = vrcp.f32 %v3414_v9  ;;  %v3889_v15 = vld [vmem:[#allocation2 + $0xa7] sm:$0xff] }
 0x5e8   : > { %v10751_v26 = vpop.eup %10750  ;;  %v3711_v10 = vmul.f32 1.442695, %v3667_v16 }
 0x5e9   : > { %v3415_v24 = vadd.f32 1.0, %v10751_v26  ;;  %v10753_v19 = vpop.eup %10752 }
 0x5ea   : > { %10758 = vpow2.f32 %v3711_v10  ;;  %v3762_v57 = vadd.f32 1.0, %v10753_v19 }
 0x5eb   : > { %v10755_v31 = vpop.eup %10754  ;;  %10760 = vrcp.f32 %v3415_v24  ;;  %v3607_v38 = vpop.f32.mrf.mxu0 }
 0x5ec   : > { %v3825_v14 = vmul.f32 %v10755_v31, %v13300_v11  ;;  %v3608_v52 = vadd.f32 %v13110_v42, %v3607_v38  ;;  %10762 = vrcp.f32 %v3762_v57  ;;  %v10757_v32 = vpop.eup %10756 }
 0x5ed   : > { %v3941_v37 = vld [vmem:[#allocation2 + $0xb0] sm:$0xff]  ;;  %v3478_v1 = vmul.f32 %v10757_v32, %v13297_v62 }
 0x5ee   : > { %v3890_v49 = vld [vmem:[#allocation2 + $0xaf] sm:$0xff]  ;;  %3857 = vst.msk [vmem:[#allocation2 + $0xc8] sm:$0xff] %vm810_vm2, %v3825_v14  ;;  %v3668_v17 = vsub.f32 0.0, %v3608_v52  ;;  %v3970_v55 = vpack.c.bf16 %v3941_v37, %v3940_v30 }
 0x5ef   : > { %v4277_v27 = vld [vmem:[#allocation2 + $0xa9] sm:$0xff]  ;;  %v13331_v2 = vpack.c.bf16 %v3890_v49, %v3889_v15  ;;  %v4278_v33 = vld [vmem:[#allocation2 + $0xb1] sm:$0xff] }
 0x5f0   : > { %v4307_v43 = vpack.c.bf16 %v4278_v33, %v4277_v27  ;;  %v10759_v56 = vpop.eup %10758  ;;  %v3713_v8 = vmul.f32 1.442695, %v3668_v17  ;;  %9749 = vmatmul.msk.bf16.gmra.mxu2 %vm810_vm2, %v3970_v55 }
 0x5f1   : > { %9769 = vmatmul.msk.bf16.gmra.mxu3 %vm810_vm2, %v13331_v2  ;;  %v10761_v11 = vpop.eup %10760  ;;  %v3763_v36 = vadd.f32 1.0, %v10759_v56  ;;  %v13367_v56 = vld [vmem:[%s15497_s4 + $0x1] ss:$0 sm:$0xff] }
 0x5f2   : > { %9791 = vmatmul.msk.bf16.gmra.mxu1 %vm810_vm2, %v4307_v43  ;;  %v3479_v23 = vmul.f32 %v10761_v11, %v13308_v61  ;;  %10764 = vpow2.f32 %v3713_v8  ;;  %v10763_v60 = vpop.eup %10762 }
 0x5f3   : > { %10766 = vrcp.f32 %v3763_v36  ;;  %v3610_v12 = vpop.f32.mrf.mxu0  ;;  %v3826_v25 = vmul.f32 %v10763_v60, %v13311_v21 }
 0x5f4   : > { %v3611_v7 = vadd.f32 %v13110_v42, %v3610_v12  ;;  %v3500_v51 = vpack.c.bf16 %v3479_v23, %v3478_v1 }
 0x5f5   : > { %3858 = vst.msk [vmem:[#allocation2 + $0xd0] sm:$0xff] %vm810_vm2, %v3826_v25  ;;  %v3942_v18 = vld [vmem:[#allocation2 + $0xc8] sm:$0xff] }
 0x5f6   : > { %v3669_v29 = vsub.f32 0.0, %v3611_v7  ;;  %9735 = vmatmul.msk.bf16.gmra.mxu0 %vm919_vm1, %v3500_v51  ;;  %v3891_v44 = vld [vmem:[#allocation2 + $0xc7] sm:$0xff] }
 0x5f8   : > { %v10765_v58 = vpop.eup %10764  ;;  %v3715_v54 = vmul.f32 1.442695, %v3669_v29 }
 0x5f9   : > { %v10767_v35 = vpop.eup %10766  ;;  %v3764_v62 = vadd.f32 1.0, %v10765_v58 }
 0x5fa   : > { %v3827_v50 = vmul.f32 %v10767_v35, %v3606_v40  ;;  %10768 = vpow2.f32 %v3715_v54 }
 0x5fb   : > { %10770 = vrcp.f32 %v3764_v62  ;;  %v3612_v61 = vpop.f32.mrf.mxu0 }
 0x5fc   : > { %3859 = vst.msk [vmem:[#allocation2 + $0xe8] sm:$0xff] %vm810_vm2, %v3827_v50  ;;  %v3613_v21 = vadd.f32 %v13110_v42, %v3612_v61  ;;  %v3943_v28 = vld [vmem:[#allocation2 + $0xd0] sm:$0xff] }
 0x5fd   : > { %v3892_v3 = vld [vmem:[#allocation2 + $0xcf] sm:$0xff]  ;;  %v3971_v59 = vpack.c.bf16 %v3943_v28, %v3942_v18 }
 0x5fe   : > { %v4279_v63 = vld [vmem:[#allocation2 + $0xc9] sm:$0xff]  ;;  %v3670_v53 = vsub.f32 0.0, %v3613_v21  ;;  %v13345_v13 = vpack.c.bf16 %v3892_v3, %v3891_v44  ;;  %v4280_v46 = vld [vmem:[#allocation2 + $0xd1] sm:$0xff] }
 0x5ff   : > { %v4308_v22 = vpack.c.bf16 %v4280_v46, %v4279_v63 }
 0x600   : > { %v10769_v6 = vpop.eup %10768  ;;  %v3717_v47 = vmul.f32 1.442695, %v3670_v53  ;;  %9750 = vmatmul.msk.bf16.gmra.mxu2 %vm810_vm2, %v3971_v59 }
 0x601   : > { %9770 = vmatmul.msk.bf16.gmra.mxu3 %vm810_vm2, %v13345_v13  ;;  %v10771_v0 = vpop.eup %10770  ;;  %v3765_v5 = vadd.f32 1.0, %v10769_v6 }
 0x602   : > { %9792 = vmatmul.msk.bf16.gmra.mxu1 %vm810_vm2, %v4308_v22  ;;  %v3828_v45 = vmul.f32 %v10771_v0, %v3608_v52  ;;  %10772 = vpow2.f32 %v3717_v47 }
 0x603   : > { %10774 = vrcp.f32 %v3765_v5  ;;  %v3615_v20 = vpop.f32.mrf.mxu0  ;;  %v3944_v19 = vld [vmem:[#allocation2 + $0xe8] sm:$0xff] }
 0x604   : > { %3860 = vst.msk [vmem:[#allocation2 + $0xf0] sm:$0xff] %vm810_vm2, %v3828_v45  ;;  %v3616_v40 = vadd.f32 %v13110_v42, %v3615_v20  ;;  %v3893_v31 = vld [vmem:[#allocation2 + $0xe7] sm:$0xff] }
 0x606   : > { %v3671_v39 = vsub.f32 0.0, %v3616_v40  ;;  %9808 = vmatmul.msk.bf16.vlgmr.msra.gmra.mxu0 %vm810_vm2, %v13216_v4 }
 0x608   : > { %v10773_v9 = vpop.eup %10772  ;;  %v3719_v16 = vmul.f32 1.442695, %v3671_v39  ;;  %v4187_v36 = vpop.f32.mrf.mxu3 }
 0x609   : > { %v10775_v26 = vpop.eup %10774  ;;  %v3766_v10 = vadd.f32 1.0, %v10773_v9  ;;  %v4381_v25 = vpop.f32.mrf.mxu1 }
 0x60a   : > { %v3829_v24 = vmul.f32 %v10775_v26, %v3611_v7  ;;  %10776 = vpow2.f32 %v3719_v16 }
 0x60b   : > { %10778 = vrcp.f32 %v3766_v10  ;;  %v3617_v57 = vpop.f32.mrf.mxu0  ;;  %v3945_v38 = vld [vmem:[#allocation2 + $0xf0] sm:$0xff] }
 0x60c   : > { %v3894_v14 = vld [vmem:[#allocation2 + $0xef] sm:$0xff]  ;;  %3861 = vst.msk [vmem:[#allocation2 + $0x108] sm:$0xff] %vm810_vm2, %v3829_v24  ;;  %v3618_v30 = vadd.f32 %v13110_v42, %v3617_v57  ;;  %v3972_v15 = vpack.c.bf16 %v3945_v38, %v3944_v19 }
 0x60d   : > { %v4281_v52 = vld [vmem:[#allocation2 + $0xe9] sm:$0xff]  ;;  %v13357_v37 = vpack.c.bf16 %v3894_v14, %v3893_v31  ;;  %v4282_v4 = vld [vmem:[#allocation2 + $0xf1] sm:$0xff] }
 0x60e   : > { %v4309_v49 = vpack.c.bf16 %v4282_v4, %v4281_v52  ;;  %v3672_v27 = vsub.f32 0.0, %v3618_v30 }
 0x610   : > { %v10777_v17 = vpop.eup %10776  ;;  %v3721_v55 = vmul.f32 1.442695, %v3672_v27  ;;  %9751 = vmatmul.msk.bf16.gmra.mxu2 %vm810_vm2, %v3972_v15  ;;  %v4044_v11 = vpop.f32.mrf.mxu2 }
 0x611   : > { %9771 = vmatmul.msk.bf16.gmra.mxu3 %vm810_vm2, %v13357_v37  ;;  %v10779_v33 = vpop.eup %10778  ;;  %v3767_v32 = vadd.f32 1.0, %v10777_v17  ;;  %v4188_v23 = vadd.f32 %v4187_v36, %v4044_v11  ;;  %v13383_v0 = vpop.f32.mrf.mxu1 }
 0x612   : > { %9793 = vmatmul.msk.bf16.gmra.mxu1 %vm810_vm2, %v4309_v49  ;;  %v3830_v43 = vmul.f32 %v10779_v33, %v3613_v21  ;;  %10780 = vpow2.f32 %v3721_v55  ;;  %v13390_v19 = vpop.f32.mrf.mxu3 }
 0x613   : > { %10782 = vrcp.f32 %v3767_v32  ;;  %v3620_v42 = vpop.f32.mrf.mxu0  ;;  %v13372_v29 = vadd.f32 %v4381_v25, %v4188_v23  ;;  %v3946_v54 = vld [vmem:[#allocation2 + $0x108] sm:$0xff] }
 0x614   : > { %3862 = vst.msk [vmem:[#allocation2 + $0x110] sm:$0xff] %vm810_vm2, %v3830_v43  ;;  %v3621_v8 = vadd.f32 %v13367_v56, %v3620_v42  ;;  %v3895_v35 = vld [vmem:[#allocation2 + $0x107] sm:$0xff] }
 0x616   : > { %v3673_v1 = vsub.f32 0.0, %v3621_v8  ;;  %9809 = vmatmul.msk.bf16.gmra.mxu0 %vm810_vm2, %v13251_v48 }
 0x618   : > { %v10781_v60 = vpop.eup %10780  ;;  %v3723_v12 = vmul.f32 1.442695, %v3673_v1  ;;  %v13388_v24 = vpop.f32.mrf.mxu2 }
 0x619   : > { %v10783_v7 = vpop.eup %10782  ;;  %v3768_v51 = vadd.f32 1.0, %v10781_v60 }
 0x61a   : > { %v3831_v58 = vmul.f32 %v10783_v7, %v3616_v40  ;;  %10784 = vpow2.f32 %v3723_v12 }
 0x61b   : > { %10786 = vrcp.f32 %v3768_v51  ;;  %v3622_v62 = vpop.f32.mrf.mxu0  ;;  %v3947_v50 = vld [vmem:[#allocation2 + $0x110] sm:$0xff] }
 0x61c   : > { %v3896_v61 = vld [vmem:[#allocation2 + $0x10f] sm:$0xff]  ;;  %3863 = vst.msk [vmem:[#allocation2 + $0x128] sm:$0xff] %vm810_vm2, %v3831_v58  ;;  %v3623_v48 = vadd.f32 %v13367_v56, %v3622_v62  ;;  %v3973_v18 = vpack.c.bf16 %v3947_v50, %v3946_v54 }
 0x61d   : > { %v4283_v21 = vld [vmem:[#allocation2 + $0x109] sm:$0xff]  ;;  %v13376_v44 = vpack.c.bf16 %v3896_v61, %v3895_v35  ;;  %v4284_v28 = vld [vmem:[#allocation2 + $0x111] sm:$0xff] }
 0x61e   : > { %v4310_v3 = vpack.c.bf16 %v4284_v28, %v4283_v21  ;;  %v3674_v63 = vsub.f32 0.0, %v3623_v48 }
 0x620   : > { %v10785_v53 = vpop.eup %10784  ;;  %v3725_v59 = vmul.f32 1.442695, %v3674_v63  ;;  %9752 = vmatmul.msk.bf16.gmra.mxu2 %vm810_vm2, %v3973_v18 }
 0x621   : > { %9772 = vmatmul.msk.bf16.gmra.mxu3 %vm810_vm2, %v13376_v44  ;;  %v10787_v46 = vpop.eup %10786  ;;  %v3769_v22 = vadd.f32 1.0, %v10785_v53 }
 0x622   : > { %9794 = vmatmul.msk.bf16.gmra.mxu1 %vm810_vm2, %v4310_v3  ;;  %v3832_v6 = vmul.f32 %v10787_v46, %v3618_v30  ;;  %10788 = vpow2.f32 %v3725_v59 }
 0x623   : > { %10790 = vrcp.f32 %v3769_v22  ;;  %v3625_v47 = vpop.f32.mrf.mxu0  ;;  %v3948_v26 = vld [vmem:[#allocation2 + $0x128] sm:$0xff]  ;;  %v10255_v22 = vld [vmem:[%s15498_s5 + $0x70] sm:$0xff] }
 0x624   : > { %3864 = vst.msk [vmem:[#allocation2 + $0x130] sm:$0xff] %vm810_vm2, %v3832_v6  ;;  %v3626_v5 = vadd.f32 %v13367_v56, %v3625_v47  ;;  %v3897_v10 = vld [vmem:[#allocation2 + $0x127] sm:$0xff]  ;;  %5057 = vmatpush.bf16.msrb.mxu3 %v10255_v22 }
 0x626   : > { %v3675_v45 = vsub.f32 0.0, %v3626_v5  ;;  %9810 = vmatmul.msk.bf16.gmra.mxu0 %vm810_vm2, %v13286_v34 }
 0x628   : > { %v10789_v20 = vpop.eup %10788  ;;  %v3727_v9 = vmul.f32 1.442695, %v3675_v45 }
 0x629   : > { %v10791_v40 = vpop.eup %10790  ;;  %v3770_v39 = vadd.f32 1.0, %v10789_v20 }
 0x62a   : > { %v3833_v16 = vmul.f32 %v10791_v40, %v3621_v8 }
 0x62b   : > { %10792 = vrcp.f32 %v3770_v39  ;;  %v3949_v31 = vld [vmem:[#allocation2 + $0x130] sm:$0xff]  ;;  %v3627_v14 = vpop.f32.mrf.mxu0 }
 0x62c   : > { %v3898_v57 = vld [vmem:[#allocation2 + $0x12f] sm:$0xff]  ;;  %3865 = vst.msk [vmem:[#allocation2 + $0x148] sm:$0xff] %vm810_vm2, %v3833_v16  ;;  %10794 = vpow2.f32 %v3727_v9  ;;  %v3974_v34 = vpack.c.bf16 %v3949_v31, %v3948_v26  ;;  %v3628_v15 = vadd.f32 %v13367_v56, %v3627_v14 }
 0x62d   : > { %v4285_v38 = vld [vmem:[#allocation2 + $0x129] sm:$0xff]  ;;  %v13393_v52 = vpack.c.bf16 %v3898_v57, %v3897_v10  ;;  %v4286_v30 = vld [vmem:[#allocation2 + $0x131] sm:$0xff] }
 0x62e   : > { %v4311_v4 = vpack.c.bf16 %v4286_v30, %v4285_v38  ;;  %v3676_v27 = vsub.f32 0.0, %v3628_v15 }
 0x62f   : > { %v4386_v49 = vpop.f32.mrf.mxu1 }
 0x630   : > { %9753 = vmatmul.msk.bf16.gmra.mxu2 %vm810_vm2, %v3974_v34  ;;  %v3729_v55 = vmul.f32 1.442695, %v3676_v27 }
 0x631   : > { %9773 = vmatmul.msk.bf16.gmra.mxu3 %vm810_vm2, %v13393_v52  ;;  %v10793_v17 = vpop.eup %10792 }
 0x632   : > { %9795 = vmatmul.msk.bf16.gmra.mxu1 %vm810_vm2, %v4311_v4  ;;  %v10795_v33 = vpop.eup %10794  ;;  %v3834_v32 = vmul.f32 %v10793_v17, %v3623_v48  ;;  %10796 = vpow2.f32 %v3729_v55 }
 0x633   : > { %v3771_v43 = vadd.f32 1.0, %v10795_v33  ;;  %v4049_v42 = vpop.f32.mrf.mxu2  ;;  %v3630_v36 = vpop.f32.mrf.mxu0  ;;  %v3950_v58 = vld [vmem:[#allocation2 + $0x148] sm:$0xff] }
 0x634   : > { %v4192_v8 = vpop.f32.mrf.mxu3  ;;  %3866 = vst.msk [vmem:[#allocation2 + $0x150] sm:$0xff] %vm810_vm2, %v3834_v32  ;;  %v3631_v1 = vadd.f32 %v13367_v56, %v3630_v36  ;;  %v3899_v63 = vld [vmem:[#allocation2 + $0x147] sm:$0xff] }
 0x635   : > { %v4193_v11 = vadd.f32 %v4192_v8, %v4049_v42  ;;  %10798 = vrcp.f32 %v3771_v43 }
 0x636   : > { %v3677_v60 = vsub.f32 0.0, %v3631_v1  ;;  %9811 = vmatmul.msk.bf16.gmra.mxu0 %vm810_vm2, %v13316_v41 }
 0x637   : > { %v4388_v23 = vpop.f32.mrf.mxu1  ;;  %v13404_v7 = vadd.f32 %v4386_v49, %v4193_v11 }
 0x638   : > { %v10797_v12 = vpop.eup %10796  ;;  %v3731_v25 = vmul.f32 1.442695, %v3677_v60 }
 0x639   : > { %v3772_v51 = vadd.f32 1.0, %v10797_v12 }
 0x63a   : > { %10800 = vpow2.f32 %v3731_v25 }
 0x63b   : > { %v10799_v54 = vpop.eup %10798  ;;  %v4051_v35 = vpop.f32.mrf.mxu2  ;;  %v3951_v50 = vld [vmem:[#allocation2 + $0x150] sm:$0xff]  ;;  %10802 = vrcp.f32 %v3772_v51 }
 0x63c   : > { %v4194_v62 = vpop.f32.mrf.mxu3  ;;  %v3900_v61 = vld [vmem:[#allocation2 + $0x14f] sm:$0xff]  ;;  %v3835_v48 = vmul.f32 %v10799_v54, %v3626_v5  ;;  %v3632_v28 = vpop.f32.mrf.mxu0  ;;  %v3975_v3 = vpack.c.bf16 %v3951_v50, %v3950_v58 }
 0x63d   : > { %v4287_v21 = vld [vmem:[#allocation2 + $0x149] sm:$0xff]  ;;  %v4195_v18 = vadd.f32 %v4194_v62, %v4051_v35  ;;  %v4288_v41 = vld [vmem:[#allocation2 + $0x151] sm:$0xff]  ;;  %v3633_v53 = vadd.f32 %v13367_v56, %v3632_v28  ;;  %v13407_v59 = vpack.c.bf16 %v3900_v61, %v3899_v63 }
 0x63e   : > { %v13409_v46 = vpack.c.bf16 %v4288_v41, %v4287_v21  ;;  %3867 = vst.msk [vmem:[#allocation2 + $0x168] sm:$0xff] %vm810_vm2, %v3835_v48 }
 0x63f   : > { %v4391_v6 = vpop.f32.mrf.mxu1  ;;  %v3678_v47 = vsub.f32 0.0, %v3633_v53  ;;  %v13420_v20 = vadd.f32 %v4388_v23, %v4195_v18 }
 0x640   : > { %9754 = vmatmul.msk.bf16.gmra.mxu2 %vm810_vm2, %v3975_v3  ;;  %v10801_v5 = vpop.eup %10800 }
 0x641   : > { %9774 = vmatmul.msk.bf16.gmra.mxu3 %vm810_vm2, %v13407_v59  ;;  %v3733_v45 = vmul.f32 1.442695, %v3678_v47  ;;  %v10803_v40 = vpop.eup %10802  ;;  %v3773_v39 = vadd.f32 1.0, %v10801_v5 }
 0x642   : > { %9796 = vmatmul.msk.bf16.gmra.mxu1 %vm810_vm2, %v13409_v46  ;;  %v3836_v9 = vmul.f32 %v10803_v40, %v3628_v15 }
 0x643   : > { %10804 = vpow2.f32 %v3733_v45  ;;  %v4054_v16 = vpop.f32.mrf.mxu2 }
 0x644   : > { %v4197_v26 = vpop.f32.mrf.mxu3  ;;  %10806 = vrcp.f32 %v3773_v39  ;;  %v3635_v31 = vpop.f32.mrf.mxu0  ;;  %3868 = vst.msk [vmem:[#allocation2 + $0x170] sm:$0xff] %vm810_vm2, %v3836_v9 }
 0x645   : > { %v4198_v10 = vadd.f32 %v4197_v26, %v4054_v16  ;;  %v3636_v57 = vadd.f32 %v13367_v56, %v3635_v31  ;;  %v3952_v33 = vld [vmem:[#allocation2 + $0x168] sm:$0xff] }
 0x646   : > { %9812 = vmatmul.msk.bf16.gmra.mxu0 %vm810_vm2, %v13331_v2  ;;  %v3901_v32 = vld [vmem:[#allocation2 + $0x167] sm:$0xff] }
 0x647   : > { %v4393_v38 = vpop.f32.mrf.mxu1  ;;  %v3679_v14 = vsub.f32 0.0, %v3636_v57  ;;  %v13426_v4 = vadd.f32 %v4391_v6, %v4198_v10 }
 0x649   : > { %v10805_v34 = vpop.eup %10804  ;;  %v3735_v30 = vmul.f32 1.442695, %v3679_v14 }
 0x64a   : > { %v10807_v15 = vpop.eup %10806  ;;  %v3774_v49 = vadd.f32 1.0, %v10805_v34 }
 0x64b   : > { %v3837_v27 = vmul.f32 %v10807_v15, %v3631_v1  ;;  %10808 = vpow2.f32 %v3735_v30  ;;  %v4056_v17 = vpop.f32.mrf.mxu2  ;;  %v3953_v8 = vld [vmem:[#allocation2 + $0x170] sm:$0xff] }
 0x64c   : > { %v4199_v55 = vpop.f32.mrf.mxu3  ;;  %10810 = vrcp.f32 %v3774_v49  ;;  %v3637_v42 = vpop.f32.mrf.mxu0  ;;  %v3902_v11 = vld [vmem:[#allocation2 + $0x16f] sm:$0xff]  ;;  %v13430_v23 = vpack.c.bf16 %v3953_v8, %v3952_v33 }
 0x64d   : > { %v4200_v43 = vadd.f32 %v4199_v55, %v4056_v17  ;;  %v4289_v36 = vld [vmem:[#allocation2 + $0x169] sm:$0xff]  ;;  %3869 = vst.msk [vmem:[#allocation2 + $0x188] sm:$0xff] %vm810_vm2, %v3837_v27  ;;  %v3638_v2 = vadd.f32 %v13367_v56, %v3637_v42  ;;  %v13432_v60 = vpack.c.bf16 %v3902_v11, %v3901_v32  ;;  %v4290_v1 = vld [vmem:[#allocation2 + $0x171] sm:$0xff] }
 0x64e   : > { %v13434_v25 = vpack.c.bf16 %v4290_v1, %v4289_v36 }
 0x64f   : > { %v4396_v12 = vpop.f32.mrf.mxu1  ;;  %v3680_v51 = vsub.f32 0.0, %v3638_v2  ;;  %v13442_v35 = vadd.f32 %v4393_v38, %v4200_v43 }
 0x650   : > { %9755 = vmatmul.msk.bf16.gmra.mxu2 %vm810_vm2, %v13430_v23 }
 0x651   : > { %9775 = vmatmul.msk.bf16.gmra.mxu3 %vm810_vm2, %v13432_v60  ;;  %v10809_v58 = vpop.eup %10808  ;;  %v3737_v54 = vmul.f32 1.442695, %v3680_v51 }
 0x652   : > { %9797 = vmatmul.msk.bf16.gmra.mxu1 %vm810_vm2, %v13434_v25  ;;  %v10811_v62 = vpop.eup %10810  ;;  %v3775_v50 = vadd.f32 1.0, %v10809_v58 }
 0x653   : > { %v3838_v61 = vmul.f32 %v10811_v62, %v3633_v53  ;;  %10812 = vpow2.f32 %v3737_v54  ;;  %v4059_v21 = vpop.f32.mrf.mxu2 }
 0x654   : > { %v4202_v48 = vpop.f32.mrf.mxu3  ;;  %10814 = vrcp.f32 %v3775_v50  ;;  %v3640_v28 = vpop.f32.mrf.mxu0  ;;  %v3954_v9 = vld [vmem:[#allocation2 + $0x188] sm:$0xff] }
 0x655   : > { %v4203_v18 = vadd.f32 %v4202_v48, %v4059_v21  ;;  %3870 = vst.msk [vmem:[#allocation2 + $0x190] sm:$0xff] %vm810_vm2, %v3838_v61  ;;  %v3641_v3 = vadd.f32 %v13367_v56, %v3640_v28  ;;  %v3903_v16 = vld [vmem:[#allocation2 + $0x187] sm:$0xff] }
 0x656   : > { %9813 = vmatmul.msk.bf16.gmra.mxu0 %vm810_vm2, %v13345_v13 }
 0x657   : > { %v4398_v63 = vpop.f32.mrf.mxu1  ;;  %v3681_v41 = vsub.f32 0.0, %v3641_v3  ;;  %v13448_v47 = vadd.f32 %v4396_v12, %v4203_v18 }
 0x659   : > { %v10813_v22 = vpop.eup %10812  ;;  %v3739_v6 = vmul.f32 1.442695, %v3681_v41 }
 0x65a   : > { %v10815_v53 = vpop.eup %10814  ;;  %v3776_v5 = vadd.f32 1.0, %v10813_v22 }
 0x65b   : > { %v3839_v45 = vmul.f32 %v10815_v53, %v3636_v57  ;;  %10816 = vpow2.f32 %v3739_v6  ;;  %v4061_v40 = vpop.f32.mrf.mxu2 }
 0x65c   : > { %v4204_v39 = vpop.f32.mrf.mxu3  ;;  %10818 = vrcp.f32 %v3776_v5  ;;  %v3642_v10 = vpop.f32.mrf.mxu0  ;;  %v3955_v31 = vld [vmem:[#allocation2 + $0x190] sm:$0xff] }
 0x65d   : > { %v4205_v26 = vadd.f32 %v4204_v39, %v4061_v40  ;;  %v3904_v38 = vld [vmem:[#allocation2 + $0x18f] sm:$0xff]  ;;  %3871 = vst.msk [vmem:[#allocation2 + $0x1a8] sm:$0xff] %vm810_vm2, %v3839_v45  ;;  %v3643_v13 = vadd.f32 %v13367_v56, %v3642_v10  ;;  %v13452_v34 = vpack.c.bf16 %v3955_v31, %v3954_v9 }
 0x65e   : > { %v4291_v14 = vld [vmem:[#allocation2 + $0x189] sm:$0xff]  ;;  %v13454_v30 = vpack.c.bf16 %v3904_v38, %v3903_v16  ;;  %v4292_v57 = vld [vmem:[#allocation2 + $0x191] sm:$0xff] }
 0x65f   : > { %v4401_v15 = vpop.f32.mrf.mxu1  ;;  %v13456_v49 = vpack.c.bf16 %v4292_v57, %v4291_v14  ;;  %v3682_v27 = vsub.f32 0.0, %v3643_v13  ;;  %v13464_v33 = vadd.f32 %v4398_v63, %v4205_v26 }
 0x660   : > { %9756 = vmatmul.msk.bf16.gmra.mxu2 %vm810_vm2, %v13452_v34 }
 0x661   : > { %9776 = vmatmul.msk.bf16.gmra.mxu3 %vm810_vm2, %v13454_v30  ;;  %v10817_v17 = vpop.eup %10816  ;;  %v3741_v55 = vmul.f32 1.442695, %v3682_v27 }
 0x662   : > { %9798 = vmatmul.msk.bf16.gmra.mxu1 %vm810_vm2, %v13456_v49  ;;  %v10819_v32 = vpop.eup %10818  ;;  %v3777_v43 = vadd.f32 1.0, %v10817_v17 }
 0x663   : > { %v3840_v42 = vmul.f32 %v10819_v32, %v3638_v2  ;;  %10820 = vpow2.f32 %v3741_v55  ;;  %v4064_v8 = vpop.f32.mrf.mxu2 }
 0x664   : > { %v4207_v11 = vpop.f32.mrf.mxu3  ;;  %10822 = vrcp.f32 %v3777_v43  ;;  %v3645_v1 = vpop.f32.mrf.mxu0  ;;  %v3956_v28 = vld [vmem:[#allocation2 + $0x1a8] sm:$0xff] }
 0x665   : > { %v4208_v36 = vadd.f32 %v4207_v11, %v4064_v8  ;;  %3872 = vst.msk [vmem:[#allocation2 + $0x1b0] sm:$0xff] %vm810_vm2, %v3840_v42  ;;  %v3646_v12 = vadd.f32 %v13367_v56, %v3645_v1  ;;  %v3905_v63 = vld [vmem:[#allocation2 + $0x1a7] sm:$0xff] }
 0x666   : > { %9814 = vmatmul.msk.bf16.gmra.mxu0 %vm810_vm2, %v13357_v37 }
 0x667   : > { %v4403_v51 = vpop.f32.mrf.mxu1  ;;  %v3683_v58 = vsub.f32 0.0, %v3646_v12  ;;  %v13470_v50 = vadd.f32 %v4401_v15, %v4208_v36 }
 0x669   : > { %v10821_v54 = vpop.eup %10820  ;;  %v3743_v62 = vmul.f32 1.442695, %v3683_v58 }
 0x66a   : > { %v10823_v2 = vpop.eup %10822  ;;  %v3778_v61 = vadd.f32 1.0, %v10821_v54 }
 0x66b   : > { %v3841_v21 = vmul.f32 %v10823_v2, %v3641_v3  ;;  %10824 = vpow2.f32 %v3743_v62  ;;  %v4066_v48 = vpop.f32.mrf.mxu2 }
 0x66c   : > { %v4209_v18 = vpop.f32.mrf.mxu3  ;;  %10826 = vrcp.f32 %v3778_v61  ;;  %v3647_v22 = vpop.f32.mrf.mxu0  ;;  %v3957_v6 = vld [vmem:[#allocation2 + $0x1b0] sm:$0xff] }
 0x66d   : > { %v4210_v41 = vadd.f32 %v4209_v18, %v4066_v48  ;;  %v3906_v53 = vld [vmem:[#allocation2 + $0x1af] sm:$0xff]  ;;  %3873 = vst.msk [vmem:[#allocation2 + $0x1c8] sm:$0xff] %vm810_vm2, %v3841_v21  ;;  %v13474_v37 = vadd.f32 %v13367_v56, %v3647_v22  ;;  %v13476_v45 = vpack.c.bf16 %v3957_v6, %v3956_v28 }
 0x66e   : > { %v4293_v5 = vld [vmem:[#allocation2 + $0x1a9] sm:$0xff]  ;;  %v13478_v40 = vpack.c.bf16 %v3906_v53, %v3905_v63  ;;  %v4294_v3 = vld [vmem:[#allocation2 + $0x1b1] sm:$0xff] }
 0x66f   : > { %v4406_v39 = vpop.f32.mrf.mxu1  ;;  %v13480_v9 = vpack.c.bf16 %v4294_v3, %v4293_v5  ;;  %v3684_v16 = vsub.f32 0.0, %v13474_v37  ;;  %v13489_v31 = vadd.f32 %v4403_v51, %v4210_v41  ;;  %v10256_v5 = vld [vmem:[%s15498_s5 + $0x78] sm:$0xff] }
 0x670   : > { %9757 = vmatmul.msk.bf16.gmra.mxu2 %vm810_vm2, %v13476_v45  ;;  %5283 = vmatpush.bf16.msrb.mxu1 %v10256_v5 }
 0x671   : > { %9777 = vmatmul.msk.bf16.gmra.mxu3 %vm810_vm2, %v13478_v40  ;;  %v10825_v26 = vpop.eup %10824  ;;  %v3745_v10 = vmul.f32 1.442695, %v3684_v16  ;;  %v10258_v16 = vld [vmem:[%s15498_s5 + $0x88] sm:$0xff] }
 0x672   : > { %9799 = vmatmul.msk.bf16.gmra.mxu1 %vm810_vm2, %v13480_v9  ;;  %v10827_v38 = vpop.eup %10826  ;;  %v3779_v14 = vadd.f32 1.0, %v10825_v26  ;;  %5735 = vmatpush.bf16.msrb.mxu2 %v10258_v16 }
 0x673   : > { %v3842_v57 = vmul.f32 %v10827_v38, %v3643_v13  ;;  %10828 = vpow2.f32 %v3745_v10  ;;  %v4069_v15 = vpop.f32.mrf.mxu2 }
 0x674   : > { %v4212_v27 = vpop.f32.mrf.mxu3  ;;  %10830 = vrcp.f32 %v3779_v14  ;;  %v3650_v55 = vpop.f32.mrf.mxu0  ;;  %v3958_v62 = vld [vmem:[#allocation2 + $0x1c8] sm:$0xff] }
 0x675   : > { %v4213_v17 = vadd.f32 %v4212_v27, %v4069_v15  ;;  %3874 = vst.msk [vmem:[#allocation2 + $0x1d0] sm:$0xff] %vm810_vm2, %v3842_v57  ;;  %v3651_v32 = vadd.f32 %v13367_v56, %v3650_v55  ;;  %v3907_v2 = vld [vmem:[#allocation2 + $0x1c7] sm:$0xff] }
 0x676   : > { %9815 = vmatmul.msk.bf16.gmra.mxu0 %vm810_vm2, %v13376_v44  ;;  %v10257_v55 = vld [vmem:[%s15498_s5 + $0x80] sm:$0xff] }
 0x677   : > { %v4408_v43 = vpop.f32.mrf.mxu1  ;;  %v3685_v42 = vsub.f32 0.0, %v3651_v32  ;;  %v13495_v36 = vadd.f32 %v4406_v39, %v4213_v17  ;;  %5509 = vmatpush.bf16.msrb.mxu0 %v10257_v55  ;;  %v4720_v55 = vld [vmem:[#allocation2 + $0x30] sm:$0xff] }
 0x679   : > { %v10829_v8 = vpop.eup %10828  ;;  %v3747_v11 = vmul.f32 1.442695, %v3685_v42 }
 0x67a   : > { %v10831_v13 = vpop.eup %10830  ;;  %v3780_v1 = vadd.f32 1.0, %v10829_v8 }
 0x67b   : > { %v3843_v51 = vmul.f32 %v10831_v13, %v3646_v12  ;;  %10832 = vpow2.f32 %v3747_v11  ;;  %v4071_v58 = vpop.f32.mrf.mxu2 }
 0x67c   : > { %v4214_v54 = vpop.f32.mrf.mxu3  ;;  %10834 = vrcp.f32 %v3780_v1  ;;  %v3652_v21 = vpop.f32.mrf.mxu0  ;;  %v3959_v48 = vld [vmem:[#allocation2 + $0x1d0] sm:$0xff] }
 0x67d   : > { %v4215_v61 = vadd.f32 %v4214_v54, %v4071_v58  ;;  %v3908_v18 = vld [vmem:[#allocation2 + $0x1cf] sm:$0xff]  ;;  %3875 = vst.msk [vmem:[#allocation2 + $0x1e8] sm:$0xff] %vm810_vm2, %v3843_v51  ;;  %v3653_v63 = vadd.f32 %v13367_v56, %v3652_v21  ;;  %v13499_v41 = vpack.c.bf16 %v3959_v48, %v3958_v62 }
 0x67e   : > { %v4295_v28 = vld [vmem:[#allocation2 + $0x1c9] sm:$0xff]  ;;  %v13501_v22 = vpack.c.bf16 %v3908_v18, %v3907_v2  ;;  %v4296_v12 = vld [vmem:[#allocation2 + $0x1d1] sm:$0xff] }
 0x67f   : > { %v4411_v6 = vpop.f32.mrf.mxu1  ;;  %v13503_v53 = vpack.c.bf16 %v4296_v12, %v4295_v28  ;;  %v3686_v3 = vsub.f32 0.0, %v3653_v63  ;;  %v13517_v26 = vadd.f32 %v4408_v43, %v4215_v61 }
 0x680   : > { %9758 = vmatmul.msk.bf16.gmra.mxu2 %vm810_vm2, %v13499_v41 }
 0x681   : > { %9778 = vmatmul.msk.bf16.gmra.mxu3 %vm810_vm2, %v13501_v22  ;;  %v10833_v56 = vpop.eup %10832  ;;  %v3749_v39 = vmul.f32 1.442695, %v3686_v3 }
 0x682   : > { %9800 = vmatmul.msk.bf16.gmra.mxu1 %vm810_vm2, %v13503_v53  ;;  %v10835_v10 = vpop.eup %10834  ;;  %v3781_v38 = vadd.f32 1.0, %v10833_v56 }
 0x683   : > { %v3844_v14 = vmul.f32 %v10835_v10, %v13474_v37  ;;  %10836 = vpow2.f32 %v3749_v39  ;;  %v4074_v57 = vpop.f32.mrf.mxu2  ;;  %v4190_v37 = vadd.f32 %v13390_v19, %v13388_v24 }
 0x684   : > { %v4217_v15 = vpop.f32.mrf.mxu3  ;;  %10838 = vrcp.f32 %v3781_v38  ;;  %v4607_v17 = vpop.f32.mrf.mxu0  ;;  %v3909_v2 = vld [vmem:[#allocation2 + $0x1e7] sm:$0xff] }
 0x685   : > { %v4218_v27 = vadd.f32 %v4217_v15, %v4074_v57  ;;  %3876 = vst.msk [vmem:[#allocation2 + $0x1f0] sm:$0xff] %vm810_vm2, %v3844_v14  ;;  %v13525_v43 = vadd.f32 %v4607_v17, %v13372_v29  ;;  %v4462_v51 = vadd.f32 %v13383_v0, %v4190_v37  ;;  %v3960_v29 = vld [vmem:[#allocation2 + $0x1e8] sm:$0xff] }
 0x686   : > { %9816 = vmatmul.msk.bf16.gmra.mxu0 %vm810_vm2, %v13393_v52 }
 0x687   : > { %v4413_v42 = vpop.f32.mrf.mxu1  ;;  %v13531_v11 = vadd.f32 %v4411_v6, %v4218_v27 }
 0x689   : > { %v10837_v8 = vpop.eup %10836 }
 0x68a   : > { %v10839_v13 = vpop.eup %10838  ;;  %v3782_v1 = vadd.f32 1.0, %v10837_v8 }
 0x68b   : > { %v3845_v58 = vmul.f32 %v10839_v13, %v3651_v32  ;;  %v4076_v54 = vpop.f32.mrf.mxu2  ;;  %v5172_v13 = vld [vmem:[#allocation2 + $0x4f] sm:$0xff] }
 0x68c   : > { %v4219_v62 = vpop.f32.mrf.mxu3  ;;  %10840 = vrcp.f32 %v3782_v1  ;;  %v4609_v21 = vpop.f32.mrf.mxu0  ;;  %v3961_v48 = vld [vmem:[#allocation2 + $0x1f0] sm:$0xff] }
 0x68d   : > { %v4220_v61 = vadd.f32 %v4219_v62, %v4076_v54  ;;  %v3910_v24 = vld [vmem:[#allocation2 + $0x1ef] sm:$0xff]  ;;  %3877 = vst.msk [vmem:[#allocation2 + $0x208] sm:$0xff] %vm810_vm2, %v3845_v58  ;;  %v13535_v18 = vadd.f32 %v4609_v21, %v4462_v51  ;;  %v13537_v28 = vpack.c.bf16 %v3961_v48, %v3960_v29  ;;  %v5171_v62 = vld [vmem:[#allocation2 + $0x47] sm:$0xff] }
 0x68e   : > { %v4297_v19 = vld [vmem:[#allocation2 + $0x1e9] sm:$0xff]  ;;  %v13539_v12 = vpack.c.bf16 %v3910_v24, %v3909_v2  ;;  %v4298_v0 = vld [vmem:[#allocation2 + $0x1f1] sm:$0xff]  ;;  %v5206_v29 = vpack.c.bf16 %v5172_v13, %v5171_v62 }
 0x68f   : > { %v4416_v32 = vpop.f32.mrf.mxu1  ;;  %v13541_v6 = vpack.c.bf16 %v4298_v0, %v4297_v19  ;;  %v13549_v5 = vadd.f32 %v4413_v42, %v4220_v61  ;;  %v4945_v42 = vld [vmem:[#allocation2 + $0x29] sm:$0xff] }
 0x690   : > { %9759 = vmatmul.msk.bf16.gmra.mxu2 %vm810_vm2, %v13537_v28  ;;  %v4719_v51 = vld [vmem:[#allocation2 + $0x28] sm:$0xff] }
 0x691   : > { %15727 = vst [vmem:[#allocation48_spill] sm:$0xff] %v13541_v6  ;;  %9779 = vmatmul.msk.bf16.gmra.mxu3 %vm810_vm2, %v13539_v12  ;;  %v4754_v58 = vpack.c.bf16 %v4720_v55, %v4719_v51 }
 0x692   : > { %9801 = vmatmul.msk.bf16.gmra.mxu1 %vm810_vm2, %v13541_v6  ;;  %v10841_v3 = vpop.eup %10840 }
 0x693   : > { %v3846_v56 = vmul.f32 %v10841_v3, %v3653_v63  ;;  %v4079_v39 = vpop.f32.mrf.mxu2  ;;  %v4946_v63 = vld [vmem:[#allocation2 + $0x31] sm:$0xff] }
 0x694   : > { %v4222_v16 = vpop.f32.mrf.mxu3  ;;  %v4612_v38 = vpop.f32.mrf.mxu0  ;;  %v4980_v54 = vpack.c.bf16 %v4946_v63, %v4945_v42  ;;  %v5173_v63 = vld [vmem:[#allocation2 + $0x67] sm:$0xff] }
 0x695   : > { %v4223_v10 = vadd.f32 %v4222_v16, %v4079_v39  ;;  %3878 = vst.msk [vmem:[#allocation2 + $0x210] sm:$0xff] %vm810_vm2, %v3846_v56  ;;  %v13553_v14 = vadd.f32 %v4612_v38, %v13404_v7  ;;  %v4722_v56 = vld [vmem:[#allocation2 + $0x50] sm:$0xff] }
 0x696   : > { %9817 = vmatmul.msk.bf16.gmra.mxu0 %vm810_vm2, %v13407_v59  ;;  %v4947_v39 = vld [vmem:[#allocation2 + $0x49] sm:$0xff]  ;;  %v4948_v16 = vld [vmem:[#allocation2 + $0x51] sm:$0xff] }
 0x697   : > { %v4418_v57 = vpop.f32.mrf.mxu1  ;;  %v13557_v15 = vadd.f32 %v4416_v32, %v4223_v10  ;;  %v13579_v42 = vpack.c.bf16 %v4948_v16, %v4947_v39  ;;  %v4723_v39 = vld [vmem:[#allocation2 + $0x68] sm:$0xff] }
 0x699   : > { %15728 = vst [vmem:[#allocation6_spill] sm:$0xff] %v13579_v42 }
 0x69b   : > { %v4081_v27 = vpop.f32.mrf.mxu2 }
 0x69c   : > { %v4224_v17 = vpop.f32.mrf.mxu3  ;;  %v4614_v8 = vpop.f32.mrf.mxu0 }
 0x69d   : > { %v4225_v37 = vadd.f32 %v4224_v17, %v4081_v27  ;;  %v13560_v1 = vadd.f32 %v4614_v8, %v13420_v20  ;;  %v4721_v17 = vld [vmem:[#allocation2 + $0x48] sm:$0xff] }
 0x69e   : > { %v13577_v55 = vpack.c.bf16 %v4722_v56, %v4721_v17 }
 0x69f   : > { %v4421_v7 = vpop.f32.mrf.mxu1  ;;  %v13565_v2 = vadd.f32 %v4418_v57, %v4225_v37  ;;  %v5174_v57 = vld [vmem:[#allocation2 + $0x6f] sm:$0xff] }
 0x6a0   : > { %9830 = vmatmul.msk.bf16.vlgmr.msra.gmra.mxu2 %vm810_vm2, %v4754_v58  ;;  %v5207_v37 = vpack.c.bf16 %v5174_v57, %v5173_v63 }
 0x6a1   : > { %9852 = vmatmul.msk.bf16.vlgmr.msrb.gmra.mxu3 %vm810_vm2, %v4980_v54 }
 0x6a2   : > { %9874 = vmatmul.msk.bf16.vlgmr.msrb.gmra.mxu1 %vm810_vm2, %v5206_v29 }
 0x6a3   : > { %v4084_v61 = vpop.f32.mrf.mxu2 }
 0x6a4   : > { %v4227_v21 = vpop.f32.mrf.mxu3  ;;  %v4617_v24 = vpop.f32.mrf.mxu0 }
 0x6a5   : > { %v4228_v48 = vadd.f32 %v4227_v21, %v4084_v61  ;;  %v13568_v20 = vadd.f32 %v4617_v24, %v13426_v4  ;;  %v4724_v21 = vld [vmem:[#allocation2 + $0x70] sm:$0xff] }
 0x6a6   : > { %9818 = vmatmul.msk.bf16.gmra.mxu0 %vm810_vm2, %v13432_v60  ;;  %v4950_v24 = vld [vmem:[#allocation2 + $0x71] sm:$0xff]  ;;  %v13598_v16 = vpack.c.bf16 %v4724_v21, %v4723_v39  ;;  %v4951_v21 = vld [vmem:[#allocation2 + $0x89] sm:$0xff] }
 0x6a7   : > { %v4423_v19 = vpop.f32.mrf.mxu1  ;;  %v13572_v0 = vadd.f32 %v4421_v7, %v4228_v48  ;;  %v4949_v48 = vld [vmem:[#allocation2 + $0x69] sm:$0xff] }
 0x6ab   : > { %v4086_v32 = vpop.f32.mrf.mxu2 }
 0x6ac   : > { %v4229_v3 = vpop.f32.mrf.mxu3  ;;  %v4619_v38 = vpop.f32.mrf.mxu0 }
 0x6ad   : > { %v4230_v10 = vadd.f32 %v4229_v3, %v4086_v32  ;;  %v13575_v27 = vadd.f32 %v4619_v38, %v13442_v35  ;;  %v5176_v3 = vld [vmem:[#allocation2 + $0x8f] sm:$0xff]  ;;  %v5175_v38 = vld [vmem:[#allocation2 + $0x87] sm:$0xff] }
 0x6ae   : > { %v5208_v57 = vpack.c.bf16 %v5176_v3, %v5175_v38  ;;  %v4725_v3 = vld [vmem:[#allocation2 + $0x88] sm:$0xff] }
 0x6af   : > { %v4426_v4 = vpop.f32.mrf.mxu1  ;;  %v13586_v8 = vadd.f32 %v4423_v19, %v4230_v10  ;;  %v13600_v10 = vpack.c.bf16 %v4950_v24, %v4949_v48  ;;  %v4952_v48 = vld [vmem:[#allocation2 + $0x91] sm:$0xff] }
 0x6b0   : > { %9831 = vmatmul.msk.bf16.gmra.mxu2 %vm810_vm2, %v13577_v55  ;;  %v13621_v38 = vpack.c.bf16 %v4952_v48, %v4951_v21 }
 0x6b1   : > { %9853 = vmatmul.msk.bf16.gmra.mxu3 %vm810_vm2, %v13579_v42  ;;  %15729 = vst [vmem:[#allocation69_spill] sm:$0xff] %v13600_v10 }
 0x6b2   : > { %9875 = vmatmul.msk.bf16.gmra.mxu1 %vm810_vm2, %v5207_v37  ;;  %15730 = vst [vmem:[#allocation50_spill] sm:$0xff] %v13621_v38 }
 0x6b3   : > { %v4089_v35 = vpop.f32.mrf.mxu2 }
 0x6b4   : > { %v4232_v13 = vpop.f32.mrf.mxu3  ;;  %v4622_v7 = vpop.f32.mrf.mxu0 }
 0x6b5   : > { %v4233_v51 = vadd.f32 %v4232_v13, %v4089_v35  ;;  %v13589_v58 = vadd.f32 %v4622_v7, %v13448_v47 }
 0x6b6   : > { %9819 = vmatmul.msk.bf16.gmra.mxu0 %vm810_vm2, %v13454_v30 }
 0x6b7   : > { %v4428_v54 = vpop.f32.mrf.mxu1  ;;  %v13593_v62 = vadd.f32 %v4426_v4, %v4233_v51 }
 0x6bb   : > { %v4091_v29 = vpop.f32.mrf.mxu2 }
 0x6bc   : > { %v4234_v61 = vpop.f32.mrf.mxu3  ;;  %v4624_v32 = vpop.f32.mrf.mxu0 }
 0x6bd   : > { %v4235_v19 = vadd.f32 %v4234_v61, %v4091_v29  ;;  %v13596_v56 = vadd.f32 %v4624_v32, %v13464_v33  ;;  %v4726_v61 = vld [vmem:[#allocation2 + $0x90] sm:$0xff] }
 0x6be   : > { %v13619_v39 = vpack.c.bf16 %v4726_v61, %v4725_v3  ;;  %v4954_v3 = vld [vmem:[#allocation2 + $0xb1] sm:$0xff] }
 0x6bf   : > { %v4431_v47 = vpop.f32.mrf.mxu1  ;;  %v13607_v17 = vadd.f32 %v4428_v54, %v4235_v19  ;;  %v5178_v19 = vld [vmem:[#allocation2 + $0xaf] sm:$0xff] }
 0x6c0   : > { %9832 = vmatmul.msk.bf16.gmra.mxu2 %vm810_vm2, %v13598_v16 }
 0x6c1   : > { %9854 = vmatmul.msk.bf16.gmra.mxu3 %vm810_vm2, %v13600_v10  ;;  %v5182_v10 = vld [vmem:[#allocation2 + $0xef] sm:$0xff] }
 0x6c2   : > { %9876 = vmatmul.msk.bf16.gmra.mxu1 %vm810_vm2, %v5208_v57  ;;  %v5177_v57 = vld [vmem:[#allocation2 + $0xa7] sm:$0xff] }
 0x6c3   : > { %v4094_v33 = vpop.f32.mrf.mxu2 }
 0x6c4   : > { %v4237_v4 = vpop.f32.mrf.mxu3  ;;  %v4627_v37 = vpop.f32.mrf.mxu0 }
 0x6c5   : > { %v4238_v63 = vadd.f32 %v4237_v4, %v4094_v33  ;;  %v13610_v35 = vadd.f32 %v4627_v37, %v13470_v50 }
 0x6c6   : > { %9820 = vmatmul.msk.bf16.gmra.mxu0 %vm810_vm2, %v13478_v40 }
 0x6c7   : > { %v4433_v13 = vpop.f32.mrf.mxu1  ;;  %v13614_v51 = vadd.f32 %v4431_v47, %v4238_v63  ;;  %v5209_v47 = vpack.c.bf16 %v5178_v19, %v5177_v57  ;;  %v4953_v19 = vld [vmem:[#allocation2 + $0xa9] sm:$0xff] }
 0x6c8   : > { %v5180_v57 = vld [vmem:[#allocation2 + $0xcf] sm:$0xff] }
 0x6cb   : > { %v4096_v7 = vpop.f32.mrf.mxu2 }
 0x6cc   : > { %v4239_v29 = vpop.f32.mrf.mxu3  ;;  %v4629_v24 = vpop.f32.mrf.mxu0 }
 0x6cd   : > { %v4240_v54 = vadd.f32 %v4239_v29, %v4096_v7  ;;  %v13617_v32 = vadd.f32 %v4629_v24, %v13489_v31  ;;  %v4728_v24 = vld [vmem:[#allocation2 + $0xb0] sm:$0xff] }
 0x6cf   : > { %v4436_v50 = vpop.f32.mrf.mxu1  ;;  %v13628_v33 = vadd.f32 %v4433_v13, %v4240_v54 }
 0x6d0   : > { %9833 = vmatmul.msk.bf16.gmra.mxu2 %vm810_vm2, %v13619_v39 }
 0x6d1   : > { %9855 = vmatmul.msk.bf16.gmra.mxu3 %vm810_vm2, %v13621_v38  ;;  %v5179_v38 = vld [vmem:[#allocation2 + $0xc7] sm:$0xff] }
 0x6d2   : > { %9877 = vmatmul.msk.bf16.gmra.mxu1 %vm810_vm2, %v5209_v47 }
 0x6d3   : > { %v4099_v31 = vpop.f32.mrf.mxu2 }
 0x6d4   : > { %v4242_v4 = vpop.f32.mrf.mxu3  ;;  %v4632_v37 = vpop.f32.mrf.mxu0 }
 0x6d5   : > { %v4243_v63 = vadd.f32 %v4242_v4, %v4099_v31  ;;  %v13631_v7 = vadd.f32 %v4632_v37, %v13495_v36  ;;  %v4727_v31 = vld [vmem:[#allocation2 + $0xa8] sm:$0xff]  ;;  %v13642_v37 = vpack.c.bf16 %v4954_v3, %v4953_v19 }
 0x6d6   : > { %9821 = vmatmul.msk.bf16.gmra.mxu0 %vm810_vm2, %v13501_v22  ;;  %v13640_v4 = vpack.c.bf16 %v4728_v24, %v4727_v31  ;;  %v4730_v31 = vld [vmem:[#allocation2 + $0xd0] sm:$0xff] }
 0x6d7   : > { %v4438_v29 = vpop.f32.mrf.mxu1  ;;  %v13635_v61 = vadd.f32 %v4436_v50, %v4243_v63  ;;  %15731 = vst [vmem:[#allocation7_spill] sm:$0xff] %v13642_v37  ;;  %v5210_v50 = vpack.c.bf16 %v5180_v57, %v5179_v38 }
 0x6db   : > { %v4101_v21 = vpop.f32.mrf.mxu2 }
 0x6dc   : > { %v4244_v48 = vpop.f32.mrf.mxu3  ;;  %v4634_v54 = vpop.f32.mrf.mxu0 }
 0x6dd   : > { %v4245_v13 = vadd.f32 %v4244_v48, %v4101_v21  ;;  %v13638_v47 = vadd.f32 %v4634_v54, %v13517_v26 }
 0x6df   : > { %v4441_v36 = vpop.f32.mrf.mxu1  ;;  %v13649_v63 = vadd.f32 %v4438_v29, %v4245_v13 }
 0x6e0   : > { %9834 = vmatmul.msk.bf16.gmra.mxu2 %vm810_vm2, %v13640_v4 }
 0x6e1   : > { %9856 = vmatmul.msk.bf16.gmra.mxu3 %vm810_vm2, %v13642_v37  ;;  %v4955_v37 = vld [vmem:[#allocation2 + $0xc9] sm:$0xff] }
 0x6e2   : > { %9878 = vmatmul.msk.bf16.gmra.mxu1 %vm810_vm2, %v5210_v50  ;;  %v4956_v50 = vld [vmem:[#allocation2 + $0xd1] sm:$0xff] }
 0x6e3   : > { %v4104_v26 = vpop.f32.mrf.mxu2  ;;  %v13663_v42 = vpack.c.bf16 %v4956_v50, %v4955_v37 }
 0x6e4   : > { %v4247_v21 = vpop.f32.mrf.mxu3  ;;  %v4637_v54 = vpop.f32.mrf.mxu0 }
 0x6e5   : > { %v4248_v48 = vadd.f32 %v4247_v21, %v4104_v26  ;;  %v13652_v24 = vadd.f32 %v4637_v54, %v13531_v11  ;;  %v4729_v21 = vld [vmem:[#allocation2 + $0xc8] sm:$0xff]  ;;  %15734 = vst [vmem:[#allocation54_spill] sm:$0xff] %v13663_v42 }
 0x6e6   : > { %9822 = vmatmul.msk.bf16.gmra.mxu0 %vm810_vm2, %v13539_v12  ;;  %v13661_v54 = vpack.c.bf16 %v4730_v31, %v4729_v21  ;;  %v4523_v21 = vld [vmem:[#allocation2 + $0x207] sm:$0xff] }
 0x6e7   : > { %15732 = vst [vmem:[#allocation52_spill] sm:$0xff] %v13652_v24  ;;  %v4443_v19 = vpop.f32.mrf.mxu1  ;;  %v13656_v38 = vadd.f32 %v4441_v36, %v4248_v48  ;;  %v5181_v24 = vld [vmem:[#allocation2 + $0xe7] sm:$0xff] }
 0x6e8   : > { %v5211_v36 = vpack.c.bf16 %v5182_v10, %v5181_v24 }
 0x6eb   : > { %v4106_v3 = vpop.f32.mrf.mxu2 }
 0x6ec   : > { %v4249_v57 = vpop.f32.mrf.mxu3  ;;  %v4639_v13 = vpop.f32.mrf.mxu0 }
 0x6ed   : > { %v4250_v29 = vadd.f32 %v4249_v57, %v4106_v3  ;;  %v13659_v26 = vadd.f32 %v4639_v13, %v13549_v5  ;;  %v4524_v5 = vld [vmem:[#allocation2 + $0x20f] sm:$0xff] }
 0x6ee   : > { %v13675_v10 = vpack.c.bf16 %v4524_v5, %v4523_v21 }
 0x6ef   : > { %15733 = vst [vmem:[#allocation8_spill] sm:$0xff] %v13659_v26  ;;  %v4446_v11 = vpop.f32.mrf.mxu1  ;;  %v13670_v48 = vadd.f32 %v4443_v19, %v4250_v29  ;;  %v4732_v29 = vld [vmem:[#allocation2 + $0xf0] sm:$0xff] }
 0x6f0   : > { %9835 = vmatmul.msk.bf16.gmra.mxu2 %vm810_vm2, %v13661_v54  ;;  %v4958_v26 = vld [vmem:[#allocation2 + $0xf1] sm:$0xff] }
 0x6f1   : > { %9857 = vmatmul.msk.bf16.gmra.mxu3 %vm810_vm2, %v13663_v42  ;;  %v4957_v42 = vld [vmem:[#allocation2 + $0xe9] sm:$0xff] }
 0x6f2   : > { %9879 = vmatmul.msk.bf16.gmra.mxu1 %vm810_vm2, %v5211_v36  ;;  %v13686_v21 = vpack.c.bf16 %v4958_v26, %v4957_v42 }
 0x6f3   : > { %v4109_v3 = vpop.f32.mrf.mxu2 }
 0x6f4   : > { %v4252_v57 = vpop.f32.mrf.mxu3  ;;  %v4642_v31 = vpop.f32.mrf.mxu0  ;;  %15737 = vst [vmem:[#allocation10_spill] sm:$0xff] %v13686_v21 }
 0x6f5   : > { %v4253_v13 = vadd.f32 %v4252_v57, %v4109_v3  ;;  %v13673_v37 = vadd.f32 %v4642_v31, %v13557_v15  ;;  %v4731_v15 = vld [vmem:[#allocation2 + $0xe8] sm:$0xff] }
 0x6f6   : > { %9823 = vmatmul.msk.bf16.gmra.mxu0 %vm810_vm2, %v13675_v10  ;;  %v13684_v5 = vpack.c.bf16 %v4732_v29, %v4731_v15 }
 0x6f7   : > { %15735 = vst [vmem:[#allocation9_spill] sm:$0xff] %v13673_v37  ;;  %v4448_v24 = vpop.f32.mrf.mxu1  ;;  %v13679_v50 = vadd.f32 %v4446_v11, %v4253_v13 }
 0x6fb   : > { %v4111_v36 = vpop.f32.mrf.mxu2 }
 0x6fc   : > { %v4254_v19 = vpop.f32.mrf.mxu3  ;;  %v4644_v3 = vpop.f32.mrf.mxu0 }
 0x6fd   : > { %v4255_v6 = vadd.f32 %v4254_v19, %v4111_v36  ;;  %v13682_v57 = vadd.f32 %v4644_v3, %v13565_v2 }
 0x6ff   : > { %15736 = vst [vmem:[#allocation56_spill] sm:$0xff] %v13682_v57  ;;  %v4451_v31 = vpop.f32.mrf.mxu1  ;;  %v13694_v11 = vadd.f32 %v4448_v24, %v4255_v6  ;;  %v4959_v57 = vld [vmem:[#allocation2 + $0x109] sm:$0xff] }
 0x700   : > { %9836 = vmatmul.msk.bf16.gmra.mxu2 %vm810_vm2, %v13684_v5 }
 0x701   : > { %9858 = vmatmul.msk.bf16.gmra.mxu3 %vm810_vm2, %v13686_v21  ;;  %v4734_v21 = vld [vmem:[#allocation2 + $0x110] sm:$0xff] }
 0x702   : > { %9880 = vmatmul.msk.bf16.gmra.mxu1 %vm810_vm2, %v13376_v44  ;;  %v4960_v44 = vld [vmem:[#allocation2 + $0x111] sm:$0xff] }
 0x703   : > { %v4114_v13 = vpop.f32.mrf.mxu2 }
 0x704   : > { %v4257_v2 = vpop.f32.mrf.mxu3  ;;  %v4647_v19 = vpop.f32.mrf.mxu0 }
 0x705   : > { %v4258_v36 = vadd.f32 %v4257_v2, %v4114_v13  ;;  %v13697_v29 = vadd.f32 %v4647_v19, %v13572_v0  ;;  %v4733_v13 = vld [vmem:[#allocation2 + $0x108] sm:$0xff]  ;;  %v13708_v19 = vpack.c.bf16 %v4960_v44, %v4959_v57 }
 0x706   : > { %9896 = vmatmul.msk.bf16.vlgmr.msrb.gmra.mxu0 %vm810_vm2, %v13577_v55  ;;  %v13706_v0 = vpack.c.bf16 %v4734_v21, %v4733_v13  ;;  %v4736_v13 = vld [vmem:[#allocation2 + $0x130] sm:$0xff] }
 0x707   : > { %v4453_v42 = vpop.f32.mrf.mxu1  ;;  %v13701_v26 = vadd.f32 %v4451_v31, %v4258_v36  ;;  %15739 = vst [vmem:[#allocation11_spill] sm:$0xff] %v13708_v19 }
 0x70b   : > { %v4116_v3 = vpop.f32.mrf.mxu2 }
 0x70c   : > { %v4259_v15 = vpop.f32.mrf.mxu3  ;;  %v4649_v24 = vpop.f32.mrf.mxu0 }
 0x70d   : > { %v4260_v6 = vadd.f32 %v4259_v15, %v4116_v3  ;;  %v13704_v37 = vadd.f32 %v4649_v24, %v13586_v8 }
 0x70f   : > { %15738 = vst [vmem:[#allocation58_spill] sm:$0xff] %v13704_v37  ;;  %v4456_v2 = vpop.f32.mrf.mxu1  ;;  %v13716_v55 = vadd.f32 %v4453_v42, %v4260_v6 }
 0x710   : > { %9837 = vmatmul.msk.bf16.gmra.mxu2 %vm810_vm2, %v13706_v0 }
 0x711   : > { %9859 = vmatmul.msk.bf16.gmra.mxu3 %vm810_vm2, %v13708_v19  ;;  %v4961_v19 = vld [vmem:[#allocation2 + $0x129] sm:$0xff] }
 0x712   : > { %9881 = vmatmul.msk.bf16.gmra.mxu1 %vm810_vm2, %v13393_v52  ;;  %v4962_v52 = vld [vmem:[#allocation2 + $0x131] sm:$0xff] }
 0x713   : > { %v4119_v31 = vpop.f32.mrf.mxu2 }
 0x714   : > { %v4262_v8 = vpop.f32.mrf.mxu3  ;;  %v4652_v3 = vpop.f32.mrf.mxu0 }
 0x715   : > { %v4263_v36 = vadd.f32 %v4262_v8, %v4119_v31  ;;  %v13719_v21 = vadd.f32 %v4652_v3, %v13593_v62  ;;  %v4735_v31 = vld [vmem:[#allocation2 + $0x128] sm:$0xff]  ;;  %v13730_v3 = vpack.c.bf16 %v4962_v52, %v4961_v19 }
 0x716   : > { %9897 = vmatmul.msk.bf16.gmra.mxu0 %vm810_vm2, %v13598_v16  ;;  %v13728_v62 = vpack.c.bf16 %v4736_v13, %v4735_v31  ;;  %v10260_v52 = vld [vmem:[%s15496_s3 + $0x28] sm:$0xff] }
 0x717   : > { %v4458_v57 = vpop.f32.mrf.mxu1  ;;  %v13723_v15 = vadd.f32 %v4456_v2, %v4263_v36  ;;  %6170 = vmatpush.bf16.msra.mxu3 %v10260_v52 }
 0x71b   : > { %v4121_v44 = vpop.f32.mrf.mxu2 }
 0x71c   : > { %v4264_v24 = vpop.f32.mrf.mxu3  ;;  %v4654_v6 = vpop.f32.mrf.mxu0 }
 0x71d   : > { %v4265_v42 = vadd.f32 %v4264_v24, %v4121_v44  ;;  %v13726_v37 = vadd.f32 %v4654_v6, %v13607_v17 }
 0x71f   : > { %v5285_v8 = vpop.f32.mrf.mxu1  ;;  %v13738_v16 = vadd.f32 %v4458_v57, %v4265_v42  ;;  %v4738_v42 = vld [vmem:[#allocation2 + $0x150] sm:$0xff] }
 0x720   : > { %9838 = vmatmul.msk.bf16.gmra.mxu2 %vm810_vm2, %v13728_v62 }
 0x721   : > { %9860 = vmatmul.msk.bf16.gmra.mxu3 %vm810_vm2, %v13730_v3 }
 0x722   : > { %9882 = vmatmul.msk.bf16.gmra.mxu1 %vm810_vm2, %v13407_v59 }
 0x723   : > { %v4833_v2 = vpop.f32.mrf.mxu2 }
 0x724   : > { %v5059_v17 = vpop.f32.mrf.mxu3  ;;  %v4913_v36 = vadd.f32 %v4833_v2, %v13525_v43  ;;  %v4657_v44 = vpop.f32.mrf.mxu0  ;;  %v4737_v2 = vld [vmem:[#allocation2 + $0x148] sm:$0xff] }
 0x725   : > { %v13742_v24 = vadd.f32 %v4657_v44, %v13614_v51 }
 0x726   : > { %v5139_v19 = vadd.f32 %v5059_v17, %v4913_v36  ;;  %9898 = vmatmul.msk.bf16.gmra.mxu0 %vm810_vm2, %v13619_v39  ;;  %v13755_v36 = vpack.c.bf16 %v4738_v42, %v4737_v2 }
 0x727   : > { %v5287_v13 = vpop.f32.mrf.mxu1 }
 0x728   : > { %v13749_v6 = vadd.f32 %v5285_v8, %v5139_v19 }
 0x72b   : > { %v4835_v59 = vpop.f32.mrf.mxu2 }
 0x72c   : > { %v5061_v57 = vpop.f32.mrf.mxu3  ;;  %v4914_v43 = vadd.f32 %v4835_v59, %v13535_v18  ;;  %v4659_v31 = vpop.f32.mrf.mxu0 }
 0x72d   : > { %v13753_v51 = vadd.f32 %v4659_v31, %v13628_v33 }
 0x72e   : > { %v5140_v17 = vadd.f32 %v5061_v57, %v4914_v43 }
 0x72f   : > { %v5290_v39 = vpop.f32.mrf.mxu1 }
 0x730   : > { %9839 = vmatmul.msk.bf16.gmra.mxu2 %vm810_vm2, %v13755_v36  ;;  %v13763_v44 = vadd.f32 %v5287_v13, %v5140_v17 }
 0x731   : > { %9861 = vmatmul.msk.bf16.gmra.mxu3 %vm810_vm2, %v13409_v46 }
 0x732   : > { %9883 = vmatmul.msk.bf16.gmra.mxu1 %vm810_vm2, %v13432_v60 }
 0x733   : > { %v4838_v8 = vpop.f32.mrf.mxu2 }
 0x734   : > { %v5064_v18 = vpop.f32.mrf.mxu3  ;;  %v4915_v33 = vadd.f32 %v4838_v8, %v13553_v14  ;;  %v4662_v19 = vpop.f32.mrf.mxu0 }
 0x735   : > { %v13767_v52 = vadd.f32 %v4662_v19, %v13635_v61 }
 0x736   : > { %v5141_v59 = vadd.f32 %v5064_v18, %v4915_v33  ;;  %9899 = vmatmul.msk.bf16.gmra.mxu0 %vm810_vm2, %v13640_v4 }
 0x737   : > { %v5292_v57 = vpop.f32.mrf.mxu1 }
 0x738   : > { %v13771_v43 = vadd.f32 %v5290_v39, %v5141_v59 }
 0x73b   : > { %v4840_v42 = vpop.f32.mrf.mxu2 }
 0x73c   : > { %v5066_v46 = vpop.f32.mrf.mxu3  ;;  %v4916_v60 = vadd.f32 %v4840_v42, %v13560_v1  ;;  %v4664_v31 = vpop.f32.mrf.mxu0 }
 0x73d   : > { %v13775_v13 = vadd.f32 %v4664_v31, %v13649_v63 }
 0x73e   : > { %v5142_v14 = vadd.f32 %v5066_v46, %v4916_v60 }
 0x73f   : > { %v5295_v17 = vpop.f32.mrf.mxu1 }
 0x740   : > { %9840 = vmatmul.msk.bf16.gmra.mxu2 %vm810_vm2, %v13430_v23  ;;  %v13783_v2 = vadd.f32 %v5292_v57, %v5142_v14 }
 0x741   : > { %9862 = vmatmul.msk.bf16.gmra.mxu3 %vm810_vm2, %v13434_v25 }
 0x742   : > { %9884 = vmatmul.msk.bf16.gmra.mxu1 %vm810_vm2, %v13454_v30 }
 0x743   : > { %v4843_v61 = vpop.f32.mrf.mxu2 }
 0x744   : > { %v5069_v4 = vpop.f32.mrf.mxu3  ;;  %v4917_v1 = vadd.f32 %v4843_v61, %v13568_v20  ;;  %v4667_v39 = vpop.f32.mrf.mxu0 }
 0x745   : > { %v13787_v63 = vadd.f32 %v4667_v39, %v13656_v38 }
 0x746   : > { %v5143_v8 = vadd.f32 %v5069_v4, %v4917_v1  ;;  %9900 = vmatmul.msk.bf16.gmra.mxu0 %vm810_vm2, %v13661_v54 }
 0x747   : > { %v5297_v59 = vpop.f32.mrf.mxu1 }
 0x748   : > { %v13791_v18 = vadd.f32 %v5295_v17, %v5143_v8 }
 0x74b   : > { %v4845_v23 = vpop.f32.mrf.mxu2 }
 0x74c   : > { %v5071_v25 = vpop.f32.mrf.mxu3  ;;  %v4918_v30 = vadd.f32 %v4845_v23, %v13575_v27  ;;  %v4669_v33 = vpop.f32.mrf.mxu0 }
 0x74d   : > { %v13795_v19 = vadd.f32 %v4669_v33, %v13670_v48 }
 0x74e   : > { %v5144_v20 = vadd.f32 %v5071_v25, %v4918_v30 }
 0x750   : > { %9841 = vmatmul.msk.bf16.gmra.mxu2 %vm810_vm2, %v13452_v34  ;;  %v13803_v57 = vadd.f32 %v5297_v59, %v5144_v20  ;;  %v5300_v34 = vpop.f32.mrf.mxu1  ;;  %v15741_v59 = vld [vmem:[#allocation52_spill] sm:$0xff] }
 0x751   : > { %9863 = vmatmul.msk.bf16.gmra.mxu3 %vm810_vm2, %v13456_v49 }
 0x752   : > { %9885 = vmatmul.msk.bf16.gmra.mxu1 %vm810_vm2, %v13478_v40 }
 0x753   : > { %v4848_v38 = vpop.f32.mrf.mxu2 }
 0x754   : > { %v5074_v54 = vpop.f32.mrf.mxu3  ;;  %v4919_v27 = vadd.f32 %v4848_v38, %v13589_v58  ;;  %v4672_v42 = vpop.f32.mrf.mxu0 }
 0x755   : > { %v13807_v48 = vadd.f32 %v4672_v42, %v13679_v50 }
 0x756   : > { %v5145_v46 = vadd.f32 %v5074_v54, %v4919_v27  ;;  %9901 = vmatmul.msk.bf16.gmra.mxu0 %vm810_vm2, %v13684_v5 }
 0x758   : > { %v13811_v31 = vadd.f32 %v5300_v34, %v5145_v46  ;;  %v5302_v50 = vpop.f32.mrf.mxu1  ;;  %v4750_v46 = vld [vmem:[#allocation2 + $0x210] sm:$0xff] }
 0x759   : > { %v4976_v34 = vld [vmem:[#allocation2 + $0x211] sm:$0xff] }
 0x75b   : > { %v4850_v60 = vpop.f32.mrf.mxu2 }
 0x75c   : > { %v5076_v49 = vpop.f32.mrf.mxu3  ;;  %v4920_v40 = vadd.f32 %v4850_v60, %v13596_v56  ;;  %v4674_v14 = vpop.f32.mrf.mxu0  ;;  %v15742_v60 = vld [vmem:[#allocation8_spill] sm:$0xff] }
 0x75d   : > { %v13815_v61 = vadd.f32 %v4674_v14, %v13694_v11  ;;  %v4749_v14 = vld [vmem:[#allocation2 + $0x208] sm:$0xff] }
 0x75e   : > { %v5146_v58 = vadd.f32 %v5076_v49, %v4920_v40 }
 0x760   : > { %9842 = vmatmul.msk.bf16.gmra.mxu2 %vm810_vm2, %v13476_v45  ;;  %v13823_v17 = vadd.f32 %v5302_v50, %v5146_v58  ;;  %v13885_v50 = vpack.c.bf16 %v4750_v46, %v4749_v14  ;;  %v15746_v14 = vld [vmem:[#allocation58_spill] sm:$0xff] }
 0x761   : > { %9864 = vmatmul.msk.bf16.gmra.mxu3 %vm810_vm2, %v13480_v9 }
 0x762   : > { %9886 = vmatmul.msk.bf16.gmra.mxu1 %vm810_vm2, %v13501_v22 }
 0x763   : > { %v4853_v5 = vpop.f32.mrf.mxu2 }
 0x764   : > { %v5079_v4 = vpop.f32.mrf.mxu3  ;;  %v4921_v56 = vadd.f32 %v4853_v5, %v13610_v35  ;;  %v4677_v1 = vpop.f32.mrf.mxu0  ;;  %v5416_v5 = vld [vmem:[#allocation2 + $0x170] sm:$0xff] }
 0x765   : > { %v13827_v11 = vadd.f32 %v4677_v1, %v13701_v26  ;;  %v15743_v1 = vld [vmem:[#allocation9_spill] sm:$0xff] }
 0x766   : > { %v13829_v39 = vadd.f32 %v5079_v4, %v4921_v56  ;;  %9902 = vmatmul.msk.bf16.gmra.mxu0 %vm810_vm2, %v13706_v0 }
 0x76b   : > { %v4855_v45 = vpop.f32.mrf.mxu2 }
 0x76c   : > { %v13833_v9 = vpop.f32.mrf.mxu3  ;;  %v13836_v22 = vadd.f32 %v4855_v45, %v13617_v32  ;;  %v4679_v8 = vpop.f32.mrf.mxu0 }
 0x76d   : > { %v13839_v23 = vadd.f32 %v4679_v8, %v13716_v55  ;;  %v5415_v8 = vld [vmem:[#allocation2 + $0x168] sm:$0xff] }
 0x770   : > { %9843 = vmatmul.msk.bf16.gmra.mxu2 %vm810_vm2, %v13499_v41 }
 0x771   : > { %9865 = vmatmul.msk.bf16.gmra.mxu3 %vm810_vm2, %v13503_v53 }
 0x772   : > { %9887 = vmatmul.msk.bf16.gmra.mxu1 %vm810_vm2, %v13539_v12 }
 0x773   : > { %v4858_v35 = vpop.f32.mrf.mxu2 }
 0x774   : > { %v5084_v26 = vpop.f32.mrf.mxu3  ;;  %v4923_v0 = vadd.f32 %v4858_v35, %v13631_v7  ;;  %v4682_v25 = vpop.f32.mrf.mxu0  ;;  %v15740_v7 = vld [vmem:[#allocation48_spill] sm:$0xff] }
 0x775   : > { %v13849_v32 = vadd.f32 %v4682_v25, %v13723_v15 }
 0x776   : > { %v13851_v30 = vadd.f32 %v5084_v26, %v4923_v0  ;;  %9903 = vmatmul.msk.bf16.gmra.mxu0 %vm810_vm2, %v13728_v62  ;;  %v5441_v26 = vpack.c.bf16 %v5416_v5, %v5415_v8  ;;  %v15747_v5 = vld [vmem:[#allocation69_spill] sm:$0xff]  ;;  %v5419_v8 = vld [vmem:[#allocation2 + $0x1a8] sm:$0xff] }
 0x77b   : > { %v4860_v41 = vpop.f32.mrf.mxu2 }
 0x77c   : > { %v13855_v55 = vpop.f32.mrf.mxu3  ;;  %v13858_v53 = vadd.f32 %v4860_v41, %v13638_v47  ;;  %v4684_v12 = vpop.f32.mrf.mxu0 }
 0x77d   : > { %v13861_v33 = vadd.f32 %v4684_v12, %v13738_v16  ;;  %v5202_v16 = vld [vmem:[#allocation2 + $0x22f] sm:$0xff] }
 0x77e   : > { %v15744_v12 = vld [vmem:[#allocation56_spill] sm:$0xff] }
 0x780   : > { %9844 = vmatmul.msk.bf16.gmra.mxu2 %vm810_vm2, %v13537_v28  ;;  %v5201_v28 = vld [vmem:[#allocation2 + $0x227] sm:$0xff] }
 0x781   : > { %9866 = vmatmul.msk.bf16.gmra.mxu3 %vm810_vm2, %v15740_v7  ;;  %v5221_v58 = vpack.c.bf16 %v5202_v16, %v5201_v28 }
 0x782   : > { %9888 = vmatmul.msk.bf16.gmra.mxu1 %vm810_vm2, %v13675_v10  ;;  %v4975_v10 = vld [vmem:[#allocation2 + $0x209] sm:$0xff] }
 0x783   : > { %v4863_v15 = vpop.f32.mrf.mxu2 }
 0x784   : > { %v5089_v62 = vpop.f32.mrf.mxu3  ;;  %v4925_v20 = vadd.f32 %v4863_v15, %v15741_v59  ;;  %v5511_v38 = vpop.f32.mrf.mxu0  ;;  %v15745_v59 = vld [vmem:[#allocation6_spill] sm:$0xff] }
 0x785   : > { %v13871_v47 = vadd.f32 %v5511_v38, %v13749_v6 }
 0x786   : > { %v13873_v54 = vadd.f32 %v5089_v62, %v4925_v20  ;;  %9904 = vmatmul.msk.bf16.gmra.mxu0 %vm810_vm2, %v13755_v36  ;;  %v13887_v36 = vpack.c.bf16 %v4976_v34, %v4975_v10 }
 0x78b   : > { %v4865_v27 = vpop.f32.mrf.mxu2 }
 0x78c   : > { %v13877_v42 = vpop.f32.mrf.mxu3  ;;  %v13880_v49 = vadd.f32 %v4865_v27, %v15742_v60  ;;  %v5513_v40 = vpop.f32.mrf.mxu0  ;;  %v5417_v27 = vld [vmem:[#allocation2 + $0x188] sm:$0xff] }
 0x78d   : > { %v13883_v6 = vadd.f32 %v5513_v40, %v13763_v44 }
 0x790   : > { %9845 = vmatmul.msk.bf16.gmra.mxu2 %vm810_vm2, %v13885_v50 }
 0x791   : > { %9867 = vmatmul.msk.bf16.gmra.mxu3 %vm810_vm2, %v13887_v36 }
 0x792   : > { %9889 = vmatmul.msk.bf16.gmra.mxu1 %vm810_vm2, %v5221_v58 }
 0x793   : > { %v4868_v4 = vpop.f32.mrf.mxu2 }
 0x794   : > { %v5094_v56 = vpop.f32.mrf.mxu3  ;;  %v4927_v44 = vadd.f32 %v4868_v4, %v15743_v1  ;;  %v5516_v45 = vpop.f32.mrf.mxu0  ;;  %v5420_v4 = vld [vmem:[#allocation2 + $0x1b0] sm:$0xff] }
 0x795   : > { %v13896_v35 = vadd.f32 %v5516_v45, %v13771_v43  ;;  %v5418_v43 = vld [vmem:[#allocation2 + $0x190] sm:$0xff] }
 0x796   : > { %v13898_v0 = vadd.f32 %v5094_v56, %v4927_v44  ;;  %9905 = vmatmul.msk.bf16.gmra.mxu0 %vm810_vm2, %v5441_v26  ;;  %v5442_v10 = vpack.c.bf16 %v5418_v43, %v5417_v27  ;;  %v5421_v27 = vld [vmem:[#allocation2 + $0x1c8] sm:$0xff] }
 0x79b   : > { %v4870_v25 = vpop.f32.mrf.mxu2 }
 0x79c   : > { %v13901_v41 = vpop.f32.mrf.mxu3  ;;  %v13904_v7 = vadd.f32 %v4870_v25, %v15744_v12  ;;  %v5518_v15 = vpop.f32.mrf.mxu0  ;;  %v5443_v25 = vpack.c.bf16 %v5420_v4, %v5419_v8 }
 0x79d   : > { %v13907_v62 = vadd.f32 %v5518_v15, %v13783_v2  ;;  %v10259_v2 = vld [vmem:[%s15496_s3 + $0x20] sm:$0xff] }
 0x79e   : > { %6171 = vmatpush.bf16.msra.mxu3 %v10259_v2 }
 0x7a0   : > { %9918 = vmatmul.msk.bf16.vlgmr.msrb.gmra.mxu2 %vm810_vm2, %v15745_v59 }
 0x7a3   : > { %v4873_v20 = vpop.f32.mrf.mxu2 }
 0x7a4   : > { %v5099_v38 = vpop.f32.mrf.mxu3  ;;  %v4929_v28 = vadd.f32 %v4873_v20, %v13697_v29  ;;  %v5521_v16 = vpop.f32.mrf.mxu0 }
 0x7a5   : > { %v13913_v46 = vadd.f32 %v5521_v16, %v13791_v18 }
 0x7a6   : > { %v13915_v34 = vadd.f32 %v5099_v38, %v4929_v28  ;;  %9906 = vmatmul.msk.bf16.gmra.mxu0 %vm810_vm2, %v5442_v10 }
 0x7ab   : > { %v4875_v60 = vpop.f32.mrf.mxu2 }
 0x7ac   : > { %v13921_v40 = vpop.f32.mrf.mxu3  ;;  %v13924_v29 = vadd.f32 %v4875_v60, %v15746_v14  ;;  %v5523_v58 = vpop.f32.mrf.mxu0 }
 0x7ad   : > { %v13927_v18 = vadd.f32 %v5523_v58, %v13803_v57  ;;  %v15749_v58 = vld [vmem:[#allocation7_spill] sm:$0xff] }
 0x7b0   : > { %9919 = vmatmul.msk.bf16.gmra.mxu2 %vm810_vm2, %v15747_v5 }
 0x7b3   : > { %v4878_v56 = vpop.f32.mrf.mxu2 }
 0x7b4   : > { %v5104_v1 = vpop.f32.mrf.mxu3  ;;  %v4931_v44 = vadd.f32 %v4878_v56, %v13719_v21  ;;  %v5526_v45 = vpop.f32.mrf.mxu0  ;;  %v15748_v21 = vld [vmem:[#allocation50_spill] sm:$0xff] }
 0x7b5   : > { %v13933_v26 = vadd.f32 %v5526_v45, %v13811_v31  ;;  %v5422_v31 = vld [vmem:[#allocation2 + $0x1d0] sm:$0xff] }
 0x7b6   : > { %v13935_v12 = vadd.f32 %v5104_v1, %v4931_v44  ;;  %9907 = vmatmul.msk.bf16.gmra.mxu0 %vm810_vm2, %v5443_v25  ;;  %v5444_v10 = vpack.c.bf16 %v5422_v31, %v5421_v27  ;;  %v5423_v1 = vld [vmem:[#allocation2 + $0x1e8] sm:$0xff] }
 0x7b7   : > { %v5427_v27 = vld [vmem:[#allocation2 + $0x228] sm:$0xff] }
 0x7bb   : > { %v4880_v57 = vpop.f32.mrf.mxu2 }
 0x7bc   : > { %v13938_v15 = vpop.f32.mrf.mxu3  ;;  %v13941_v59 = vadd.f32 %v4880_v57, %v13726_v37  ;;  %v5528_v43 = vpop.f32.mrf.mxu0  ;;  %v10262_v37 = vld [vmem:[%s15498_s5 + $0x98] sm:$0xff]  ;;  %v15750_v57 = vld [vmem:[#allocation54_spill] sm:$0xff] }
 0x7bd   : > { %v13944_v20 = vadd.f32 %v5528_v43, %v13823_v17  ;;  %6640 = vmatpush.bf16.msra.mxu1 %v10262_v37 }
 0x7c0   : > { %9920 = vmatmul.msk.bf16.gmra.mxu2 %vm810_vm2, %v15748_v21 }
 0x7c3   : > { %v4883_v38 = vpop.f32.mrf.mxu2 }
 0x7c4   : > { %v5109_v28 = vpop.f32.mrf.mxu3  ;;  %v4933_v16 = vadd.f32 %v4883_v38, %v13742_v24  ;;  %v5424_v24 = vld [vmem:[#allocation2 + $0x1f0] sm:$0xff] }
 0x7c5   : > { %v5445_v44 = vpack.c.bf16 %v5424_v24, %v5423_v1 }
 0x7c6   : > { %v13949_v2 = vadd.f32 %v5109_v28, %v4933_v16  ;;  %9908 = vmatmul.msk.bf16.gmra.mxu0 %vm810_vm2, %v5444_v10  ;;  %v5428_v10 = vld [vmem:[#allocation2 + $0x230] sm:$0xff] }
 0x7cb   : > { %v4885_v17 = vpop.f32.mrf.mxu2 }
 0x7cc   : > { %v13955_v60 = vpop.f32.mrf.mxu3  ;;  %v13958_v14 = vadd.f32 %v4885_v17, %v13753_v51 }
 0x7d0   : > { %9921 = vmatmul.msk.bf16.gmra.mxu2 %vm810_vm2, %v15749_v58  ;;  %v5447_v58 = vpack.c.bf16 %v5428_v10, %v5427_v27  ;;  %v5639_v27 = vld [vmem:[#allocation2 + $0x149] sm:$0xff] }
 0x7d3   : > { %v4888_v5 = vpop.f32.mrf.mxu2 }
 0x7d4   : > { %v5114_v4 = vpop.f32.mrf.mxu3  ;;  %v4935_v56 = vadd.f32 %v4888_v5, %v13767_v52 }
 0x7d6   : > { %v13963_v45 = vadd.f32 %v5114_v4, %v4935_v56  ;;  %9909 = vmatmul.msk.bf16.gmra.mxu0 %vm810_vm2, %v5445_v44  ;;  %v15752_v4 = vld [vmem:[#allocation11_spill] sm:$0xff] }
 0x7db   : > { %v4890_v8 = vpop.f32.mrf.mxu2 }
 0x7dc   : > { %v13966_v25 = vpop.f32.mrf.mxu3  ;;  %v13969_v51 = vadd.f32 %v4890_v8, %v13775_v13  ;;  %v15751_v13 = vld [vmem:[#allocation10_spill] sm:$0xff] }
 0x7e0   : > { %9922 = vmatmul.msk.bf16.gmra.mxu2 %vm810_vm2, %v15750_v57 }
 0x7e3   : > { %v4893_v43 = vpop.f32.mrf.mxu2 }
 0x7e4   : > { %v5119_v21 = vpop.f32.mrf.mxu3  ;;  %v4937_v31 = vadd.f32 %v4893_v43, %v13787_v63 }
 0x7e6   : > { %v13974_v52 = vadd.f32 %v5119_v21, %v4937_v31  ;;  %9910 = vmatmul.msk.bf16.gmra.mxu0 %vm810_vm2, %v13885_v50 }
 0x7eb   : > { %v4895_v38 = vpop.f32.mrf.mxu2 }
 0x7ec   : > { %v13978_v28 = vpop.f32.mrf.mxu3  ;;  %v13981_v16 = vadd.f32 %v4895_v38, %v13795_v19 }
 0x7f0   : > { %9923 = vmatmul.msk.bf16.gmra.mxu2 %vm810_vm2, %v15751_v13 }
 0x7f3   : > { %v4898_v37 = vpop.f32.mrf.mxu2 }
 0x7f4   : > { %v5124_v17 = vpop.f32.mrf.mxu3  ;;  %v4939_v63 = vadd.f32 %v4898_v37, %v13807_v48 }
 0x7f6   : > { %v13986_v24 = vadd.f32 %v5124_v17, %v4939_v63  ;;  %9911 = vmatmul.msk.bf16.gmra.mxu0 %vm810_vm2, %v5447_v58 }
 0x7fb   : > { %v4900_v50 = vpop.f32.mrf.mxu2 }
 0x7fc   : > { %v13989_v5 = vpop.f32.mrf.mxu3  ;;  %v13992_v19 = vadd.f32 %v4900_v50, %v13815_v61 }
 0x800   : > { %9924 = vmatmul.msk.bf16.gmra.mxu2 %vm810_vm2, %v15752_v4  ;;  %v5641_v4 = vld [vmem:[#allocation2 + $0x169] sm:$0xff] }
 0x803   : > { %v4903_v56 = vpop.f32.mrf.mxu2 }
 0x804   : > { %v5129_v1 = vpop.f32.mrf.mxu3  ;;  %v4941_v44 = vadd.f32 %v4903_v56, %v13827_v11  ;;  %v5640_v11 = vld [vmem:[#allocation2 + $0x151] sm:$0xff] }
 0x805   : > { %v5666_v37 = vpack.c.bf16 %v5640_v11, %v5639_v27  ;;  %v5642_v56 = vld [vmem:[#allocation2 + $0x171] sm:$0xff] }
 0x806   : > { %v13997_v8 = vadd.f32 %v5129_v1, %v4941_v44  ;;  %v5667_v44 = vpack.c.bf16 %v5642_v56, %v5641_v4  ;;  %v5643_v56 = vld [vmem:[#allocation2 + $0x189] sm:$0xff] }
 0x808   : > { %15753 = vst [vmem:[#allocation60_spill] sm:$0xff] %v13997_v8  ;;  %v5646_v8 = vld [vmem:[#allocation2 + $0x1b1] sm:$0xff] }
 0x80b   : > { %v4905_v48 = vpop.f32.mrf.mxu2 }
 0x80c   : > { %v13999_v57 = vpop.f32.mrf.mxu3  ;;  %v14002_v43 = vadd.f32 %v4905_v48, %v13839_v23  ;;  %v14016_v23 = vld [vmem:[%s15499_s6 + $0x1] ss:$0 sm:$0xff]  ;;  %v14022_v48 = vpop.f32.mrf.mxu1 }
 0x80d   : > { %15754 = vst [vmem:[#allocation12_spill] sm:$0xff] %v13999_v57 }
 0x80e   : > { %15755 = vst [vmem:[#allocation63_spill] sm:$0xff] %v14002_v43  ;;  %v5645_v43 = vld [vmem:[#allocation2 + $0x1a9] sm:$0xff] }
 0x810   : > { %9925 = vmatmul.msk.bf16.gmra.mxu2 %vm810_vm2, %v13730_v3 }
 0x813   : > { %v4908_v61 = vpop.f32.mrf.mxu2 }
 0x814   : > { %v4943_v21 = vadd.f32 %v4908_v61, %v13849_v32  ;;  %v5134_v31 = vpop.f32.mrf.mxu3  ;;  %v14024_v61 = vpop.f32.mrf.mxu0 }
 0x816   : > { %v14007_v38 = vadd.f32 %v5134_v31, %v4943_v21 }
 0x818   : > { %15756 = vst [vmem:[#allocation14_spill] sm:$0xff] %v14007_v38 }
 0x81b   : > { %v4910_v13 = vpop.f32.mrf.mxu2 }
 0x81c   : > { %v14010_v10 = vadd.f32 %v4910_v13, %v13861_v33 }
 0x81e   : > { %15757 = vst [vmem:[#allocation67_spill] sm:$0xff] %v14010_v10 }
 0x820   : > { %9926 = vmatmul.msk.bf16.gmra.mxu2 %vm810_vm2, %v5666_v37 }
 0x823   : > { %v5737_v3 = vpop.f32.mrf.mxu2 }
 0x824   : > { %v5817_v32 = vadd.f32 %v5737_v3, %v13871_v47 }
 0x826   : > { %v5854_v17 = vadd.f32 %v14016_v23, %v5817_v32  ;;  %v14029_v32 = vpop.f32.mrf.mxu1 }
 0x828   : > { %v5886_v58 = vsub.f32 0.0, %v5854_v17 }
 0x82a   : > { %v5918_v63 = vmul.f32 1.442695, %v5886_v58  ;;  %v14031_v58 = vpop.f32.mrf.mxu0 }
 0x82b   : > { %v5739_v50 = vpop.f32.mrf.mxu2 }
 0x82c   : > { %v5818_v33 = vadd.f32 %v5739_v50, %v13883_v6  ;;  %10842 = vpow2.f32 %v5918_v63 }
 0x82e   : > { %v5855_v1 = vadd.f32 %v14016_v23, %v5818_v33  ;;  %v5644_v33 = vld [vmem:[#allocation2 + $0x191] sm:$0xff] }
 0x830   : > { %v5887_v21 = vsub.f32 0.0, %v5855_v1  ;;  %9927 = vmatmul.msk.bf16.gmra.mxu2 %vm810_vm2, %v5667_v44 }
 0x832   : > { %v5920_v47 = vmul.f32 1.442695, %v5887_v21  ;;  %v10843_v13 = vpop.eup %10842  ;;  %v5668_v21 = vpack.c.bf16 %v5644_v33, %v5643_v56 }
 0x833   : > { %v5742_v31 = vpop.f32.mrf.mxu2  ;;  %v5982_v6 = vadd.f32 1.0, %v10843_v13 }
 0x834   : > { %10844 = vpow2.f32 %v5920_v47  ;;  %v5819_v27 = vadd.f32 %v5742_v31, %v13896_v35 }
 0x835   : > { %10846 = vrcp.f32 %v5982_v6  ;;  %v14036_v6 = vpop.f32.mrf.mxu1 }
 0x836   : > { %v5856_v11 = vadd.f32 %v14016_v23, %v5819_v27 }
 0x838   : > { %v5888_v37 = vsub.f32 0.0, %v5856_v11 }
 0x83a   : > { %v10845_v3 = vpop.eup %10844  ;;  %v5922_v63 = vmul.f32 1.442695, %v5888_v37 }
 0x83b   : > { %v5983_v50 = vadd.f32 1.0, %v10845_v3  ;;  %v5744_v4 = vpop.f32.mrf.mxu2  ;;  %v10847_v31 = vpop.eup %10846 }
 0x83c   : > { %v5820_v44 = vadd.f32 %v5744_v4, %v13907_v62  ;;  %v14038_v3 = vpop.f32.mrf.mxu0  ;;  %v6046_v38 = vmul.f32 %v10847_v31, %v5854_v17 }
 0x83d   : > { %10848 = vrcp.f32 %v5983_v50 }
 0x83e   : > { %10850 = vpow2.f32 %v5922_v63  ;;  %v5857_v35 = vadd.f32 %v14016_v23, %v5820_v44 }
 0x840   : > { %v5889_v47 = vsub.f32 0.0, %v5857_v35  ;;  %9928 = vmatmul.msk.bf16.gmra.mxu2 %vm810_vm2, %v5668_v21 }
 0x842   : > { %v5924_v13 = vmul.f32 1.442695, %v5889_v47 }
 0x843   : > { %v10849_v27 = vpop.eup %10848  ;;  %v5747_v10 = vpop.f32.mrf.mxu2 }
 0x844   : > { %v10851_v37 = vpop.eup %10850  ;;  %v6047_v57 = vmul.f32 %v10849_v27, %v5855_v1  ;;  %10852 = vpow2.f32 %v5924_v13  ;;  %v5821_v62 = vadd.f32 %v5747_v10, %v13913_v46  ;;  %v14044_v1 = vpop.f32.mrf.mxu1 }
 0x845   : > { %v5984_v4 = vadd.f32 1.0, %v10851_v37  ;;  %v14046_v46 = vpop.f32.mrf.mxu0 }
 0x846   : > { %v6083_v63 = vpack.c.bf16 %v6047_v57, %v6046_v38  ;;  %v5858_v50 = vadd.f32 %v14016_v23, %v5821_v62  ;;  %v5669_v38 = vpack.c.bf16 %v5646_v8, %v5645_v43 }
 0x847   : > { %10854 = vrcp.f32 %v5984_v4 }
 0x848   : > { %v5890_v56 = vsub.f32 0.0, %v5858_v50  ;;  %9948 = vmatmul.msk.bf16.vlgmr.msra.gmra.mxu3 %vm919_vm1, %v6083_v63 }
 0x84a   : > { %v10853_v33 = vpop.eup %10852  ;;  %v5926_v44 = vmul.f32 1.442695, %v5890_v56 }
 0x84b   : > { %v5985_v21 = vadd.f32 1.0, %v10853_v33  ;;  %v5749_v47 = vpop.f32.mrf.mxu2 }
 0x84c   : > { %v5822_v17 = vadd.f32 %v5749_v47, %v13927_v18 }
 0x84d   : > { %10856 = vrcp.f32 %v5985_v21  ;;  %v10855_v31 = vpop.eup %10854  ;;  %v14054_v21 = vpop.f32.mrf.mxu1 }
 0x84e   : > { %10858 = vpow2.f32 %v5926_v44  ;;  %v5859_v57 = vadd.f32 %v14016_v23, %v5822_v17  ;;  %v6048_v63 = vmul.f32 %v10855_v31, %v5856_v11  ;;  %v14056_v8 = vpop.f32.mrf.mxu0 }
 0x850   : > { %v5891_v10 = vsub.f32 0.0, %v5859_v57  ;;  %9929 = vmatmul.msk.bf16.gmra.mxu2 %vm810_vm2, %v5669_v38  ;;  %v5647_v38 = vld [vmem:[#allocation2 + $0x1c9] sm:$0xff] }
 0x852   : > { %v5928_v13 = vmul.f32 1.442695, %v5891_v10 }
 0x853   : > { %v10857_v27 = vpop.eup %10856  ;;  %v5752_v37 = vpop.f32.mrf.mxu2 }
 0x854   : > { %v10859_v62 = vpop.eup %10858  ;;  %v6049_v4 = vmul.f32 %v10857_v27, %v5857_v35  ;;  %10860 = vpow2.f32 %v5928_v13  ;;  %v5823_v18 = vadd.f32 %v5752_v37, %v13933_v26  ;;  %v5648_v26 = vld [vmem:[#allocation2 + $0x1d1] sm:$0xff]  ;;  %v5373_v27 = vadd.f32 %v14022_v48, %v13829_v39 }
 0x855   : > { %v5986_v44 = vadd.f32 1.0, %v10859_v62  ;;  %v5670_v13 = vpack.c.bf16 %v5648_v26, %v5647_v38 }
 0x856   : > { %v14052_v56 = vadd.f32 %v14016_v23, %v5823_v18  ;;  %v6084_v33 = vpack.c.bf16 %v6049_v4, %v6048_v63  ;;  %v14065_v63 = vpop.f32.mrf.mxu1  ;;  %v5599_v4 = vadd.f32 %v14024_v61, %v5373_v27  ;;  %v14068_v18 = vpop.f32.mrf.mxu0  ;;  %v5650_v27 = vld [vmem:[#allocation2 + $0x1f1] sm:$0xff] }
 0x857   : > { %10862 = vrcp.f32 %v5986_v44  ;;  %v5148_v44 = vadd.f32 %v13833_v9, %v13836_v22 }
 0x858   : > { %v5892_v43 = vsub.f32 0.0, %v14052_v56  ;;  %9949 = vmatmul.msk.bf16.gmra.mxu3 %vm919_vm1, %v6084_v33 }
 0x859   : > { %v5374_v61 = vadd.f32 %v14029_v32, %v5148_v44 }
 0x85a   : > { %v10861_v47 = vpop.eup %10860  ;;  %v5930_v17 = vmul.f32 1.442695, %v5892_v43 }
 0x85b   : > { %v5987_v11 = vadd.f32 1.0, %v10861_v47  ;;  %v5754_v35 = vpop.f32.mrf.mxu2  ;;  %v5600_v9 = vadd.f32 %v14031_v58, %v5374_v61 }
 0x85c   : > { %v5824_v10 = vadd.f32 %v5754_v35, %v13944_v20 }
 0x85d   : > { %10864 = vrcp.f32 %v5987_v11  ;;  %v10863_v62 = vpop.eup %10862 }
 0x85e   : > { %10866 = vpow2.f32 %v5930_v17  ;;  %v5861_v31 = vadd.f32 %v14016_v23, %v5824_v10  ;;  %v6050_v17 = vmul.f32 %v10863_v62, %v5858_v50  ;;  %v14081_v62 = vpop.f32.mrf.mxu0 }
 0x860   : > { %v5893_v37 = vsub.f32 0.0, %v5861_v31  ;;  %9930 = vmatmul.msk.bf16.gmra.mxu2 %vm810_vm2, %v5670_v13  ;;  %v5649_v13 = vld [vmem:[#allocation2 + $0x1e9] sm:$0xff] }
 0x862   : > { %v5932_v33 = vmul.f32 1.442695, %v5893_v37  ;;  %v14079_v37 = vpop.f32.mrf.mxu1 }
 0x863   : > { %v10865_v20 = vpop.eup %10864  ;;  %v5757_v43 = vpop.f32.mrf.mxu2 }
 0x864   : > { %v10867_v47 = vpop.eup %10866  ;;  %v6051_v11 = vmul.f32 %v10865_v20, %v5859_v57  ;;  %10868 = vpow2.f32 %v5932_v33  ;;  %v5825_v39 = vadd.f32 %v5757_v43, %v5599_v4  ;;  %v5671_v33 = vpack.c.bf16 %v5650_v27, %v5649_v13  ;;  %v10263_v27 = vld [vmem:[%s15498_s5 + $0xa0] sm:$0xff] }
 0x865   : > { %v5988_v38 = vadd.f32 1.0, %v10867_v47  ;;  %v5375_v20 = vadd.f32 %v14036_v6, %v13851_v30  ;;  %6977 = vmatpush.bf16.msra.mxu2 %v10263_v27 }
 0x866   : > { %v14073_v48 = vadd.f32 %v14016_v23, %v5825_v39  ;;  %v6085_v35 = vpack.c.bf16 %v6051_v11, %v6050_v17  ;;  %v5150_v11 = vadd.f32 %v13855_v55, %v13858_v53  ;;  %v14093_v30 = vpop.f32.mrf.mxu0 }
 0x867   : > { %10870 = vrcp.f32 %v5988_v38  ;;  %v5601_v43 = vadd.f32 %v14038_v3, %v5375_v20 }
 0x868   : > { %v5894_v26 = vsub.f32 0.0, %v14073_v48  ;;  %9950 = vmatmul.msk.bf16.gmra.mxu3 %vm919_vm1, %v6085_v35 }
 0x86a   : > { %v10869_v10 = vpop.eup %10868  ;;  %v5934_v22 = vmul.f32 1.442695, %v5894_v26 }
 0x86b   : > { %v5989_v50 = vadd.f32 1.0, %v10869_v10  ;;  %v5759_v57 = vpop.f32.mrf.mxu2  ;;  %v14091_v10 = vpop.f32.mrf.mxu1 }
 0x86c   : > { %v5826_v4 = vadd.f32 %v5759_v57, %v5600_v9 }
 0x86d   : > { %10872 = vrcp.f32 %v5989_v50  ;;  %v10871_v44 = vpop.eup %10870 }
 0x86e   : > { %10874 = vpow2.f32 %v5934_v22  ;;  %v5863_v32 = vadd.f32 %v14016_v23, %v5826_v4  ;;  %v6052_v38 = vmul.f32 %v10871_v44, %v14052_v56  ;;  %v5376_v22 = vadd.f32 %v14044_v1, %v5150_v11 }
 0x870   : > { %v5895_v58 = vsub.f32 0.0, %v5863_v32  ;;  %9931 = vmatmul.msk.bf16.gmra.mxu2 %vm810_vm2, %v5671_v33  ;;  %v5602_v56 = vadd.f32 %v14046_v46, %v5376_v22  ;;  %v5377_v33 = vadd.f32 %v14054_v21, %v13873_v54  ;;  %v14110_v46 = vpop.f32.mrf.mxu0  ;;  %v10261_v21 = vld [vmem:[%s15498_s5 + $0x90] sm:$0xff] }
 0x871   : > { %6783 = vmatpush.bf16.msra.mxu0 %v10261_v21 }
 0x872   : > { %v5936_v47 = vmul.f32 1.442695, %v5895_v58  ;;  %v5603_v44 = vadd.f32 %v14056_v8, %v5377_v33 }
 0x873   : > { %v10873_v17 = vpop.eup %10872  ;;  %v5762_v39 = vpop.f32.mrf.mxu2 }
 0x874   : > { %v10875_v35 = vpop.eup %10874  ;;  %v6053_v61 = vmul.f32 %v10873_v17, %v5861_v31  ;;  %10876 = vpow2.f32 %v5936_v47  ;;  %v5827_v26 = vadd.f32 %v5762_v39, %v5601_v43  ;;  %v14106_v4 = vpop.f32.mrf.mxu1  ;;  %v5152_v17 = vadd.f32 %v13877_v42, %v13880_v49  ;;  %v5653_v49 = vld [vmem:[#allocation2 + $0x229] sm:$0xff] }
 0x875   : > { %v5990_v9 = vadd.f32 1.0, %v10875_v35 }
 0x876   : > { %v14096_v6 = vadd.f32 %v14016_v23, %v5827_v26  ;;  %v6086_v3 = vpack.c.bf16 %v6053_v61, %v6052_v38  ;;  %v5378_v26 = vadd.f32 %v14065_v63, %v5152_v17 }
 0x877   : > { %10878 = vrcp.f32 %v5990_v9 }
 0x878   : > { %v5896_v55 = vsub.f32 0.0, %v14096_v6  ;;  %9951 = vmatmul.msk.bf16.gmra.mxu3 %vm919_vm1, %v6086_v3  ;;  %v5604_v9 = vadd.f32 %v14068_v18, %v5378_v26  ;;  %v14130_v22 = vpop.f32.mrf.mxu0 }
 0x87a   : > { %v10877_v53 = vpop.eup %10876  ;;  %v5938_v31 = vmul.f32 1.442695, %v5896_v55 }
 0x87b   : > { %v5991_v50 = vadd.f32 1.0, %v10877_v53  ;;  %v5764_v57 = vpop.f32.mrf.mxu2 }
 0x87c   : > { %v5828_v13 = vadd.f32 %v5764_v57, %v5602_v56  ;;  %v14127_v3 = vpop.f32.mrf.mxu1  ;;  %v5379_v57 = vadd.f32 %v14079_v37, %v13898_v0 }
 0x87d   : > { %10880 = vrcp.f32 %v5991_v50  ;;  %v10879_v58 = vpop.eup %10878 }
 0x87e   : > { %10882 = vpow2.f32 %v5938_v31  ;;  %v5865_v1 = vadd.f32 %v14016_v23, %v5828_v13  ;;  %v6054_v35 = vmul.f32 %v10879_v58, %v14073_v48  ;;  %v5654_v48 = vld [vmem:[#allocation2 + $0x231] sm:$0xff]  ;;  %v5605_v18 = vadd.f32 %v14081_v62, %v5379_v57 }
 0x87f   : > { %v5673_v50 = vpack.c.bf16 %v5654_v48, %v5653_v49  ;;  %v5154_v58 = vadd.f32 %v13901_v41, %v13904_v7 }
 0x880   : > { %v5897_v20 = vsub.f32 0.0, %v5865_v1  ;;  %9932 = vmatmul.msk.bf16.gmra.mxu2 %vm810_vm2, %v13887_v36  ;;  %v5556_v17 = vpop.f32.mrf.mxu0 }
 0x881   : > { %v5380_v62 = vadd.f32 %v14091_v10, %v5154_v58  ;;  %v5381_v10 = vadd.f32 %v14106_v4, %v13915_v34 }
 0x882   : > { %v5940_v43 = vmul.f32 1.442695, %v5897_v20 }
 0x883   : > { %v10881_v47 = vpop.eup %10880  ;;  %v5767_v11 = vpop.f32.mrf.mxu2  ;;  %v5606_v41 = vadd.f32 %v14093_v30, %v5380_v62 }
 0x884   : > { %v10883_v39 = vpop.eup %10882  ;;  %v6055_v38 = vmul.f32 %v10881_v47, %v5863_v32  ;;  %10884 = vpow2.f32 %v5940_v43  ;;  %v5829_v54 = vadd.f32 %v5767_v11, %v5603_v44  ;;  %v5330_v47 = vpop.f32.mrf.mxu1 }
 0x885   : > { %v5992_v61 = vadd.f32 1.0, %v10883_v39 }
 0x886   : > { %v14122_v36 = vadd.f32 %v14016_v23, %v5829_v54  ;;  %v6087_v8 = vpack.c.bf16 %v6055_v38, %v6054_v35 }
 0x887   : > { %10886 = vrcp.f32 %v5992_v61 }
 0x888   : > { %v5898_v42 = vsub.f32 0.0, %v14122_v36  ;;  %9952 = vmatmul.msk.bf16.gmra.mxu3 %vm919_vm1, %v6087_v8  ;;  %v5558_v26 = vpop.f32.mrf.mxu0 }
 0x88a   : > { %v10885_v32 = vpop.eup %10884  ;;  %v5942_v55 = vmul.f32 1.442695, %v5898_v42 }
 0x88b   : > { %v5993_v53 = vadd.f32 1.0, %v10885_v32  ;;  %v5769_v56 = vpop.f32.mrf.mxu2  ;;  %v5607_v32 = vadd.f32 %v14110_v46, %v5381_v10 }
 0x88c   : > { %v5830_v31 = vadd.f32 %v5769_v56, %v5604_v9 }
 0x88d   : > { %10888 = vrcp.f32 %v5993_v53  ;;  %v10887_v27 = vpop.eup %10886 }
 0x88e   : > { %10890 = vpow2.f32 %v5942_v55  ;;  %v5867_v63 = vadd.f32 %v14016_v23, %v5830_v31  ;;  %v6056_v11 = vmul.f32 %v10887_v27, %v14096_v6  ;;  %v5156_v55 = vadd.f32 %v13921_v40, %v13924_v29 }
 0x890   : > { %v5899_v13 = vsub.f32 0.0, %v5867_v63  ;;  %9933 = vmatmul.msk.bf16.gmra.mxu2 %vm810_vm2, %v5673_v50  ;;  %v5561_v46 = vpop.f32.mrf.mxu0 }
 0x892   : > { %v5944_v33 = vmul.f32 1.442695, %v5899_v13 }
 0x893   : > { %v10889_v20 = vpop.eup %10888  ;;  %v5772_v44 = vpop.f32.mrf.mxu2 }
 0x894   : > { %v10891_v43 = vpop.eup %10890  ;;  %v6057_v39 = vmul.f32 %v10889_v20, %v5865_v1  ;;  %10892 = vpow2.f32 %v5944_v33  ;;  %v5831_v0 = vadd.f32 %v5772_v44, %v5605_v18  ;;  %v5332_v1 = vpop.f32.mrf.mxu1  ;;  %v5382_v18 = vadd.f32 %v14127_v3, %v5156_v55 }
 0x895   : > { %v5994_v38 = vadd.f32 1.0, %v10891_v43  ;;  %v5383_v43 = vadd.f32 %v5330_v47, %v13935_v12 }
 0x896   : > { %v5868_v37 = vadd.f32 %v14016_v23, %v5831_v0  ;;  %v6088_v35 = vpack.c.bf16 %v6057_v39, %v6056_v11  ;;  %v5608_v40 = vadd.f32 %v14130_v22, %v5382_v18  ;;  %v5158_v22 = vadd.f32 %v13938_v15, %v13941_v59 }
 0x897   : > { %10894 = vrcp.f32 %v5994_v38  ;;  %v5609_v0 = vadd.f32 %v5556_v17, %v5383_v43 }
 0x898   : > { %v5900_v54 = vsub.f32 0.0, %v5868_v37  ;;  %9953 = vmatmul.msk.bf16.gmra.mxu3 %vm919_vm1, %v6088_v35  ;;  %v5563_v35 = vpop.f32.mrf.mxu0 }
 0x89a   : > { %v10893_v21 = vpop.eup %10892  ;;  %v5946_v7 = vmul.f32 1.442695, %v5900_v54 }
 0x89b   : > { %v5995_v8 = vadd.f32 1.0, %v10893_v21  ;;  %v5774_v61 = vpop.f32.mrf.mxu2 }
 0x89c   : > { %v5832_v6 = vadd.f32 %v5774_v61, %v5606_v41  ;;  %v5335_v4 = vpop.f32.mrf.mxu1 }
 0x89d   : > { %10896 = vrcp.f32 %v5995_v8  ;;  %v10895_v48 = vpop.eup %10894 }
 0x89e   : > { %10898 = vpow2.f32 %v5946_v7  ;;  %v5869_v42 = vadd.f32 %v14016_v23, %v5832_v6  ;;  %v6058_v31 = vmul.f32 %v10895_v48, %v14122_v36  ;;  %v5384_v6 = vadd.f32 %v5332_v1, %v5158_v22 }
 0x8a0   : > { %v5901_v49 = vsub.f32 0.0, %v5869_v42 }
 0x8a2   : > { %v5948_v9 = vmul.f32 1.442695, %v5901_v49  ;;  %v5610_v49 = vadd.f32 %v5558_v26, %v5384_v6  ;;  %v5160_v26 = vadd.f32 %v13955_v60, %v13958_v14  ;;  %v14180_v60 = vld [vmem:[%s15497_s4 + $0x2] ss:$0 sm:$0xff] }
 0x8a3   : > { %v10897_v30 = vpop.eup %10896  ;;  %v5777_v53 = vpop.f32.mrf.mxu2 }
 0x8a4   : > { %v10899_v56 = vpop.eup %10898  ;;  %v6059_v50 = vmul.f32 %v10897_v30, %v5867_v63  ;;  %10900 = vpow2.f32 %v5948_v9  ;;  %v5833_v57 = vadd.f32 %v5777_v53, %v5607_v32  ;;  %v5337_v39 = vpop.f32.mrf.mxu1  ;;  %v5385_v30 = vadd.f32 %v5335_v4, %v13949_v2 }
 0x8a5   : > { %v5996_v34 = vadd.f32 1.0, %v10899_v56 }
 0x8a6   : > { %v5870_v13 = vadd.f32 %v14016_v23, %v5833_v57  ;;  %v6089_v27 = vpack.c.bf16 %v6059_v50, %v6058_v31  ;;  %v5611_v56 = vadd.f32 %v5561_v46, %v5385_v30  ;;  %v14168_v57 = vpop.f32.mrf.mxu3  ;;  %v6529_v30 = vld [vmem:[#allocation2 + $0x10] sm:$0xff] }
 0x8a7   : > { %10902 = vrcp.f32 %v5996_v34 }
 0x8a8   : > { %v5902_v33 = vsub.f32 0.0, %v5870_v13  ;;  %9954 = vmatmul.msk.bf16.gmra.mxu3 %vm919_vm1, %v6089_v27 }
 0x8aa   : > { %v10901_v20 = vpop.eup %10900  ;;  %v5950_v29 = vmul.f32 1.442695, %v5902_v33 }
 0x8ab   : > { %v5997_v36 = vadd.f32 1.0, %v10901_v20  ;;  %v5779_v63 = vpop.f32.mrf.mxu2 }
 0x8ac   : > { %v5834_v58 = vadd.f32 %v5779_v63, %v5608_v40 }
 0x8ad   : > { %10904 = vrcp.f32 %v5997_v36  ;;  %v10903_v3 = vpop.eup %10902 }
 0x8ae   : > { %10906 = vpow2.f32 %v5950_v29  ;;  %v5871_v44 = vadd.f32 %v14016_v23, %v5834_v58  ;;  %v6060_v41 = vmul.f32 %v10903_v3, %v5868_v37  ;;  %v5340_v37 = vpop.f32.mrf.mxu1  ;;  %v5386_v29 = vadd.f32 %v5337_v39, %v5160_v26  ;;  %v6865_v39 = vld [vmem:[#allocation2 + $0x9] sm:$0xff] }
 0x8b0   : > { %v5903_v11 = vsub.f32 0.0, %v5871_v44 }
 0x8b2   : > { %v5952_v38 = vmul.f32 1.442695, %v5903_v11 }
 0x8b3   : > { %v10905_v62 = vpop.eup %10904  ;;  %v5782_v54 = vpop.f32.mrf.mxu2 }
 0x8b4   : > { %v10907_v21 = vpop.eup %10906  ;;  %v6061_v7 = vmul.f32 %v10905_v62, %v5869_v42  ;;  %10908 = vpow2.f32 %v5952_v38  ;;  %v5835_v8 = vadd.f32 %v5782_v54, %v5609_v0  ;;  %v5566_v42 = vpop.f32.mrf.mxu0  ;;  %v6866_v0 = vld [vmem:[#allocation2 + $0x11] sm:$0xff] }
 0x8b5   : > { %v5998_v47 = vadd.f32 1.0, %v10907_v21  ;;  %v6900_v38 = vpack.c.bf16 %v6866_v0, %v6865_v39  ;;  %v5387_v21 = vadd.f32 %v5340_v37, %v13963_v45 }
 0x8b6   : > { %v14160_v61 = vadd.f32 %v14016_v23, %v5835_v8  ;;  %v6090_v12 = vpack.c.bf16 %v6061_v7, %v6060_v41  ;;  %v5342_v20 = vpop.f32.mrf.mxu1 }
 0x8b7   : > { %10910 = vrcp.f32 %v5998_v47  ;;  %10014 = vmatmul.msk.bf16.vlgmr.msra.gmra.mxu2 %vm810_vm2, %v6900_v38  ;;  %v5613_v47 = vadd.f32 %v5566_v42, %v5387_v21 }
 0x8b8   : > { %v5904_v17 = vsub.f32 0.0, %v14160_v61  ;;  %9955 = vmatmul.msk.bf16.gmra.mxu3 %vm919_vm1, %v6090_v12 }
 0x8ba   : > { %v10909_v10 = vpop.eup %10908  ;;  %v5954_v48 = vmul.f32 1.442695, %v5904_v17 }
 0x8bb   : > { %v5999_v15 = vadd.f32 1.0, %v10909_v10  ;;  %v5784_v59 = vpop.f32.mrf.mxu2  ;;  %v5162_v10 = vadd.f32 %v13966_v25, %v13969_v51  ;;  %v10264_v25 = vld [vmem:[%s15498_s5 + $0xa8] sm:$0xff] }
 0x8bc   : > { %10912 = vpow2.f32 %v5954_v48  ;;  %v5836_v32 = vadd.f32 %v5784_v59, %v5610_v49  ;;  %v14170_v40 = vpop.f32.mrf.mxu0  ;;  %7203 = vmatpush.bf16.msrb.mxu3 %v10264_v25 }
 0x8bd   : > { %10914 = vrcp.f32 %v5999_v15  ;;  %v10911_v55 = vpop.eup %10910 }
 0x8be   : > { %v5873_v9 = vadd.f32 %v14016_v23, %v5836_v32  ;;  %v6062_v34 = vmul.f32 %v10911_v55, %v5870_v13  ;;  %v5612_v13 = vadd.f32 %v5563_v35, %v5386_v29  ;;  %v5345_v54 = vpop.f32.mrf.mxu1  ;;  %v6528_v32 = vld [vmem:[#allocation2 + $0x8] sm:$0xff] }
 0x8bf   : > { %v6563_v55 = vpack.c.bf16 %v6529_v30, %v6528_v32  ;;  %v5389_v39 = vadd.f32 %v5345_v54, %v13974_v52 }
 0x8c0   : > { %v5905_v1 = vsub.f32 0.0, %v5873_v9 }
 0x8c1   : > { %9972 = vmatmul.msk.bf16.vlgmr.msra.gmra.mxu1 %vm810_vm2, %v6563_v55 }
 0x8c2   : > { %v10913_v53 = vpop.eup %10912  ;;  %v5956_v31 = vmul.f32 1.442695, %v5905_v1  ;;  %v6477_v1 = vld [vmem:[#allocation2 + $0x7] sm:$0xff] }
 0x8c3   : > { %v10915_v50 = vpop.eup %10914  ;;  %v5787_v27 = vpop.f32.mrf.mxu2  ;;  %v6000_v2 = vadd.f32 1.0, %v10913_v53  ;;  %v6478_v53 = vld [vmem:[#allocation2 + $0xf] sm:$0xff] }
 0x8c4   : > { %v6063_v18 = vmul.f32 %v10915_v50, %v5871_v44  ;;  %10916 = vpow2.f32 %v5956_v31  ;;  %v5837_v33 = vadd.f32 %v5787_v27, %v5611_v56  ;;  %v14191_v41 = vpop.f32.mrf.mxu0  ;;  %v6512_v56 = vpack.c.bf16 %v6478_v53, %v6477_v1 }
 0x8c5   : > { %10918 = vrcp.f32 %v6000_v2  ;;  %v5388_v50 = vadd.f32 %v5342_v20, %v5162_v10 }
 0x8c6   : > { %v14173_v4 = vadd.f32 %v14016_v23, %v5837_v33  ;;  %v6091_v46 = vpack.c.bf16 %v6063_v18, %v6062_v34  ;;  %9992 = vmatmul.msk.bf16.vlgmr.msra.gmra.mxu0 %vm810_vm2, %v6512_v56  ;;  %v5347_v33 = vpop.f32.mrf.mxu1 }
 0x8c7   : > { %v5614_v2 = vadd.f32 %v14170_v40, %v5388_v50 }
 0x8c8   : > { %v5906_v36 = vsub.f32 0.0, %v14173_v4  ;;  %9956 = vmatmul.msk.bf16.gmra.mxu3 %vm919_vm1, %v6091_v46 }
 0x8ca   : > { %v10917_v14 = vpop.eup %10916  ;;  %v5958_v63 = vmul.f32 1.442695, %v5906_v36 }
 0x8cb   : > { %v6001_v58 = vadd.f32 1.0, %v10917_v14  ;;  %v5789_v44 = vpop.f32.mrf.mxu2  ;;  %v6173_v43 = vpop.f32.mrf.mxu3 }
 0x8cc   : > { %10920 = vpow2.f32 %v5958_v63  ;;  %v5838_v11 = vadd.f32 %v5789_v44, %v5612_v13  ;;  %v14183_v3 = vadd.f32 %v14180_v60, %v6173_v43  ;;  %v10919_v35 = vpop.eup %10918  ;;  %v5573_v46 = vpop.f32.mrf.mxu0 }
 0x8cd   : > { %10922 = vrcp.f32 %v6001_v58  ;;  %v6064_v49 = vmul.f32 %v10919_v35, %v14160_v61  ;;  %v10265_v58 = vld [vmem:[%s15498_s5 + $0xb0] sm:$0xff] }
 0x8ce   : > { %v14186_v62 = vadd.f32 %v14016_v23, %v5838_v11  ;;  %v6253_v22 = vsub.f32 0.0, %v14183_v3  ;;  %7429 = vmatpush.bf16.msrb.mxu1 %v10265_v58  ;;  %v5350_v10 = vpop.f32.mrf.mxu1 }
 0x8d0   : > { %v5907_v7 = vsub.f32 0.0, %v14186_v62  ;;  %v6285_v8 = vmul.f32 1.442695, %v6253_v22 }
 0x8d2   : > { %v10921_v12 = vpop.eup %10920  ;;  %v5960_v6 = vmul.f32 1.442695, %v5907_v7  ;;  %10924 = vpow2.f32 %v6285_v8  ;;  %v5615_v7 = vadd.f32 %v14191_v41, %v5389_v39 }
 0x8d3   : > { %v10923_v17 = vpop.eup %10922  ;;  %v5792_v48 = vpop.f32.mrf.mxu2  ;;  %v6002_v42 = vadd.f32 1.0, %v10921_v12 }
 0x8d4   : > { %v6175_v15 = vpop.f32.mrf.mxu3  ;;  %v6065_v59 = vmul.f32 %v10923_v17, %v5873_v9  ;;  %10926 = vpow2.f32 %v5960_v6  ;;  %v5839_v45 = vadd.f32 %v5792_v48, %v5613_v47  ;;  %v5164_v6 = vadd.f32 %v13978_v28, %v13981_v16 }
 0x8d5   : > { %v14198_v37 = vadd.f32 %v14180_v60, %v6175_v15  ;;  %10928 = vrcp.f32 %v6002_v42 }
 0x8d6   : > { %v14204_v51 = vadd.f32 %v14016_v23, %v5839_v45  ;;  %v6092_v9 = vpack.c.bf16 %v6065_v59, %v6064_v49  ;;  %v5576_v49 = vpop.f32.mrf.mxu0  ;;  %v5390_v45 = vadd.f32 %v5347_v33, %v5164_v6 }
 0x8d7   : > { %v6254_v61 = vsub.f32 0.0, %v14198_v37 }
 0x8d8   : > { %v10925_v31 = vpop.eup %10924  ;;  %v5908_v26 = vsub.f32 0.0, %v14204_v51  ;;  %9957 = vmatmul.msk.bf16.gmra.mxu3 %vm919_vm1, %v6092_v9  ;;  %v5616_v55 = vadd.f32 %v5573_v46, %v5390_v45 }
 0x8d9   : > { %v6287_v27 = vmul.f32 1.442695, %v6254_v61  ;;  %v6349_v34 = vadd.f32 1.0, %v10925_v31 }
 0x8da   : > { %v10927_v18 = vpop.eup %10926  ;;  %v5962_v29 = vmul.f32 1.442695, %v5908_v26  ;;  %v5352_v26 = vpop.f32.mrf.mxu1 }
 0x8db   : > { %10930 = vpow2.f32 %v6287_v27  ;;  %v6003_v36 = vadd.f32 1.0, %v10927_v18  ;;  %v5794_v14 = vpop.f32.mrf.mxu2  ;;  %v10929_v43 = vpop.eup %10928 }
 0x8dc   : > { %10932 = vrcp.f32 %v6349_v34  ;;  %v6178_v20 = vpop.f32.mrf.mxu3  ;;  %v5840_v13 = vadd.f32 %v5794_v14, %v5614_v2  ;;  %v6066_v17 = vmul.f32 %v10929_v43, %v14173_v4  ;;  %v5391_v2 = vadd.f32 %v5350_v10, %v13986_v24 }
 0x8dd   : > { %10934 = vpow2.f32 %v5962_v29  ;;  %v14213_v63 = vadd.f32 %v14180_v60, %v6178_v20 }
 0x8de   : > { %10936 = vrcp.f32 %v6003_v36  ;;  %v14219_v44 = vadd.f32 %v14016_v23, %v5840_v13  ;;  %v5578_v27 = vpop.f32.mrf.mxu0  ;;  %v5617_v13 = vadd.f32 %v5576_v49, %v5391_v2 }
 0x8df   : > { %v6255_v40 = vsub.f32 0.0, %v14213_v63 }
 0x8e0   : > { %v5909_v0 = vsub.f32 0.0, %v14219_v44 }
 0x8e1   : > { %v10931_v11 = vpop.eup %10930  ;;  %v6289_v38 = vmul.f32 1.442695, %v6255_v40 }
 0x8e2   : > { %v10933_v22 = vpop.eup %10932  ;;  %v6350_v35 = vadd.f32 1.0, %v10931_v11  ;;  %v5964_v12 = vmul.f32 1.442695, %v5909_v0  ;;  %v5166_v11 = vadd.f32 %v13989_v5, %v13992_v19  ;;  %v5355_v10 = vpop.f32.mrf.mxu1 }
 0x8e3   : > { %v10935_v21 = vpop.eup %10934  ;;  %v6413_v8 = vmul.f32 %v10933_v22, %v14183_v3  ;;  %10938 = vpow2.f32 %v6289_v38  ;;  %v5797_v52 = vpop.f32.mrf.mxu2 }
 0x8e4   : > { %v10937_v47 = vpop.eup %10936  ;;  %10940 = vrcp.f32 %v6350_v35  ;;  %v6180_v54 = vpop.f32.mrf.mxu3  ;;  %v5841_v41 = vadd.f32 %v5797_v52, %v5615_v7  ;;  %v6004_v15 = vadd.f32 1.0, %v10935_v21  ;;  %v5392_v49 = vadd.f32 %v5352_v26, %v5166_v11 }
 0x8e5   : > { %v6067_v48 = vmul.f32 %v10937_v47, %v14186_v62  ;;  %6445 = vst.msk [vmem:[#allocation2 + $0x28] sm:$0xff] %vm810_vm2, %v6413_v8  ;;  %10942 = vpow2.f32 %v5964_v12  ;;  %v14232_v3 = vadd.f32 %v14180_v60, %v6180_v54 }
 0x8e6   : > { %v14235_v59 = vadd.f32 %v14016_v23, %v5841_v41  ;;  %10944 = vrcp.f32 %v6004_v15 }
 0x8e7   : > { %v6256_v28 = vsub.f32 0.0, %v14232_v3  ;;  %v6093_v16 = vpack.c.bf16 %v6067_v48, %v6066_v17  ;;  %v5581_v48 = vpop.f32.mrf.mxu0 }
 0x8e8   : > { %v5910_v32 = vsub.f32 0.0, %v14235_v59 }
 0x8e9   : > { %v10939_v4 = vpop.eup %10938  ;;  %v6291_v30 = vmul.f32 1.442695, %v6256_v28  ;;  %9958 = vmatmul.msk.bf16.gmra.mxu3 %vm919_vm1, %v6093_v16 }
 0x8ea   : > { %v10941_v62 = vpop.eup %10940  ;;  %v6351_v1 = vadd.f32 1.0, %v10939_v4  ;;  %v5966_v25 = vmul.f32 1.442695, %v5910_v32  ;;  %v5618_v4 = vadd.f32 %v5578_v27, %v5392_v49  ;;  %v5357_v2 = vpop.f32.mrf.mxu1 }
 0x8eb   : > { %v10943_v42 = vpop.eup %10942  ;;  %v6414_v53 = vmul.f32 %v10941_v62, %v14198_v37  ;;  %10946 = vpow2.f32 %v6291_v30  ;;  %v5799_v9 = vpop.f32.mrf.mxu2 }
 0x8ec   : > { %v6005_v61 = vadd.f32 1.0, %v10943_v42  ;;  %10948 = vrcp.f32 %v6351_v1  ;;  %v6183_v56 = vpop.f32.mrf.mxu3  ;;  %v5842_v31 = vadd.f32 %v5799_v9, %v5616_v55  ;;  %v10945_v18 = vpop.eup %10944  ;;  %v6530_v8 = vld [vmem:[#allocation2 + $0x28] sm:$0xff] }
 0x8ed   : > { %6446 = vst.msk [vmem:[#allocation2 + $0x30] sm:$0xff] %vm810_vm2, %v6414_v53  ;;  %10950 = vpow2.f32 %v5966_v25  ;;  %v14243_v50 = vadd.f32 %v14180_v60, %v6183_v56  ;;  %v6068_v39 = vmul.f32 %v10945_v18, %v14204_v51  ;;  %v6479_v12 = vld [vmem:[#allocation2 + $0x27] sm:$0xff]  ;;  %v14280_v53 = vld [vmem:[%s15499_s6 + $0x1] ss:$0 sm:$0xff]  ;;  %v15758_v56 = vld [vmem:[#allocation60_spill] sm:$0xff] }
 0x8ee   : > { %10952 = vrcp.f32 %v6005_v61  ;;  %v14246_v34 = vadd.f32 %v14016_v23, %v5842_v31  ;;  %v5393_v31 = vadd.f32 %v5355_v10, %v15758_v56 }
 0x8ef   : > { %v6257_v37 = vsub.f32 0.0, %v14243_v50 }
 0x8f0   : > { %v5911_v46 = vsub.f32 0.0, %v14246_v34 }
 0x8f1   : > { %v10947_v33 = vpop.eup %10946  ;;  %v6293_v29 = vmul.f32 1.442695, %v6257_v37 }
 0x8f2   : > { %v10949_v36 = vpop.eup %10948  ;;  %v6352_v14 = vadd.f32 1.0, %v10947_v33  ;;  %v5968_v40 = vmul.f32 1.442695, %v5911_v46  ;;  %v5619_v46 = vadd.f32 %v5581_v48, %v5393_v31 }
 0x8f3   : > { %v10951_v20 = vpop.eup %10950  ;;  %v6415_v58 = vmul.f32 %v10949_v36, %v14213_v63  ;;  %10954 = vpow2.f32 %v6293_v29  ;;  %v5802_v0 = vpop.f32.mrf.mxu2 }
 0x8f4   : > { %v10953_v43 = vpop.eup %10952  ;;  %10956 = vrcp.f32 %v6352_v14  ;;  %v6185_v24 = vpop.f32.mrf.mxu3  ;;  %v6531_v38 = vld [vmem:[#allocation2 + $0x30] sm:$0xff]  ;;  %v5843_v63 = vadd.f32 %v5802_v0, %v5617_v13  ;;  %v6006_v19 = vadd.f32 1.0, %v10951_v20  ;;  %v15759_v13 = vld [vmem:[#allocation63_spill] sm:$0xff] }
 0x8f5   : > { %v6480_v22 = vld [vmem:[#allocation2 + $0x2f] sm:$0xff]  ;;  %v6069_v21 = vmul.f32 %v10953_v43, %v14219_v44  ;;  %6447 = vst.msk [vmem:[#allocation2 + $0x48] sm:$0xff] %vm810_vm2, %v6415_v58  ;;  %10958 = vpow2.f32 %v5968_v40  ;;  %v14258_v7 = vadd.f32 %v14180_v60, %v6185_v24  ;;  %v6564_v51 = vpack.c.bf16 %v6531_v38, %v6530_v8  ;;  %v5583_v29 = vpop.f32.mrf.mxu0 }
 0x8f6   : > { %v6867_v35 = vld [vmem:[#allocation2 + $0x29] sm:$0xff]  ;;  %v6868_v5 = vld [vmem:[#allocation2 + $0x31] sm:$0xff]  ;;  %v14260_v47 = vpack.c.bf16 %v6480_v22, %v6479_v12  ;;  %v14263_v17 = vadd.f32 %v14016_v23, %v5843_v63  ;;  %10960 = vrcp.f32 %v6006_v19 }
 0x8f7   : > { %v6901_v6 = vpack.c.bf16 %v6868_v5, %v6867_v35  ;;  %v6258_v44 = vsub.f32 0.0, %v14258_v7  ;;  %v6094_v52 = vpack.c.bf16 %v6069_v21, %v6068_v39  ;;  %9973 = vmatmul.msk.bf16.gmra.mxu1 %vm810_vm2, %v6564_v51  ;;  %v15760_v58 = vld [vmem:[#allocation12_spill] sm:$0xff] }
 0x8f8   : > { %9993 = vmatmul.msk.bf16.gmra.mxu0 %vm810_vm2, %v14260_v47  ;;  %v5912_v41 = vsub.f32 0.0, %v14263_v17  ;;  %v5168_v40 = vadd.f32 %v15760_v58, %v15759_v13 }
 0x8f9   : > { %v10955_v54 = vpop.eup %10954  ;;  %v6295_v15 = vmul.f32 1.442695, %v6258_v44  ;;  %10015 = vmatmul.msk.bf16.gmra.mxu2 %vm810_vm2, %v6901_v6  ;;  %9959 = vmatmul.msk.bf16.gmra.mxu3 %vm919_vm1, %v6094_v52 }
 0x8fa   : > { %v10957_v23 = vpop.eup %10956  ;;  %v6353_v28 = vadd.f32 1.0, %v10955_v54  ;;  %v5970_v32 = vmul.f32 1.442695, %v5912_v41  ;;  %v5394_v52 = vadd.f32 %v5357_v2, %v5168_v40 }
 0x8fb   : > { %v10959_v16 = vpop.eup %10958  ;;  %v6416_v45 = vmul.f32 %v10957_v23, %v14232_v3  ;;  %10962 = vpow2.f32 %v6295_v15  ;;  %v5804_v62 = vpop.f32.mrf.mxu2 }
 0x8fc   : > { %v6007_v30 = vadd.f32 1.0, %v10959_v16  ;;  %10964 = vrcp.f32 %v6353_v28  ;;  %v6188_v1 = vpop.f32.mrf.mxu3  ;;  %v5844_v42 = vadd.f32 %v5804_v62, %v5618_v4  ;;  %v10961_v61 = vpop.eup %10960  ;;  %v6532_v21 = vld [vmem:[#allocation2 + $0x48] sm:$0xff]  ;;  %v5620_v23 = vadd.f32 %v5583_v29, %v5394_v52 }
 0x8fd   : > { %6448 = vst.msk [vmem:[#allocation2 + $0x50] sm:$0xff] %vm810_vm2, %v6416_v45  ;;  %10966 = vpow2.f32 %v5970_v32  ;;  %v14275_v55 = vadd.f32 %v14180_v60, %v6188_v1  ;;  %v6070_v43 = vmul.f32 %v10961_v61, %v14235_v59  ;;  %v6481_v63 = vld [vmem:[#allocation2 + $0x47] sm:$0xff]  ;;  %v5360_v15 = vpop.f32.mrf.mxu1  ;;  %v5586_v1 = vpop.f32.mrf.mxu0 }
 0x8fe   : > { %10968 = vrcp.f32 %v6007_v30  ;;  %v14283_v3 = vadd.f32 %v14280_v53, %v5844_v42 }
 0x8ff   : > { %v6259_v25 = vsub.f32 0.0, %v14275_v55 }
 0x900   : > { %v5913_v26 = vsub.f32 0.0, %v14283_v3 }
 0x901   : > { %v10963_v9 = vpop.eup %10962  ;;  %v6297_v27 = vmul.f32 1.442695, %v6259_v25 }
 0x902   : > { %v10965_v37 = vpop.eup %10964  ;;  %v6354_v18 = vadd.f32 1.0, %v10963_v9  ;;  %v5972_v14 = vmul.f32 1.442695, %v5913_v26  ;;  %v15761_v9 = vld [vmem:[#allocation14_spill] sm:$0xff] }
 0x903   : > { %v10967_v33 = vpop.eup %10966  ;;  %v6417_v36 = vmul.f32 %v10965_v37, %v14243_v50  ;;  %10970 = vpow2.f32 %v6297_v27  ;;  %v5807_v11 = vpop.f32.mrf.mxu2  ;;  %v5395_v56 = vadd.f32 %v5360_v15, %v15761_v9 }
 0x904   : > { %v10969_v20 = vpop.eup %10968  ;;  %10972 = vrcp.f32 %v6354_v18  ;;  %v6190_v39 = vpop.f32.mrf.mxu3  ;;  %v6533_v0 = vld [vmem:[#allocation2 + $0x50] sm:$0xff]  ;;  %v5845_v50 = vadd.f32 %v5807_v11, %v5619_v46  ;;  %v6008_v12 = vadd.f32 1.0, %v10967_v33 }
 0x905   : > { %v6482_v24 = vld [vmem:[#allocation2 + $0x4f] sm:$0xff]  ;;  %v6071_v22 = vmul.f32 %v10969_v20, %v14246_v34  ;;  %6449 = vst.msk [vmem:[#allocation2 + $0x68] sm:$0xff] %vm810_vm2, %v6417_v36  ;;  %10974 = vpow2.f32 %v5972_v14  ;;  %v14295_v35 = vadd.f32 %v14180_v60, %v6190_v39  ;;  %v6565_v59 = vpack.c.bf16 %v6533_v0, %v6532_v21 }
 0x906   : > { %v6869_v38 = vld [vmem:[#allocation2 + $0x49] sm:$0xff]  ;;  %v6870_v8 = vld [vmem:[#allocation2 + $0x51] sm:$0xff]  ;;  %v14297_v5 = vpack.c.bf16 %v6482_v24, %v6481_v63  ;;  %v14300_v51 = vadd.f32 %v14280_v53, %v5845_v50  ;;  %10976 = vrcp.f32 %v6008_v12  ;;  %v5621_v33 = vadd.f32 %v5586_v1, %v5395_v56 }
 0x907   : > { %v6902_v19 = vpack.c.bf16 %v6870_v8, %v6869_v38  ;;  %v6260_v34 = vsub.f32 0.0, %v14295_v35  ;;  %v6095_v6 = vpack.c.bf16 %v6071_v22, %v6070_v43  ;;  %9974 = vmatmul.msk.bf16.gmra.mxu1 %vm810_vm2, %v6565_v59  ;;  %v15762_v36 = vld [vmem:[#allocation67_spill] sm:$0xff]  ;;  %v5362_v22 = vpop.f32.mrf.mxu1  ;;  %v5588_v59 = vpop.f32.mrf.mxu0 }
 0x908   : > { %9994 = vmatmul.msk.bf16.gmra.mxu0 %vm810_vm2, %v14297_v5  ;;  %v5914_v54 = vsub.f32 0.0, %v14300_v51  ;;  %v5170_v14 = vadd.f32 %v14168_v57, %v15762_v36 }
 0x909   : > { %v10971_v44 = vpop.eup %10970  ;;  %v6299_v10 = vmul.f32 1.442695, %v6260_v34  ;;  %10016 = vmatmul.msk.bf16.gmra.mxu2 %vm810_vm2, %v6902_v19  ;;  %9960 = vmatmul.msk.bf16.gmra.mxu3 %vm919_vm1, %v6095_v6 }
 0x90a   : > { %v10973_v49 = vpop.eup %10972  ;;  %v6355_v48 = vadd.f32 1.0, %v10971_v44  ;;  %v5974_v16 = vmul.f32 1.442695, %v5914_v54  ;;  %v5396_v34 = vadd.f32 %v5362_v22, %v5170_v14 }
 0x90b   : > { %v10975_v41 = vpop.eup %10974  ;;  %v6418_v28 = vmul.f32 %v10973_v49, %v14258_v7  ;;  %10978 = vpow2.f32 %v6299_v10  ;;  %v5809_v45 = vpop.f32.mrf.mxu2 }
 0x90c   : > { %v6009_v4 = vadd.f32 1.0, %v10975_v41  ;;  %10980 = vrcp.f32 %v6355_v48  ;;  %v6193_v32 = vpop.f32.mrf.mxu3  ;;  %v5846_v30 = vadd.f32 %v5809_v45, %v5620_v23  ;;  %v10977_v25 = vpop.eup %10976  ;;  %v6534_v24 = vld [vmem:[#allocation2 + $0x68] sm:$0xff]  ;;  %v5622_v49 = vadd.f32 %v5588_v59, %v5396_v34 }
 0x90d   : > { %6450 = vst.msk [vmem:[#allocation2 + $0x70] sm:$0xff] %vm810_vm2, %v6418_v28  ;;  %10982 = vpow2.f32 %v5974_v16  ;;  %v14312_v62 = vadd.f32 %v14180_v60, %v6193_v32  ;;  %v6072_v20 = vmul.f32 %v10977_v25, %v14263_v17  ;;  %v6483_v38 = vld [vmem:[#allocation2 + $0x67] sm:$0xff] }
 0x90e   : > { %10984 = vrcp.f32 %v6009_v4  ;;  %v14315_v42 = vadd.f32 %v14280_v53, %v5846_v30 }
 0x90f   : > { %v6261_v7 = vsub.f32 0.0, %v14312_v62 }
 0x910   : > { %v5915_v31 = vsub.f32 0.0, %v14315_v42 }
 0x911   : > { %v10979_v61 = vpop.eup %10978  ;;  %v6301_v26 = vmul.f32 1.442695, %v6261_v7 }
 0x912   : > { %v10981_v27 = vpop.eup %10980  ;;  %v6356_v37 = vadd.f32 1.0, %v10979_v61  ;;  %v5976_v46 = vmul.f32 1.442695, %v5915_v31 }
 0x913   : > { %v10983_v18 = vpop.eup %10982  ;;  %v6419_v2 = vmul.f32 %v10981_v27, %v14275_v55  ;;  %10986 = vpow2.f32 %v6301_v26  ;;  %v5812_v13 = vpop.f32.mrf.mxu2 }
 0x914   : > { %v10985_v29 = vpop.eup %10984  ;;  %10988 = vrcp.f32 %v6356_v37  ;;  %v6195_v58 = vpop.f32.mrf.mxu3  ;;  %v6535_v40 = vld [vmem:[#allocation2 + $0x70] sm:$0xff]  ;;  %v5847_v55 = vadd.f32 %v5812_v13, %v5621_v33  ;;  %v6010_v17 = vadd.f32 1.0, %v10983_v18 }
 0x915   : > { %v6484_v43 = vld [vmem:[#allocation2 + $0x6f] sm:$0xff]  ;;  %v6073_v39 = vmul.f32 %v10985_v29, %v14283_v3  ;;  %6451 = vst.msk [vmem:[#allocation2 + $0x88] sm:$0xff] %vm810_vm2, %v6419_v2  ;;  %10990 = vpow2.f32 %v5976_v46  ;;  %v14327_v0 = vadd.f32 %v14180_v60, %v6195_v58  ;;  %v6566_v50 = vpack.c.bf16 %v6535_v40, %v6534_v24 }
 0x916   : > { %v6871_v11 = vld [vmem:[#allocation2 + $0x69] sm:$0xff]  ;;  %v6872_v57 = vld [vmem:[#allocation2 + $0x71] sm:$0xff]  ;;  %v14329_v21 = vpack.c.bf16 %v6484_v43, %v6483_v38  ;;  %v14332_v8 = vadd.f32 %v14280_v53, %v5847_v55  ;;  %10992 = vrcp.f32 %v6010_v17 }
 0x917   : > { %v6903_v63 = vpack.c.bf16 %v6872_v57, %v6871_v11  ;;  %v6262_v3 = vsub.f32 0.0, %v14327_v0  ;;  %v6096_v12 = vpack.c.bf16 %v6073_v39, %v6072_v20  ;;  %9975 = vmatmul.msk.bf16.gmra.mxu1 %vm810_vm2, %v6566_v50 }
 0x918   : > { %9995 = vmatmul.msk.bf16.gmra.mxu0 %vm810_vm2, %v14329_v21  ;;  %v5916_v6 = vsub.f32 0.0, %v14332_v8 }
 0x919   : > { %v10987_v19 = vpop.eup %10986  ;;  %v6303_v44 = vmul.f32 1.442695, %v6262_v3  ;;  %10017 = vmatmul.msk.bf16.gmra.mxu2 %vm810_vm2, %v6903_v63  ;;  %9961 = vmatmul.msk.bf16.gmra.mxu3 %vm919_vm1, %v6096_v12 }
 0x91a   : > { %v10989_v52 = vpop.eup %10988  ;;  %v6357_v54 = vadd.f32 1.0, %v10987_v19  ;;  %v5978_v41 = vmul.f32 1.442695, %v5916_v6 }
 0x91b   : > { %v10991_v10 = vpop.eup %10990  ;;  %v6420_v48 = vmul.f32 %v10989_v52, %v14295_v35  ;;  %10994 = vpow2.f32 %v6303_v44  ;;  %v5814_v23 = vpop.f32.mrf.mxu2 }
 0x91c   : > { %v6011_v15 = vadd.f32 1.0, %v10991_v10  ;;  %10996 = vrcp.f32 %v6357_v54  ;;  %v6198_v28 = vpop.f32.mrf.mxu3  ;;  %v5848_v16 = vadd.f32 %v5814_v23, %v5622_v49  ;;  %v10993_v30 = vpop.eup %10992  ;;  %v6536_v26 = vld [vmem:[#allocation2 + $0x88] sm:$0xff] }
 0x91d   : > { %6452 = vst.msk [vmem:[#allocation2 + $0x90] sm:$0xff] %vm810_vm2, %v6420_v48  ;;  %10998 = vpow2.f32 %v5978_v41  ;;  %v6199_v4 = vadd.f32 %v14180_v60, %v6198_v28  ;;  %v6074_v37 = vmul.f32 %v10993_v30, %v14300_v51 }
 0x91e   : > { %11000 = vrcp.f32 %v6011_v15  ;;  %v14345_v45 = vadd.f32 %v14280_v53, %v5848_v16 }
 0x91f   : > { %v6263_v32 = vsub.f32 0.0, %v6199_v4 }
 0x920   : > { %v5917_v35 = vsub.f32 0.0, %v14345_v45 }
 0x921   : > { %v10995_v1 = vpop.eup %10994  ;;  %v6305_v7 = vmul.f32 1.442695, %v6263_v32 }
 0x922   : > { %v10997_v25 = vpop.eup %10996  ;;  %v6358_v61 = vadd.f32 1.0, %v10995_v1  ;;  %v5980_v31 = vmul.f32 1.442695, %v5917_v35 }
 0x923   : > { %v10999_v9 = vpop.eup %10998  ;;  %v6421_v56 = vmul.f32 %v10997_v25, %v14312_v62  ;;  %11002 = vpow2.f32 %v6305_v7  ;;  %v6485_v62 = vld [vmem:[#allocation2 + $0x87] sm:$0xff] }
 0x924   : > { %v11001_v27 = vpop.eup %11000  ;;  %11004 = vrcp.f32 %v6358_v61  ;;  %v6200_v53 = vpop.f32.mrf.mxu3  ;;  %v6537_v18 = vld [vmem:[#allocation2 + $0x90] sm:$0xff]  ;;  %v6012_v20 = vadd.f32 1.0, %v10999_v9 }
 0x925   : > { %v6486_v33 = vld [vmem:[#allocation2 + $0x8f] sm:$0xff]  ;;  %v6075_v46 = vmul.f32 %v11001_v27, %v14315_v42  ;;  %6453 = vst.msk [vmem:[#allocation2 + $0xa8] sm:$0xff] %vm810_vm2, %v6421_v56  ;;  %11006 = vpow2.f32 %v5980_v31  ;;  %v6201_v29 = vadd.f32 %v14180_v60, %v6200_v53  ;;  %v6567_v36 = vpack.c.bf16 %v6537_v18, %v6536_v26 }
 0x926   : > { %v6873_v2 = vld [vmem:[#allocation2 + $0x89] sm:$0xff]  ;;  %v6874_v14 = vld [vmem:[#allocation2 + $0x91] sm:$0xff]  ;;  %v14353_v13 = vpack.c.bf16 %v6486_v33, %v6485_v62  ;;  %11008 = vrcp.f32 %v6012_v20 }
 0x927   : > { %v6904_v58 = vpack.c.bf16 %v6874_v14, %v6873_v2  ;;  %v6264_v51 = vsub.f32 0.0, %v6201_v29  ;;  %v6097_v40 = vpack.c.bf16 %v6075_v46, %v6074_v37  ;;  %9976 = vmatmul.msk.bf16.gmra.mxu1 %vm810_vm2, %v6567_v36 }
 0x928   : > { %9996 = vmatmul.msk.bf16.gmra.mxu0 %vm810_vm2, %v14353_v13 }
 0x929   : > { %v11003_v42 = vpop.eup %11002  ;;  %v6307_v43 = vmul.f32 1.442695, %v6264_v51  ;;  %10018 = vmatmul.msk.bf16.gmra.mxu2 %vm810_vm2, %v6904_v58  ;;  %9962 = vmatmul.msk.bf16.gmra.mxu3 %vm919_vm1, %v6097_v40 }
 0x92a   : > { %v11005_v11 = vpop.eup %11004  ;;  %v6359_v39 = vadd.f32 1.0, %v11003_v42 }
 0x92b   : > { %v11007_v55 = vpop.eup %11006  ;;  %v6422_v24 = vmul.f32 %v11005_v11, %v14327_v0  ;;  %11010 = vpow2.f32 %v6307_v43 }
 0x92c   : > { %v6013_v38 = vadd.f32 1.0, %v11007_v55  ;;  %11012 = vrcp.f32 %v6359_v39  ;;  %v6203_v57 = vpop.f32.mrf.mxu3  ;;  %v11009_v50 = vpop.eup %11008  ;;  %v6538_v34 = vld [vmem:[#allocation2 + $0xa8] sm:$0xff] }
 0x92d   : > { %6454 = vst.msk [vmem:[#allocation2 + $0xb0] sm:$0xff] %vm810_vm2, %v6422_v24  ;;  %v6204_v22 = vadd.f32 %v14180_v60, %v6203_v57  ;;  %v6487_v6 = vld [vmem:[#allocation2 + $0xa7] sm:$0xff]  ;;  %v6076_v44 = vmul.f32 %v11009_v50, %v14332_v8 }
 0x92e   : > { %11014 = vrcp.f32 %v6013_v38 }
 0x92f   : > { %v6265_v17 = vsub.f32 0.0, %v6204_v22 }
 0x931   : > { %v11011_v63 = vpop.eup %11010  ;;  %v6309_v3 = vmul.f32 1.442695, %v6265_v17 }
 0x932   : > { %v11013_v12 = vpop.eup %11012  ;;  %v6360_v59 = vadd.f32 1.0, %v11011_v63 }
 0x933   : > { %v6423_v19 = vmul.f32 %v11013_v12, %v6199_v4  ;;  %11016 = vpow2.f32 %v6309_v3 }
 0x934   : > { %v11015_v0 = vpop.eup %11014  ;;  %11018 = vrcp.f32 %v6360_v59  ;;  %v6205_v52 = vpop.f32.mrf.mxu3  ;;  %v6539_v54 = vld [vmem:[#allocation2 + $0xb0] sm:$0xff] }
 0x935   : > { %v6488_v10 = vld [vmem:[#allocation2 + $0xaf] sm:$0xff]  ;;  %v6077_v48 = vmul.f32 %v11015_v0, %v14345_v45  ;;  %6455 = vst.msk [vmem:[#allocation2 + $0xc8] sm:$0xff] %vm810_vm2, %v6423_v19  ;;  %v6206_v41 = vadd.f32 %v14180_v60, %v6205_v52  ;;  %v6568_v15 = vpack.c.bf16 %v6539_v54, %v6538_v34 }
 0x936   : > { %v6875_v49 = vld [vmem:[#allocation2 + $0xa9] sm:$0xff]  ;;  %v14367_v23 = vpack.c.bf16 %v6488_v10, %v6487_v6  ;;  %v6876_v28 = vld [vmem:[#allocation2 + $0xb1] sm:$0xff] }
 0x937   : > { %v6905_v16 = vpack.c.bf16 %v6876_v28, %v6875_v49  ;;  %v6266_v4 = vsub.f32 0.0, %v6206_v41  ;;  %v6098_v32 = vpack.c.bf16 %v6077_v48, %v6076_v44  ;;  %9977 = vmatmul.msk.bf16.gmra.mxu1 %vm810_vm2, %v6568_v15 }
 0x938   : > { %9997 = vmatmul.msk.bf16.gmra.mxu0 %vm810_vm2, %v14367_v23 }
 0x939   : > { %v11017_v8 = vpop.eup %11016  ;;  %v6311_v30 = vmul.f32 1.442695, %v6266_v4  ;;  %10019 = vmatmul.msk.bf16.gmra.mxu2 %vm810_vm2, %v6905_v16  ;;  %9963 = vmatmul.msk.bf16.gmra.mxu3 %vm919_vm1, %v6098_v32 }
 0x93a   : > { %v11019_v45 = vpop.eup %11018  ;;  %v6361_v1 = vadd.f32 1.0, %v11017_v8 }
 0x93b   : > { %v6424_v35 = vmul.f32 %v11019_v45, %v6201_v29  ;;  %11020 = vpow2.f32 %v6311_v30 }
 0x93c   : > { %11022 = vrcp.f32 %v6361_v1  ;;  %v6208_v7 = vpop.f32.mrf.mxu3  ;;  %v6540_v37 = vld [vmem:[#allocation2 + $0xc8] sm:$0xff] }
 0x93d   : > { %6456 = vst.msk [vmem:[#allocation2 + $0xd0] sm:$0xff] %vm810_vm2, %v6424_v35  ;;  %v6209_v25 = vadd.f32 %v14180_v60, %v6208_v7  ;;  %v6489_v53 = vld [vmem:[#allocation2 + $0xc7] sm:$0xff] }
 0x93e   : > { %v6642_v54 = vpop.f32.mrf.mxu1 }
 0x93f   : > { %v6267_v61 = vsub.f32 0.0, %v6209_v25 }
 0x941   : > { %v11021_v9 = vpop.eup %11020  ;;  %v6313_v56 = vmul.f32 1.442695, %v6267_v61 }
 0x942   : > { %v11023_v31 = vpop.eup %11022  ;;  %v6362_v26 = vadd.f32 1.0, %v11021_v9 }
 0x943   : > { %v6425_v27 = vmul.f32 %v11023_v31, %v6204_v22  ;;  %11024 = vpow2.f32 %v6313_v56  ;;  %v6785_v10 = vpop.f32.mrf.mxu0 }
 0x944   : > { %11026 = vrcp.f32 %v6362_v26  ;;  %v6210_v18 = vpop.f32.mrf.mxu3  ;;  %v6541_v33 = vld [vmem:[#allocation2 + $0xd0] sm:$0xff]  ;;  %v6786_v48 = vadd.f32 %v6785_v10, %v6642_v54 }
 0x945   : > { %v6490_v2 = vld [vmem:[#allocation2 + $0xcf] sm:$0xff]  ;;  %6457 = vst.msk [vmem:[#allocation2 + $0xe8] sm:$0xff] %vm810_vm2, %v6425_v27  ;;  %v6211_v29 = vadd.f32 %v14180_v60, %v6210_v18  ;;  %v6569_v36 = vpack.c.bf16 %v6541_v33, %v6540_v37 }
 0x946   : > { %v6877_v46 = vld [vmem:[#allocation2 + $0xc9] sm:$0xff]  ;;  %v14378_v62 = vpack.c.bf16 %v6490_v2, %v6489_v53  ;;  %v6878_v14 = vld [vmem:[#allocation2 + $0xd1] sm:$0xff] }
 0x947   : > { %v6906_v20 = vpack.c.bf16 %v6878_v14, %v6877_v46  ;;  %v6268_v58 = vsub.f32 0.0, %v6211_v29  ;;  %9978 = vmatmul.msk.bf16.gmra.mxu1 %vm810_vm2, %v6569_v36 }
 0x948   : > { %9998 = vmatmul.msk.bf16.gmra.mxu0 %vm810_vm2, %v14378_v62 }
 0x949   : > { %v11025_v51 = vpop.eup %11024  ;;  %v6315_v40 = vmul.f32 1.442695, %v6268_v58  ;;  %10020 = vmatmul.msk.bf16.gmra.mxu2 %vm810_vm2, %v6906_v20  ;;  %10036 = vmatmul.msk.bf16.vlgmr.msrb.gmra.mxu3 %vm810_vm2, %v14260_v47 }
 0x94a   : > { %v11027_v42 = vpop.eup %11026  ;;  %v6363_v43 = vadd.f32 1.0, %v11025_v51 }
 0x94b   : > { %v6426_v11 = vmul.f32 %v11027_v42, %v6206_v41  ;;  %11028 = vpow2.f32 %v6315_v40  ;;  %v6979_v41 = vpop.f32.mrf.mxu2  ;;  %v14413_v40 = vpop.f32.mrf.mxu1 }
 0x94c   : > { %11030 = vrcp.f32 %v6363_v43  ;;  %v6213_v39 = vpop.f32.mrf.mxu3  ;;  %v6542_v63 = vld [vmem:[#allocation2 + $0xe8] sm:$0xff]  ;;  %v14398_v16 = vadd.f32 %v6979_v41, %v6786_v48  ;;  %v14415_v42 = vpop.f32.mrf.mxu0  ;;  %v14420_v43 = vld [vmem:[%s15497_s4 + $0x2] ss:$0 sm:$0xff] }
 0x94d   : > { %6458 = vst.msk [vmem:[#allocation2 + $0xf0] sm:$0xff] %vm810_vm2, %v6426_v11  ;;  %v6214_v55 = vadd.f32 %v14180_v60, %v6213_v39  ;;  %v6491_v3 = vld [vmem:[#allocation2 + $0xe7] sm:$0xff] }
 0x94f   : > { %v6269_v24 = vsub.f32 0.0, %v6214_v55 }
 0x951   : > { %v11029_v38 = vpop.eup %11028  ;;  %v6317_v57 = vmul.f32 1.442695, %v6269_v24 }
 0x952   : > { %v11031_v22 = vpop.eup %11030  ;;  %v6364_v17 = vadd.f32 1.0, %v11029_v38 }
 0x953   : > { %v6427_v50 = vmul.f32 %v11031_v22, %v6209_v25  ;;  %11032 = vpow2.f32 %v6317_v57 }
 0x954   : > { %11034 = vrcp.f32 %v6364_v17  ;;  %v6215_v47 = vpop.f32.mrf.mxu3  ;;  %v6543_v12 = vld [vmem:[#allocation2 + $0xf0] sm:$0xff] }
 0x955   : > { %v6492_v59 = vld [vmem:[#allocation2 + $0xef] sm:$0xff]  ;;  %6459 = vst.msk [vmem:[#allocation2 + $0x108] sm:$0xff] %vm810_vm2, %v6427_v50  ;;  %v6216_v34 = vadd.f32 %v14180_v60, %v6215_v47  ;;  %v6570_v6 = vpack.c.bf16 %v6543_v12, %v6542_v63  ;;  %v14423_v50 = vpop.f32.mrf.mxu2 }
 0x956   : > { %v6879_v19 = vld [vmem:[#allocation2 + $0xe9] sm:$0xff]  ;;  %v14390_v0 = vpack.c.bf16 %v6492_v59, %v6491_v3  ;;  %v6880_v44 = vld [vmem:[#allocation2 + $0xf1] sm:$0xff] }
 0x957   : > { %v6907_v52 = vpack.c.bf16 %v6880_v44, %v6879_v19  ;;  %v6270_v49 = vsub.f32 0.0, %v6216_v34  ;;  %9979 = vmatmul.msk.bf16.gmra.mxu1 %vm810_vm2, %v6570_v6 }
 0x958   : > { %9999 = vmatmul.msk.bf16.gmra.mxu0 %vm810_vm2, %v14390_v0 }
 0x959   : > { %v11033_v15 = vpop.eup %11032  ;;  %v6319_v28 = vmul.f32 1.442695, %v6270_v49  ;;  %10021 = vmatmul.msk.bf16.gmra.mxu2 %vm810_vm2, %v6907_v52  ;;  %10037 = vmatmul.msk.bf16.gmra.mxu3 %vm810_vm2, %v14297_v5 }
 0x95a   : > { %v11035_v4 = vpop.eup %11034  ;;  %v6365_v32 = vadd.f32 1.0, %v11033_v15 }
 0x95b   : > { %v6428_v8 = vmul.f32 %v11035_v4, %v6211_v29  ;;  %11036 = vpow2.f32 %v6319_v28 }
 0x95c   : > { %11038 = vrcp.f32 %v6365_v32  ;;  %v6218_v30 = vpop.f32.mrf.mxu3  ;;  %v6544_v5 = vld [vmem:[#allocation2 + $0x108] sm:$0xff] }
 0x95d   : > { %6460 = vst.msk [vmem:[#allocation2 + $0x110] sm:$0xff] %vm810_vm2, %v6428_v8  ;;  %v6219_v45 = vadd.f32 %v14180_v60, %v6218_v30  ;;  %v6493_v56 = vld [vmem:[#allocation2 + $0x107] sm:$0xff] }
 0x95f   : > { %v6271_v1 = vsub.f32 0.0, %v6219_v45 }
 0x961   : > { %v11037_v35 = vpop.eup %11036  ;;  %v6321_v7 = vmul.f32 1.442695, %v6271_v1 }
 0x962   : > { %v11039_v25 = vpop.eup %11038  ;;  %v6366_v61 = vadd.f32 1.0, %v11037_v35 }
 0x963   : > { %v6429_v9 = vmul.f32 %v11039_v25, %v6214_v55  ;;  %11040 = vpow2.f32 %v6321_v7  ;;  %v10267_v7 = vld [vmem:[%s15498_s5 + $0xc0] sm:$0xff] }
 0x964   : > { %11042 = vrcp.f32 %v6366_v61  ;;  %v6220_v31 = vpop.f32.mrf.mxu3  ;;  %v6545_v26 = vld [vmem:[#allocation2 + $0x110] sm:$0xff]  ;;  %7881 = vmatpush.bf16.msrb.mxu2 %v10267_v7 }
 0x965   : > { %v6494_v27 = vld [vmem:[#allocation2 + $0x10f] sm:$0xff]  ;;  %6461 = vst.msk [vmem:[#allocation2 + $0x128] sm:$0xff] %vm810_vm2, %v6429_v9  ;;  %v6221_v53 = vadd.f32 %v14180_v60, %v6220_v31  ;;  %v6571_v18 = vpack.c.bf16 %v6545_v26, %v6544_v5 }
 0x966   : > { %v6881_v37 = vld [vmem:[#allocation2 + $0x109] sm:$0xff]  ;;  %v14404_v33 = vpack.c.bf16 %v6494_v27, %v6493_v56  ;;  %v6882_v2 = vld [vmem:[#allocation2 + $0x111] sm:$0xff] }
 0x967   : > { %v6908_v46 = vpack.c.bf16 %v6882_v2, %v6881_v37  ;;  %v6272_v29 = vsub.f32 0.0, %v6221_v53  ;;  %9980 = vmatmul.msk.bf16.gmra.mxu1 %vm810_vm2, %v6571_v18 }
 0x968   : > { %10000 = vmatmul.msk.bf16.gmra.mxu0 %vm810_vm2, %v14404_v33 }
 0x969   : > { %v11041_v36 = vpop.eup %11040  ;;  %v6323_v14 = vmul.f32 1.442695, %v6272_v29  ;;  %10022 = vmatmul.msk.bf16.gmra.mxu2 %vm810_vm2, %v6908_v46  ;;  %10038 = vmatmul.msk.bf16.gmra.mxu3 %vm810_vm2, %v14329_v21 }
 0x96a   : > { %v11043_v20 = vpop.eup %11042  ;;  %v6367_v60 = vadd.f32 1.0, %v11041_v36 }
 0x96b   : > { %v6430_v58 = vmul.f32 %v11043_v20, %v6216_v34  ;;  %11044 = vpow2.f32 %v6323_v14 }
 0x96c   : > { %11046 = vrcp.f32 %v6367_v60  ;;  %v6223_v51 = vpop.f32.mrf.mxu3  ;;  %v6546_v22 = vld [vmem:[#allocation2 + $0x128] sm:$0xff] }
 0x96d   : > { %6462 = vst.msk [vmem:[#allocation2 + $0x130] sm:$0xff] %vm810_vm2, %v6430_v58  ;;  %v6224_v11 = vadd.f32 %v14420_v43, %v6223_v51  ;;  %v6495_v17 = vld [vmem:[#allocation2 + $0x127] sm:$0xff] }
 0x96f   : > { %v6273_v21 = vsub.f32 0.0, %v6224_v11 }
 0x971   : > { %v11045_v39 = vpop.eup %11044  ;;  %v6325_v55 = vmul.f32 1.442695, %v6273_v21 }
 0x972   : > { %v11047_v24 = vpop.eup %11046  ;;  %v6368_v38 = vadd.f32 1.0, %v11045_v39 }
 0x973   : > { %v6431_v57 = vmul.f32 %v11047_v24, %v6219_v45  ;;  %11048 = vpow2.f32 %v6325_v55 }
 0x974   : > { %11050 = vrcp.f32 %v6368_v38  ;;  %v6225_v63 = vpop.f32.mrf.mxu3  ;;  %v6547_v3 = vld [vmem:[#allocation2 + $0x130] sm:$0xff]  ;;  %v6647_v19 = vpop.f32.mrf.mxu1 }
 0x975   : > { %v6496_v47 = vld [vmem:[#allocation2 + $0x12f] sm:$0xff]  ;;  %6463 = vst.msk [vmem:[#allocation2 + $0x148] sm:$0xff] %vm810_vm2, %v6431_v57  ;;  %v14427_v59 = vadd.f32 %v14420_v43, %v6225_v63  ;;  %v6790_v34 = vpop.f32.mrf.mxu0  ;;  %v6572_v6 = vpack.c.bf16 %v6547_v3, %v6546_v22 }
 0x976   : > { %v6883_v12 = vld [vmem:[#allocation2 + $0x129] sm:$0xff]  ;;  %v14429_v44 = vpack.c.bf16 %v6496_v47, %v6495_v17  ;;  %v6884_v52 = vld [vmem:[#allocation2 + $0x131] sm:$0xff]  ;;  %v6791_v54 = vadd.f32 %v6790_v34, %v6647_v19 }
 0x977   : > { %v6909_v10 = vpack.c.bf16 %v6884_v52, %v6883_v12  ;;  %v6274_v49 = vsub.f32 0.0, %v14427_v59  ;;  %9981 = vmatmul.msk.bf16.gmra.mxu1 %vm810_vm2, %v6572_v6 }
 0x978   : > { %10001 = vmatmul.msk.bf16.gmra.mxu0 %vm810_vm2, %v14429_v44 }
 0x979   : > { %v11049_v48 = vpop.eup %11048  ;;  %v6327_v41 = vmul.f32 1.442695, %v6274_v49  ;;  %10023 = vmatmul.msk.bf16.gmra.mxu2 %vm810_vm2, %v6909_v10  ;;  %10039 = vmatmul.msk.bf16.gmra.mxu3 %vm810_vm2, %v14353_v13 }
 0x97a   : > { %v11051_v15 = vpop.eup %11050  ;;  %v6369_v28 = vadd.f32 1.0, %v11049_v48 }
 0x97b   : > { %v6432_v4 = vmul.f32 %v11051_v15, %v6221_v53  ;;  %11052 = vpow2.f32 %v6327_v41 }
 0x97c   : > { %11054 = vrcp.f32 %v6369_v28  ;;  %v6984_v32 = vpop.f32.mrf.mxu2  ;;  %v6228_v8 = vpop.f32.mrf.mxu3  ;;  %v6548_v26 = vld [vmem:[#allocation2 + $0x148] sm:$0xff] }
 0x97d   : > { %6464 = vst.msk [vmem:[#allocation2 + $0x150] sm:$0xff] %vm810_vm2, %v6432_v4  ;;  %v14439_v30 = vadd.f32 %v6984_v32, %v6791_v54  ;;  %v6229_v45 = vadd.f32 %v14420_v43, %v6228_v8  ;;  %v6649_v1 = vpop.f32.mrf.mxu1  ;;  %v6792_v35 = vpop.f32.mrf.mxu0  ;;  %v6497_v27 = vld [vmem:[#allocation2 + $0x147] sm:$0xff] }
 0x97e   : > { %v6793_v13 = vadd.f32 %v6792_v35, %v6649_v1 }
 0x97f   : > { %v6275_v25 = vsub.f32 0.0, %v6229_v45 }
 0x981   : > { %v11053_v61 = vpop.eup %11052  ;;  %v6329_v9 = vmul.f32 1.442695, %v6275_v25 }
 0x982   : > { %v11055_v5 = vpop.eup %11054  ;;  %v6370_v56 = vadd.f32 1.0, %v11053_v61 }
 0x983   : > { %v6433_v31 = vmul.f32 %v11055_v5, %v6224_v11  ;;  %11056 = vpow2.f32 %v6329_v9  ;;  %v10266_v11 = vld [vmem:[%s15498_s5 + $0xb8] sm:$0xff] }
 0x984   : > { %11058 = vrcp.f32 %v6370_v56  ;;  %v6986_v37 = vpop.f32.mrf.mxu2  ;;  %v6230_v53 = vpop.f32.mrf.mxu3  ;;  %v6549_v18 = vld [vmem:[#allocation2 + $0x150] sm:$0xff]  ;;  %7655 = vmatpush.bf16.msrb.mxu0 %v10266_v11 }
 0x985   : > { %v6498_v2 = vld [vmem:[#allocation2 + $0x14f] sm:$0xff]  ;;  %6465 = vst.msk [vmem:[#allocation2 + $0x168] sm:$0xff] %vm810_vm2, %v6433_v31  ;;  %v14446_v29 = vadd.f32 %v6986_v37, %v6793_v13  ;;  %v14449_v36 = vadd.f32 %v14420_v43, %v6230_v53  ;;  %v6652_v14 = vpop.f32.mrf.mxu1  ;;  %v6795_v20 = vpop.f32.mrf.mxu0  ;;  %v6573_v60 = vpack.c.bf16 %v6549_v18, %v6548_v26 }
 0x986   : > { %v6885_v46 = vld [vmem:[#allocation2 + $0x149] sm:$0xff]  ;;  %v14451_v58 = vpack.c.bf16 %v6498_v2, %v6497_v27  ;;  %v6886_v51 = vld [vmem:[#allocation2 + $0x151] sm:$0xff]  ;;  %v6796_v21 = vadd.f32 %v6795_v20, %v6652_v14 }
 0x987   : > { %v6910_v39 = vpack.c.bf16 %v6886_v51, %v6885_v46  ;;  %v6276_v55 = vsub.f32 0.0, %v14449_v36  ;;  %9982 = vmatmul.msk.bf16.gmra.mxu1 %vm810_vm2, %v6573_v60 }
 0x988   : > { %10002 = vmatmul.msk.bf16.gmra.mxu0 %vm810_vm2, %v14451_v58 }
 0x989   : > { %v11057_v24 = vpop.eup %11056  ;;  %v6331_v38 = vmul.f32 1.442695, %v6276_v55  ;;  %10024 = vmatmul.msk.bf16.gmra.mxu2 %vm810_vm2, %v6910_v39  ;;  %10040 = vmatmul.msk.bf16.gmra.mxu3 %vm810_vm2, %v14367_v23 }
 0x98a   : > { %v11059_v57 = vpop.eup %11058  ;;  %v6371_v22 = vadd.f32 1.0, %v11057_v24 }
 0x98b   : > { %v6434_v17 = vmul.f32 %v11059_v57, %v14427_v59  ;;  %11060 = vpow2.f32 %v6331_v38 }
 0x98c   : > { %11062 = vrcp.f32 %v6371_v22  ;;  %v6989_v63 = vpop.f32.mrf.mxu2  ;;  %v6233_v3 = vpop.f32.mrf.mxu3  ;;  %v6550_v59 = vld [vmem:[#allocation2 + $0x168] sm:$0xff] }
 0x98d   : > { %6466 = vst.msk [vmem:[#allocation2 + $0x170] sm:$0xff] %vm810_vm2, %v6434_v17  ;;  %v14465_v47 = vadd.f32 %v6989_v63, %v6796_v21  ;;  %v6234_v12 = vadd.f32 %v14420_v43, %v6233_v3  ;;  %v6654_v19 = vpop.f32.mrf.mxu1  ;;  %v6797_v34 = vpop.f32.mrf.mxu0  ;;  %v6499_v41 = vld [vmem:[#allocation2 + $0x167] sm:$0xff] }
 0x98e   : > { %v6798_v6 = vadd.f32 %v6797_v34, %v6654_v19 }
 0x98f   : > { %v6277_v52 = vsub.f32 0.0, %v6234_v12 }
 0x991   : > { %v11061_v54 = vpop.eup %11060  ;;  %v6333_v23 = vmul.f32 1.442695, %v6277_v52 }
 0x992   : > { %v11063_v10 = vpop.eup %11062  ;;  %v6372_v49 = vadd.f32 1.0, %v11061_v54 }
 0x993   : > { %v6435_v48 = vmul.f32 %v11063_v10, %v6229_v45  ;;  %11064 = vpow2.f32 %v6333_v23 }
 0x994   : > { %11066 = vrcp.f32 %v6372_v49  ;;  %v6991_v15 = vpop.f32.mrf.mxu2  ;;  %v6235_v28 = vpop.f32.mrf.mxu3  ;;  %v6551_v4 = vld [vmem:[#allocation2 + $0x170] sm:$0xff] }
 0x995   : > { %v6500_v32 = vld [vmem:[#allocation2 + $0x16f] sm:$0xff]  ;;  %6467 = vst.msk [vmem:[#allocation2 + $0x188] sm:$0xff] %vm810_vm2, %v6435_v48  ;;  %v14469_v1 = vadd.f32 %v6991_v15, %v6798_v6  ;;  %v6236_v35 = vadd.f32 %v14420_v43, %v6235_v28  ;;  %v6657_v7 = vpop.f32.mrf.mxu1  ;;  %v6800_v13 = vpop.f32.mrf.mxu0  ;;  %v14472_v25 = vpack.c.bf16 %v6551_v4, %v6550_v59 }
 0x996   : > { %v6887_v8 = vld [vmem:[#allocation2 + $0x169] sm:$0xff]  ;;  %v14474_v45 = vpack.c.bf16 %v6500_v32, %v6499_v41  ;;  %v6888_v61 = vld [vmem:[#allocation2 + $0x171] sm:$0xff]  ;;  %v6801_v9 = vadd.f32 %v6800_v13, %v6657_v7 }
 0x997   : > { %v14476_v5 = vpack.c.bf16 %v6888_v61, %v6887_v8  ;;  %v6278_v56 = vsub.f32 0.0, %v6236_v35  ;;  %9983 = vmatmul.msk.bf16.gmra.mxu1 %vm810_vm2, %v14472_v25 }
 0x998   : > { %10003 = vmatmul.msk.bf16.gmra.mxu0 %vm810_vm2, %v14474_v45 }
 0x999   : > { %v11065_v31 = vpop.eup %11064  ;;  %v6335_v26 = vmul.f32 1.442695, %v6278_v56  ;;  %10025 = vmatmul.msk.bf16.gmra.mxu2 %vm810_vm2, %v14476_v5  ;;  %10041 = vmatmul.msk.bf16.gmra.mxu3 %vm810_vm2, %v14378_v62 }
 0x99a   : > { %v11067_v27 = vpop.eup %11066  ;;  %v6373_v37 = vadd.f32 1.0, %v11065_v31 }
 0x99b   : > { %v6436_v53 = vmul.f32 %v11067_v27, %v14449_v36  ;;  %11068 = vpow2.f32 %v6335_v26 }
 0x99c   : > { %11070 = vrcp.f32 %v6373_v37  ;;  %v6994_v18 = vpop.f32.mrf.mxu2  ;;  %v6238_v2 = vpop.f32.mrf.mxu3  ;;  %v6552_v36 = vld [vmem:[#allocation2 + $0x188] sm:$0xff] }
 0x99d   : > { %6468 = vst.msk [vmem:[#allocation2 + $0x190] sm:$0xff] %vm810_vm2, %v6436_v53  ;;  %v14488_v46 = vadd.f32 %v6994_v18, %v6801_v9  ;;  %v6239_v14 = vadd.f32 %v14420_v43, %v6238_v2  ;;  %v6659_v20 = vpop.f32.mrf.mxu1  ;;  %v6802_v60 = vpop.f32.mrf.mxu0  ;;  %v6501_v38 = vld [vmem:[#allocation2 + $0x187] sm:$0xff] }
 0x99e   : > { %v6803_v51 = vadd.f32 %v6802_v60, %v6659_v20 }
 0x99f   : > { %v6279_v11 = vsub.f32 0.0, %v6239_v14 }
 0x9a1   : > { %v11069_v21 = vpop.eup %11068  ;;  %v6337_v62 = vmul.f32 1.442695, %v6279_v11 }
 0x9a2   : > { %v11071_v39 = vpop.eup %11070  ;;  %v6374_v55 = vadd.f32 1.0, %v11069_v21 }
 0x9a3   : > { %v6437_v24 = vmul.f32 %v11071_v39, %v6234_v12  ;;  %11072 = vpow2.f32 %v6337_v62 }
 0x9a4   : > { %11074 = vrcp.f32 %v6374_v55  ;;  %v6996_v57 = vpop.f32.mrf.mxu2  ;;  %v6240_v22 = vpop.f32.mrf.mxu3  ;;  %v6553_v17 = vld [vmem:[#allocation2 + $0x190] sm:$0xff] }
 0x9a5   : > { %v6502_v63 = vld [vmem:[#allocation2 + $0x18f] sm:$0xff]  ;;  %6469 = vst.msk [vmem:[#allocation2 + $0x1a8] sm:$0xff] %vm810_vm2, %v6437_v24  ;;  %v14492_v19 = vadd.f32 %v6996_v57, %v6803_v51  ;;  %v6241_v34 = vadd.f32 %v14420_v43, %v6240_v22  ;;  %v6662_v6 = vpop.f32.mrf.mxu1  ;;  %v6805_v52 = vpop.f32.mrf.mxu0  ;;  %v14495_v54 = vpack.c.bf16 %v6553_v17, %v6552_v36 }
 0x9a6   : > { %v6889_v3 = vld [vmem:[#allocation2 + $0x189] sm:$0xff]  ;;  %v14497_v12 = vpack.c.bf16 %v6502_v63, %v6501_v38  ;;  %v6890_v23 = vld [vmem:[#allocation2 + $0x191] sm:$0xff]  ;;  %v6806_v10 = vadd.f32 %v6805_v52, %v6662_v6 }
 0x9a7   : > { %v14499_v49 = vpack.c.bf16 %v6890_v23, %v6889_v3  ;;  %v6280_v48 = vsub.f32 0.0, %v6241_v34  ;;  %9984 = vmatmul.msk.bf16.gmra.mxu1 %vm810_vm2, %v14495_v54 }
 0x9a8   : > { %10004 = vmatmul.msk.bf16.gmra.mxu0 %vm810_vm2, %v14497_v12 }
 0x9a9   : > { %v11073_v59 = vpop.eup %11072  ;;  %v6339_v41 = vmul.f32 1.442695, %v6280_v48  ;;  %10026 = vmatmul.msk.bf16.gmra.mxu2 %vm810_vm2, %v14499_v49  ;;  %10042 = vmatmul.msk.bf16.gmra.mxu3 %vm810_vm2, %v14390_v0 }
 0x9aa   : > { %v11075_v15 = vpop.eup %11074  ;;  %v6375_v28 = vadd.f32 1.0, %v11073_v59 }
 0x9ab   : > { %v6438_v4 = vmul.f32 %v11075_v15, %v6236_v35  ;;  %11076 = vpow2.f32 %v6339_v41 }
 0x9ac   : > { %11078 = vrcp.f32 %v6375_v28  ;;  %v6999_v32 = vpop.f32.mrf.mxu2  ;;  %v6243_v8 = vpop.f32.mrf.mxu3  ;;  %v6554_v35 = vld [vmem:[#allocation2 + $0x1a8] sm:$0xff] }
 0x9ad   : > { %6470 = vst.msk [vmem:[#allocation2 + $0x1b0] sm:$0xff] %vm810_vm2, %v6438_v4  ;;  %v14510_v7 = vadd.f32 %v6999_v32, %v6806_v10  ;;  %v6244_v13 = vadd.f32 %v14420_v43, %v6243_v8  ;;  %v6664_v61 = vpop.f32.mrf.mxu1  ;;  %v6807_v9 = vpop.f32.mrf.mxu0  ;;  %v6503_v18 = vld [vmem:[#allocation2 + $0x1a7] sm:$0xff] }
 0x9ae   : > { %v6808_v56 = vadd.f32 %v6807_v9, %v6664_v61 }
 0x9af   : > { %v6281_v31 = vsub.f32 0.0, %v6244_v13 }
 0x9b1   : > { %v11077_v26 = vpop.eup %11076  ;;  %v6341_v27 = vmul.f32 1.442695, %v6281_v31 }
 0x9b2   : > { %v11079_v0 = vpop.eup %11078  ;;  %v6376_v37 = vadd.f32 1.0, %v11077_v26 }
 0x9b3   : > { %v6439_v53 = vmul.f32 %v11079_v0, %v6239_v14  ;;  %11080 = vpow2.f32 %v6341_v27 }
 0x9b4   : > { %11082 = vrcp.f32 %v6376_v37  ;;  %v7001_v2 = vpop.f32.mrf.mxu2  ;;  %v6245_v20 = vpop.f32.mrf.mxu3  ;;  %v6555_v60 = vld [vmem:[#allocation2 + $0x1b0] sm:$0xff] }
 0x9b5   : > { %v6504_v51 = vld [vmem:[#allocation2 + $0x1af] sm:$0xff]  ;;  %6471 = vst.msk [vmem:[#allocation2 + $0x1c8] sm:$0xff] %vm810_vm2, %v6439_v53  ;;  %v14514_v21 = vadd.f32 %v7001_v2, %v6808_v56  ;;  %v14517_v62 = vadd.f32 %v14420_v43, %v6245_v20  ;;  %v6667_v39 = vpop.f32.mrf.mxu1  ;;  %v6810_v55 = vpop.f32.mrf.mxu0  ;;  %v14519_v24 = vpack.c.bf16 %v6555_v60, %v6554_v35 }
 0x9b6   : > { %v6891_v11 = vld [vmem:[#allocation2 + $0x1a9] sm:$0xff]  ;;  %v14521_v14 = vpack.c.bf16 %v6504_v51, %v6503_v18  ;;  %v6892_v36 = vld [vmem:[#allocation2 + $0x1b1] sm:$0xff]  ;;  %v6811_v38 = vadd.f32 %v6810_v55, %v6667_v39 }
 0x9b7   : > { %v14523_v57 = vpack.c.bf16 %v6892_v36, %v6891_v11  ;;  %v6282_v22 = vsub.f32 0.0, %v14517_v62  ;;  %9985 = vmatmul.msk.bf16.gmra.mxu1 %vm810_vm2, %v14519_v24 }
 0x9b8   : > { %10005 = vmatmul.msk.bf16.gmra.mxu0 %vm810_vm2, %v14521_v14 }
 0x9b9   : > { %v11081_v17 = vpop.eup %11080  ;;  %v6343_v63 = vmul.f32 1.442695, %v6282_v22  ;;  %10027 = vmatmul.msk.bf16.gmra.mxu2 %vm810_vm2, %v14523_v57  ;;  %10043 = vmatmul.msk.bf16.gmra.mxu3 %vm810_vm2, %v14404_v33  ;;  %v10268_v33 = vld [vmem:[%s15498_s5 + $0xc8] sm:$0xff] }
 0x9ba   : > { %v11083_v3 = vpop.eup %11082  ;;  %v6377_v6 = vadd.f32 1.0, %v11081_v17  ;;  %8107 = vmatpush.bf16.msra.mxu3 %v10268_v33 }
 0x9bb   : > { %v6440_v52 = vmul.f32 %v11083_v3, %v6241_v34  ;;  %11084 = vpow2.f32 %v6343_v63 }
 0x9bc   : > { %11086 = vrcp.f32 %v6377_v6  ;;  %v7004_v23 = vpop.f32.mrf.mxu2  ;;  %v6248_v10 = vpop.f32.mrf.mxu3  ;;  %v6556_v56 = vld [vmem:[#allocation2 + $0x1c8] sm:$0xff] }
 0x9bd   : > { %6472 = vst.msk [vmem:[#allocation2 + $0x1d0] sm:$0xff] %vm810_vm2, %v6440_v52  ;;  %v14535_v48 = vadd.f32 %v7004_v23, %v6811_v38  ;;  %v6249_v59 = vadd.f32 %v14420_v43, %v6248_v10  ;;  %v6669_v41 = vpop.f32.mrf.mxu1  ;;  %v6812_v15 = vpop.f32.mrf.mxu0  ;;  %v6505_v31 = vld [vmem:[#allocation2 + $0x1c7] sm:$0xff] }
 0x9be   : > { %v6813_v28 = vadd.f32 %v6812_v15, %v6669_v41 }
 0x9bf   : > { %v6283_v4 = vsub.f32 0.0, %v6249_v59 }
 0x9c1   : > { %v11085_v34 = vpop.eup %11084  ;;  %v6345_v32 = vmul.f32 1.442695, %v6283_v4 }
 0x9c2   : > { %v11087_v8 = vpop.eup %11086  ;;  %v6378_v61 = vadd.f32 1.0, %v11085_v34 }
 0x9c3   : > { %v6441_v9 = vmul.f32 %v11087_v8, %v6244_v13  ;;  %11088 = vpow2.f32 %v6345_v32 }
 0x9c4   : > { %11090 = vrcp.f32 %v6378_v61  ;;  %v7006_v26 = vpop.f32.mrf.mxu2  ;;  %v6250_v27 = vpop.f32.mrf.mxu3  ;;  %v6557_v0 = vld [vmem:[#allocation2 + $0x1d0] sm:$0xff] }
 0x9c5   : > { %v6506_v37 = vld [vmem:[#allocation2 + $0x1cf] sm:$0xff]  ;;  %6473 = vst.msk [vmem:[#allocation2 + $0x1e8] sm:$0xff] %vm810_vm2, %v6441_v9  ;;  %v14542_v35 = vadd.f32 %v7006_v26, %v6813_v28  ;;  %v6251_v18 = vadd.f32 %v14420_v43, %v6250_v27  ;;  %v6672_v2 = vpop.f32.mrf.mxu1  ;;  %v6815_v20 = vpop.f32.mrf.mxu0  ;;  %v14545_v60 = vpack.c.bf16 %v6557_v0, %v6556_v56 }
 0x9c6   : > { %v6893_v53 = vld [vmem:[#allocation2 + $0x1c9] sm:$0xff]  ;;  %v14547_v13 = vpack.c.bf16 %v6506_v37, %v6505_v31  ;;  %v6894_v51 = vld [vmem:[#allocation2 + $0x1d1] sm:$0xff]  ;;  %v6816_v11 = vadd.f32 %v6815_v20, %v6672_v2 }
 0x9c7   : > { %v14549_v39 = vpack.c.bf16 %v6894_v51, %v6893_v53  ;;  %v6284_v55 = vsub.f32 0.0, %v6251_v18  ;;  %9986 = vmatmul.msk.bf16.gmra.mxu1 %vm810_vm2, %v14545_v60  ;;  %v10269_v43 = vld [vmem:[%s15498_s5 + $0xd0] sm:$0xff] }
 0x9c8   : > { %10006 = vmatmul.msk.bf16.gmra.mxu0 %vm810_vm2, %v14547_v13  ;;  %8333 = vmatpush.bf16.msra.mxu1 %v10269_v43 }
 0x9c9   : > { %v11089_v36 = vpop.eup %11088  ;;  %v6347_v38 = vmul.f32 1.442695, %v6284_v55  ;;  %10028 = vmatmul.msk.bf16.gmra.mxu2 %vm810_vm2, %v14549_v39  ;;  %10044 = vmatmul.msk.bf16.gmra.mxu3 %vm810_vm2, %v14429_v44 }
 0x9ca   : > { %v11091_v22 = vpop.eup %11090  ;;  %v6379_v17 = vadd.f32 1.0, %v11089_v36 }
 0x9cb   : > { %v6442_v63 = vmul.f32 %v11091_v22, %v14517_v62  ;;  %11092 = vpow2.f32 %v6347_v38 }
 0x9cc   : > { %11094 = vrcp.f32 %v6379_v17  ;;  %v7009_v3 = vpop.f32.mrf.mxu2  ;;  %v7205_v6 = vpop.f32.mrf.mxu3  ;;  %v6558_v62 = vld [vmem:[#allocation2 + $0x1e8] sm:$0xff] }
 0x9cd   : > { %6474 = vst.msk [vmem:[#allocation2 + $0x1f0] sm:$0xff] %vm810_vm2, %v6442_v63  ;;  %v14564_v52 = vadd.f32 %v7009_v3, %v6816_v11  ;;  %v6674_v23 = vpop.f32.mrf.mxu1  ;;  %v6817_v10 = vpop.f32.mrf.mxu0  ;;  %v14567_v41 = vadd.f32 %v7205_v6, %v14398_v16  ;;  %v6507_v32 = vld [vmem:[#allocation2 + $0x1e7] sm:$0xff]  ;;  %v7318_v63 = vld [vmem:[#allocation2 + $0x30] sm:$0xff] }
 0x9ce   : > { %v6818_v15 = vadd.f32 %v6817_v10, %v6674_v23  ;;  %v7543_v3 = vld [vmem:[#allocation2 + $0x29] sm:$0xff]  ;;  %v7544_v6 = vld [vmem:[#allocation2 + $0x31] sm:$0xff] }
 0x9d1   : > { %v11093_v28 = vpop.eup %11092 }
 0x9d2   : > { %v11095_v33 = vpop.eup %11094  ;;  %v6380_v4 = vadd.f32 1.0, %v11093_v28 }
 0x9d3   : > { %v6443_v34 = vmul.f32 %v11095_v33, %v6249_v59 }
 0x9d4   : > { %11096 = vrcp.f32 %v6380_v4  ;;  %v7011_v8 = vpop.f32.mrf.mxu2  ;;  %v14569_v61 = vpop.f32.mrf.mxu3  ;;  %v6559_v9 = vld [vmem:[#allocation2 + $0x1f0] sm:$0xff] }
 0x9d5   : > { %v6508_v56 = vld [vmem:[#allocation2 + $0x1ef] sm:$0xff]  ;;  %6475 = vst.msk [vmem:[#allocation2 + $0x208] sm:$0xff] %vm810_vm2, %v6443_v34  ;;  %v14572_v26 = vadd.f32 %v7011_v8, %v6818_v15  ;;  %v6677_v16 = vpop.f32.mrf.mxu1  ;;  %v6820_v27 = vpop.f32.mrf.mxu0  ;;  %v14574_v0 = vpack.c.bf16 %v6559_v9, %v6558_v62  ;;  %v7578_v8 = vpack.c.bf16 %v7544_v6, %v7543_v3 }
 0x9d6   : > { %v6895_v31 = vld [vmem:[#allocation2 + $0x1e9] sm:$0xff]  ;;  %v14576_v37 = vpack.c.bf16 %v6508_v56, %v6507_v32  ;;  %v6896_v59 = vld [vmem:[#allocation2 + $0x1f1] sm:$0xff]  ;;  %v6821_v53 = vadd.f32 %v6820_v27, %v6677_v16 }
 0x9d7   : > { %15763 = vst [vmem:[#allocation16_spill] sm:$0xff] %v14574_v0  ;;  %v14578_v2 = vpack.c.bf16 %v6896_v59, %v6895_v31  ;;  %9987 = vmatmul.msk.bf16.gmra.mxu1 %vm810_vm2, %v14574_v0  ;;  %v7770_v15 = vld [vmem:[#allocation2 + $0x4f] sm:$0xff] }
 0x9d8   : > { %15764 = vst [vmem:[#allocation17_spill] sm:$0xff] %v14576_v37  ;;  %10007 = vmatmul.msk.bf16.gmra.mxu0 %vm810_vm2, %v14576_v37  ;;  %v7317_v34 = vld [vmem:[#allocation2 + $0x28] sm:$0xff] }
 0x9d9   : > { %15765 = vst [vmem:[#allocation20_spill] sm:$0xff] %v14578_v2  ;;  %10029 = vmatmul.msk.bf16.gmra.mxu2 %vm810_vm2, %v14578_v2  ;;  %10045 = vmatmul.msk.bf16.gmra.mxu3 %vm810_vm2, %v14451_v58  ;;  %v7352_v32 = vpack.c.bf16 %v7318_v63, %v7317_v34 }
 0x9da   : > { %v11097_v20 = vpop.eup %11096 }
 0x9db   : > { %v6444_v51 = vmul.f32 %v11097_v20, %v6251_v18  ;;  %v7320_v20 = vld [vmem:[#allocation2 + $0x50] sm:$0xff] }
 0x9dc   : > { %v7014_v11 = vpop.f32.mrf.mxu2  ;;  %v7210_v55 = vpop.f32.mrf.mxu3 }
 0x9dd   : > { %6476 = vst.msk [vmem:[#allocation2 + $0x210] sm:$0xff] %vm810_vm2, %v6444_v51  ;;  %v14589_v36 = vadd.f32 %v7014_v11, %v6821_v53  ;;  %v6679_v38 = vpop.f32.mrf.mxu1  ;;  %v6822_v43 = vpop.f32.mrf.mxu0  ;;  %v14592_v22 = vadd.f32 %v7210_v55, %v14439_v30  ;;  %v7769_v30 = vld [vmem:[#allocation2 + $0x47] sm:$0xff]  ;;  %v7546_v11 = vld [vmem:[#allocation2 + $0x51] sm:$0xff] }
 0x9de   : > { %v6823_v17 = vadd.f32 %v6822_v43, %v6679_v38  ;;  %v7804_v9 = vpack.c.bf16 %v7770_v15, %v7769_v30  ;;  %v7545_v51 = vld [vmem:[#allocation2 + $0x49] sm:$0xff] }
 0x9df   : > { %v7772_v43 = vld [vmem:[#allocation2 + $0x6f] sm:$0xff] }
 0x9e4   : > { %v7016_v23 = vpop.f32.mrf.mxu2  ;;  %v7212_v10 = vpop.f32.mrf.mxu3 }
 0x9e5   : > { %v14594_v28 = vadd.f32 %v7016_v23, %v6823_v17  ;;  %v6682_v18 = vpop.f32.mrf.mxu1  ;;  %v6825_v33 = vpop.f32.mrf.mxu0  ;;  %v14597_v4 = vadd.f32 %v7212_v10, %v14446_v29  ;;  %v7319_v23 = vld [vmem:[#allocation2 + $0x48] sm:$0xff] }
 0x9e6   : > { %v6826_v62 = vadd.f32 %v6825_v33, %v6682_v18  ;;  %v14614_v15 = vpack.c.bf16 %v7320_v20, %v7319_v23  ;;  %v7771_v18 = vld [vmem:[#allocation2 + $0x67] sm:$0xff]  ;;  %v7774_v20 = vld [vmem:[#allocation2 + $0x8f] sm:$0xff] }
 0x9e7   : > { %10058 = vmatmul.msk.bf16.vlgmr.msrb.gmra.mxu1 %vm810_vm2, %v7352_v32  ;;  %v7805_v33 = vpack.c.bf16 %v7772_v43, %v7771_v18  ;;  %v7321_v43 = vld [vmem:[#allocation2 + $0x68] sm:$0xff] }
 0x9e8   : > { %10080 = vmatmul.msk.bf16.vlgmr.msrb.gmra.mxu0 %vm810_vm2, %v7578_v8  ;;  %v7773_v23 = vld [vmem:[#allocation2 + $0x87] sm:$0xff] }
 0x9e9   : > { %10102 = vmatmul.msk.bf16.vlgmr.msrb.gmra.mxu2 %vm810_vm2, %v7804_v9  ;;  %10046 = vmatmul.msk.bf16.gmra.mxu3 %vm810_vm2, %v14474_v45 }
 0x9ec   : > { %v7019_v56 = vpop.f32.mrf.mxu2  ;;  %v7215_v31 = vpop.f32.mrf.mxu3 }
 0x9ed   : > { %v14604_v16 = vadd.f32 %v7019_v56, %v6826_v62  ;;  %v6684_v29 = vpop.f32.mrf.mxu1  ;;  %v6827_v27 = vpop.f32.mrf.mxu0  ;;  %v14607_v59 = vadd.f32 %v7215_v31, %v14465_v47  ;;  %v14616_v47 = vpack.c.bf16 %v7546_v11, %v7545_v51  ;;  %v7322_v56 = vld [vmem:[#allocation2 + $0x70] sm:$0xff] }
 0x9ee   : > { %v6828_v53 = vadd.f32 %v6827_v27, %v6684_v29  ;;  %v7547_v31 = vld [vmem:[#allocation2 + $0x69] sm:$0xff]  ;;  %v7548_v29 = vld [vmem:[#allocation2 + $0x71] sm:$0xff] }
 0x9ef   : > { %15766 = vst [vmem:[#allocation72_spill] sm:$0xff] %v14616_v47 }
 0x9f4   : > { %v7021_v55 = vpop.f32.mrf.mxu2  ;;  %v7217_v38 = vpop.f32.mrf.mxu3 }
 0x9f5   : > { %v14609_v17 = vadd.f32 %v7021_v55, %v6828_v53  ;;  %v6687_v63 = vpop.f32.mrf.mxu1  ;;  %v6830_v3 = vpop.f32.mrf.mxu0  ;;  %v14612_v6 = vadd.f32 %v7217_v38, %v14469_v1 }
 0x9f6   : > { %v6831_v10 = vadd.f32 %v6830_v3, %v6687_v63  ;;  %v14635_v3 = vpack.c.bf16 %v7322_v56, %v7321_v43  ;;  %v7549_v56 = vld [vmem:[#allocation2 + $0x89] sm:$0xff] }
 0x9f7   : > { %10059 = vmatmul.msk.bf16.gmra.mxu1 %vm810_vm2, %v14614_v15 }
 0x9f8   : > { %10081 = vmatmul.msk.bf16.gmra.mxu0 %vm810_vm2, %v14616_v47 }
 0x9f9   : > { %10103 = vmatmul.msk.bf16.gmra.mxu2 %vm810_vm2, %v7805_v33  ;;  %10047 = vmatmul.msk.bf16.gmra.mxu3 %vm810_vm2, %v14497_v12 }
 0x9fc   : > { %v7024_v1 = vpop.f32.mrf.mxu2  ;;  %v7220_v34 = vpop.f32.mrf.mxu3 }
 0x9fd   : > { %v14625_v62 = vadd.f32 %v7024_v1, %v6831_v10  ;;  %v6689_v32 = vpop.f32.mrf.mxu1  ;;  %v6832_v8 = vpop.f32.mrf.mxu0  ;;  %v14628_v30 = vadd.f32 %v7220_v34, %v14488_v46  ;;  %v14637_v46 = vpack.c.bf16 %v7548_v29, %v7547_v31  ;;  %v7806_v10 = vpack.c.bf16 %v7774_v20, %v7773_v23  ;;  %v7550_v31 = vld [vmem:[#allocation2 + $0x91] sm:$0xff] }
 0x9fe   : > { %v6833_v9 = vadd.f32 %v6832_v8, %v6689_v32 }
 0x9ff   : > { %15767 = vst [vmem:[#allocation23_spill] sm:$0xff] %v14637_v46 }
 0xa04   : > { %v7026_v27 = vpop.f32.mrf.mxu2  ;;  %v7222_v53 = vpop.f32.mrf.mxu3 }
 0xa05   : > { %v14630_v51 = vadd.f32 %v7026_v27, %v6833_v9  ;;  %v6692_v11 = vpop.f32.mrf.mxu1  ;;  %v6835_v55 = vpop.f32.mrf.mxu0  ;;  %v14633_v38 = vadd.f32 %v7222_v53, %v14492_v19  ;;  %v7324_v9 = vld [vmem:[#allocation2 + $0x90] sm:$0xff] }
 0xa06   : > { %v6836_v63 = vadd.f32 %v6835_v55, %v6692_v11  ;;  %v7776_v53 = vld [vmem:[#allocation2 + $0xaf] sm:$0xff] }
 0xa07   : > { %10060 = vmatmul.msk.bf16.gmra.mxu1 %vm810_vm2, %v14635_v3 }
 0xa08   : > { %10082 = vmatmul.msk.bf16.gmra.mxu0 %vm810_vm2, %v14637_v46 }
 0xa09   : > { %10104 = vmatmul.msk.bf16.gmra.mxu2 %vm810_vm2, %v7806_v10  ;;  %10048 = vmatmul.msk.bf16.gmra.mxu3 %vm810_vm2, %v14521_v14 }
 0xa0c   : > { %v7029_v19 = vpop.f32.mrf.mxu2  ;;  %v7225_v18 = vpop.f32.mrf.mxu3 }
 0xa0d   : > { %v14646_v33 = vadd.f32 %v7029_v19, %v6836_v63  ;;  %v6694_v1 = vpop.f32.mrf.mxu1  ;;  %v6837_v34 = vpop.f32.mrf.mxu0  ;;  %v14649_v32 = vadd.f32 %v7225_v18, %v14510_v7  ;;  %v7323_v63 = vld [vmem:[#allocation2 + $0x88] sm:$0xff]  ;;  %v14658_v7 = vpack.c.bf16 %v7550_v31, %v7549_v56 }
 0xa0e   : > { %v6838_v8 = vadd.f32 %v6837_v34, %v6694_v1  ;;  %v14656_v10 = vpack.c.bf16 %v7324_v9, %v7323_v63  ;;  %v7775_v19 = vld [vmem:[#allocation2 + $0xa7] sm:$0xff]  ;;  %v7778_v63 = vld [vmem:[#allocation2 + $0xcf] sm:$0xff] }
 0xa0f   : > { %15768 = vst [vmem:[#allocation74_spill] sm:$0xff] %v14658_v7  ;;  %v7807_v18 = vpack.c.bf16 %v7776_v53, %v7775_v19  ;;  %v7552_v53 = vld [vmem:[#allocation2 + $0xb1] sm:$0xff] }
 0xa14   : > { %v7031_v29 = vpop.f32.mrf.mxu2  ;;  %v7227_v27 = vpop.f32.mrf.mxu3 }
 0xa15   : > { %v14651_v20 = vadd.f32 %v7031_v29, %v6838_v8  ;;  %v6697_v11 = vpop.f32.mrf.mxu1  ;;  %v6840_v55 = vpop.f32.mrf.mxu0  ;;  %v14654_v43 = vadd.f32 %v7227_v27, %v14514_v21  ;;  %v7326_v29 = vld [vmem:[#allocation2 + $0xb0] sm:$0xff] }
 0xa16   : > { %v6841_v23 = vadd.f32 %v6840_v55, %v6697_v11  ;;  %v7551_v27 = vld [vmem:[#allocation2 + $0xa9] sm:$0xff] }
 0xa17   : > { %10061 = vmatmul.msk.bf16.gmra.mxu1 %vm810_vm2, %v14656_v10 }
 0xa18   : > { %10083 = vmatmul.msk.bf16.gmra.mxu0 %vm810_vm2, %v14658_v7 }
 0xa19   : > { %10105 = vmatmul.msk.bf16.gmra.mxu2 %vm810_vm2, %v7807_v18  ;;  %10049 = vmatmul.msk.bf16.gmra.mxu3 %vm810_vm2, %v14547_v13 }
 0xa1c   : > { %v7034_v21 = vpop.f32.mrf.mxu2  ;;  %v7230_v1 = vpop.f32.mrf.mxu3 }
 0xa1d   : > { %v14667_v34 = vadd.f32 %v7034_v21, %v6841_v23  ;;  %v6699_v8 = vpop.f32.mrf.mxu1  ;;  %v6842_v9 = vpop.f32.mrf.mxu0  ;;  %v14670_v56 = vadd.f32 %v7230_v1, %v14535_v48  ;;  %v7325_v23 = vld [vmem:[#allocation2 + $0xa8] sm:$0xff]  ;;  %v14679_v48 = vpack.c.bf16 %v7552_v53, %v7551_v27 }
 0xa1e   : > { %v6843_v31 = vadd.f32 %v6842_v9, %v6699_v8  ;;  %v14677_v47 = vpack.c.bf16 %v7326_v29, %v7325_v23  ;;  %v7777_v1 = vld [vmem:[#allocation2 + $0xc7] sm:$0xff] }
 0xa1f   : > { %15770 = vst [vmem:[#allocation76_spill] sm:$0xff] %v14679_v48  ;;  %v7808_v8 = vpack.c.bf16 %v7778_v63, %v7777_v1  ;;  %v7554_v63 = vld [vmem:[#allocation2 + $0xd1] sm:$0xff] }
 0xa20   : > { %v7780_v1 = vld [vmem:[#allocation2 + $0xef] sm:$0xff] }
 0xa24   : > { %v7036_v11 = vpop.f32.mrf.mxu2  ;;  %v7232_v55 = vpop.f32.mrf.mxu3 }
 0xa25   : > { %v14672_v19 = vadd.f32 %v7036_v11, %v6843_v31  ;;  %v6702_v18 = vpop.f32.mrf.mxu1  ;;  %v6845_v7 = vpop.f32.mrf.mxu0  ;;  %v14675_v46 = vadd.f32 %v7232_v55, %v14542_v35  ;;  %v7328_v11 = vld [vmem:[#allocation2 + $0xd0] sm:$0xff] }
 0xa26   : > { %v6846_v21 = vadd.f32 %v6845_v7, %v6702_v18  ;;  %v7553_v55 = vld [vmem:[#allocation2 + $0xc9] sm:$0xff] }
 0xa27   : > { %15769 = vst [vmem:[#allocation26_spill] sm:$0xff] %v14675_v46  ;;  %10062 = vmatmul.msk.bf16.gmra.mxu1 %vm810_vm2, %v14677_v47 }
 0xa28   : > { %10084 = vmatmul.msk.bf16.gmra.mxu0 %vm810_vm2, %v14679_v48 }
 0xa29   : > { %10106 = vmatmul.msk.bf16.gmra.mxu2 %vm810_vm2, %v7808_v8  ;;  %10050 = vmatmul.msk.bf16.gmra.mxu3 %vm810_vm2, %v14576_v37  ;;  %v7122_v8 = vld [vmem:[#allocation2 + $0x20f] sm:$0xff] }
 0xa2c   : > { %v7039_v35 = vpop.f32.mrf.mxu2  ;;  %v7235_v9 = vpop.f32.mrf.mxu3 }
 0xa2d   : > { %v14688_v7 = vadd.f32 %v7039_v35, %v6846_v21  ;;  %v6704_v31 = vpop.f32.mrf.mxu1  ;;  %v6847_v29 = vpop.f32.mrf.mxu0  ;;  %v14691_v27 = vadd.f32 %v7235_v9, %v14564_v52  ;;  %v7327_v35 = vld [vmem:[#allocation2 + $0xc8] sm:$0xff]  ;;  %v14700_v52 = vpack.c.bf16 %v7554_v63, %v7553_v55 }
 0xa2e   : > { %v6848_v53 = vadd.f32 %v6847_v29, %v6704_v31  ;;  %v14698_v37 = vpack.c.bf16 %v7328_v11, %v7327_v35  ;;  %v7779_v9 = vld [vmem:[#allocation2 + $0xe7] sm:$0xff] }
 0xa2f   : > { %15771 = vst [vmem:[#allocation29_spill] sm:$0xff] %v14691_v27  ;;  %v7121_v31 = vld [vmem:[#allocation2 + $0x207] sm:$0xff]  ;;  %v7809_v29 = vpack.c.bf16 %v7780_v1, %v7779_v9  ;;  %v7556_v1 = vld [vmem:[#allocation2 + $0xf1] sm:$0xff] }
 0xa30   : > { %15773 = vst [vmem:[#allocation31_spill] sm:$0xff] %v14700_v52  ;;  %v14702_v27 = vpack.c.bf16 %v7122_v8, %v7121_v31  ;;  %v7782_v9 = vld [vmem:[#allocation2 + $0x10f] sm:$0xff] }
 0xa32   : > { %15774 = vst [vmem:[#allocation80_spill] sm:$0xff] %v14702_v27 }
 0xa34   : > { %v7041_v18 = vpop.f32.mrf.mxu2  ;;  %v7237_v23 = vpop.f32.mrf.mxu3 }
 0xa35   : > { %v14693_v48 = vadd.f32 %v7041_v18, %v6848_v53  ;;  %v6707_v2 = vpop.f32.mrf.mxu1  ;;  %v6850_v0 = vpop.f32.mrf.mxu0  ;;  %v14696_v21 = vadd.f32 %v7237_v23, %v14572_v26  ;;  %v7330_v18 = vld [vmem:[#allocation2 + $0xf0] sm:$0xff] }
 0xa36   : > { %v6851_v46 = vadd.f32 %v6850_v0, %v6707_v2  ;;  %v7555_v23 = vld [vmem:[#allocation2 + $0xe9] sm:$0xff] }
 0xa37   : > { %15772 = vst [vmem:[#allocation78_spill] sm:$0xff] %v14696_v21  ;;  %10063 = vmatmul.msk.bf16.gmra.mxu1 %vm810_vm2, %v14698_v37 }
 0xa38   : > { %10085 = vmatmul.msk.bf16.gmra.mxu0 %vm810_vm2, %v14700_v52 }
 0xa39   : > { %10107 = vmatmul.msk.bf16.gmra.mxu2 %vm810_vm2, %v7809_v29  ;;  %10051 = vmatmul.msk.bf16.gmra.mxu3 %vm810_vm2, %v14702_v27 }
 0xa3c   : > { %v7044_v26 = vpop.f32.mrf.mxu2  ;;  %v7240_v0 = vpop.f32.mrf.mxu3 }
 0xa3d   : > { %v14711_v2 = vadd.f32 %v7044_v26, %v6851_v46  ;;  %v6709_v53 = vpop.f32.mrf.mxu1  ;;  %v6852_v11 = vpop.f32.mrf.mxu0  ;;  %v14714_v55 = vadd.f32 %v7240_v0, %v14589_v36  ;;  %v7329_v46 = vld [vmem:[#allocation2 + $0xe8] sm:$0xff]  ;;  %v14723_v36 = vpack.c.bf16 %v7556_v1, %v7555_v23 }
 0xa3e   : > { %v6853_v63 = vadd.f32 %v6852_v11, %v6709_v53  ;;  %v14721_v27 = vpack.c.bf16 %v7330_v18, %v7329_v46  ;;  %v7781_v0 = vld [vmem:[#allocation2 + $0x107] sm:$0xff] }
 0xa3f   : > { %15775 = vst [vmem:[#allocation34_spill] sm:$0xff] %v14714_v55  ;;  %v7810_v53 = vpack.c.bf16 %v7782_v9, %v7781_v0  ;;  %v7558_v9 = vld [vmem:[#allocation2 + $0x111] sm:$0xff] }
 0xa40   : > { %15777 = vst [vmem:[#allocation37_spill] sm:$0xff] %v14723_v36 }
 0xa44   : > { %v7046_v8 = vpop.f32.mrf.mxu2  ;;  %v7242_v35 = vpop.f32.mrf.mxu3 }
 0xa45   : > { %v14716_v31 = vadd.f32 %v7046_v8, %v6853_v63  ;;  %v6712_v29 = vpop.f32.mrf.mxu1  ;;  %v6855_v52 = vpop.f32.mrf.mxu0  ;;  %v14719_v21 = vadd.f32 %v7242_v35, %v14594_v28  ;;  %v7332_v8 = vld [vmem:[#allocation2 + $0x110] sm:$0xff] }
 0xa46   : > { %v6856_v26 = vadd.f32 %v6855_v52, %v6712_v29  ;;  %v7557_v35 = vld [vmem:[#allocation2 + $0x109] sm:$0xff] }
 0xa47   : > { %15776 = vst [vmem:[#allocation82_spill] sm:$0xff] %v14719_v21  ;;  %10064 = vmatmul.msk.bf16.gmra.mxu1 %vm810_vm2, %v14721_v27  ;;  %v14744_v55 = vpack.c.bf16 %v7558_v9, %v7557_v35  ;;  %v7559_v35 = vld [vmem:[#allocation2 + $0x129] sm:$0xff]  ;;  %v7560_v9 = vld [vmem:[#allocation2 + $0x131] sm:$0xff] }
 0xa48   : > { %10086 = vmatmul.msk.bf16.gmra.mxu0 %vm810_vm2, %v14723_v36 }
 0xa49   : > { %10108 = vmatmul.msk.bf16.gmra.mxu2 %vm810_vm2, %v7810_v53  ;;  %10124 = vmatmul.msk.bf16.vlgmr.msra.gmra.mxu3 %vm810_vm2, %v14614_v15 }
 0xa4c   : > { %v7049_v28 = vpop.f32.mrf.mxu2  ;;  %v7245_v11 = vpop.f32.mrf.mxu3 }
 0xa4d   : > { %v14732_v52 = vadd.f32 %v7049_v28, %v6856_v26  ;;  %v6714_v63 = vpop.f32.mrf.mxu1  ;;  %v6857_v18 = vpop.f32.mrf.mxu0  ;;  %v14735_v23 = vadd.f32 %v7245_v11, %v14604_v16  ;;  %v7331_v26 = vld [vmem:[#allocation2 + $0x108] sm:$0xff] }
 0xa4e   : > { %v6858_v1 = vadd.f32 %v6857_v18, %v6714_v63  ;;  %v14742_v21 = vpack.c.bf16 %v7332_v8, %v7331_v26  ;;  %v7334_v8 = vld [vmem:[#allocation2 + $0x130] sm:$0xff] }
 0xa54   : > { %v7051_v29 = vpop.f32.mrf.mxu2  ;;  %v7247_v46 = vpop.f32.mrf.mxu3 }
 0xa55   : > { %v14737_v0 = vadd.f32 %v7051_v29, %v6858_v1  ;;  %v6717_v53 = vpop.f32.mrf.mxu1  ;;  %v6860_v36 = vpop.f32.mrf.mxu0  ;;  %v14740_v15 = vadd.f32 %v7247_v46, %v14609_v17 }
 0xa56   : > { %v6861_v28 = vadd.f32 %v6860_v36, %v6717_v53 }
 0xa57   : > { %10065 = vmatmul.msk.bf16.gmra.mxu1 %vm810_vm2, %v14742_v21 }
 0xa58   : > { %10087 = vmatmul.msk.bf16.gmra.mxu0 %vm810_vm2, %v14744_v55 }
 0xa59   : > { %10109 = vmatmul.msk.bf16.gmra.mxu2 %vm810_vm2, %v14429_v44  ;;  %10125 = vmatmul.msk.bf16.gmra.mxu3 %vm810_vm2, %v14635_v3 }
 0xa5c   : > { %v7054_v16 = vpop.f32.mrf.mxu2  ;;  %v7250_v17 = vpop.f32.mrf.mxu3 }
 0xa5d   : > { %v14754_v11 = vadd.f32 %v7054_v16, %v6861_v28  ;;  %v6719_v36 = vpop.f32.mrf.mxu1  ;;  %v6862_v63 = vpop.f32.mrf.mxu0  ;;  %v14757_v18 = vadd.f32 %v7250_v17, %v14625_v62  ;;  %v7333_v28 = vld [vmem:[#allocation2 + $0x128] sm:$0xff]  ;;  %v6788_v16 = vadd.f32 %v14415_v42, %v14413_v40 }
 0xa5e   : > { %v6863_v1 = vadd.f32 %v6862_v63, %v6719_v36  ;;  %v14767_v17 = vpack.c.bf16 %v7334_v8, %v7333_v28  ;;  %v14769_v36 = vpack.c.bf16 %v7560_v9, %v7559_v35  ;;  %v10271_v40 = vld [vmem:[%s15500_s7 + $0x8] sm:$0xff] }
 0xa5f   : > { %v7060_v42 = vadd.f32 %v14423_v50, %v6788_v16  ;;  %8963 = vmatpush.bf16.msra.mxu2 %v10271_v40  ;;  %v7336_v50 = vld [vmem:[#allocation2 + $0x150] sm:$0xff]  ;;  %v7335_v40 = vld [vmem:[#allocation2 + $0x148] sm:$0xff] }
 0xa64   : > { %v7056_v29 = vpop.f32.mrf.mxu2  ;;  %v7252_v46 = vpop.f32.mrf.mxu3 }
 0xa65   : > { %v14759_v53 = vadd.f32 %v7056_v29, %v6863_v1  ;;  %v14762_v44 = vadd.f32 %v7252_v46, %v14630_v51  ;;  %v7431_v3 = vpop.f32.mrf.mxu1  ;;  %v7657_v26 = vpop.f32.mrf.mxu0  ;;  %v10273_v46 = vld [vmem:[%s15500_s7 + $0x18] sm:$0xff] }
 0xa66   : > { %v7511_v62 = vadd.f32 %v7431_v3, %v14567_v41  ;;  %v7286_v41 = vadd.f32 %v14569_v61, %v7060_v42  ;;  %8814 = vmatpush.bf16.msra.mxu0 %v10273_v46  ;;  %v7561_v3 = vld [vmem:[#allocation2 + $0x149] sm:$0xff] }
 0xa67   : > { %10066 = vmatmul.msk.bf16.gmra.mxu1 %vm810_vm2, %v14767_v17 }
 0xa68   : > { %v7737_v63 = vadd.f32 %v7657_v26, %v7511_v62  ;;  %10088 = vmatmul.msk.bf16.gmra.mxu0 %vm810_vm2, %v14769_v36  ;;  %v7562_v26 = vld [vmem:[#allocation2 + $0x151] sm:$0xff] }
 0xa69   : > { %10110 = vmatmul.msk.bf16.gmra.mxu2 %vm810_vm2, %v14451_v58  ;;  %10126 = vmatmul.msk.bf16.gmra.mxu3 %vm810_vm2, %v14656_v10 }
 0xa6c   : > { %v7883_v51 = vpop.f32.mrf.mxu2  ;;  %v7255_v1 = vpop.f32.mrf.mxu3 }
 0xa6d   : > { %v14784_v8 = vadd.f32 %v7883_v51, %v7737_v63  ;;  %v14787_v35 = vadd.f32 %v7255_v1, %v14646_v33  ;;  %v7433_v58 = vpop.f32.mrf.mxu1  ;;  %v7659_v9 = vpop.f32.mrf.mxu0  ;;  %v14800_v51 = vpack.c.bf16 %v7562_v26, %v7561_v3 }
 0xa6e   : > { %v7512_v29 = vadd.f32 %v7433_v58, %v7286_v41  ;;  %v14798_v41 = vpack.c.bf16 %v7336_v50, %v7335_v40 }
 0xa70   : > { %v7738_v10 = vadd.f32 %v7659_v9, %v7512_v29 }
 0xa74   : > { %v7885_v61 = vpop.f32.mrf.mxu2  ;;  %v7257_v28 = vpop.f32.mrf.mxu3 }
 0xa75   : > { %v14792_v16 = vadd.f32 %v7885_v61, %v7738_v10  ;;  %v14795_v62 = vadd.f32 %v7257_v28, %v14651_v20  ;;  %v7436_v33 = vpop.f32.mrf.mxu1  ;;  %v7662_v63 = vpop.f32.mrf.mxu0 }
 0xa76   : > { %v7513_v42 = vadd.f32 %v7436_v33, %v14592_v22 }
 0xa77   : > { %10067 = vmatmul.msk.bf16.gmra.mxu1 %vm810_vm2, %v14798_v41 }
 0xa78   : > { %v7739_v1 = vadd.f32 %v7662_v63, %v7513_v42  ;;  %10089 = vmatmul.msk.bf16.gmra.mxu0 %vm810_vm2, %v14800_v51 }
 0xa79   : > { %10111 = vmatmul.msk.bf16.gmra.mxu2 %vm810_vm2, %v14474_v45  ;;  %10127 = vmatmul.msk.bf16.gmra.mxu3 %vm810_vm2, %v14677_v47 }
 0xa7c   : > { %v7888_v20 = vpop.f32.mrf.mxu2  ;;  %v7260_v58 = vpop.f32.mrf.mxu3 }
 0xa7d   : > { %v14810_v22 = vadd.f32 %v7888_v20, %v7739_v1  ;;  %v14813_v9 = vadd.f32 %v7260_v58, %v14667_v34  ;;  %v7438_v29 = vpop.f32.mrf.mxu1  ;;  %v7664_v10 = vpop.f32.mrf.mxu0 }
 0xa7e   : > { %v7514_v46 = vadd.f32 %v7438_v29, %v14597_v4 }
 0xa80   : > { %v7740_v50 = vadd.f32 %v7664_v10, %v7514_v46 }
 0xa84   : > { %v7890_v3 = vpop.f32.mrf.mxu2  ;;  %v7262_v26 = vpop.f32.mrf.mxu3 }
 0xa85   : > { %v14816_v61 = vadd.f32 %v7890_v3, %v7740_v50  ;;  %v14819_v45 = vadd.f32 %v7262_v26, %v14672_v19  ;;  %v7441_v47 = vpop.f32.mrf.mxu1  ;;  %v7667_v28 = vpop.f32.mrf.mxu0 }
 0xa86   : > { %v7515_v33 = vadd.f32 %v7441_v47, %v14607_v59 }
 0xa87   : > { %10068 = vmatmul.msk.bf16.gmra.mxu1 %vm810_vm2, %v14472_v25 }
 0xa88   : > { %v7741_v63 = vadd.f32 %v7667_v28, %v7515_v33  ;;  %10090 = vmatmul.msk.bf16.gmra.mxu0 %vm810_vm2, %v14476_v5 }
 0xa89   : > { %10112 = vmatmul.msk.bf16.gmra.mxu2 %vm810_vm2, %v14497_v12  ;;  %10128 = vmatmul.msk.bf16.gmra.mxu3 %vm810_vm2, %v14698_v37 }
 0xa8c   : > { %v7893_v4 = vpop.f32.mrf.mxu2  ;;  %v7265_v34 = vpop.f32.mrf.mxu3 }
 0xa8d   : > { %v14830_v19 = vadd.f32 %v7893_v4, %v7741_v63  ;;  %v14833_v40 = vadd.f32 %v7265_v34, %v14688_v7  ;;  %v7443_v59 = vpop.f32.mrf.mxu1  ;;  %v7669_v42 = vpop.f32.mrf.mxu0 }
 0xa8e   : > { %v7516_v25 = vadd.f32 %v7443_v59, %v14612_v6 }
 0xa90   : > { %v7742_v1 = vadd.f32 %v7669_v42, %v7516_v25 }
 0xa94   : > { %v7895_v20 = vpop.f32.mrf.mxu2  ;;  %v7267_v5 = vpop.f32.mrf.mxu3 }
 0xa95   : > { %v14836_v58 = vadd.f32 %v7895_v20, %v7742_v1  ;;  %v14839_v12 = vadd.f32 %v7267_v5, %v14693_v48  ;;  %v7446_v37 = vpop.f32.mrf.mxu1  ;;  %v7672_v29 = vpop.f32.mrf.mxu0 }
 0xa96   : > { %v7517_v10 = vadd.f32 %v7446_v37, %v14628_v30 }
 0xa97   : > { %10069 = vmatmul.msk.bf16.gmra.mxu1 %vm810_vm2, %v14495_v54 }
 0xa98   : > { %v7743_v46 = vadd.f32 %v7672_v29, %v7517_v10  ;;  %10091 = vmatmul.msk.bf16.gmra.mxu0 %vm810_vm2, %v14499_v49 }
 0xa99   : > { %10113 = vmatmul.msk.bf16.gmra.mxu2 %vm810_vm2, %v14521_v14  ;;  %10129 = vmatmul.msk.bf16.gmra.mxu3 %vm810_vm2, %v14721_v27 }
 0xa9c   : > { %v7898_v6 = vpop.f32.mrf.mxu2  ;;  %v7270_v48 = vpop.f32.mrf.mxu3 }
 0xa9d   : > { %v14850_v7 = vadd.f32 %v7898_v6, %v7743_v46  ;;  %v14853_v50 = vadd.f32 %v7270_v48, %v14711_v2  ;;  %v7448_v30 = vpop.f32.mrf.mxu1  ;;  %v7674_v3 = vpop.f32.mrf.mxu0  ;;  %v15779_v46 = vld [vmem:[#allocation26_spill] sm:$0xff] }
 0xa9e   : > { %v7518_v54 = vadd.f32 %v7448_v30, %v14633_v38 }
 0xaa0   : > { %v7744_v26 = vadd.f32 %v7674_v3, %v7518_v54  ;;  %v15780_v54 = vld [vmem:[#allocation29_spill] sm:$0xff] }
 0xaa4   : > { %v7900_v47 = vpop.f32.mrf.mxu2  ;;  %v7272_v49 = vpop.f32.mrf.mxu3 }
 0xaa5   : > { %v14856_v28 = vadd.f32 %v7900_v47, %v7744_v26  ;;  %v14859_v14 = vadd.f32 %v7272_v49, %v14716_v31  ;;  %v7451_v27 = vpop.f32.mrf.mxu1  ;;  %v7677_v33 = vpop.f32.mrf.mxu0  ;;  %v15781_v49 = vld [vmem:[#allocation16_spill] sm:$0xff] }
 0xaa6   : > { %v7519_v63 = vadd.f32 %v7451_v27, %v14649_v32  ;;  %v10272_v27 = vld [vmem:[%s15500_s7 + $0x10] sm:$0xff] }
 0xaa7   : > { %10070 = vmatmul.msk.bf16.gmra.mxu1 %vm810_vm2, %v14519_v24  ;;  %8815 = vmatpush.bf16.msra.mxu0 %v10272_v27 }
 0xaa8   : > { %v7745_v4 = vadd.f32 %v7677_v33, %v7519_v63  ;;  %10092 = vmatmul.msk.bf16.gmra.mxu0 %vm810_vm2, %v14523_v57  ;;  %v15783_v33 = vld [vmem:[#allocation80_spill] sm:$0xff] }
 0xaa9   : > { %10114 = vmatmul.msk.bf16.gmra.mxu2 %vm810_vm2, %v14547_v13  ;;  %10130 = vmatmul.msk.bf16.gmra.mxu3 %vm810_vm2, %v14742_v21 }
 0xaac   : > { %v7903_v38 = vpop.f32.mrf.mxu2  ;;  %v7275_v2 = vpop.f32.mrf.mxu3 }
 0xaad   : > { %v14870_v31 = vadd.f32 %v7903_v38, %v7745_v4  ;;  %v14873_v34 = vadd.f32 %v7275_v2, %v14732_v52  ;;  %v7453_v32 = vpop.f32.mrf.mxu1  ;;  %v7679_v59 = vpop.f32.mrf.mxu0 }
 0xaae   : > { %v7520_v24 = vadd.f32 %v7453_v32, %v14654_v43  ;;  %v15778_v43 = vld [vmem:[#allocation17_spill] sm:$0xff] }
 0xab0   : > { %v14876_v42 = vadd.f32 %v7679_v59, %v7520_v24  ;;  %v15784_v59 = vld [vmem:[#allocation78_spill] sm:$0xff] }
 0xab4   : > { %v14878_v57 = vpop.f32.mrf.mxu2  ;;  %v7277_v25 = vpop.f32.mrf.mxu3 }
 0xab5   : > { %v14881_v13 = vadd.f32 %v7277_v25, %v14737_v0  ;;  %v7456_v21 = vpop.f32.mrf.mxu1  ;;  %v7682_v1 = vpop.f32.mrf.mxu0 }
 0xab6   : > { %v7521_v20 = vadd.f32 %v7456_v21, %v14670_v56  ;;  %v7799_v21 = vld [vmem:[#allocation2 + $0x227] sm:$0xff] }
 0xab7   : > { %10071 = vmatmul.msk.bf16.gmra.mxu1 %vm810_vm2, %v14545_v60 }
 0xab8   : > { %v7747_v5 = vadd.f32 %v7682_v1, %v7521_v20  ;;  %10093 = vmatmul.msk.bf16.gmra.mxu0 %vm810_vm2, %v14549_v39  ;;  %v7800_v1 = vld [vmem:[#allocation2 + $0x22f] sm:$0xff] }
 0xab9   : > { %10115 = vmatmul.msk.bf16.gmra.mxu2 %vm810_vm2, %v15778_v43  ;;  %10131 = vmatmul.msk.bf16.gmra.mxu3 %vm810_vm2, %v14767_v17  ;;  %v7348_v20 = vld [vmem:[#allocation2 + $0x210] sm:$0xff] }
 0xaba   : > { %v7574_v43 = vld [vmem:[#allocation2 + $0x211] sm:$0xff] }
 0xabc   : > { %v7908_v52 = vpop.f32.mrf.mxu2  ;;  %v7280_v0 = vpop.f32.mrf.mxu3 }
 0xabd   : > { %v14892_v37 = vadd.f32 %v7908_v52, %v7747_v5  ;;  %v14895_v29 = vadd.f32 %v7280_v0, %v14754_v11  ;;  %v7458_v56 = vpop.f32.mrf.mxu1  ;;  %v7684_v10 = vpop.f32.mrf.mxu0  ;;  %v15782_v11 = vld [vmem:[#allocation20_spill] sm:$0xff] }
 0xabe   : > { %v7522_v60 = vadd.f32 %v7458_v56, %v15779_v46  ;;  %v7573_v5 = vld [vmem:[#allocation2 + $0x209] sm:$0xff] }
 0xabf   : > { %v8014_v0 = vld [vmem:[#allocation2 + $0x170] sm:$0xff] }
 0xac0   : > { %v14898_v6 = vadd.f32 %v7684_v10, %v7522_v60  ;;  %v7819_v60 = vpack.c.bf16 %v7800_v1, %v7799_v21  ;;  %v8016_v1 = vld [vmem:[#allocation2 + $0x190] sm:$0xff] }
 0xac4   : > { %v14900_v39 = vpop.f32.mrf.mxu2  ;;  %v7282_v48 = vpop.f32.mrf.mxu3 }
 0xac5   : > { %v14903_v30 = vadd.f32 %v7282_v48, %v14759_v53  ;;  %v7461_v17 = vpop.f32.mrf.mxu1  ;;  %v7687_v3 = vpop.f32.mrf.mxu0  ;;  %v15785_v48 = vld [vmem:[#allocation34_spill] sm:$0xff] }
 0xac6   : > { %v7523_v26 = vadd.f32 %v7461_v17, %v15780_v54  ;;  %v14933_v54 = vpack.c.bf16 %v7574_v43, %v7573_v5 }
 0xac7   : > { %10072 = vmatmul.msk.bf16.gmra.mxu1 %vm810_vm2, %v15781_v49 }
 0xac8   : > { %v7749_v47 = vadd.f32 %v7687_v3, %v7523_v26  ;;  %10094 = vmatmul.msk.bf16.gmra.mxu0 %vm810_vm2, %v15782_v11  ;;  %v8013_v26 = vld [vmem:[#allocation2 + $0x168] sm:$0xff] }
 0xac9   : > { %10116 = vmatmul.msk.bf16.gmra.mxu2 %vm810_vm2, %v15783_v33  ;;  %10132 = vmatmul.msk.bf16.gmra.mxu3 %vm810_vm2, %v14798_v41 }
 0xacc   : > { %v7913_v53 = vpop.f32.mrf.mxu2  ;;  %v8109_v63 = vpop.f32.mrf.mxu3 }
 0xacd   : > { %v14917_v4 = vadd.f32 %v7913_v53, %v7749_v47  ;;  %v7463_v38 = vpop.f32.mrf.mxu1  ;;  %v7689_v2 = vpop.f32.mrf.mxu0  ;;  %v14920_v32 = vadd.f32 %v8109_v63, %v14784_v8  ;;  %v7347_v8 = vld [vmem:[#allocation2 + $0x208] sm:$0xff]  ;;  %v8039_v47 = vpack.c.bf16 %v8014_v0, %v8013_v26 }
 0xace   : > { %v7524_v24 = vadd.f32 %v7463_v38, %v15784_v59  ;;  %v14931_v3 = vpack.c.bf16 %v7348_v20, %v7347_v8  ;;  %v15786_v38 = vld [vmem:[#allocation82_spill] sm:$0xff]  ;;  %v8015_v0 = vld [vmem:[#allocation2 + $0x188] sm:$0xff]  ;;  %v15787_v8 = vld [vmem:[#allocation72_spill] sm:$0xff] }
 0xad0   : > { %v14923_v25 = vadd.f32 %v7689_v2, %v7524_v24 }
 0xad4   : > { %v14925_v41 = vpop.f32.mrf.mxu2  ;;  %v8111_v52 = vpop.f32.mrf.mxu3 }
 0xad5   : > { %v7466_v56 = vpop.f32.mrf.mxu1  ;;  %v7692_v10 = vpop.f32.mrf.mxu0  ;;  %v14928_v46 = vadd.f32 %v8111_v52, %v14792_v16 }
 0xad6   : > { %v7525_v17 = vadd.f32 %v7466_v56, %v15785_v48  ;;  %v8717_v56 = vpop.permute.xlu0 %8716 }
 0xad7   : > { %10073 = vmatmul.msk.bf16.gmra.mxu1 %vm810_vm2, %v14931_v3 }
 0xad8   : > { %v7751_v49 = vadd.f32 %v7692_v10, %v7525_v17  ;;  %10095 = vmatmul.msk.bf16.gmra.mxu0 %vm810_vm2, %v14933_v54  ;;  %v8040_v10 = vpack.c.bf16 %v8016_v1, %v8015_v0  ;;  %v15788_v0 = vld [vmem:[#allocation23_spill] sm:$0xff] }
 0xad9   : > { %10117 = vmatmul.msk.bf16.gmra.mxu2 %vm810_vm2, %v7819_v60  ;;  %10133 = vmatmul.msk.bf16.gmra.mxu3 %vm810_vm2, %v8039_v47  ;;  %v10270_v60 = vld [vmem:[%s15500_s7] sm:$0xff] }
 0xada   : > { %8964 = vmatpush.bf16.msra.mxu2 %v10270_v60 }
 0xadc   : > { %v7918_v16 = vpop.f32.mrf.mxu2  ;;  %v8114_v11 = vpop.f32.mrf.mxu3 }
 0xadd   : > { %v14941_v27 = vadd.f32 %v7918_v16, %v7751_v49  ;;  %v7468_v33 = vpop.f32.mrf.mxu1  ;;  %v7694_v53 = vpop.f32.mrf.mxu0  ;;  %v14944_v63 = vadd.f32 %v8114_v11, %v14810_v22 }
 0xade   : > { %v7526_v2 = vadd.f32 %v7468_v33, %v15786_v38 }
 0xae0   : > { %v14947_v59 = vadd.f32 %v7694_v53, %v7526_v2  ;;  %v8018_v53 = vld [vmem:[#allocation2 + $0x1b0] sm:$0xff] }
 0xae4   : > { %v14949_v24 = vpop.f32.mrf.mxu2  ;;  %v8116_v21 = vpop.f32.mrf.mxu3 }
 0xae5   : > { %v7471_v20 = vpop.f32.mrf.mxu1  ;;  %v7697_v5 = vpop.f32.mrf.mxu0  ;;  %v14952_v43 = vadd.f32 %v8116_v21, %v14816_v61 }
 0xae6   : > { %v7527_v52 = vadd.f32 %v7471_v20, %v14735_v23  ;;  %v8017_v20 = vld [vmem:[#allocation2 + $0x1a8] sm:$0xff] }
 0xae7   : > { %10146 = vmatmul.msk.bf16.vlgmr.msra.gmra.mxu1 %vm810_vm2, %v15787_v8 }
 0xae8   : > { %v7753_v22 = vadd.f32 %v7697_v5, %v7527_v52  ;;  %10171 = vmatmul.msk.bf16.vlgmr.msra.gmra.mxu0 %vm919_vm1, %v8717_v56  ;;  %v8719_v5 = vpop.permute.xlu0 %8718  ;;  %v8041_v52 = vpack.c.bf16 %v8018_v53, %v8017_v20  ;;  %v15789_v20 = vld [vmem:[#allocation74_spill] sm:$0xff] }
 0xae9   : > { %10134 = vmatmul.msk.bf16.gmra.mxu3 %vm810_vm2, %v8040_v10 }
 0xaec   : > { %v7923_v61 = vpop.f32.mrf.mxu2  ;;  %v8119_v48 = vpop.f32.mrf.mxu3 }
 0xaed   : > { %v14962_v17 = vadd.f32 %v7923_v61, %v7753_v22  ;;  %v7473_v23 = vpop.f32.mrf.mxu1  ;;  %v7699_v26 = vpop.f32.mrf.mxu0  ;;  %v14965_v47 = vadd.f32 %v8119_v48, %v14830_v19 }
 0xaee   : > { %v7528_v49 = vadd.f32 %v7473_v23, %v14740_v15  ;;  %v8020_v23 = vld [vmem:[#allocation2 + $0x1d0] sm:$0xff] }
 0xaf0   : > { %v14968_v16 = vadd.f32 %v7699_v26, %v7528_v49 }
 0xaf4   : > { %v14970_v11 = vpop.f32.mrf.mxu2  ;;  %v8121_v33 = vpop.f32.mrf.mxu3 }
 0xaf5   : > { %v7476_v38 = vpop.f32.mrf.mxu1  ;;  %v7702_v2 = vpop.f32.mrf.mxu0  ;;  %v14973_v21 = vadd.f32 %v8121_v33, %v14836_v58 }
 0xaf6   : > { %v7529_v1 = vadd.f32 %v7476_v38, %v14757_v18  ;;  %v8019_v38 = vld [vmem:[#allocation2 + $0x1c8] sm:$0xff] }
 0xaf7   : > { %10147 = vmatmul.msk.bf16.gmra.mxu1 %vm810_vm2, %v15788_v0 }
 0xaf8   : > { %v7755_v19 = vadd.f32 %v7702_v2, %v7529_v1  ;;  %10172 = vmatmul.msk.bf16.gmra.mxu0 %vm919_vm1, %v8719_v5  ;;  %v8721_v2 = vpop.permute.xlu1 %8720  ;;  %v8042_v1 = vpack.c.bf16 %v8020_v23, %v8019_v38 }
 0xaf9   : > { %10135 = vmatmul.msk.bf16.gmra.mxu3 %vm810_vm2, %v8041_v52 }
 0xafc   : > { %v7928_v15 = vpop.f32.mrf.mxu2  ;;  %v8124_v56 = vpop.f32.mrf.mxu3 }
 0xafd   : > { %v14980_v10 = vadd.f32 %v7928_v15, %v7755_v19  ;;  %v7478_v22 = vpop.f32.mrf.mxu1  ;;  %v7704_v58 = vpop.f32.mrf.mxu0  ;;  %v14983_v8 = vadd.f32 %v8124_v56, %v14850_v7  ;;  %v8022_v15 = vld [vmem:[#allocation2 + $0x1f0] sm:$0xff] }
 0xafe   : > { %v7530_v18 = vadd.f32 %v7478_v22, %v14762_v44 }
 0xb00   : > { %v14986_v60 = vadd.f32 %v7704_v58, %v7530_v18  ;;  %v8021_v18 = vld [vmem:[#allocation2 + $0x1e8] sm:$0xff] }
 0xb01   : > { %v8043_v23 = vpack.c.bf16 %v8022_v15, %v8021_v18  ;;  %v15791_v15 = vld [vmem:[#allocation31_spill] sm:$0xff] }
 0xb04   : > { %v14988_v61 = vpop.f32.mrf.mxu2  ;;  %v8126_v48 = vpop.f32.mrf.mxu3 }
 0xb05   : > { %v7481_v26 = vpop.f32.mrf.mxu1  ;;  %v7707_v49 = vpop.f32.mrf.mxu0  ;;  %v14991_v33 = vadd.f32 %v8126_v48, %v14856_v28 }
 0xb06   : > { %v7531_v53 = vadd.f32 %v7481_v26, %v14787_v35  ;;  %v8723_v48 = vpop.permute.xlu1 %8722 }
 0xb07   : > { %10148 = vmatmul.msk.bf16.gmra.mxu1 %vm810_vm2, %v15789_v20 }
 0xb08   : > { %v7757_v7 = vadd.f32 %v7707_v49, %v7531_v53  ;;  %10173 = vmatmul.msk.bf16.gmra.mxu0 %vm919_vm1, %v8721_v2  ;;  %v15790_v49 = vld [vmem:[#allocation76_spill] sm:$0xff] }
 0xb09   : > { %10136 = vmatmul.msk.bf16.gmra.mxu3 %vm810_vm2, %v8042_v1 }
 0xb0c   : > { %v7933_v44 = vpop.f32.mrf.mxu2 }
 0xb0d   : > { %v14998_v5 = vadd.f32 %v7933_v44, %v7757_v7  ;;  %v7483_v52 = vpop.f32.mrf.mxu1  ;;  %v7709_v19 = vpop.f32.mrf.mxu0 }
 0xb0e   : > { %v7532_v28 = vadd.f32 %v7483_v52, %v14795_v62 }
 0xb10   : > { %v15001_v0 = vadd.f32 %v7709_v19, %v7532_v28  ;;  %v8725_v19 = vpop.permute.xlu2 %8724 }
 0xb14   : > { %v15003_v35 = vpop.f32.mrf.mxu2 }
 0xb15   : > { %v7486_v56 = vpop.f32.mrf.mxu1  ;;  %v7712_v22 = vpop.f32.mrf.mxu0 }
 0xb16   : > { %v7533_v58 = vadd.f32 %v7486_v56, %v14813_v9 }
 0xb17   : > { %10149 = vmatmul.msk.bf16.gmra.mxu1 %vm810_vm2, %v15790_v49 }
 0xb18   : > { %v7759_v26 = vadd.f32 %v7712_v22, %v7533_v58  ;;  %10174 = vmatmul.msk.bf16.gmra.mxu0 %vm919_vm1, %v8723_v48 }
 0xb19   : > { %10137 = vmatmul.msk.bf16.gmra.mxu3 %vm810_vm2, %v8043_v23  ;;  %v8026_v23 = vld [vmem:[#allocation2 + $0x230] sm:$0xff] }
 0xb1c   : > { %v7938_v62 = vpop.f32.mrf.mxu2 }
 0xb1d   : > { %v15010_v53 = vadd.f32 %v7938_v62, %v7759_v26  ;;  %v7488_v38 = vpop.f32.mrf.mxu1  ;;  %v7714_v2 = vpop.f32.mrf.mxu0 }
 0xb1e   : > { %v7534_v1 = vadd.f32 %v7488_v38, %v14819_v45 }
 0xb20   : > { %v15013_v7 = vadd.f32 %v7714_v2, %v7534_v1  ;;  %v8727_v1 = vpop.permute.xlu2 %8726 }
 0xb24   : > { %v15015_v9 = vpop.f32.mrf.mxu2 }
 0xb25   : > { %v7491_v20 = vpop.f32.mrf.mxu1  ;;  %v7717_v44 = vpop.f32.mrf.mxu0 }
 0xb26   : > { %v7535_v52 = vadd.f32 %v7491_v20, %v14833_v40  ;;  %v8025_v40 = vld [vmem:[#allocation2 + $0x228] sm:$0xff]  ;;  %v15792_v20 = vld [vmem:[#allocation37_spill] sm:$0xff] }
 0xb27   : > { %10150 = vmatmul.msk.bf16.gmra.mxu1 %vm810_vm2, %v15791_v15  ;;  %v8045_v38 = vpack.c.bf16 %v8026_v23, %v8025_v40 }
 0xb28   : > { %v7761_v28 = vadd.f32 %v7717_v44, %v7535_v52  ;;  %10175 = vmatmul.msk.bf16.gmra.mxu0 %vm919_vm1, %v8725_v19 }
 0xb29   : > { %10138 = vmatmul.msk.bf16.gmra.mxu3 %vm810_vm2, %v14931_v3 }
 0xb2c   : > { %v7943_v56 = vpop.f32.mrf.mxu2 }
 0xb2d   : > { %v15023_v45 = vadd.f32 %v7943_v56, %v7761_v28  ;;  %v7493_v22 = vpop.f32.mrf.mxu1  ;;  %v7719_v58 = vpop.f32.mrf.mxu0 }
 0xb2e   : > { %v7536_v18 = vadd.f32 %v7493_v22, %v14839_v12 }
 0xb30   : > { %v15026_v48 = vadd.f32 %v7719_v58, %v7536_v18  ;;  %v8729_v18 = vpop.permute.xlu0 %8728 }
 0xb34   : > { %v15028_v26 = vpop.f32.mrf.mxu2 }
 0xb35   : > { %v7496_v49 = vpop.f32.mrf.mxu1  ;;  %v7722_v62 = vpop.f32.mrf.mxu0 }
 0xb36   : > { %v7537_v2 = vadd.f32 %v7496_v49, %v14853_v50 }
 0xb37   : > { %10151 = vmatmul.msk.bf16.gmra.mxu1 %vm810_vm2, %v15792_v20 }
 0xb38   : > { %v7763_v3 = vadd.f32 %v7722_v62, %v7537_v2  ;;  %10176 = vmatmul.msk.bf16.gmra.mxu0 %vm919_vm1, %v8727_v1 }
 0xb39   : > { %10139 = vmatmul.msk.bf16.gmra.mxu3 %vm810_vm2, %v8045_v38 }
 0xb3c   : > { %v7948_v12 = vpop.f32.mrf.mxu2 }
 0xb3d   : > { %v15035_v44 = vadd.f32 %v7948_v12, %v7763_v3  ;;  %v7498_v52 = vpop.f32.mrf.mxu1  ;;  %v7724_v19 = vpop.f32.mrf.mxu0 }
 0xb3e   : > { %v7538_v28 = vadd.f32 %v7498_v52, %v14859_v14  ;;  %v8731_v12 = vpop.permute.xlu1 %8730 }
 0xb40   : > { %v15038_v15 = vadd.f32 %v7724_v19, %v7538_v28 }
 0xb44   : > { %v15040_v56 = vpop.f32.mrf.mxu2 }
 0xb45   : > { %v7501_v50 = vpop.f32.mrf.mxu1  ;;  %v7727_v22 = vpop.f32.mrf.mxu0 }
 0xb46   : > { %v7539_v58 = vadd.f32 %v7501_v50, %v14873_v34 }
 0xb47   : > { %10152 = vmatmul.msk.bf16.gmra.mxu1 %vm810_vm2, %v14744_v55 }
 0xb48   : > { %v7765_v40 = vadd.f32 %v7727_v22, %v7539_v58  ;;  %10177 = vmatmul.msk.bf16.gmra.mxu0 %vm919_vm1, %v8729_v18 }
 0xb4c   : > { %v7953_v23 = vpop.f32.mrf.mxu2 }
 0xb4d   : > { %v15046_v49 = vadd.f32 %v7953_v23, %v7765_v40  ;;  %v7503_v62 = vpop.f32.mrf.mxu1  ;;  %v7729_v14 = vpop.f32.mrf.mxu0 }
 0xb4e   : > { %v7540_v38 = vadd.f32 %v7503_v62, %v14881_v13 }
 0xb50   : > { %v15049_v2 = vadd.f32 %v7729_v14, %v7540_v38 }
 0xb54   : > { %v15051_v1 = vpop.f32.mrf.mxu2 }
 0xb55   : > { %v7506_v3 = vpop.f32.mrf.mxu1  ;;  %v7732_v34 = vpop.f32.mrf.mxu0 }
 0xb56   : > { %v7541_v20 = vadd.f32 %v7506_v3, %v14895_v29  ;;  %v15065_v29 = vld [vmem:[%s15499_s6 + $0x2] ss:$0 sm:$0xff] }
 0xb57   : > { %10153 = vmatmul.msk.bf16.gmra.mxu1 %vm810_vm2, %v14769_v36  ;;  %v8733_v36 = vpop.permute.xlu2 %8732 }
 0xb58   : > { %v7767_v52 = vadd.f32 %v7732_v34, %v7541_v20  ;;  %10178 = vmatmul.msk.bf16.gmra.mxu0 %vm919_vm1, %v8731_v12  ;;  %v15074_v34 = vpop.f32.mrf.mxu3  ;;  %v8240_v20 = vld [vmem:[#allocation2 + $0x171] sm:$0xff] }
 0xb5c   : > { %v7958_v55 = vpop.f32.mrf.mxu2 }
 0xb5d   : > { %v15057_v19 = vadd.f32 %v7958_v55, %v7767_v52  ;;  %v7508_v28 = vpop.f32.mrf.mxu1  ;;  %v7734_v50 = vpop.f32.mrf.mxu0 }
 0xb5e   : > { %v7542_v13 = vadd.f32 %v7508_v28, %v14903_v30 }
 0xb60   : > { %v15060_v22 = vadd.f32 %v7734_v50, %v7542_v13  ;;  %v8735_v13 = vpop.permute.xlu0 %8734 }
 0xb62   : > { %15793 = vst [vmem:[#allocation84_spill] sm:$0xff] %v15060_v22 }
 0xb65   : > { %v8335_v58 = vpop.f32.mrf.mxu1 }
 0xb66   : > { %v8415_v18 = vadd.f32 %v8335_v58, %v14920_v32  ;;  %v8239_v32 = vld [vmem:[#allocation2 + $0x169] sm:$0xff] }
 0xb67   : > { %10154 = vmatmul.msk.bf16.gmra.mxu1 %vm810_vm2, %v14800_v51  ;;  %v8265_v28 = vpack.c.bf16 %v8240_v20, %v8239_v32  ;;  %v8241_v32 = vld [vmem:[#allocation2 + $0x189] sm:$0xff]  ;;  %v8242_v20 = vld [vmem:[#allocation2 + $0x191] sm:$0xff] }
 0xb68   : > { %v8452_v40 = vadd.f32 %v15065_v29, %v8415_v18  ;;  %10179 = vmatmul.msk.bf16.gmra.mxu0 %vm919_vm1, %v8733_v36 }
 0xb6a   : > { %v8484_v30 = vsub.f32 0.0, %v8452_v40 }
 0xb6c   : > { %v8516_v23 = vmul.f32 1.442695, %v8484_v30  ;;  %v15080_v30 = vpop.f32.mrf.mxu3 }
 0xb6d   : > { %v8337_v62 = vpop.f32.mrf.mxu1 }
 0xb6e   : > { %v8416_v14 = vadd.f32 %v8337_v62, %v14928_v46  ;;  %11098 = vpow2.f32 %v8516_v23 }
 0xb70   : > { %v8453_v38 = vadd.f32 %v15065_v29, %v8416_v14 }
 0xb72   : > { %v8485_v3 = vsub.f32 0.0, %v8453_v38 }
 0xb74   : > { %v8518_v12 = vmul.f32 1.442695, %v8485_v3  ;;  %v11099_v55 = vpop.eup %11098 }
 0xb75   : > { %v8340_v52 = vpop.f32.mrf.mxu1  ;;  %v8580_v46 = vadd.f32 1.0, %v11099_v55 }
 0xb76   : > { %11100 = vpow2.f32 %v8518_v12  ;;  %v8417_v51 = vadd.f32 %v8340_v52, %v14944_v63 }
 0xb77   : > { %10155 = vmatmul.msk.bf16.gmra.mxu1 %vm810_vm2, %v8265_v28  ;;  %11102 = vrcp.f32 %v8580_v46  ;;  %v8266_v28 = vpack.c.bf16 %v8242_v20, %v8241_v32 }
 0xb78   : > { %v8454_v50 = vadd.f32 %v15065_v29, %v8417_v51  ;;  %10180 = vmatmul.msk.bf16.gmra.mxu0 %vm919_vm1, %v8735_v13 }
 0xb7a   : > { %v8486_v58 = vsub.f32 0.0, %v8454_v50 }
 0xb7c   : > { %v11101_v18 = vpop.eup %11100  ;;  %v8520_v36 = vmul.f32 1.442695, %v8486_v58 }
 0xb7d   : > { %v8581_v23 = vadd.f32 1.0, %v11101_v18  ;;  %v8342_v62 = vpop.f32.mrf.mxu1  ;;  %v11103_v12 = vpop.eup %11102 }
 0xb7e   : > { %v8418_v14 = vadd.f32 %v8342_v62, %v14952_v43  ;;  %v8644_v58 = vmul.f32 %v11103_v12, %v8452_v40  ;;  %v8737_v18 = vpop.permute.xlu1 %8736  ;;  %v15085_v43 = vpop.f32.mrf.mxu3 }
 0xb7f   : > { %11104 = vrcp.f32 %v8581_v23  ;;  %v15095_v12 = vpop.f32.mrf.mxu0 }
 0xb80   : > { %11106 = vpow2.f32 %v8520_v36  ;;  %v8455_v63 = vadd.f32 %v15065_v29, %v8418_v14 }
 0xb82   : > { %v8487_v3 = vsub.f32 0.0, %v8455_v63 }
 0xb84   : > { %v8522_v52 = vmul.f32 1.442695, %v8487_v3 }
 0xb85   : > { %v11105_v55 = vpop.eup %11104  ;;  %v8345_v51 = vpop.f32.mrf.mxu1 }
 0xb86   : > { %v11107_v13 = vpop.eup %11106  ;;  %v8645_v22 = vmul.f32 %v11105_v55, %v8453_v38  ;;  %11108 = vpow2.f32 %v8522_v52  ;;  %v8419_v46 = vadd.f32 %v8345_v51, %v14965_v47  ;;  %v15093_v20 = vpop.f32.mrf.mxu3  ;;  %v8243_v55 = vld [vmem:[#allocation2 + $0x1a9] sm:$0xff]  ;;  %v8244_v51 = vld [vmem:[#allocation2 + $0x1b1] sm:$0xff] }
 0xb87   : > { %10156 = vmatmul.msk.bf16.gmra.mxu1 %vm810_vm2, %v8266_v28  ;;  %v8582_v62 = vadd.f32 1.0, %v11107_v13 }
 0xb88   : > { %v8684_v36 = vpack.c.bf16 %v8645_v22, %v8644_v58  ;;  %v8456_v23 = vadd.f32 %v15065_v29, %v8419_v46  ;;  %10181 = vmatmul.msk.bf16.gmra.mxu0 %vm919_vm1, %v8737_v18  ;;  %v8267_v18 = vpack.c.bf16 %v8244_v51, %v8243_v55 }
 0xb89   : > { %11110 = vrcp.f32 %v8582_v62 }
 0xb8a   : > { %v8488_v14 = vsub.f32 0.0, %v8456_v23  ;;  %10195 = vmatmul.msk.bf16.vlgmr.msra.gmra.mxu2 %vm919_vm1, %v8684_v36 }
 0xb8c   : > { %v11109_v3 = vpop.eup %11108  ;;  %v8524_v40 = vmul.f32 1.442695, %v8488_v14 }
 0xb8d   : > { %v8583_v38 = vadd.f32 1.0, %v11109_v3  ;;  %v8347_v32 = vpop.f32.mrf.mxu1  ;;  %v8739_v3 = vpop.permute.xlu2 %8738 }
 0xb8e   : > { %v8420_v47 = vadd.f32 %v8347_v32, %v14973_v21 }
 0xb8f   : > { %11112 = vrcp.f32 %v8583_v38  ;;  %v11111_v28 = vpop.eup %11110 }
 0xb90   : > { %11114 = vpow2.f32 %v8524_v40  ;;  %v8457_v22 = vadd.f32 %v15065_v29, %v8420_v47  ;;  %v8646_v62 = vmul.f32 %v11111_v28, %v8454_v50 }
 0xb92   : > { %v8489_v52 = vsub.f32 0.0, %v8457_v22 }
 0xb94   : > { %v8526_v13 = vmul.f32 1.442695, %v8489_v52  ;;  %v15105_v52 = vpop.f32.mrf.mxu3 }
 0xb95   : > { %v11113_v58 = vpop.eup %11112  ;;  %v8350_v46 = vpop.f32.mrf.mxu1 }
 0xb96   : > { %v11115_v36 = vpop.eup %11114  ;;  %v8647_v14 = vmul.f32 %v11113_v58, %v8455_v63  ;;  %11116 = vpow2.f32 %v8526_v13  ;;  %v8421_v21 = vadd.f32 %v8350_v46, %v14983_v8  ;;  %v15107_v63 = vpop.f32.mrf.mxu0  ;;  %v8245_v46 = vld [vmem:[#allocation2 + $0x1c9] sm:$0xff] }
 0xb97   : > { %10157 = vmatmul.msk.bf16.gmra.mxu1 %vm810_vm2, %v8267_v18  ;;  %v8584_v32 = vadd.f32 1.0, %v11115_v36  ;;  %v8246_v18 = vld [vmem:[#allocation2 + $0x1d1] sm:$0xff] }
 0xb98   : > { %v15099_v40 = vadd.f32 %v15065_v29, %v8421_v21  ;;  %10182 = vmatmul.msk.bf16.gmra.mxu0 %vm919_vm1, %v8739_v3  ;;  %v8685_v38 = vpack.c.bf16 %v8647_v14, %v8646_v62  ;;  %v8197_v62 = vadd.f32 %v15074_v34, %v14870_v31 }
 0xb99   : > { %11118 = vrcp.f32 %v8584_v32  ;;  %v8268_v32 = vpack.c.bf16 %v8246_v18, %v8245_v46 }
 0xb9a   : > { %v8490_v47 = vsub.f32 0.0, %v15099_v40  ;;  %10196 = vmatmul.msk.bf16.gmra.mxu2 %vm919_vm1, %v8685_v38 }
 0xb9c   : > { %v11117_v50 = vpop.eup %11116  ;;  %v8528_v8 = vmul.f32 1.442695, %v8490_v47  ;;  %v15113_v3 = vpop.f32.mrf.mxu3 }
 0xb9d   : > { %v8585_v55 = vadd.f32 1.0, %v11117_v50  ;;  %v8352_v51 = vpop.f32.mrf.mxu1 }
 0xb9e   : > { %v8422_v28 = vadd.f32 %v8352_v51, %v14991_v33  ;;  %v15115_v50 = vpop.f32.mrf.mxu0  ;;  %v8741_v51 = vpop.permute.xlu0 %8740 }
 0xb9f   : > { %11120 = vrcp.f32 %v8585_v55  ;;  %v11119_v36 = vpop.eup %11118 }
 0xba0   : > { %11122 = vpow2.f32 %v8528_v8  ;;  %v8459_v13 = vadd.f32 %v15065_v29, %v8422_v28  ;;  %v8648_v33 = vmul.f32 %v11119_v36, %v8456_v23 }
 0xba2   : > { %v8491_v58 = vsub.f32 0.0, %v8459_v13 }
 0xba4   : > { %v8530_v14 = vmul.f32 1.442695, %v8491_v58  ;;  %v7972_v58 = vadd.f32 %v14878_v57, %v14876_v42 }
 0xba5   : > { %v11121_v21 = vpop.eup %11120  ;;  %v8355_v38 = vpop.f32.mrf.mxu1 }
 0xba6   : > { %v11123_v47 = vpop.eup %11122  ;;  %v8649_v8 = vmul.f32 %v11121_v21, %v8457_v22  ;;  %11124 = vpow2.f32 %v8530_v14  ;;  %v8423_v55 = vadd.f32 %v8355_v38, %v8197_v62  ;;  %v8198_v22 = vadd.f32 %v15080_v30, %v7972_v58  ;;  %v15127_v21 = vpop.f32.mrf.mxu3 }
 0xba7   : > { %10158 = vmatmul.msk.bf16.gmra.mxu1 %vm810_vm2, %v8268_v32  ;;  %v8586_v34 = vadd.f32 1.0, %v11123_v47  ;;  %v15129_v38 = vpop.f32.mrf.mxu0  ;;  %v8247_v32 = vld [vmem:[#allocation2 + $0x1e9] sm:$0xff]  ;;  %v8248_v47 = vld [vmem:[#allocation2 + $0x1f1] sm:$0xff]  ;;  %v8199_v30 = vadd.f32 %v15085_v43, %v14892_v37 }
 0xba8   : > { %v15118_v28 = vadd.f32 %v15065_v29, %v8423_v55  ;;  %10183 = vmatmul.msk.bf16.gmra.mxu0 %vm919_vm1, %v8741_v51  ;;  %v8686_v31 = vpack.c.bf16 %v8649_v8, %v8648_v33 }
 0xba9   : > { %11126 = vrcp.f32 %v8586_v34 }
 0xbaa   : > { %v8492_v46 = vsub.f32 0.0, %v15118_v28  ;;  %10197 = vmatmul.msk.bf16.gmra.mxu2 %vm919_vm1, %v8686_v31  ;;  %v8269_v31 = vpack.c.bf16 %v8248_v47, %v8247_v32 }
 0xbac   : > { %v11125_v23 = vpop.eup %11124  ;;  %v8532_v18 = vmul.f32 1.442695, %v8492_v46 }
 0xbad   : > { %v8587_v36 = vadd.f32 1.0, %v11125_v23  ;;  %v8357_v62 = vpop.f32.mrf.mxu1 }
 0xbae   : > { %v8424_v14 = vadd.f32 %v8357_v62, %v8198_v22  ;;  %v8743_v22 = vpop.permute.xlu1 %8742  ;;  %v15140_v37 = vpop.f32.mrf.mxu3  ;;  %v7974_v62 = vadd.f32 %v14900_v39, %v14898_v6 }
 0xbaf   : > { %11128 = vrcp.f32 %v8587_v36  ;;  %v11127_v33 = vpop.eup %11126 }
 0xbb0   : > { %11130 = vpow2.f32 %v8532_v18  ;;  %v8461_v42 = vadd.f32 %v15065_v29, %v8424_v14  ;;  %v8650_v58 = vmul.f32 %v11127_v33, %v15099_v40  ;;  %v15144_v14 = vpop.f32.mrf.mxu0 }
 0xbb2   : > { %v8493_v57 = vsub.f32 0.0, %v8461_v42 }
 0xbb4   : > { %v8534_v8 = vmul.f32 1.442695, %v8493_v57  ;;  %v8200_v57 = vadd.f32 %v15093_v20, %v7974_v62 }
 0xbb5   : > { %v11129_v55 = vpop.eup %11128  ;;  %v8360_v51 = vpop.f32.mrf.mxu1 }
 0xbb6   : > { %v11131_v34 = vpop.eup %11130  ;;  %v8651_v46 = vmul.f32 %v11129_v55, %v8459_v13  ;;  %11132 = vpow2.f32 %v8534_v8  ;;  %v8425_v23 = vadd.f32 %v8360_v51, %v8199_v30  ;;  %v15150_v39 = vpop.f32.mrf.mxu3  ;;  %v8201_v51 = vadd.f32 %v15105_v52, %v14917_v4 }
 0xbb7   : > { %10159 = vmatmul.msk.bf16.gmra.mxu1 %vm810_vm2, %v8269_v31  ;;  %v8588_v43 = vadd.f32 1.0, %v11131_v34  ;;  %v7976_v52 = vadd.f32 %v14925_v41, %v14923_v25  ;;  %v8251_v25 = vld [vmem:[#allocation2 + $0x229] sm:$0xff]  ;;  %v8252_v41 = vld [vmem:[#allocation2 + $0x231] sm:$0xff] }
 0xbb8   : > { %v15136_v18 = vadd.f32 %v15065_v29, %v8425_v23  ;;  %10184 = vmatmul.msk.bf16.gmra.mxu0 %vm919_vm1, %v8743_v22  ;;  %v8687_v36 = vpack.c.bf16 %v8651_v46, %v8650_v58  ;;  %v15154_v31 = vpop.f32.mrf.mxu0 }
 0xbb9   : > { %11134 = vrcp.f32 %v8588_v43  ;;  %v8745_v43 = vpop.permute.xlu2 %8744 }
 0xbba   : > { %v8494_v40 = vsub.f32 0.0, %v15136_v18  ;;  %10198 = vmatmul.msk.bf16.gmra.mxu2 %vm919_vm1, %v8687_v36 }
 0xbbc   : > { %v11133_v13 = vpop.eup %11132  ;;  %v8536_v32 = vmul.f32 1.442695, %v8494_v40 }
 0xbbd   : > { %v8589_v47 = vadd.f32 1.0, %v11133_v13  ;;  %v8362_v33 = vpop.f32.mrf.mxu1 }
 0xbbe   : > { %v8426_v30 = vadd.f32 %v8362_v33, %v8200_v57 }
 0xbbf   : > { %11136 = vrcp.f32 %v8589_v47  ;;  %v11135_v6 = vpop.eup %11134 }
 0xbc0   : > { %11138 = vpow2.f32 %v8536_v32  ;;  %v8463_v8 = vadd.f32 %v15065_v29, %v8426_v30  ;;  %v8652_v23 = vmul.f32 %v11135_v6, %v15118_v28  ;;  %v15165_v32 = vpop.f32.mrf.mxu3  ;;  %v15167_v30 = vpop.f32.mrf.mxu0 }
 0xbc2   : > { %v8495_v55 = vsub.f32 0.0, %v8463_v8 }
 0xbc4   : > { %v8538_v34 = vmul.f32 1.442695, %v8495_v55 }
 0xbc5   : > { %v11137_v20 = vpop.eup %11136  ;;  %v8365_v58 = vpop.f32.mrf.mxu1 }
 0xbc6   : > { %v11139_v46 = vpop.eup %11138  ;;  %v8653_v22 = vmul.f32 %v11137_v20, %v8461_v42  ;;  %11140 = vpow2.f32 %v8538_v34  ;;  %v8427_v36 = vadd.f32 %v8365_v58, %v8201_v51  ;;  %v8202_v42 = vadd.f32 %v15113_v3, %v7976_v52 }
 0xbc7   : > { %10160 = vmatmul.msk.bf16.gmra.mxu1 %vm810_vm2, %v14933_v54  ;;  %v8590_v4 = vadd.f32 1.0, %v11139_v46  ;;  %v8203_v3 = vadd.f32 %v15127_v21, %v14941_v27  ;;  %v8271_v20 = vpack.c.bf16 %v8252_v41, %v8251_v25  ;;  %v7978_v21 = vadd.f32 %v14949_v24, %v14947_v59 }
 0xbc8   : > { %v8688_v62 = vpack.c.bf16 %v8653_v22, %v8652_v23  ;;  %v8464_v40 = vadd.f32 %v15065_v29, %v8427_v36  ;;  %10185 = vmatmul.msk.bf16.gmra.mxu0 %vm919_vm1, %v8745_v43  ;;  %v15173_v52 = vpop.f32.mrf.mxu0  ;;  %v8205_v59 = vadd.f32 %v15150_v39, %v14962_v17 }
 0xbc9   : > { %11142 = vrcp.f32 %v8590_v4  ;;  %v8154_v4 = vpop.f32.mrf.mxu3 }
 0xbca   : > { %v8496_v13 = vsub.f32 0.0, %v8464_v40  ;;  %10199 = vmatmul.msk.bf16.gmra.mxu2 %vm919_vm1, %v8688_v62  ;;  %v8747_v62 = vpop.permute.xlu0 %8746 }
 0xbcc   : > { %v11141_v28 = vpop.eup %11140  ;;  %v8540_v57 = vmul.f32 1.442695, %v8496_v13 }
 0xbcd   : > { %v8591_v47 = vadd.f32 1.0, %v11141_v28  ;;  %v8367_v33 = vpop.f32.mrf.mxu1 }
 0xbce   : > { %v8428_v54 = vadd.f32 %v8367_v33, %v8202_v42 }
 0xbcf   : > { %11144 = vrcp.f32 %v8591_v47  ;;  %v11143_v51 = vpop.eup %11142 }
 0xbd0   : > { %11146 = vpow2.f32 %v8540_v57  ;;  %v8465_v55 = vadd.f32 %v15065_v29, %v8428_v54  ;;  %v8654_v22 = vmul.f32 %v11143_v51, %v15136_v18 }
 0xbd1   : > { %v8156_v41 = vpop.f32.mrf.mxu3 }
 0xbd2   : > { %v8497_v6 = vsub.f32 0.0, %v8465_v55 }
 0xbd4   : > { %v8542_v34 = vmul.f32 1.442695, %v8497_v6 }
 0xbd5   : > { %v11145_v58 = vpop.eup %11144  ;;  %v8370_v46 = vpop.f32.mrf.mxu1 }
 0xbd6   : > { %v11147_v23 = vpop.eup %11146  ;;  %v8655_v36 = vmul.f32 %v11145_v58, %v8463_v8  ;;  %11148 = vpow2.f32 %v8542_v34  ;;  %v8429_v43 = vadd.f32 %v8370_v46, %v8203_v3  ;;  %v8204_v8 = vadd.f32 %v15140_v37, %v7978_v21 }
 0xbd7   : > { %10161 = vmatmul.msk.bf16.gmra.mxu1 %vm810_vm2, %v8271_v20  ;;  %v8592_v27 = vadd.f32 1.0, %v11147_v23 }
 0xbd8   : > { %v8689_v13 = vpack.c.bf16 %v8655_v36, %v8654_v22  ;;  %v8466_v28 = vadd.f32 %v15065_v29, %v8429_v43  ;;  %10186 = vmatmul.msk.bf16.gmra.mxu0 %vm919_vm1, %v8747_v62  ;;  %v7980_v43 = vadd.f32 %v14970_v11, %v14968_v16  ;;  %v8207_v16 = vadd.f32 %v8154_v4, %v14980_v10 }
 0xbd9   : > { %11150 = vrcp.f32 %v8592_v27 }
 0xbda   : > { %v8498_v42 = vsub.f32 0.0, %v8466_v28  ;;  %10200 = vmatmul.msk.bf16.gmra.mxu2 %vm919_vm1, %v8689_v13  ;;  %v8159_v13 = vpop.f32.mrf.mxu3  ;;  %v8206_v39 = vadd.f32 %v15165_v32, %v7980_v43 }
 0xbdc   : > { %v11149_v18 = vpop.eup %11148  ;;  %v8544_v57 = vmul.f32 1.442695, %v8498_v42 }
 0xbdd   : > { %v8593_v47 = vadd.f32 1.0, %v11149_v18  ;;  %v8372_v33 = vpop.f32.mrf.mxu1 }
 0xbde   : > { %v8430_v54 = vadd.f32 %v8372_v33, %v8204_v8 }
 0xbdf   : > { %11152 = vrcp.f32 %v8593_v47  ;;  %v11151_v51 = vpop.eup %11150 }
 0xbe0   : > { %11154 = vpow2.f32 %v8544_v57  ;;  %v8467_v25 = vadd.f32 %v15065_v29, %v8430_v54  ;;  %v8656_v37 = vmul.f32 %v11151_v51, %v8464_v40 }
 0xbe2   : > { %v8499_v6 = vsub.f32 0.0, %v8467_v25  ;;  %v8161_v47 = vpop.f32.mrf.mxu3 }
 0xbe4   : > { %v8546_v24 = vmul.f32 1.442695, %v8499_v6 }
 0xbe5   : > { %v11153_v3 = vpop.eup %11152  ;;  %v8375_v34 = vpop.f32.mrf.mxu1 }
 0xbe6   : > { %v11155_v20 = vpop.eup %11154  ;;  %v8657_v58 = vmul.f32 %v11153_v3, %v8465_v55  ;;  %11156 = vpow2.f32 %v8546_v24  ;;  %v8431_v46 = vadd.f32 %v8375_v34, %v8205_v59  ;;  %v7982_v34 = vadd.f32 %v14988_v61, %v14986_v60 }
 0xbe7   : > { %v8594_v36 = vadd.f32 1.0, %v11155_v20 }
 0xbe8   : > { %v8690_v23 = vpack.c.bf16 %v8657_v58, %v8656_v37  ;;  %v8468_v22 = vadd.f32 %v15065_v29, %v8431_v46  ;;  %v8208_v4 = vadd.f32 %v8156_v41, %v7982_v34 }
 0xbe9   : > { %11158 = vrcp.f32 %v8594_v36 }
 0xbea   : > { %v8500_v62 = vsub.f32 0.0, %v8468_v22  ;;  %10201 = vmatmul.msk.bf16.gmra.mxu2 %vm919_vm1, %v8690_v23 }
 0xbec   : > { %v11157_v17 = vpop.eup %11156  ;;  %v8548_v27 = vmul.f32 1.442695, %v8500_v62  ;;  %v8209_v62 = vadd.f32 %v8159_v13, %v14998_v5 }
 0xbed   : > { %v8595_v40 = vadd.f32 1.0, %v11157_v17  ;;  %v8377_v55 = vpop.f32.mrf.mxu1 }
 0xbee   : > { %v8432_v21 = vadd.f32 %v8377_v55, %v8206_v39 }
 0xbef   : > { %11160 = vrcp.f32 %v8595_v40  ;;  %v11159_v8 = vpop.eup %11158 }
 0xbf0   : > { %11162 = vpow2.f32 %v8548_v27  ;;  %v8469_v42 = vadd.f32 %v15065_v29, %v8432_v21  ;;  %v8658_v6 = vmul.f32 %v11159_v8, %v8466_v28  ;;  %v15198_v27 = vpop.f32.mrf.mxu2 }
 0xbf2   : > { %v8501_v18 = vsub.f32 0.0, %v8469_v42 }
 0xbf4   : > { %v8550_v11 = vmul.f32 1.442695, %v8501_v18 }
 0xbf5   : > { %v11161_v57 = vpop.eup %11160  ;;  %v8380_v33 = vpop.f32.mrf.mxu1 }
 0xbf6   : > { %v11163_v54 = vpop.eup %11162  ;;  %v8659_v32 = vmul.f32 %v11161_v57, %v8467_v25  ;;  %11164 = vpow2.f32 %v8550_v11  ;;  %v8433_v51 = vadd.f32 %v8380_v33, %v8207_v16  ;;  %v8164_v25 = vpop.f32.mrf.mxu3  ;;  %v7984_v11 = vadd.f32 %v15003_v35, %v15001_v0 }
 0xbf7   : > { %v8596_v3 = vadd.f32 1.0, %v11163_v54  ;;  %v15210_v54 = vld [vmem:[%s15501_s8] ss:$0 sm:$0xff] }
 0xbf8   : > { %v8691_v59 = vpack.c.bf16 %v8659_v32, %v8658_v6  ;;  %v8470_v24 = vadd.f32 %v15065_v29, %v8433_v51  ;;  %v8210_v57 = vadd.f32 %v8161_v47, %v7984_v11 }
 0xbf9   : > { %11166 = vrcp.f32 %v8596_v3 }
 0xbfa   : > { %v8502_v20 = vsub.f32 0.0, %v8470_v24  ;;  %10202 = vmatmul.msk.bf16.gmra.mxu2 %vm919_vm1, %v8691_v59 }
 0xbfc   : > { %v11165_v10 = vpop.eup %11164  ;;  %v8552_v37 = vmul.f32 1.442695, %v8502_v20  ;;  %v8211_v20 = vadd.f32 %v8164_v25, %v15010_v53  ;;  %v7986_v25 = vadd.f32 %v15015_v9, %v15013_v7 }
 0xbfd   : > { %v8597_v58 = vadd.f32 1.0, %v11165_v10  ;;  %v8382_v46 = vpop.f32.mrf.mxu1 }
 0xbfe   : > { %v8434_v28 = vadd.f32 %v8382_v46, %v8208_v4  ;;  %v8166_v8 = vpop.f32.mrf.mxu3 }
 0xbff   : > { %11168 = vrcp.f32 %v8597_v58  ;;  %v11167_v43 = vpop.eup %11166 }
 0xc00   : > { %11170 = vpow2.f32 %v8552_v37  ;;  %v8471_v23 = vadd.f32 %v15065_v29, %v8434_v28  ;;  %v8660_v41 = vmul.f32 %v11167_v43, %v8468_v22 }
 0xc02   : > { %v8503_v36 = vsub.f32 0.0, %v8471_v23 }
 0xc04   : > { %v8554_v60 = vmul.f32 1.442695, %v8503_v36 }
 0xc05   : > { %v11169_v61 = vpop.eup %11168  ;;  %v8385_v17 = vpop.f32.mrf.mxu1 }
 0xc06   : > { %v11171_v39 = vpop.eup %11170  ;;  %v8661_v40 = vmul.f32 %v11169_v61, %v8469_v42  ;;  %11172 = vpow2.f32 %v8554_v60  ;;  %v8435_v55 = vadd.f32 %v8385_v17, %v8209_v62  ;;  %v8169_v3 = vpop.f32.mrf.mxu3 }
 0xc07   : > { %v8598_v16 = vadd.f32 1.0, %v11171_v39 }
 0xc08   : > { %v8692_v21 = vpack.c.bf16 %v8661_v40, %v8660_v41  ;;  %v15201_v18 = vadd.f32 %v15065_v29, %v8435_v55 }
 0xc09   : > { %11174 = vrcp.f32 %v8598_v16 }
 0xc0a   : > { %v8504_v5 = vsub.f32 0.0, %v15201_v18  ;;  %10203 = vmatmul.msk.bf16.gmra.mxu2 %vm919_vm1, %v8692_v21 }
 0xc0c   : > { %v11173_v13 = vpop.eup %11172  ;;  %v8556_v33 = vmul.f32 1.442695, %v8504_v5 }
 0xc0d   : > { %v8599_v22 = vadd.f32 1.0, %v11173_v13  ;;  %v8387_v42 = vpop.f32.mrf.mxu1  ;;  %v8966_v32 = vpop.f32.mrf.mxu2 }
 0xc0e   : > { %v8436_v6 = vadd.f32 %v8387_v42, %v8210_v57  ;;  %v8967_v0 = vadd.f32 %v8966_v32, %v15095_v12  ;;  %v8171_v40 = vpop.f32.mrf.mxu3  ;;  %v15232_v57 = vpop.f32.mrf.mxu0 }
 0xc0f   : > { %11176 = vrcp.f32 %v8599_v22  ;;  %v11175_v59 = vpop.eup %11174 }
 0xc10   : > { %11178 = vpow2.f32 %v8556_v33  ;;  %v8473_v35 = vadd.f32 %v15065_v29, %v8436_v6  ;;  %v15215_v51 = vadd.f32 %v15210_v54, %v8967_v0  ;;  %v8662_v28 = vmul.f32 %v11175_v59, %v8470_v24 }
 0xc11   : > { %v8213_v0 = vadd.f32 %v8169_v3, %v15023_v45 }
 0xc12   : > { %v8505_v47 = vsub.f32 0.0, %v8473_v35  ;;  %v9082_v34 = vsub.f32 0.0, %v15215_v51 }
 0xc14   : > { %v8558_v10 = vmul.f32 1.442695, %v8505_v47  ;;  %v9114_v37 = vmul.f32 1.442695, %v9082_v34 }
 0xc15   : > { %v11177_v4 = vpop.eup %11176  ;;  %v8390_v58 = vpop.f32.mrf.mxu1 }
 0xc16   : > { %v11179_v46 = vpop.eup %11178  ;;  %v8663_v12 = vmul.f32 %v11177_v4, %v8471_v23  ;;  %11180 = vpow2.f32 %v8558_v10  ;;  %v8437_v36 = vadd.f32 %v8390_v58, %v8211_v20  ;;  %v8968_v43 = vpop.f32.mrf.mxu2 }
 0xc17   : > { %v8969_v62 = vadd.f32 %v8968_v43, %v15107_v63  ;;  %11182 = vpow2.f32 %v9114_v37  ;;  %v8600_v17 = vadd.f32 1.0, %v11179_v46  ;;  %v8212_v63 = vadd.f32 %v8166_v8, %v7986_v25 }
 0xc18   : > { %v8693_v60 = vpack.c.bf16 %v8663_v12, %v8662_v28  ;;  %v15221_v61 = vadd.f32 %v15065_v29, %v8437_v36  ;;  %v8174_v28 = vpop.f32.mrf.mxu3 }
 0xc19   : > { %v15224_v53 = vadd.f32 %v15210_v54, %v8969_v62  ;;  %11184 = vrcp.f32 %v8600_v17 }
 0xc1a   : > { %v8506_v24 = vsub.f32 0.0, %v15221_v61  ;;  %10204 = vmatmul.msk.bf16.gmra.mxu2 %vm919_vm1, %v8693_v60  ;;  %v15257_v60 = vpop.f32.mrf.mxu0 }
 0xc1b   : > { %v9083_v23 = vsub.f32 0.0, %v15224_v53 }
 0xc1c   : > { %v11181_v39 = vpop.eup %11180  ;;  %v8560_v41 = vmul.f32 1.442695, %v8506_v24 }
 0xc1d   : > { %v8601_v55 = vadd.f32 1.0, %v11181_v39  ;;  %v9116_v21 = vmul.f32 1.442695, %v9083_v23  ;;  %v8392_v16 = vpop.f32.mrf.mxu1  ;;  %v11183_v11 = vpop.eup %11182 }
 0xc1e   : > { %11186 = vpow2.f32 %v8560_v41  ;;  %v8438_v5 = vadd.f32 %v8392_v16, %v8212_v63  ;;  %v8971_v7 = vpop.f32.mrf.mxu2  ;;  %v9178_v9 = vadd.f32 1.0, %v11183_v11 }
 0xc1f   : > { %11188 = vrcp.f32 %v8601_v55  ;;  %v8972_v13 = vadd.f32 %v8971_v7, %v15115_v50  ;;  %v11185_v42 = vpop.eup %11184 }
 0xc20   : > { %11190 = vpow2.f32 %v9116_v21  ;;  %v15235_v8 = vadd.f32 %v15065_v29, %v8438_v5  ;;  %v8664_v10 = vmul.f32 %v11185_v42, %v15201_v18  ;;  %v8176_v5 = vpop.f32.mrf.mxu3 }
 0xc21   : > { %11192 = vrcp.f32 %v9178_v9  ;;  %v15239_v33 = vadd.f32 %v15210_v54, %v8972_v13 }
 0xc22   : > { %v8507_v22 = vsub.f32 0.0, %v15235_v8 }
 0xc23   : > { %v9084_v6 = vsub.f32 0.0, %v15239_v33 }
 0xc24   : > { %v11187_v32 = vpop.eup %11186  ;;  %v8562_v50 = vmul.f32 1.442695, %v8507_v22 }
 0xc25   : > { %v11189_v47 = vpop.eup %11188  ;;  %v9118_v59 = vmul.f32 1.442695, %v9084_v6  ;;  %v8395_v34 = vpop.f32.mrf.mxu1  ;;  %v8602_v62 = vadd.f32 1.0, %v11187_v32 }
 0xc26   : > { %v11191_v20 = vpop.eup %11190  ;;  %v8665_v4 = vmul.f32 %v11189_v47, %v8473_v35  ;;  %11194 = vpow2.f32 %v8562_v50  ;;  %v8439_v37 = vadd.f32 %v8395_v34, %v8213_v0  ;;  %v8973_v58 = vpop.f32.mrf.mxu2  ;;  %v7988_v35 = vadd.f32 %v15028_v26, %v15026_v48 }
 0xc27   : > { %v11193_v46 = vpop.eup %11192  ;;  %v9179_v12 = vadd.f32 1.0, %v11191_v20  ;;  %v8974_v36 = vadd.f32 %v8973_v58, %v15129_v38  ;;  %11196 = vpow2.f32 %v9118_v59 }
 0xc28   : > { %v8694_v43 = vpack.c.bf16 %v8665_v4, %v8664_v10  ;;  %v9242_v45 = vmul.f32 %v11193_v46, %v15215_v51  ;;  %v15250_v3 = vadd.f32 %v15065_v29, %v8439_v37  ;;  %v8214_v25 = vadd.f32 %v8171_v40, %v7988_v35 }
 0xc29   : > { %11198 = vrcp.f32 %v9179_v12  ;;  %v15253_v18 = vadd.f32 %v15210_v54, %v8974_v36 }
 0xc2a   : > { %9274 = vst.msk [vmem:[%s15259_s29] sm:$0xff] %vm919_vm1, %v9242_v45  ;;  %v8508_v38 = vsub.f32 0.0, %v15250_v3  ;;  %10205 = vmatmul.msk.bf16.gmra.mxu2 %vm919_vm1, %v8694_v43  ;;  %11200 = vrcp.f32 %v8602_v62 }
 0xc2b   : > { %v9085_v51 = vsub.f32 0.0, %v15253_v18 }
 0xc2c   : > { %v11195_v17 = vpop.eup %11194  ;;  %v8564_v24 = vmul.f32 1.442695, %v8508_v38 }
 0xc2d   : > { %v8603_v23 = vadd.f32 1.0, %v11195_v17  ;;  %v9120_v39 = vmul.f32 1.442695, %v9085_v51  ;;  %v8397_v48 = vpop.f32.mrf.mxu1  ;;  %v11197_v26 = vpop.eup %11196 }
 0xc2e   : > { %11202 = vpow2.f32 %v8564_v24  ;;  %v8440_v63 = vadd.f32 %v8397_v48, %v8214_v25  ;;  %v8976_v41 = vpop.f32.mrf.mxu2  ;;  %v9180_v21 = vadd.f32 1.0, %v11197_v26 }
 0xc2f   : > { %v11199_v55 = vpop.eup %11198  ;;  %11204 = vrcp.f32 %v8603_v23  ;;  %v8977_v16 = vadd.f32 %v8976_v41, %v15144_v14  ;;  %v8215_v14 = vadd.f32 %v8174_v28, %v15035_v44 }
 0xc30   : > { %v9243_v11 = vmul.f32 %v11199_v55, %v15224_v53  ;;  %11206 = vpow2.f32 %v9120_v39  ;;  %v15269_v40 = vadd.f32 %v15065_v29, %v8440_v63  ;;  %v11201_v13 = vpop.eup %11200  ;;  %v15279_v53 = vpop.f32.mrf.mxu0 }
 0xc31   : > { %11208 = vrcp.f32 %v9180_v21  ;;  %v15272_v7 = vadd.f32 %v15210_v54, %v8977_v16  ;;  %v8666_v59 = vmul.f32 %v11201_v13, %v15221_v61 }
 0xc32   : > { %9275 = vst.msk [vmem:[%s15259_s29 + $0x8] sm:$0xff] %vm919_vm1, %v9243_v11  ;;  %v8509_v9 = vsub.f32 0.0, %v15269_v40 }
 0xc33   : > { %v9086_v22 = vsub.f32 0.0, %v15272_v7 }
 0xc34   : > { %v11203_v42 = vpop.eup %11202  ;;  %v8566_v6 = vmul.f32 1.442695, %v8509_v9 }
 0xc35   : > { %v11205_v32 = vpop.eup %11204  ;;  %v9122_v0 = vmul.f32 1.442695, %v9086_v22  ;;  %v8400_v50 = vpop.f32.mrf.mxu1  ;;  %v8604_v12 = vadd.f32 1.0, %v11203_v42 }
 0xc36   : > { %v11207_v47 = vpop.eup %11206  ;;  %v8667_v34 = vmul.f32 %v11205_v32, %v15235_v8  ;;  %11210 = vpow2.f32 %v8566_v6  ;;  %v8441_v20 = vadd.f32 %v8400_v50, %v8215_v14  ;;  %v8978_v10 = vpop.f32.mrf.mxu2  ;;  %v7990_v8 = vadd.f32 %v15040_v56, %v15038_v15 }
 0xc37   : > { %v11209_v4 = vpop.eup %11208  ;;  %v9181_v37 = vadd.f32 1.0, %v11207_v47  ;;  %v8979_v58 = vadd.f32 %v8978_v10, %v15154_v31  ;;  %11212 = vpow2.f32 %v9122_v0  ;;  %v8179_v31 = vpop.f32.mrf.mxu3 }
 0xc38   : > { %v8695_v44 = vpack.c.bf16 %v8667_v34, %v8666_v59  ;;  %v9244_v46 = vmul.f32 %v11209_v4, %v15239_v33  ;;  %v15286_v28 = vadd.f32 %v15065_v29, %v8441_v20  ;;  %v8216_v45 = vadd.f32 %v8176_v5, %v7990_v8  ;;  %v15298_v25 = vpop.f32.mrf.mxu0 }
 0xc39   : > { %11214 = vrcp.f32 %v9181_v37  ;;  %v15289_v61 = vadd.f32 %v15210_v54, %v8979_v58 }
 0xc3a   : > { %9276 = vst.msk [vmem:[%s15259_s29 + $0x10] sm:$0xff] %vm919_vm1, %v9244_v46  ;;  %v8510_v36 = vsub.f32 0.0, %v15286_v28  ;;  %10206 = vmatmul.msk.bf16.gmra.mxu2 %vm919_vm1, %v8695_v44  ;;  %11216 = vrcp.f32 %v8604_v12 }
 0xc3b   : > { %v9087_v33 = vsub.f32 0.0, %v15289_v61 }
 0xc3c   : > { %v11211_v43 = vpop.eup %11210  ;;  %v8568_v62 = vmul.f32 1.442695, %v8510_v36 }
 0xc3d   : > { %v8605_v35 = vadd.f32 1.0, %v11211_v43  ;;  %v9124_v38 = vmul.f32 1.442695, %v9087_v33  ;;  %v8402_v51 = vpop.f32.mrf.mxu1  ;;  %v11213_v17 = vpop.eup %11212 }
 0xc3e   : > { %11218 = vpow2.f32 %v8568_v62  ;;  %v8442_v15 = vadd.f32 %v8402_v51, %v8216_v45  ;;  %v8981_v56 = vpop.f32.mrf.mxu2  ;;  %v9182_v23 = vadd.f32 1.0, %v11213_v17 }
 0xc3f   : > { %v11215_v24 = vpop.eup %11214  ;;  %11220 = vrcp.f32 %v8605_v35  ;;  %v8982_v39 = vadd.f32 %v8981_v56, %v15167_v30  ;;  %v8217_v30 = vadd.f32 %v8179_v31, %v15046_v49  ;;  %v8181_v5 = vpop.f32.mrf.mxu3 }
 0xc40   : > { %v9245_v48 = vmul.f32 %v11215_v24, %v15253_v18  ;;  %11222 = vpow2.f32 %v9124_v38  ;;  %v15303_v26 = vadd.f32 %v15065_v29, %v8442_v15  ;;  %v11217_v55 = vpop.eup %11216  ;;  %v15316_v47 = vpop.f32.mrf.mxu0 }
 0xc41   : > { %11224 = vrcp.f32 %v9182_v23  ;;  %v15306_v63 = vadd.f32 %v15210_v54, %v8982_v39  ;;  %v8668_v22 = vmul.f32 %v11217_v55, %v15250_v3  ;;  %v15322_v3 = vld [vmem:[%s15499_s6 + $0x2] ss:$0 sm:$0xff] }
 0xc42   : > { %9277 = vst.msk [vmem:[%s15259_s29 + $0x18] sm:$0xff] %vm919_vm1, %v9245_v48  ;;  %v8511_v41 = vsub.f32 0.0, %v15303_v26 }
 0xc43   : > { %v9088_v21 = vsub.f32 0.0, %v15306_v63 }
 0xc44   : > { %v11219_v16 = vpop.eup %11218  ;;  %v8570_v11 = vmul.f32 1.442695, %v8511_v41 }
 0xc45   : > { %v11221_v18 = vpop.eup %11220  ;;  %v9126_v9 = vmul.f32 1.442695, %v9088_v21  ;;  %v8405_v29 = vpop.f32.mrf.mxu1  ;;  %v8606_v34 = vadd.f32 1.0, %v11219_v16 }
 0xc46   : > { %v11223_v13 = vpop.eup %11222  ;;  %v8669_v42 = vmul.f32 %v11221_v18, %v15269_v40  ;;  %11226 = vpow2.f32 %v8570_v11  ;;  %v8443_v14 = vadd.f32 %v8405_v29, %v8217_v30  ;;  %v8983_v6 = vpop.f32.mrf.mxu2 }
 0xc47   : > { %v11225_v32 = vpop.eup %11224  ;;  %v9183_v0 = vadd.f32 1.0, %v11223_v13  ;;  %v8984_v50 = vadd.f32 %v8983_v6, %v15173_v52  ;;  %11228 = vpow2.f32 %v9126_v9  ;;  %v7992_v52 = vadd.f32 %v15051_v1, %v15049_v2  ;;  %v8184_v31 = vpop.f32.mrf.mxu3 }
 0xc48   : > { %v8696_v49 = vpack.c.bf16 %v8669_v42, %v8668_v22  ;;  %v9246_v59 = vmul.f32 %v11225_v32, %v15272_v7  ;;  %v15325_v40 = vadd.f32 %v15322_v3, %v8443_v14  ;;  %v15345_v38 = vpop.f32.mrf.mxu0 }
 0xc49   : > { %11230 = vrcp.f32 %v9183_v0  ;;  %v15328_v20 = vadd.f32 %v15210_v54, %v8984_v50  ;;  %v8218_v37 = vadd.f32 %v8181_v5, %v7992_v52 }
 0xc4a   : > { %9278 = vst.msk [vmem:[%s15259_s29 + $0x20] sm:$0xff] %vm919_vm1, %v9246_v59  ;;  %v8512_v7 = vsub.f32 0.0, %v15325_v40  ;;  %10207 = vmatmul.msk.bf16.gmra.mxu2 %vm919_vm1, %v8696_v49  ;;  %11232 = vrcp.f32 %v8606_v34 }
 0xc4b   : > { %v9089_v10 = vsub.f32 0.0, %v15328_v20 }
 0xc4c   : > { %v11227_v4 = vpop.eup %11226  ;;  %v8572_v58 = vmul.f32 1.442695, %v8512_v7 }
 0xc4d   : > { %v8607_v44 = vadd.f32 1.0, %v11227_v4  ;;  %v9128_v46 = vmul.f32 1.442695, %v9089_v10  ;;  %v8407_v12 = vpop.f32.mrf.mxu1  ;;  %v11229_v8 = vpop.eup %11228 }
 0xc4e   : > { %11234 = vpow2.f32 %v8572_v58  ;;  %v8444_v36 = vadd.f32 %v8407_v12, %v8218_v37  ;;  %v8986_v2 = vpop.f32.mrf.mxu2  ;;  %v9184_v33 = vadd.f32 1.0, %v11229_v8 }
 0xc4f   : > { %v11231_v1 = vpop.eup %11230  ;;  %11236 = vrcp.f32 %v8607_v44  ;;  %v8987_v43 = vadd.f32 %v8986_v2, %v15232_v57  ;;  %v8186_v29 = vpop.f32.mrf.mxu3 }
 0xc50   : > { %v9247_v45 = vmul.f32 %v11231_v1, %v15289_v61  ;;  %11238 = vpow2.f32 %v9128_v46  ;;  %v15340_v62 = vadd.f32 %v15322_v3, %v8444_v36  ;;  %v11233_v17 = vpop.eup %11232  ;;  %v8219_v61 = vadd.f32 %v8184_v31, %v15057_v19  ;;  %v15369_v6 = vpop.f32.mrf.mxu0 }
 0xc51   : > { %11240 = vrcp.f32 %v9184_v33  ;;  %v15343_v35 = vadd.f32 %v15210_v54, %v8987_v43  ;;  %v8670_v41 = vmul.f32 %v11233_v17, %v15286_v28 }
 0xc52   : > { %9279 = vst.msk [vmem:[%s15259_s29 + $0x28] sm:$0xff] %vm919_vm1, %v9247_v45  ;;  %v8513_v51 = vsub.f32 0.0, %v15340_v62 }
 0xc53   : > { %v9090_v15 = vsub.f32 0.0, %v15343_v35 }
 0xc54   : > { %v11235_v57 = vpop.eup %11234  ;;  %v8574_v56 = vmul.f32 1.442695, %v8513_v51 }
 0xc55   : > { %v11237_v24 = vpop.eup %11236  ;;  %v9130_v23 = vmul.f32 1.442695, %v9090_v15  ;;  %v8410_v39 = vpop.f32.mrf.mxu1  ;;  %v8608_v13 = vadd.f32 1.0, %v11235_v57 }
 0xc56   : > { %v11239_v48 = vpop.eup %11238  ;;  %v8671_v55 = vmul.f32 %v11237_v24, %v15303_v26  ;;  %11242 = vpow2.f32 %v8574_v56  ;;  %v8445_v21 = vadd.f32 %v8410_v39, %v8219_v61  ;;  %v8988_v16 = vpop.f32.mrf.mxu2  ;;  %v15794_v26 = vld [vmem:[#allocation84_spill] sm:$0xff] }
 0xc57   : > { %v11241_v30 = vpop.eup %11240  ;;  %v9185_v11 = vadd.f32 1.0, %v11239_v48  ;;  %v8989_v18 = vadd.f32 %v8988_v16, %v15257_v60  ;;  %11244 = vpow2.f32 %v9130_v23  ;;  %v7994_v22 = vadd.f32 %v15198_v27, %v15794_v26 }
 0xc58   : > { %v8697_v5 = vpack.c.bf16 %v8671_v55, %v8670_v41  ;;  %v9248_v19 = vmul.f32 %v11241_v30, %v15306_v63  ;;  %v15357_v9 = vadd.f32 %v15322_v3, %v8445_v21 }
 0xc59   : > { %11246 = vrcp.f32 %v9185_v11  ;;  %v15360_v28 = vadd.f32 %v15210_v54, %v8989_v18  ;;  %v8220_v14 = vadd.f32 %v8186_v29, %v7994_v22 }
 0xc5a   : > { %9280 = vst.msk [vmem:[%s15259_s29 + $0x30] sm:$0xff] %vm919_vm1, %v9248_v19  ;;  %v8514_v60 = vsub.f32 0.0, %v15357_v9  ;;  %10208 = vmatmul.msk.bf16.gmra.mxu2 %vm919_vm1, %v8697_v5  ;;  %11248 = vrcp.f32 %v8608_v13 }
 0xc5b   : > { %v9091_v63 = vsub.f32 0.0, %v15360_v28 }
 0xc5c   : > { %v11243_v42 = vpop.eup %11242  ;;  %v8576_v32 = vmul.f32 1.442695, %v8514_v60 }
 0xc5d   : > { %v8609_v0 = vadd.f32 1.0, %v11243_v42  ;;  %v9132_v50 = vmul.f32 1.442695, %v9091_v63  ;;  %v8412_v49 = vpop.f32.mrf.mxu1  ;;  %v11245_v59 = vpop.eup %11244 }
 0xc5e   : > { %11250 = vpow2.f32 %v8576_v32  ;;  %v8446_v27 = vadd.f32 %v8412_v49, %v8220_v14  ;;  %v8991_v34 = vpop.f32.mrf.mxu2  ;;  %v9186_v7 = vadd.f32 1.0, %v11245_v59 }
 0xc5f   : > { %v11247_v52 = vpop.eup %11246  ;;  %11252 = vrcp.f32 %v8609_v0  ;;  %v8992_v10 = vadd.f32 %v8991_v34, %v15279_v53  ;;  %v15377_v53 = vpop.f32.mrf.mxu0 }
 0xc60   : > { %v9249_v4 = vmul.f32 %v11247_v52, %v15328_v20  ;;  %11254 = vpow2.f32 %v9132_v50  ;;  %v8483_v37 = vadd.f32 %v15322_v3, %v8446_v27  ;;  %v11249_v46 = vpop.eup %11248 }
 0xc61   : > { %11256 = vrcp.f32 %v9186_v7  ;;  %v9060_v58 = vadd.f32 %v15210_v54, %v8992_v10  ;;  %v8672_v20 = vmul.f32 %v11249_v46, %v15325_v40 }
 0xc62   : > { %9281 = vst.msk [vmem:[%s15259_s29 + $0x38] sm:$0xff] %vm919_vm1, %v9249_v4  ;;  %v8515_v44 = vsub.f32 0.0, %v8483_v37 }
 0xc63   : > { %v9092_v12 = vsub.f32 0.0, %v9060_v58 }
 0xc64   : > { %v11251_v8 = vpop.eup %11250  ;;  %v8578_v36 = vmul.f32 1.442695, %v8515_v44 }
 0xc65   : > { %v11253_v2 = vpop.eup %11252  ;;  %v9134_v1 = vmul.f32 1.442695, %v9092_v12  ;;  %v8610_v57 = vadd.f32 1.0, %v11251_v8 }
 0xc66   : > { %v11255_v31 = vpop.eup %11254  ;;  %v8673_v3 = vmul.f32 %v11253_v2, %v15340_v62  ;;  %11258 = vpow2.f32 %v8578_v36  ;;  %v8993_v33 = vpop.f32.mrf.mxu2 }
 0xc67   : > { %v11257_v43 = vpop.eup %11256  ;;  %v9187_v45 = vadd.f32 1.0, %v11255_v31  ;;  %v8994_v51 = vadd.f32 %v8993_v33, %v15298_v25  ;;  %11260 = vpow2.f32 %v9134_v1  ;;  %v8857_v41 = vpop.f32.mrf.mxu0 }
 0xc68   : > { %v8698_v17 = vpack.c.bf16 %v8673_v3, %v8672_v20  ;;  %v9250_v15 = vmul.f32 %v11257_v43, %v15343_v35 }
 0xc69   : > { %11262 = vrcp.f32 %v9187_v45  ;;  %v9061_v61 = vadd.f32 %v15210_v54, %v8994_v51 }
 0xc6a   : > { %9282 = vst.msk [vmem:[%s15259_s29 + $0x40] sm:$0xff] %vm919_vm1, %v9250_v15  ;;  %10209 = vmatmul.msk.bf16.gmra.mxu2 %vm919_vm1, %v8698_v17  ;;  %11264 = vrcp.f32 %v8610_v57 }
 0xc6b   : > { %v9093_v40 = vsub.f32 0.0, %v9061_v61 }
 0xc6c   : > { %v11259_v62 = vpop.eup %11258 }
 0xc6d   : > { %v8611_v56 = vadd.f32 1.0, %v11259_v62  ;;  %v9136_v24 = vmul.f32 1.442695, %v9093_v40  ;;  %v11261_v23 = vpop.eup %11260 }
 0xc6e   : > { %v8996_v25 = vpop.f32.mrf.mxu2  ;;  %v9188_v35 = vadd.f32 1.0, %v11261_v23 }
 0xc6f   : > { %v11263_v39 = vpop.eup %11262  ;;  %11266 = vrcp.f32 %v8611_v56  ;;  %v8997_v48 = vadd.f32 %v8996_v25, %v15316_v47  ;;  %v8859_v42 = vpop.f32.mrf.mxu0 }
 0xc70   : > { %v9251_v55 = vmul.f32 %v11263_v39, %v15360_v28  ;;  %11268 = vpow2.f32 %v9136_v24  ;;  %v11265_v16 = vpop.eup %11264 }
 0xc71   : > { %11270 = vrcp.f32 %v9188_v35  ;;  %v9062_v21 = vadd.f32 %v15210_v54, %v8997_v48  ;;  %v8674_v19 = vmul.f32 %v11265_v16, %v15357_v9 }
 0xc72   : > { %9283 = vst.msk [vmem:[%s15259_s29 + $0x48] sm:$0xff] %vm919_vm1, %v9251_v55 }
 0xc73   : > { %v9094_v30 = vsub.f32 0.0, %v9062_v21 }
 0xc75   : > { %v11267_v11 = vpop.eup %11266  ;;  %v9138_v18 = vmul.f32 1.442695, %v9094_v30 }
 0xc76   : > { %v11269_v5 = vpop.eup %11268  ;;  %v8675_v29 = vmul.f32 %v11267_v11, %v8483_v37  ;;  %v8998_v13 = vpop.f32.mrf.mxu2 }
 0xc77   : > { %v11271_v47 = vpop.eup %11270  ;;  %v9189_v26 = vadd.f32 1.0, %v11269_v5  ;;  %11272 = vpow2.f32 %v9138_v18  ;;  %v8999_v28 = vadd.f32 %v8998_v13, %v15345_v38  ;;  %v8862_v52 = vpop.f32.mrf.mxu0 }
 0xc78   : > { %v8699_v22 = vpack.c.bf16 %v8675_v29, %v8674_v19  ;;  %v9252_v60 = vmul.f32 %v11271_v47, %v9060_v58 }
 0xc79   : > { %11274 = vrcp.f32 %v9189_v26  ;;  %v9063_v63 = vadd.f32 %v15210_v54, %v8999_v28 }
 0xc7a   : > { %9284 = vst.msk [vmem:[%s15259_s29 + $0x50] sm:$0xff] %vm919_vm1, %v9252_v60  ;;  %10210 = vmatmul.msk.bf16.gmra.mxu2 %vm919_vm1, %v8699_v22 }
 0xc7b   : > { %v9095_v14 = vsub.f32 0.0, %v9063_v63 }
 0xc7d   : > { %v11273_v9 = vpop.eup %11272  ;;  %v9140_v32 = vmul.f32 1.442695, %v9095_v14 }
 0xc7e   : > { %v9190_v0 = vadd.f32 1.0, %v11273_v9  ;;  %v9001_v50 = vpop.f32.mrf.mxu2 }
 0xc7f   : > { %v11275_v49 = vpop.eup %11274  ;;  %11276 = vpow2.f32 %v9140_v32  ;;  %v9002_v38 = vadd.f32 %v9001_v50, %v15369_v6  ;;  %v8864_v1 = vpop.f32.mrf.mxu0 }
 0xc80   : > { %v9253_v59 = vmul.f32 %v11275_v49, %v9061_v61  ;;  %11278 = vrcp.f32 %v9190_v0 }
 0xc81   : > { %v9064_v27 = vadd.f32 %v15210_v54, %v9002_v38 }
 0xc82   : > { %9285 = vst.msk [vmem:[%s15259_s29 + $0x58] sm:$0xff] %vm919_vm1, %v9253_v59 }
 0xc83   : > { %v9096_v34 = vsub.f32 0.0, %v9064_v27 }
 0xc85   : > { %v11277_v7 = vpop.eup %11276  ;;  %v9142_v10 = vmul.f32 1.442695, %v9096_v34 }
 0xc86   : > { %v11279_v4 = vpop.eup %11278  ;;  %v9191_v37 = vadd.f32 1.0, %v11277_v7  ;;  %v9003_v58 = vpop.f32.mrf.mxu2 }
 0xc87   : > { %v9254_v44 = vmul.f32 %v11279_v4, %v9062_v21  ;;  %11280 = vpow2.f32 %v9142_v10  ;;  %v9004_v46 = vadd.f32 %v9003_v58, %v15377_v53  ;;  %v8867_v62 = vpop.f32.mrf.mxu0 }
 0xc88   : > { %11282 = vrcp.f32 %v9191_v37 }
 0xc89   : > { %9286 = vst.msk [vmem:[%s15259_s29 + $0x60] sm:$0xff] %vm919_vm1, %v9254_v44  ;;  %v9065_v6 = vadd.f32 %v15210_v54, %v9004_v46 }
 0xc8b   : > { %v9097_v12 = vsub.f32 0.0, %v9065_v6 }
 0xc8d   : > { %v11281_v8 = vpop.eup %11280  ;;  %v9144_v36 = vmul.f32 1.442695, %v9097_v12 }
 0xc8e   : > { %v11283_v2 = vpop.eup %11282  ;;  %v9192_v31 = vadd.f32 1.0, %v11281_v8  ;;  %v9006_v20 = vpop.f32.mrf.mxu2 }
 0xc8f   : > { %v9255_v3 = vmul.f32 %v11283_v2, %v9063_v63  ;;  %11284 = vpow2.f32 %v9144_v36  ;;  %v9007_v33 = vadd.f32 %v9006_v20, %v8857_v41  ;;  %v8869_v16 = vpop.f32.mrf.mxu0 }
 0xc90   : > { %11286 = vrcp.f32 %v9192_v31 }
 0xc91   : > { %9287 = vst.msk [vmem:[%s15259_s29 + $0x68] sm:$0xff] %vm919_vm1, %v9255_v3  ;;  %v9066_v53 = vadd.f32 %v15210_v54, %v9007_v33 }
 0xc93   : > { %v9098_v43 = vsub.f32 0.0, %v9066_v53 }
 0xc95   : > { %v11285_v45 = vpop.eup %11284  ;;  %v9146_v51 = vmul.f32 1.442695, %v9098_v43 }
 0xc96   : > { %v11287_v17 = vpop.eup %11286  ;;  %v9193_v15 = vadd.f32 1.0, %v11285_v45  ;;  %v9008_v57 = vpop.f32.mrf.mxu2 }
 0xc97   : > { %v9256_v61 = vmul.f32 %v11287_v17, %v9064_v27  ;;  %11288 = vpow2.f32 %v9146_v51  ;;  %v9009_v40 = vadd.f32 %v9008_v57, %v8859_v42  ;;  %v8872_v22 = vpop.f32.mrf.mxu0 }
 0xc98   : > { %11290 = vrcp.f32 %v9193_v15 }
 0xc99   : > { %9288 = vst.msk [vmem:[%s15259_s29 + $0x70] sm:$0xff] %vm919_vm1, %v9256_v61  ;;  %v9067_v56 = vadd.f32 %v15210_v54, %v9009_v40 }
 0xc9b   : > { %v9099_v24 = vsub.f32 0.0, %v9067_v56 }
 0xc9d   : > { %v11289_v23 = vpop.eup %11288  ;;  %v9148_v25 = vmul.f32 1.442695, %v9099_v24 }
 0xc9e   : > { %v11291_v39 = vpop.eup %11290  ;;  %v9194_v35 = vadd.f32 1.0, %v11289_v23  ;;  %v9011_v48 = vpop.f32.mrf.mxu2 }
 0xc9f   : > { %v9257_v41 = vmul.f32 %v11291_v39, %v9065_v6  ;;  %11292 = vpow2.f32 %v9148_v25  ;;  %v9012_v55 = vadd.f32 %v9011_v48, %v8862_v52  ;;  %v8874_v34 = vpop.f32.mrf.mxu0 }
 0xca0   : > { %11294 = vrcp.f32 %v9194_v35 }
 0xca1   : > { %9289 = vst.msk [vmem:[%s15259_s29 + $0x78] sm:$0xff] %vm919_vm1, %v9257_v41  ;;  %v9068_v21 = vadd.f32 %v15210_v54, %v9012_v55 }
 0xca3   : > { %v9100_v30 = vsub.f32 0.0, %v9068_v21 }
 0xca5   : > { %v11293_v11 = vpop.eup %11292  ;;  %v9150_v18 = vmul.f32 1.442695, %v9100_v30 }
 0xca6   : > { %v11295_v5 = vpop.eup %11294  ;;  %v9195_v19 = vadd.f32 1.0, %v11293_v11  ;;  %v9013_v29 = vpop.f32.mrf.mxu2 }
 0xca7   : > { %v9258_v13 = vmul.f32 %v11295_v5, %v9066_v53  ;;  %11296 = vpow2.f32 %v9150_v18  ;;  %v9014_v47 = vadd.f32 %v9013_v29, %v8864_v1  ;;  %v8877_v1 = vpop.f32.mrf.mxu0 }
 0xca8   : > { %11298 = vrcp.f32 %v9195_v19 }
 0xca9   : > { %9290 = vst.msk [vmem:[%s15259_s29 + $0x80] sm:$0xff] %vm919_vm1, %v9258_v13  ;;  %v9069_v26 = vadd.f32 %v15210_v54, %v9014_v47 }
 0xcab   : > { %v9101_v28 = vsub.f32 0.0, %v9069_v26 }
 0xcad   : > { %v11297_v60 = vpop.eup %11296  ;;  %v9152_v63 = vmul.f32 1.442695, %v9101_v28 }
 0xcae   : > { %v11299_v42 = vpop.eup %11298  ;;  %v9196_v14 = vadd.f32 1.0, %v11297_v60  ;;  %v9016_v9 = vpop.f32.mrf.mxu2 }
 0xcaf   : > { %v9259_v32 = vmul.f32 %v11299_v42, %v9067_v56  ;;  %11300 = vpow2.f32 %v9152_v63  ;;  %v9017_v0 = vadd.f32 %v9016_v9, %v8867_v62  ;;  %v8879_v57 = vpop.f32.mrf.mxu0 }
 0xcb0   : > { %11302 = vrcp.f32 %v9196_v14 }
 0xcb1   : > { %9291 = vst.msk [vmem:[%s15259_s29 + $0x88] sm:$0xff] %vm919_vm1, %v9259_v32  ;;  %v9070_v50 = vadd.f32 %v15210_v54, %v9017_v0 }
 0xcb3   : > { %v9102_v49 = vsub.f32 0.0, %v9070_v50 }
 0xcb5   : > { %v11301_v38 = vpop.eup %11300  ;;  %v9154_v59 = vmul.f32 1.442695, %v9102_v49 }
 0xcb6   : > { %v11303_v27 = vpop.eup %11302  ;;  %v9197_v52 = vadd.f32 1.0, %v11301_v38  ;;  %v9018_v7 = vpop.f32.mrf.mxu2 }
 0xcb7   : > { %v9260_v10 = vmul.f32 %v11303_v27, %v9068_v21  ;;  %11304 = vpow2.f32 %v9154_v59  ;;  %v9019_v4 = vadd.f32 %v9018_v7, %v8869_v16  ;;  %v8882_v41 = vpop.f32.mrf.mxu0 }
 0xcb8   : > { %11306 = vrcp.f32 %v9197_v52 }
 0xcb9   : > { %9292 = vst.msk [vmem:[%s15259_s29 + $0x90] sm:$0xff] %vm919_vm1, %v9260_v10  ;;  %v9071_v37 = vadd.f32 %v15210_v54, %v9019_v4 }
 0xcbb   : > { %v9103_v58 = vsub.f32 0.0, %v9071_v37 }
 0xcbd   : > { %v11305_v44 = vpop.eup %11304  ;;  %v9156_v46 = vmul.f32 1.442695, %v9103_v58 }
 0xcbe   : > { %v11307_v6 = vpop.eup %11306  ;;  %v9198_v12 = vadd.f32 1.0, %v11305_v44  ;;  %v9021_v8 = vpop.f32.mrf.mxu2 }
 0xcbf   : > { %v9261_v36 = vmul.f32 %v11307_v6, %v9069_v26  ;;  %11308 = vpow2.f32 %v9156_v46  ;;  %v9022_v2 = vadd.f32 %v9021_v8, %v8872_v22  ;;  %v8884_v28 = vpop.f32.mrf.mxu0 }
 0xcc0   : > { %11310 = vrcp.f32 %v9198_v12  ;;  %v11360_v12 = vld [vmem:[%s15501_s8] ss:$0 sm:$0xff] }
 0xcc1   : > { %9293 = vst.msk [vmem:[%s15259_s29 + $0x98] sm:$0xff] %vm919_vm1, %v9261_v36  ;;  %v9072_v31 = vadd.f32 %v15210_v54, %v9022_v2 }
 0xcc3   : > { %v9104_v20 = vsub.f32 0.0, %v9072_v31 }
 0xcc5   : > { %v11309_v3 = vpop.eup %11308  ;;  %v9158_v33 = vmul.f32 1.442695, %v9104_v20 }
 0xcc6   : > { %v11311_v53 = vpop.eup %11310  ;;  %v9199_v43 = vadd.f32 1.0, %v11309_v3  ;;  %v9023_v45 = vpop.f32.mrf.mxu2 }
 0xcc7   : > { %v9262_v51 = vmul.f32 %v11311_v53, %v9070_v50  ;;  %11312 = vpow2.f32 %v9158_v33  ;;  %v9024_v17 = vadd.f32 %v9023_v45, %v8874_v34  ;;  %v8887_v34 = vpop.f32.mrf.mxu0 }
 0xcc8   : > { %11314 = vrcp.f32 %v9199_v43 }
 0xcc9   : > { %9294 = vst.msk [vmem:[%s15259_s29 + $0xa0] sm:$0xff] %vm919_vm1, %v9262_v51  ;;  %v9073_v15 = vadd.f32 %v15210_v54, %v9024_v17 }
 0xccb   : > { %v9105_v61 = vsub.f32 0.0, %v9073_v15 }
 0xccd   : > { %v11313_v40 = vpop.eup %11312  ;;  %v9160_v62 = vmul.f32 1.442695, %v9105_v61 }
 0xcce   : > { %v11315_v56 = vpop.eup %11314  ;;  %v9200_v24 = vadd.f32 1.0, %v11313_v40  ;;  %v9026_v23 = vpop.f32.mrf.mxu2 }
 0xccf   : > { %v9263_v25 = vmul.f32 %v11315_v56, %v9071_v37  ;;  %11316 = vpow2.f32 %v9160_v62  ;;  %v9027_v39 = vadd.f32 %v9026_v23, %v8877_v1  ;;  %v8889_v36 = vpop.f32.mrf.mxu0 }
 0xcd0   : > { %11318 = vrcp.f32 %v9200_v24 }
 0xcd1   : > { %9295 = vst.msk [vmem:[%s15259_s29 + $0xa8] sm:$0xff] %vm919_vm1, %v9263_v25  ;;  %v9074_v35 = vadd.f32 %v15210_v54, %v9027_v39 }
 0xcd3   : > { %v9106_v48 = vsub.f32 0.0, %v9074_v35 }
 0xcd5   : > { %v11317_v55 = vpop.eup %11316  ;;  %v9162_v21 = vmul.f32 1.442695, %v9106_v48 }
 0xcd6   : > { %v11319_v16 = vpop.eup %11318  ;;  %v9201_v30 = vadd.f32 1.0, %v11317_v55  ;;  %v9028_v11 = vpop.f32.mrf.mxu2 }
 0xcd7   : > { %v9264_v18 = vmul.f32 %v11319_v16, %v9072_v31  ;;  %11320 = vpow2.f32 %v9162_v21  ;;  %v9029_v5 = vadd.f32 %v9028_v11, %v8879_v57  ;;  %v8892_v51 = vpop.f32.mrf.mxu0 }
 0xcd8   : > { %11322 = vrcp.f32 %v9201_v30 }
 0xcd9   : > { %9296 = vst.msk [vmem:[%s15259_s29 + $0xb0] sm:$0xff] %vm919_vm1, %v9264_v18  ;;  %v9075_v19 = vadd.f32 %v15210_v54, %v9029_v5 }
 0xcdb   : > { %v9107_v29 = vsub.f32 0.0, %v9075_v19 }
 0xcdd   : > { %v11321_v13 = vpop.eup %11320  ;;  %v9164_v47 = vmul.f32 1.442695, %v9107_v29 }
 0xcde   : > { %v11323_v26 = vpop.eup %11322  ;;  %v9202_v22 = vadd.f32 1.0, %v11321_v13  ;;  %v9031_v60 = vpop.f32.mrf.mxu2 }
 0xcdf   : > { %v9265_v63 = vmul.f32 %v11323_v26, %v9073_v15  ;;  %11324 = vpow2.f32 %v9164_v47  ;;  %v9032_v42 = vadd.f32 %v9031_v60, %v8882_v41  ;;  %v8894_v48 = vpop.f32.mrf.mxu0 }
 0xce0   : > { %11326 = vrcp.f32 %v9202_v22 }
 0xce1   : > { %9297 = vst.msk [vmem:[%s15259_s29 + $0xb8] sm:$0xff] %vm919_vm1, %v9265_v63  ;;  %v9076_v14 = vadd.f32 %v15210_v54, %v9032_v42 }
 0xce3   : > { %v9108_v9 = vsub.f32 0.0, %v9076_v14 }
 0xce5   : > { %v11325_v32 = vpop.eup %11324  ;;  %v9166_v0 = vmul.f32 1.442695, %v9108_v9 }
 0xce6   : > { %v11327_v50 = vpop.eup %11326  ;;  %v9203_v49 = vadd.f32 1.0, %v11325_v32  ;;  %v9033_v38 = vpop.f32.mrf.mxu2 }
 0xce7   : > { %v9266_v59 = vmul.f32 %v11327_v50, %v9074_v35  ;;  %11328 = vpow2.f32 %v9166_v0  ;;  %v9034_v27 = vadd.f32 %v9033_v38, %v8884_v28 }
 0xce8   : > { %11330 = vrcp.f32 %v9203_v49 }
 0xce9   : > { %9298 = vst.msk [vmem:[%s15259_s29 + $0xc0] sm:$0xff] %vm919_vm1, %v9266_v59  ;;  %v9077_v52 = vadd.f32 %v15210_v54, %v9034_v27 }
 0xceb   : > { %v9109_v7 = vsub.f32 0.0, %v9077_v52 }
 0xced   : > { %v11329_v10 = vpop.eup %11328  ;;  %v9168_v4 = vmul.f32 1.442695, %v9109_v7 }
 0xcee   : > { %v11331_v37 = vpop.eup %11330  ;;  %v9204_v58 = vadd.f32 1.0, %v11329_v10  ;;  %v9036_v44 = vpop.f32.mrf.mxu2 }
 0xcef   : > { %v9267_v46 = vmul.f32 %v11331_v37, %v9075_v19  ;;  %11332 = vpow2.f32 %v9168_v4  ;;  %v9037_v6 = vadd.f32 %v9036_v44, %v8887_v34 }
 0xcf0   : > { %11334 = vrcp.f32 %v9204_v58 }
 0xcf1   : > { %9299 = vst.msk [vmem:[%s15259_s29 + $0xc8] sm:$0xff] %vm919_vm1, %v9267_v46  ;;  %v9078_v8 = vadd.f32 %v11360_v12, %v9037_v6 }
 0xcf3   : > { %v9110_v54 = vsub.f32 0.0, %v9078_v8 }
 0xcf5   : > { %v11333_v2 = vpop.eup %11332  ;;  %v9170_v1 = vmul.f32 1.442695, %v9110_v54 }
 0xcf6   : > { %v11335_v31 = vpop.eup %11334  ;;  %v9205_v20 = vadd.f32 1.0, %v11333_v2  ;;  %v9038_v3 = vpop.f32.mrf.mxu2 }
 0xcf7   : > { %v9268_v33 = vmul.f32 %v11335_v31, %v9076_v14  ;;  %11336 = vpow2.f32 %v9170_v1  ;;  %v9039_v53 = vadd.f32 %v9038_v3, %v8889_v36 }
 0xcf8   : > { %11338 = vrcp.f32 %v9205_v20 }
 0xcf9   : > { %9300 = vst.msk [vmem:[%s15259_s29 + $0xd0] sm:$0xff] %vm919_vm1, %v9268_v33  ;;  %v9079_v43 = vadd.f32 %v11360_v12, %v9039_v53 }
 0xcfb   : > { %v9111_v45 = vsub.f32 0.0, %v9079_v43 }
 0xcfd   : > { %v11337_v17 = vpop.eup %11336  ;;  %v9172_v15 = vmul.f32 1.442695, %v9111_v45 }
 0xcfe   : > { %v11339_v57 = vpop.eup %11338  ;;  %v9206_v61 = vadd.f32 1.0, %v11337_v17  ;;  %v9041_v40 = vpop.f32.mrf.mxu2 }
 0xcff   : > { %v9269_v62 = vmul.f32 %v11339_v57, %v9077_v52  ;;  %11340 = vpow2.f32 %v9172_v15  ;;  %v9042_v56 = vadd.f32 %v9041_v40, %v8892_v51 }
 0xd00   : > { %11342 = vrcp.f32 %v9206_v61 }
 0xd01   : > { %9301 = vst.msk [vmem:[%s15259_s29 + $0xd8] sm:$0xff] %vm919_vm1, %v9269_v62  ;;  %v9080_v24 = vadd.f32 %v11360_v12, %v9042_v56 }
 0xd03   : > { %v9112_v23 = vsub.f32 0.0, %v9080_v24 }
 0xd05   : > { %v11341_v25 = vpop.eup %11340  ;;  %v9174_v39 = vmul.f32 1.442695, %v9112_v23 }
 0xd06   : > { %v11343_v35 = vpop.eup %11342  ;;  %v9207_v41 = vadd.f32 1.0, %v11341_v25  ;;  %v9043_v55 = vpop.f32.mrf.mxu2 }
 0xd07   : > { %v9270_v21 = vmul.f32 %v11343_v35, %v9078_v8  ;;  %11344 = vpow2.f32 %v9174_v39  ;;  %v9044_v16 = vadd.f32 %v9043_v55, %v8894_v48 }
 0xd08   : > { %11346 = vrcp.f32 %v9207_v41 }
 0xd09   : > { %9302 = vst.msk [vmem:[%s15259_s29 + $0xe0] sm:$0xff] %vm919_vm1, %v9270_v21  ;;  %v9081_v30 = vadd.f32 %v11360_v12, %v9044_v16 }
 0xd0b   : > { %v9113_v11 = vsub.f32 0.0, %v9081_v30 }
 0xd0d   : > { %v11345_v18 = vpop.eup %11344  ;;  %v9176_v5 = vmul.f32 1.442695, %v9113_v11 }
 0xd0e   : > { %v11347_v19 = vpop.eup %11346  ;;  %v9208_v29 = vadd.f32 1.0, %v11345_v18 }
 0xd0f   : > { %v9271_v13 = vmul.f32 %v11347_v19, %v9079_v43  ;;  %11348 = vpow2.f32 %v9176_v5 }
 0xd10   : > { %11350 = vrcp.f32 %v9208_v29 }
 0xd11   : > { %9303 = vst.msk [vmem:[%s15259_s29 + $0xe8] sm:$0xff] %vm919_vm1, %v9271_v13 }
 0xd15   : > { %v11349_v47 = vpop.eup %11348 }
 0xd16   : > { %v11351_v26 = vpop.eup %11350  ;;  %v9209_v28 = vadd.f32 1.0, %v11349_v47 }
 0xd17   : > { %v9272_v22 = vmul.f32 %v11351_v26, %v9080_v24 }
 0xd18   : > { %11352 = vrcp.f32 %v9209_v28 }
 0xd19   : > { %9304 = vst.msk [vmem:[%s15259_s29 + $0xf0] sm:$0xff] %vm919_vm1, %v9272_v22 }
 0xd1e   : > { %v11353_v60 = vpop.eup %11352 }
 0xd1f   : > { %v9273_v63 = vmul.f32 %v11353_v60, %v9081_v30 }
 0xd21   : > { %9305 = vst.msk [vmem:[%s15259_s29 + $0xf8] sm:$0xff] %vm919_vm1, %v9273_v63 }
 0xd22   : > { %11388 = shalt.err (!%p11385_p3)
}
 0xd23   : > { %s11427_s27 = smov 128   ;;  %s11428_s29 = smov 8  }
 0xd24   : > { %10279 = dma.vmem_to_hbm [thread:$0]  (%p11517_p5), %s9320_s26, 4096, %s9322_s28, %s9307_s13, %s11427_s27, %s11427_s27, %s11428_s29  }
 0xd25 PF: > { %p10285_p4 = scmp.ge.s32.totalorder %s11423_s12, 2  ;;  %s9336_s25 = sand.u32 1, %s11411_s30  }
 0xd26   : > { %s9337_s17 = scalar_lea.sflag [#allocation4], %s9336_s25 }
 0xd27   : > { %p10282_p7 = pnand %p10285_p4, %p11521_p6 }
 0xd29   : > { %p10283_p8 = pneg %p10282_p7 }
 0xd2b   : > { %11406 = dma.done.wait (%p10283_p8), %s9337_s17, 4096  }
 0xd2c   : > { %11408 = vsyncadd (%p10283_p8), %s9337_s17, 4294963200  ;;  %p19_p9 = scmp.ge.s32.totalorder %s11504_s15, 4   ;;  %s15795_s30 = smov %s11415_s10 }
 0xd2d   : > { %s15796_s10 = smov %s11419_s11  ;;  %s15797_s11 = smov %s11515_s18 }
 0xd2e   : > { %s15798_s12 = smov %s11504_s15  ;;  %21 = sbr.rel (!%p19_p9) target bundleno = 3 (0x3), region = 125 }
 0xd33   :  { %9343 = vsyncpa [#allocation4], 1 }
 0xd34   :  { %9345 = vsyncpa [#allocation4 + $0x1], 1 }

</bundles_post_ra>
